<compile_context>
chip_gen: v6e
topology: v6e:2x2x1
jax: 0.10.0
libtpu: 0.0.40
codegen_flags: <defaults>
</compile_context>

<pallas_src>
import jax
import jax.numpy as jnp
from jax import lax
from jax.experimental import pallas as pl
from jax.experimental.pallas import tpu as pltpu


K = 5            # conv kernel size
C1P = 32         # conv1 out channels padded 20 -> 32 (lane-sparse but 4x less HBM)
C2P = 128        # conv2 out channels padded 50 -> 128 (lane-dense stores)
FC1P = 512       # fc1 out padded 500 -> 512
FC2P = 128       # fc2 out padded 10 -> 128
_VMEM_LIMIT = 32 * 1024 * 1024   # safe on v5e/v6e (128MiB) and v7x (64MiB)


def _round_up(x, m):
    return ((x + m - 1) // m) * m


def _pad_axis(x, axis, n):
    pad = n - x.shape[axis]
    if pad <= 0:
        return x
    widths = [(0, 0)] * x.ndim
    widths[axis] = (0, pad)
    return jnp.pad(x, widths)


# ----------------------------------------------------------------------------
# Kernel 1: conv1 (matmul over pre-ordered patches) + bias + ReLU + maxpool(2)
# ----------------------------------------------------------------------------
def _conv1_pool_kernel(p_ref, w_ref, b_ref, o_ref):
    """p_ref: (TB, 4, 144, KP) bf16 patches, rows ordered (batch, 2x2-parity,
    pooled position).  w_ref: (KP, C1) bf16.  b_ref: (1, C1) f32.
    o_ref: (TB, 144, C1) bf16 (12x12 row-major pooled spatial)."""
    tb, npar, npos, kp = p_ref.shape
    c1 = o_ref.shape[-1]
    # merging leading dims is sublane-aligned (144 % 8 == 0) -> free relayout
    p = p_ref[...].reshape(tb * npar * npos, kp)
    y = jnp.dot(p, w_ref[...], preferred_element_type=jnp.float32) + b_ref[...]
    y = jnp.maximum(y, 0.0)
    y = y.reshape(tb, npar, npos, c1)
    # 2x2 max-pool == max over the 4 parity planes: major-dim slices only.
    pooled = jnp.maximum(jnp.maximum(y[:, 0], y[:, 1]),
                         jnp.maximum(y[:, 2], y[:, 3]))
    o_ref[...] = pooled.astype(o_ref.dtype)


def conv1_pool(patches, w1, b1, *, tb):
    B, npar, npos, kp = patches.shape
    c1 = w1.shape[1]
    flops = 2 * B * npar * npos * kp * c1
    bytes_accessed = (patches.size * 2 + w1.size * 2 + b1.size * 4
                      + B * npos * c1 * 2)
    return pl.pallas_call(
        _conv1_pool_kernel,
        out_shape=jax.ShapeDtypeStruct((B, npos, c1), jnp.bfloat16),
        grid=(pl.cdiv(B, tb),),
        in_specs=[
            pl.BlockSpec((tb, npar, npos, kp), lambda i: (i, 0, 0, 0)),
            pl.BlockSpec((kp, c1), lambda i: (0, 0)),
            pl.BlockSpec((1, c1), lambda i: (0, 0)),
        ],
        out_specs=pl.BlockSpec((tb, npos, c1), lambda i: (i, 0, 0)),
        compiler_params=pltpu.CompilerParams(
            dimension_semantics=("parallel",),
            vmem_limit_bytes=_VMEM_LIMIT),
        cost_estimate=pl.CostEstimate(
            flops=flops, transcendentals=0, bytes_accessed=bytes_accessed),
    )(patches, w1, b1)


# ----------------------------------------------------------------------------
# Kernel 2: conv2 with fused im2col (25-tap loop, K compacted to live channels)
# ----------------------------------------------------------------------------
def _conv2_kernel(x_ref, w_ref, b_ref, o_ref):
    """x_ref: (TB, 12, 12, C1) bf16 channels-last pool1 activations.
    w_ref: (25, C1, C2) bf16 per-tap weight slabs.  b_ref: (1, C2) f32.
    o_ref: (TB*64, C2) bf16 with row = (b*8 + oh)*8 + ow."""
    tb, h, w, c1 = x_ref.shape
    oh, ow = h - K + 1, w - K + 1
    rows = tb * oh * ow
    c2 = o_ref.shape[-1]
    acc = jnp.zeros((rows, c2), jnp.float32)
    for dh in range(K):
        for dw in range(K):
            # static shifted window -> (TB, 8, 8, C1); flatten is sublane-aligned
            xs = x_ref[:, dh:dh + oh, dw:dw + ow, :].reshape(rows, c1)
            acc = acc + jnp.dot(xs, w_ref[dh * K + dw],
                                preferred_element_type=jnp.float32)
    acc = jnp.maximum(acc + b_ref[...], 0.0)
    o_ref[...] = acc.astype(o_ref.dtype)


def conv2_relu(x, w2, b2, *, tb):
    B, h, w, c1 = x.shape
    oh, ow = h - K + 1, w - K + 1
    c2 = w2.shape[-1]
    flops = 2 * B * oh * ow * K * K * c1 * c2
    bytes_accessed = (x.size * 2 + w2.size * 2 + b2.size * 4
                      + B * oh * ow * c2 * 2)
    out = pl.pallas_call(
        _conv2_kernel,
        out_shape=jax.ShapeDtypeStruct((B * oh * ow, c2), jnp.bfloat16),
        grid=(pl.cdiv(B, tb),),
        in_specs=[
            pl.BlockSpec((tb, h, w, c1), lambda i: (i, 0, 0, 0)),
            pl.BlockSpec((K * K, c1, c2), lambda i: (0, 0, 0)),
            pl.BlockSpec((1, c2), lambda i: (0, 0)),
        ],
        out_specs=pl.BlockSpec((tb * oh * ow, c2), lambda i: (i, 0)),
        compiler_params=pltpu.CompilerParams(
            dimension_semantics=("parallel",),
            vmem_limit_bytes=_VMEM_LIMIT),
        cost_estimate=pl.CostEstimate(
            flops=flops, transcendentals=0, bytes_accessed=bytes_accessed),
    )(x, w2, b2)
    return out.reshape(B, oh, ow, c2)


# ----------------------------------------------------------------------------
# Kernel 3: maxpool(2) + Linear(800,500) + ReLU + Linear(500,10) fused
# ----------------------------------------------------------------------------
def _pool_fc_kernel(x_ref, f1_ref, b1_ref, f2_ref, b2_ref, o_ref):
    """x_ref: (TB, 4, 2, 4, 2*C2) bf16 -- conv2 output with row pairs on a major
    dim and column pairs folded into lanes (free HBM reshape).
    f1_ref: (16, C2, F1) bf16 per-position fc1 slabs; f2_ref: (F1, F2) bf16."""
    tb = x_ref.shape[0]
    c2 = f1_ref.shape[1]
    f1n = f1_ref.shape[2]
    x = x_ref[...]
    m = jnp.maximum(x[:, :, 0], x[:, :, 1])           # max over row pairs
    pooled = jnp.maximum(m[..., :c2], m[..., c2:])    # max over column pairs
    acc = jnp.zeros((tb, f1n), jnp.float32)
    for s in range(16):                               # fc1 contracted per position
        hh, wh = divmod(s, 4)
        acc = acc + jnp.dot(pooled[:, hh, wh, :], f1_ref[s],
                            preferred_element_type=jnp.float32)
    h1 = jnp.maximum(acc + b1_ref[...], 0.0).astype(jnp.bfloat16)
    out = jnp.dot(h1, f2_ref[...], preferred_element_type=jnp.float32)
    o_ref[...] = out + b2_ref[...]


def pool_fc(xr, f1, fb1, f2, fb2, *, tb):
    B = xr.shape[0]
    c2 = f1.shape[1]
    f1n, f2n = f1.shape[2], f2.shape[1]
    flops = 2 * B * (16 * c2 * f1n + f1n * f2n)
    bytes_accessed = (xr.size * 2 + f1.size * 2 + f2.size * 2
                      + (fb1.size + fb2.size) * 4 + B * f2n * 4)
    return pl.pallas_call(
        _pool_fc_kernel,
        out_shape=jax.ShapeDtypeStruct((B, f2n), jnp.float32),
        grid=(pl.cdiv(B, tb),),
        in_specs=[
            pl.BlockSpec((tb, 4, 2, 4, 2 * c2), lambda i: (i, 0, 0, 0, 0)),
            pl.BlockSpec((16, c2, f1n), lambda i: (0, 0, 0)),
            pl.BlockSpec((1, f1n), lambda i: (0, 0)),
            pl.BlockSpec((f1n, f2n), lambda i: (0, 0)),
            pl.BlockSpec((1, f2n), lambda i: (0, 0)),
        ],
        out_specs=pl.BlockSpec((tb, f2n), lambda i: (i, 0)),
        compiler_params=pltpu.CompilerParams(
            dimension_semantics=("parallel",),
            vmem_limit_bytes=_VMEM_LIMIT),
        cost_estimate=pl.CostEstimate(
            flops=flops, transcendentals=0, bytes_accessed=bytes_accessed),
    )(xr, f1, fb1, f2, fb2)


# ----------------------------------------------------------------------------
# XLA glue: conv1 patch builder, parameter prep, full forward
# ----------------------------------------------------------------------------
def _conv1_patches(x_nchw, kp):
    """conv1 im2col with lane-dense copies (>=24-wide minor dims, never size 1),
    rows pre-ordered (batch, 2x2 pool parity, pooled position) so kernel 1 can
    fuse the max-pool as a major-dim max."""
    # TODO(synk): build these patches inside the conv1 kernel (needs a
    # lane<->sublane relayout per tap) to drop this XLA-side im2col copy too.
    B, C, H, W = x_nchw.shape
    oh, ow = H - K + 1, W - K + 1                       # 24, 24
    xb = x_nchw.astype(jnp.bfloat16)
    cols = [xb[:, c, dh:dh + oh, dw:dw + ow]
            for dh in range(K) for dw in range(K) for c in range(C)]
    p = jnp.stack(cols, axis=-1)                        # (B, 24, 24, 25*C)
    if kp > K * K * C:
        p = jnp.pad(p, ((0, 0), (0, 0), (0, 0), (0, kp - K * K * C)))
    p = p.reshape(B, oh // 2, 2, ow // 2, 2, kp)
    p = jnp.transpose(p, (0, 2, 4, 1, 3, 5))            # parity planes first
    return p.reshape(B, 4, (oh // 2) * (ow // 2), kp)   # (B, 4, 144, kp)


def init_params(num_features, key):
    """Raw parameters in PyTorch layout."""
    ks = jax.random.split(key, 8)
    s = 0.05
    return {
        "conv1_w": jax.random.normal(ks[0], (20, num_features, 5, 5), jnp.float32) * s,
        "conv1_b": jax.random.normal(ks[1], (20,), jnp.float32) * s,
        "conv2_w": jax.random.normal(ks[2], (50, 20, 5, 5), jnp.float32) * s,
        "conv2_b": jax.random.normal(ks[3], (50,), jnp.float32) * s,
        "fc1_w": jax.random.normal(ks[4], (500, 800), jnp.float32) * s,
        "fc1_b": jax.random.normal(ks[5], (500,), jnp.float32) * s,
        "fc2_w": jax.random.normal(ks[6], (10, 500), jnp.float32) * s,
        "fc2_b": jax.random.normal(ks[7], (10,), jnp.float32) * s,
    }


def prepare_params(params):
    """One-time weight re-layout hoisted out of the forward pass."""
    bf = jnp.bfloat16
    cin = params["conv1_w"].shape[1]
    # conv1: (20, Cin, 5, 5) -> (K*K*Cin, 20); K padded to a mult of 16, N 20->32.
    w1 = jnp.transpose(params["conv1_w"], (2, 3, 1, 0)).reshape(K * K * cin, -1)
    kp = _round_up(K * K * cin, 16)
    w1 = _pad_axis(_pad_axis(w1, 0, kp), 1, C1P)
    b1 = _pad_axis(params["conv1_b"], 0, C1P).reshape(1, C1P)
    # conv2: (50, 20, 5, 5) -> per-tap slabs (25, Cin=32, Cout=128): K compacted
    # to the live channels (32 vs the old 128 padding -> 4-6x fewer MXU flops).
    w2 = jnp.transpose(params["conv2_w"], (2, 3, 1, 0))           # (5,5,20,50)
    w2 = _pad_axis(_pad_axis(w2, 2, C1P), 3, C2P).reshape(K * K, C1P, C2P)
    b2 = _pad_axis(params["conv2_b"], 0, C2P).reshape(1, C2P)
    # fc1: (500, 800=(c,h,w) torch-flatten order) -> per-position slabs
    # (16, 128, 512) matching the channels-last pooled activations.
    f1 = params["fc1_w"].reshape(-1, 50, 4, 4)
    f1 = jnp.transpose(f1, (2, 3, 1, 0))                          # (4,4,50,500)
    f1 = _pad_axis(_pad_axis(f1, 2, C2P), 3, FC1P).reshape(16, C2P, FC1P)
    fb1 = _pad_axis(params["fc1_b"], 0, FC1P).reshape(1, FC1P)
    # fc2: (10, 500) -> (512, 128)
    f2 = _pad_axis(_pad_axis(params["fc2_w"].T, 0, FC1P), 1, FC2P)
    fb2 = _pad_axis(params["fc2_b"], 0, FC2P).reshape(1, FC2P)
    return {"w1": w1.astype(bf), "b1": b1.astype(jnp.float32),
            "w2": w2.astype(bf), "b2": b2.astype(jnp.float32),
            "f1": f1.astype(bf), "fb1": fb1.astype(jnp.float32),
            "f2": f2.astype(bf), "fb2": fb2.astype(jnp.float32)}


@jax.jit
def cnn_forward(prepped, x_nchw):
    """x: (B, numFeatures, 28, 28) fp32 -> (B, 10) fp32."""
    B = x_nchw.shape[0]
    kp = prepped["w1"].shape[0]
    c1 = prepped["w1"].shape[1]
    c2 = prepped["w2"].shape[-1]

    p = _conv1_patches(x_nchw, kp)                                   # (B,4,144,32)
    h = conv1_pool(p, prepped["w1"], prepped["b1"], tb=min(8, B))    # (B,144,32)
    h = h.reshape(B, 12, 12, c1)                                     # free reshape
    h = conv2_relu(h, prepped["w2"], prepped["b2"], tb=min(8, B))    # (B,8,8,128)
    # free reshape: row pairs -> major dim, column pairs -> lane dim, for pool2
    hr = h.reshape(B, 4, 2, 4, 2 * c2)
    out = pool_fc(hr, prepped["f1"], prepped["fb1"],
                  prepped["f2"], prepped["fb2"], tb=min(128, B))     # (B,128)
    return out[:, :10]


def cnn_reference(params, x):
    """Pure-JAX fp32 reference matching the PyTorch module."""
    dn = ("NCHW", "OIHW", "NCHW")
    y = lax.conv_general_dilated(x, params["conv1_w"], (1, 1), "VALID",
                                 dimension_numbers=dn)
    y = jnp.maximum(y + params["conv1_b"][None, :, None, None], 0.0)
    y = lax.reduce_window(y, -jnp.inf, lax.max, (1, 1, 2, 2), (1, 1, 2, 2), "VALID")
    y = lax.conv_general_dilated(y, params["conv2_w"], (1, 1), "VALID",
                                 dimension_numbers=dn)
    y = jnp.maximum(y + params["conv2_b"][None, :, None, None], 0.0)
    y = lax.reduce_window(y, -jnp.inf, lax.max, (1, 1, 2, 2), (1, 1, 2, 2), "VALID")
    y = y.reshape(y.shape[0], -1)
    y = jnp.maximum(y @ params["fc1_w"].T + params["fc1_b"], 0.0)
    return y @ params["fc2_w"].T + params["fc2_b"]


if __name__ == "__main__":
    key = jax.random.PRNGKey(0)
    k_param, k_x = jax.random.split(key)

    num_features = 1          # Linear(800, 500) forces a 28x28 spatial input
    batch = 2
    x = jax.random.normal(k_x, (batch, num_features, 28, 28), jnp.float32)

    params = init_params(num_features, k_param)
    prepped = prepare_params(params)          # one-time weight layout prep

    out = jax.block_until_ready(cnn_forward(prepped, x))
    assert out.shape == (batch, 10), out.shape
    assert out.dtype == jnp.float32
    assert bool(jnp.all(jnp.isfinite(out)))

    ref = jax.block_until_ready(cnn_reference(params, x))
    err = float(jnp.max(jnp.abs(out - ref)))
    assert err < 5e-2, f"max abs error vs fp32 reference: {err}"
    print("KERNEL_OK")
</pallas_src>

<mosaic_0001>
module attributes {stable_mosaic.version = 11 : i64} {
  func.func @_conv1_pool_kernel(%arg0: i32, %arg1: memref<2x4x144x32xbf16, #tpu.memory_space<vmem>>, %arg2: memref<32x32xbf16, #tpu.memory_space<vmem>>, %arg3: memref<1x32xf32, #tpu.memory_space<vmem>>, %arg4: memref<2x144x32xbf16, #tpu.memory_space<vmem>>) attributes {dimension_semantics = [#tpu.dimension_semantics<parallel>], iteration_bounds = array<i64: 1>, scalar_prefetch = 0 : i64, scratch_operands = 0 : i64, tpu.core_type = #tpu.core_type<tc>, window_params = [{transform_indices = @transform_0, window_bounds = array<i64: 2, 4, 144, 32>}, {pipeline_mode = #tpu.pipeline_mode<synchronous>, transform_indices = @transform_1, window_bounds = array<i64: 32, 32>}, {pipeline_mode = #tpu.pipeline_mode<synchronous>, transform_indices = @transform_2, window_bounds = array<i64: 1, 32>}, {transform_indices = @transform_3, window_bounds = array<i64: 2, 144, 32>}]} {
    %c0 = arith.constant 0 : index
    %c0_0 = arith.constant 0 : index
    %c0_1 = arith.constant 0 : index
    %c0_2 = arith.constant 0 : index
    %0 = vector.load %arg1[%c0, %c0_0, %c0_1, %c0_2] : memref<2x4x144x32xbf16, #tpu.memory_space<vmem>>, vector<2x4x144x32xbf16>
    %1 = vector.shape_cast %0 : vector<2x4x144x32xbf16> to vector<1152x32xbf16>
    %c0_3 = arith.constant 0 : index
    %c0_4 = arith.constant 0 : index
    %2 = vector.load %arg2[%c0_3, %c0_4] : memref<32x32xbf16, #tpu.memory_space<vmem>>, vector<32x32xbf16>
    %cst = arith.constant dense<0.000000e+00> : vector<1152x32xf32>
    %3 = tpu.matmul %1, %2, %cst {dimension_numbers = #tpu.dot_dimension_numbers<[1], [0], [0], [1], [0, 0, 1, 1], [], []>} : vector<1152x32xbf16>, vector<32x32xbf16>, vector<1152x32xf32> -> vector<1152x32xf32>
    %c0_5 = arith.constant 0 : index
    %c0_6 = arith.constant 0 : index
    %4 = vector.load %arg3[%c0_5, %c0_6] : memref<1x32xf32, #tpu.memory_space<vmem>>, vector<1x32xf32>
    %5 = vector.broadcast %4 : vector<1x32xf32> to vector<1152x32xf32>
    %6 = arith.addf %3, %5 : vector<1152x32xf32>
    %cst_7 = arith.constant 0.000000e+00 : f32
    %7 = vector.broadcast %cst_7 : f32 to vector<1152x32xf32>
    %8 = arith.maximumf %6, %7 : vector<1152x32xf32>
    %9 = vector.shape_cast %8 : vector<1152x32xf32> to vector<2x4x144x32xf32>
    %10 = vector.extract_strided_slice %9 {offsets = [0, 0, 0, 0], sizes = [2, 1, 144, 32], strides = [1, 1, 1, 1]} : vector<2x4x144x32xf32> to vector<2x1x144x32xf32>
    %11 = vector.shape_cast %10 : vector<2x1x144x32xf32> to vector<2x144x32xf32>
    %12 = vector.extract_strided_slice %9 {offsets = [0, 1, 0, 0], sizes = [2, 1, 144, 32], strides = [1, 1, 1, 1]} : vector<2x4x144x32xf32> to vector<2x1x144x32xf32>
    %13 = vector.shape_cast %12 : vector<2x1x144x32xf32> to vector<2x144x32xf32>
    %14 = arith.maximumf %11, %13 : vector<2x144x32xf32>
    %15 = vector.extract_strided_slice %9 {offsets = [0, 2, 0, 0], sizes = [2, 1, 144, 32], strides = [1, 1, 1, 1]} : vector<2x4x144x32xf32> to vector<2x1x144x32xf32>
    %16 = vector.shape_cast %15 : vector<2x1x144x32xf32> to vector<2x144x32xf32>
    %17 = vector.extract_strided_slice %9 {offsets = [0, 3, 0, 0], sizes = [2, 1, 144, 32], strides = [1, 1, 1, 1]} : vector<2x4x144x32xf32> to vector<2x1x144x32xf32>
    %18 = vector.shape_cast %17 : vector<2x1x144x32xf32> to vector<2x144x32xf32>
    %19 = arith.maximumf %16, %18 : vector<2x144x32xf32>
    %20 = arith.maximumf %14, %19 : vector<2x144x32xf32>
    %21 = arith.truncf %20 : vector<2x144x32xf32> to vector<2x144x32xbf16>
    %c0_8 = arith.constant 0 : index
    %c0_9 = arith.constant 0 : index
    %c0_10 = arith.constant 0 : index
    %22 = vector.load %arg4[%c0_8, %c0_9, %c0_10] : memref<2x144x32xbf16, #tpu.memory_space<vmem>>, vector<2x144x32xbf16>
    tpu.vector_store %arg4[%c0_8, %c0_9, %c0_10], %21 {strides = array<i32>} : memref<2x144x32xbf16, #tpu.memory_space<vmem>>, vector<2x144x32xbf16>,
    return
  }
  func.func @transform_0(%arg0: i32) -> (i32, i32, i32, i32) {
    %c0_i32 = arith.constant 0 : i32
    %c0_i32_0 = arith.constant 0 : i32
    %c0_i32_1 = arith.constant 0 : i32
    %c0_i32_2 = arith.constant 0 : i32
    return %arg0, %c0_i32, %c0_i32_0, %c0_i32_1 : i32, i32, i32, i32
  }
  func.func @transform_1(%arg0: i32) -> (i32, i32) {
    %c0_i32 = arith.constant 0 : i32
    %c0_i32_0 = arith.constant 0 : i32
    %c0_i32_1 = arith.constant 0 : i32
    return %c0_i32, %c0_i32_0 : i32, i32
  }
  func.func @transform_2(%arg0: i32) -> (i32, i32) {
    %c0_i32 = arith.constant 0 : i32
    %c0_i32_0 = arith.constant 0 : i32
    %c0_i32_1 = arith.constant 0 : i32
    return %c0_i32, %c0_i32_0 : i32, i32
  }
  func.func @transform_3(%arg0: i32) -> (i32, i32, i32) {
    %c0_i32 = arith.constant 0 : i32
    %c0_i32_0 = arith.constant 0 : i32
    %c0_i32_1 = arith.constant 0 : i32
    return %arg0, %c0_i32, %c0_i32_0 : i32, i32, i32
  }
}

module attributes {stable_mosaic.version = 11 : i64} {
  func.func @_conv2_kernel(%arg0: i32, %arg1: memref<2x12x12x32xbf16, #tpu.memory_space<vmem>>, %arg2: memref<25x32x128xbf16, #tpu.memory_space<vmem>>, %arg3: memref<1x128xf32, #tpu.memory_space<vmem>>, %arg4: memref<128x128xbf16, #tpu.memory_space<vmem>>) attributes {dimension_semantics = [#tpu.dimension_semantics<parallel>], iteration_bounds = array<i64: 1>, scalar_prefetch = 0 : i64, scratch_operands = 0 : i64, tpu.core_type = #tpu.core_type<tc>, window_params = [{transform_indices = @transform_0, window_bounds = array<i64: 2, 12, 12, 32>}, {pipeline_mode = #tpu.pipeline_mode<synchronous>, transform_indices = @transform_1, window_bounds = array<i64: 25, 32, 128>}, {pipeline_mode = #tpu.pipeline_mode<synchronous>, transform_indices = @transform_2, window_bounds = array<i64: 1, 128>}, {transform_indices = @transform_3, window_bounds = array<i64: 128, 128>}]} {
    %cst = arith.constant 0.000000e+00 : f32
    %0 = vector.broadcast %cst : f32 to vector<128x128xf32>
    %c0 = arith.constant 0 : index
    %c0_0 = arith.constant 0 : index
    %c0_1 = arith.constant 0 : index
    %c0_2 = arith.constant 0 : index
    %1 = vector.load %arg1[%c0, %c0_0, %c0_1, %c0_2] : memref<2x12x12x32xbf16, #tpu.memory_space<vmem>>, vector<2x8x8x32xbf16>
    %2 = vector.shape_cast %1 : vector<2x8x8x32xbf16> to vector<128x32xbf16>
    %c0_3 = arith.constant 0 : index
    %c0_4 = arith.constant 0 : index
    %c0_5 = arith.constant 0 : index
    %3 = vector.load %arg2[%c0_3, %c0_4, %c0_5] : memref<25x32x128xbf16, #tpu.memory_space<vmem>>, vector<1x32x128xbf16>
    %4 = vector.shape_cast %3 : vector<1x32x128xbf16> to vector<32x128xbf16>
    %cst_6 = arith.constant dense<0.000000e+00> : vector<128x128xf32>
    %5 = tpu.matmul %2, %4, %cst_6 {dimension_numbers = #tpu.dot_dimension_numbers<[1], [0], [0], [1], [0, 0, 1, 1], [], []>} : vector<128x32xbf16>, vector<32x128xbf16>, vector<128x128xf32> -> vector<128x128xf32>
    %6 = arith.addf %0, %5 : vector<128x128xf32>
    %c0_7 = arith.constant 0 : index
    %c0_8 = arith.constant 0 : index
    %c1 = arith.constant 1 : index
    %c0_9 = arith.constant 0 : index
    %7 = vector.load %arg1[%c0_7, %c0_8, %c1, %c0_9] : memref<2x12x12x32xbf16, #tpu.memory_space<vmem>>, vector<2x8x8x32xbf16>
    %8 = vector.shape_cast %7 : vector<2x8x8x32xbf16> to vector<128x32xbf16>
    %c1_10 = arith.constant 1 : index
    %c0_11 = arith.constant 0 : index
    %c0_12 = arith.constant 0 : index
    %9 = vector.load %arg2[%c1_10, %c0_11, %c0_12] : memref<25x32x128xbf16, #tpu.memory_space<vmem>>, vector<1x32x128xbf16>
    %10 = vector.shape_cast %9 : vector<1x32x128xbf16> to vector<32x128xbf16>
    %cst_13 = arith.constant dense<0.000000e+00> : vector<128x128xf32>
    %11 = tpu.matmul %8, %10, %cst_13 {dimension_numbers = #tpu.dot_dimension_numbers<[1], [0], [0], [1], [0, 0, 1, 1], [], []>} : vector<128x32xbf16>, vector<32x128xbf16>, vector<128x128xf32> -> vector<128x128xf32>
    %12 = arith.addf %6, %11 : vector<128x128xf32>
    %c0_14 = arith.constant 0 : index
    %c0_15 = arith.constant 0 : index
    %c2 = arith.constant 2 : index
    %c0_16 = arith.constant 0 : index
    %13 = vector.load %arg1[%c0_14, %c0_15, %c2, %c0_16] : memref<2x12x12x32xbf16, #tpu.memory_space<vmem>>, vector<2x8x8x32xbf16>
    %14 = vector.shape_cast %13 : vector<2x8x8x32xbf16> to vector<128x32xbf16>
    %c2_17 = arith.constant 2 : index
    %c0_18 = arith.constant 0 : index
    %c0_19 = arith.constant 0 : index
    %15 = vector.load %arg2[%c2_17, %c0_18, %c0_19] : memref<25x32x128xbf16, #tpu.memory_space<vmem>>, vector<1x32x128xbf16>
    %16 = vector.shape_cast %15 : vector<1x32x128xbf16> to vector<32x128xbf16>
    %cst_20 = arith.constant dense<0.000000e+00> : vector<128x128xf32>
    %17 = tpu.matmul %14, %16, %cst_20 {dimension_numbers = #tpu.dot_dimension_numbers<[1], [0], [0], [1], [0, 0, 1, 1], [], []>} : vector<128x32xbf16>, vector<32x128xbf16>, vector<128x128xf32> -> vector<128x128xf32>
    %18 = arith.addf %12, %17 : vector<128x128xf32>
    %c0_21 = arith.constant 0 : index
    %c0_22 = arith.constant 0 : index
    %c3 = arith.constant 3 : index
    %c0_23 = arith.constant 0 : index
    %19 = vector.load %arg1[%c0_21, %c0_22, %c3, %c0_23] : memref<2x12x12x32xbf16, #tpu.memory_space<vmem>>, vector<2x8x8x32xbf16>
    %20 = vector.shape_cast %19 : vector<2x8x8x32xbf16> to vector<128x32xbf16>
    %c3_24 = arith.constant 3 : index
    %c0_25 = arith.constant 0 : index
    %c0_26 = arith.constant 0 : index
    %21 = vector.load %arg2[%c3_24, %c0_25, %c0_26] : memref<25x32x128xbf16, #tpu.memory_space<vmem>>, vector<1x32x128xbf16>
    %22 = vector.shape_cast %21 : vector<1x32x128xbf16> to vector<32x128xbf16>
    %cst_27 = arith.constant dense<0.000000e+00> : vector<128x128xf32>
    %23 = tpu.matmul %20, %22, %cst_27 {dimension_numbers = #tpu.dot_dimension_numbers<[1], [0], [0], [1], [0, 0, 1, 1], [], []>} : vector<128x32xbf16>, vector<32x128xbf16>, vector<128x128xf32> -> vector<128x128xf32>
    %24 = arith.addf %18, %23 : vector<128x128xf32>
    %c0_28 = arith.constant 0 : index
    %c0_29 = arith.constant 0 : index
    %c4 = arith.constant 4 : index
    %c0_30 = arith.constant 0 : index
    %25 = vector.load %arg1[%c0_28, %c0_29, %c4, %c0_30] : memref<2x12x12x32xbf16, #tpu.memory_space<vmem>>, vector<2x8x8x32xbf16>
    %26 = vector.shape_cast %25 : vector<2x8x8x32xbf16> to vector<128x32xbf16>
    %c4_31 = arith.constant 4 : index
    %c0_32 = arith.constant 0 : index
    %c0_33 = arith.constant 0 : index
    %27 = vector.load %arg2[%c4_31, %c0_32, %c0_33] : memref<25x32x128xbf16, #tpu.memory_space<vmem>>, vector<1x32x128xbf16>
    %28 = vector.shape_cast %27 : vector<1x32x128xbf16> to vector<32x128xbf16>
    %cst_34 = arith.constant dense<0.000000e+00> : vector<128x128xf32>
    %29 = tpu.matmul %26, %28, %cst_34 {dimension_numbers = #tpu.dot_dimension_numbers<[1], [0], [0], [1], [0, 0, 1, 1], [], []>} : vector<128x32xbf16>, vector<32x128xbf16>, vector<128x128xf32> -> vector<128x128xf32>
    %30 = arith.addf %24, %29 : vector<128x128xf32>
    %c0_35 = arith.constant 0 : index
    %c1_36 = arith.constant 1 : index
    %c0_37 = arith.constant 0 : index
    %c0_38 = arith.constant 0 : index
    %31 = vector.load %arg1[%c0_35, %c1_36, %c0_37, %c0_38] : memref<2x12x12x32xbf16, #tpu.memory_space<vmem>>, vector<2x8x8x32xbf16>
    %32 = vector.shape_cast %31 : vector<2x8x8x32xbf16> to vector<128x32xbf16>
    %c5 = arith.constant 5 : index
    %c0_39 = arith.constant 0 : index
    %c0_40 = arith.constant 0 : index
    %33 = vector.load %arg2[%c5, %c0_39, %c0_40] : memref<25x32x128xbf16, #tpu.memory_space<vmem>>, vector<1x32x128xbf16>
    %34 = vector.shape_cast %33 : vector<1x32x128xbf16> to vector<32x128xbf16>
    %cst_41 = arith.constant dense<0.000000e+00> : vector<128x128xf32>
    %35 = tpu.matmul %32, %34, %cst_41 {dimension_numbers = #tpu.dot_dimension_numbers<[1], [0], [0], [1], [0, 0, 1, 1], [], []>} : vector<128x32xbf16>, vector<32x128xbf16>, vector<128x128xf32> -> vector<128x128xf32>
    %36 = arith.addf %30, %35 : vector<128x128xf32>
    %c0_42 = arith.constant 0 : index
    %c1_43 = arith.constant 1 : index
    %c1_44 = arith.constant 1 : index
    %c0_45 = arith.constant 0 : index
    %37 = vector.load %arg1[%c0_42, %c1_43, %c1_44, %c0_45] : memref<2x12x12x32xbf16, #tpu.memory_space<vmem>>, vector<2x8x8x32xbf16>
    %38 = vector.shape_cast %37 : vector<2x8x8x32xbf16> to vector<128x32xbf16>
    %c6 = arith.constant 6 : index
    %c0_46 = arith.constant 0 : index
    %c0_47 = arith.constant 0 : index
    %39 = vector.load %arg2[%c6, %c0_46, %c0_47] : memref<25x32x128xbf16, #tpu.memory_space<vmem>>, vector<1x32x128xbf16>
    %40 = vector.shape_cast %39 : vector<1x32x128xbf16> to vector<32x128xbf16>
    %cst_48 = arith.constant dense<0.000000e+00> : vector<128x128xf32>
    %41 = tpu.matmul %38, %40, %cst_48 {dimension_numbers = #tpu.dot_dimension_numbers<[1], [0], [0], [1], [0, 0, 1, 1], [], []>} : vector<128x32xbf16>, vector<32x128xbf16>, vector<128x128xf32> -> vector<128x128xf32>
    %42 = arith.addf %36, %41 : vector<128x128xf32>
    %c0_49 = arith.constant 0 : index
    %c1_50 = arith.constant 1 : index
    %c2_51 = arith.constant 2 : index
    %c0_52 = arith.constant 0 : index
    %43 = vector.load %arg1[%c0_49, %c1_50, %c2_51, %c0_52] : memref<2x12x12x32xbf16, #tpu.memory_space<vmem>>, vector<2x8x8x32xbf16>
    %44 = vector.shape_cast %43 : vector<2x8x8x32xbf16> to vector<128x32xbf16>
    %c7 = arith.constant 7 : index
    %c0_53 = arith.constant 0 : index
    %c0_54 = arith.constant 0 : index
    %45 = vector.load %arg2[%c7, %c0_53, %c0_54] : memref<25x32x128xbf16, #tpu.memory_space<vmem>>, vector<1x32x128xbf16>
    %46 = vector.shape_cast %45 : vector<1x32x128xbf16> to vector<32x128xbf16>
    %cst_55 = arith.constant dense<0.000000e+00> : vector<128x128xf32>
    %47 = tpu.matmul %44, %46, %cst_55 {dimension_numbers = #tpu.dot_dimension_numbers<[1], [0], [0], [1], [0, 0, 1, 1], [], []>} : vector<128x32xbf16>, vector<32x128xbf16>, vector<128x128xf32> -> vector<128x128xf32>
    %48 = arith.addf %42, %47 : vector<128x128xf32>
    %c0_56 = arith.constant 0 : index
    %c1_57 = arith.constant 1 : index
    %c3_58 = arith.constant 3 : index
    %c0_59 = arith.constant 0 : index
    %49 = vector.load %arg1[%c0_56, %c1_57, %c3_58, %c0_59] : memref<2x12x12x32xbf16, #tpu.memory_space<vmem>>, vector<2x8x8x32xbf16>
    %50 = vector.shape_cast %49 : vector<2x8x8x32xbf16> to vector<128x32xbf16>
    %c8 = arith.constant 8 : index
    %c0_60 = arith.constant 0 : index
    %c0_61 = arith.constant 0 : index
    %51 = vector.load %arg2[%c8, %c0_60, %c0_61] : memref<25x32x128xbf16, #tpu.memory_space<vmem>>, vector<1x32x128xbf16>
    %52 = vector.shape_cast %51 : vector<1x32x128xbf16> to vector<32x128xbf16>
    %cst_62 = arith.constant dense<0.000000e+00> : vector<128x128xf32>
    %53 = tpu.matmul %50, %52, %cst_62 {dimension_numbers = #tpu.dot_dimension_numbers<[1], [0], [0], [1], [0, 0, 1, 1], [], []>} : vector<128x32xbf16>, vector<32x128xbf16>, vector<128x128xf32> -> vector<128x128xf32>
    %54 = arith.addf %48, %53 : vector<128x128xf32>
    %c0_63 = arith.constant 0 : index
    %c1_64 = arith.constant 1 : index
    %c4_65 = arith.constant 4 : index
    %c0_66 = arith.constant 0 : index
    %55 = vector.load %arg1[%c0_63, %c1_64, %c4_65, %c0_66] : memref<2x12x12x32xbf16, #tpu.memory_space<vmem>>, vector<2x8x8x32xbf16>
    %56 = vector.shape_cast %55 : vector<2x8x8x32xbf16> to vector<128x32xbf16>
    %c9 = arith.constant 9 : index
    %c0_67 = arith.constant 0 : index
    %c0_68 = arith.constant 0 : index
    %57 = vector.load %arg2[%c9, %c0_67, %c0_68] : memref<25x32x128xbf16, #tpu.memory_space<vmem>>, vector<1x32x128xbf16>
    %58 = vector.shape_cast %57 : vector<1x32x128xbf16> to vector<32x128xbf16>
    %cst_69 = arith.constant dense<0.000000e+00> : vector<128x128xf32>
    %59 = tpu.matmul %56, %58, %cst_69 {dimension_numbers = #tpu.dot_dimension_numbers<[1], [0], [0], [1], [0, 0, 1, 1], [], []>} : vector<128x32xbf16>, vector<32x128xbf16>, vector<128x128xf32> -> vector<128x128xf32>
    %60 = arith.addf %54, %59 : vector<128x128xf32>
    %c0_70 = arith.constant 0 : index
    %c2_71 = arith.constant 2 : index
    %c0_72 = arith.constant 0 : index
    %c0_73 = arith.constant 0 : index
    %61 = vector.load %arg1[%c0_70, %c2_71, %c0_72, %c0_73] : memref<2x12x12x32xbf16, #tpu.memory_space<vmem>>, vector<2x8x8x32xbf16>
    %62 = vector.shape_cast %61 : vector<2x8x8x32xbf16> to vector<128x32xbf16>
    %c10 = arith.constant 10 : index
    %c0_74 = arith.constant 0 : index
    %c0_75 = arith.constant 0 : index
    %63 = vector.load %arg2[%c10, %c0_74, %c0_75] : memref<25x32x128xbf16, #tpu.memory_space<vmem>>, vector<1x32x128xbf16>
    %64 = vector.shape_cast %63 : vector<1x32x128xbf16> to vector<32x128xbf16>
    %cst_76 = arith.constant dense<0.000000e+00> : vector<128x128xf32>
    %65 = tpu.matmul %62, %64, %cst_76 {dimension_numbers = #tpu.dot_dimension_numbers<[1], [0], [0], [1], [0, 0, 1, 1], [], []>} : vector<128x32xbf16>, vector<32x128xbf16>, vector<128x128xf32> -> vector<128x128xf32>
    %66 = arith.addf %60, %65 : vector<128x128xf32>
    %c0_77 = arith.constant 0 : index
    %c2_78 = arith.constant 2 : index
    %c1_79 = arith.constant 1 : index
    %c0_80 = arith.constant 0 : index
    %67 = vector.load %arg1[%c0_77, %c2_78, %c1_79, %c0_80] : memref<2x12x12x32xbf16, #tpu.memory_space<vmem>>, vector<2x8x8x32xbf16>
    %68 = vector.shape_cast %67 : vector<2x8x8x32xbf16> to vector<128x32xbf16>
    %c11 = arith.constant 11 : index
    %c0_81 = arith.constant 0 : index
    %c0_82 = arith.constant 0 : index
    %69 = vector.load %arg2[%c11, %c0_81, %c0_82] : memref<25x32x128xbf16, #tpu.memory_space<vmem>>, vector<1x32x128xbf16>
    %70 = vector.shape_cast %69 : vector<1x32x128xbf16> to vector<32x128xbf16>
    %cst_83 = arith.constant dense<0.000000e+00> : vector<128x128xf32>
    %71 = tpu.matmul %68, %70, %cst_83 {dimension_numbers = #tpu.dot_dimension_numbers<[1], [0], [0], [1], [0, 0, 1, 1], [], []>} : vector<128x32xbf16>, vector<32x128xbf16>, vector<128x128xf32> -> vector<128x128xf32>
    %72 = arith.addf %66, %71 : vector<128x128xf32>
    %c0_84 = arith.constant 0 : index
    %c2_85 = arith.constant 2 : index
    %c2_86 = arith.constant 2 : index
    %c0_87 = arith.constant 0 : index
    %73 = vector.load %arg1[%c0_84, %c2_85, %c2_86, %c0_87] : memref<2x12x12x32xbf16, #tpu.memory_space<vmem>>, vector<2x8x8x32xbf16>
    %74 = vector.shape_cast %73 : vector<2x8x8x32xbf16> to vector<128x32xbf16>
    %c12 = arith.constant 12 : index
    %c0_88 = arith.constant 0 : index
    %c0_89 = arith.constant 0 : index
    %75 = vector.load %arg2[%c12, %c0_88, %c0_89] : memref<25x32x128xbf16, #tpu.memory_space<vmem>>, vector<1x32x128xbf16>
    %76 = vector.shape_cast %75 : vector<1x32x128xbf16> to vector<32x128xbf16>
    %cst_90 = arith.constant dense<0.000000e+00> : vector<128x128xf32>
    %77 = tpu.matmul %74, %76, %cst_90 {dimension_numbers = #tpu.dot_dimension_numbers<[1], [0], [0], [1], [0, 0, 1, 1], [], []>} : vector<128x32xbf16>, vector<32x128xbf16>, vector<128x128xf32> -> vector<128x128xf32>
    %78 = arith.addf %72, %77 : vector<128x128xf32>
    %c0_91 = arith.constant 0 : index
    %c2_92 = arith.constant 2 : index
    %c3_93 = arith.constant 3 : index
    %c0_94 = arith.constant 0 : index
    %79 = vector.load %arg1[%c0_91, %c2_92, %c3_93, %c0_94] : memref<2x12x12x32xbf16, #tpu.memory_space<vmem>>, vector<2x8x8x32xbf16>
    %80 = vector.shape_cast %79 : vector<2x8x8x32xbf16> to vector<128x32xbf16>
    %c13 = arith.constant 13 : index
    %c0_95 = arith.constant 0 : index
    %c0_96 = arith.constant 0 : index
    %81 = vector.load %arg2[%c13, %c0_95, %c0_96] : memref<25x32x128xbf16, #tpu.memory_space<vmem>>, vector<1x32x128xbf16>
    %82 = vector.shape_cast %81 : vector<1x32x128xbf16> to vector<32x128xbf16>
    %cst_97 = arith.constant dense<0.000000e+00> : vector<128x128xf32>
    %83 = tpu.matmul %80, %82, %cst_97 {dimension_numbers = #tpu.dot_dimension_numbers<[1], [0], [0], [1], [0, 0, 1, 1], [], []>} : vector<128x32xbf16>, vector<32x128xbf16>, vector<128x128xf32> -> vector<128x128xf32>
    %84 = arith.addf %78, %83 : vector<128x128xf32>
    %c0_98 = arith.constant 0 : index
    %c2_99 = arith.constant 2 : index
    %c4_100 = arith.constant 4 : index
    %c0_101 = arith.constant 0 : index
    %85 = vector.load %arg1[%c0_98, %c2_99, %c4_100, %c0_101] : memref<2x12x12x32xbf16, #tpu.memory_space<vmem>>, vector<2x8x8x32xbf16>
    %86 = vector.shape_cast %85 : vector<2x8x8x32xbf16> to vector<128x32xbf16>
    %c14 = arith.constant 14 : index
    %c0_102 = arith.constant 0 : index
    %c0_103 = arith.constant 0 : index
    %87 = vector.load %arg2[%c14, %c0_102, %c0_103] : memref<25x32x128xbf16, #tpu.memory_space<vmem>>, vector<1x32x128xbf16>
    %88 = vector.shape_cast %87 : vector<1x32x128xbf16> to vector<32x128xbf16>
    %cst_104 = arith.constant dense<0.000000e+00> : vector<128x128xf32>
    %89 = tpu.matmul %86, %88, %cst_104 {dimension_numbers = #tpu.dot_dimension_numbers<[1], [0], [0], [1], [0, 0, 1, 1], [], []>} : vector<128x32xbf16>, vector<32x128xbf16>, vector<128x128xf32> -> vector<128x128xf32>
    %90 = arith.addf %84, %89 : vector<128x128xf32>
    %c0_105 = arith.constant 0 : index
    %c3_106 = arith.constant 3 : index
    %c0_107 = arith.constant 0 : index
    %c0_108 = arith.constant 0 : index
    %91 = vector.load %arg1[%c0_105, %c3_106, %c0_107, %c0_108] : memref<2x12x12x32xbf16, #tpu.memory_space<vmem>>, vector<2x8x8x32xbf16>
    %92 = vector.shape_cast %91 : vector<2x8x8x32xbf16> to vector<128x32xbf16>
    %c15 = arith.constant 15 : index
    %c0_109 = arith.constant 0 : index
    %c0_110 = arith.constant 0 : index
    %93 = vector.load %arg2[%c15, %c0_109, %c0_110] : memref<25x32x128xbf16, #tpu.memory_space<vmem>>, vector<1x32x128xbf16>
    %94 = vector.shape_cast %93 : vector<1x32x128xbf16> to vector<32x128xbf16>
    %cst_111 = arith.constant dense<0.000000e+00> : vector<128x128xf32>
    %95 = tpu.matmul %92, %94, %cst_111 {dimension_numbers = #tpu.dot_dimension_numbers<[1], [0], [0], [1], [0, 0, 1, 1], [], []>} : vector<128x32xbf16>, vector<32x128xbf16>, vector<128x128xf32> -> vector<128x128xf32>
    %96 = arith.addf %90, %95 : vector<128x128xf32>
    %c0_112 = arith.constant 0 : index
    %c3_113 = arith.constant 3 : index
    %c1_114 = arith.constant 1 : index
    %c0_115 = arith.constant 0 : index
    %97 = vector.load %arg1[%c0_112, %c3_113, %c1_114, %c0_115] : memref<2x12x12x32xbf16, #tpu.memory_space<vmem>>, vector<2x8x8x32xbf16>
    %98 = vector.shape_cast %97 : vector<2x8x8x32xbf16> to vector<128x32xbf16>
    %c16 = arith.constant 16 : index
    %c0_116 = arith.constant 0 : index
    %c0_117 = arith.constant 0 : index
    %99 = vector.load %arg2[%c16, %c0_116, %c0_117] : memref<25x32x128xbf16, #tpu.memory_space<vmem>>, vector<1x32x128xbf16>
    %100 = vector.shape_cast %99 : vector<1x32x128xbf16> to vector<32x128xbf16>
    %cst_118 = arith.constant dense<0.000000e+00> : vector<128x128xf32>
    %101 = tpu.matmul %98, %100, %cst_118 {dimension_numbers = #tpu.dot_dimension_numbers<[1], [0], [0], [1], [0, 0, 1, 1], [], []>} : vector<128x32xbf16>, vector<32x128xbf16>, vector<128x128xf32> -> vector<128x128xf32>
    %102 = arith.addf %96, %101 : vector<128x128xf32>
    %c0_119 = arith.constant 0 : index
    %c3_120 = arith.constant 3 : index
    %c2_121 = arith.constant 2 : index
    %c0_122 = arith.constant 0 : index
    %103 = vector.load %arg1[%c0_119, %c3_120, %c2_121, %c0_122] : memref<2x12x12x32xbf16, #tpu.memory_space<vmem>>, vector<2x8x8x32xbf16>
    %104 = vector.shape_cast %103 : vector<2x8x8x32xbf16> to vector<128x32xbf16>
    %c17 = arith.constant 17 : index
    %c0_123 = arith.constant 0 : index
    %c0_124 = arith.constant 0 : index
    %105 = vector.load %arg2[%c17, %c0_123, %c0_124] : memref<25x32x128xbf16, #tpu.memory_space<vmem>>, vector<1x32x128xbf16>
    %106 = vector.shape_cast %105 : vector<1x32x128xbf16> to vector<32x128xbf16>
    %cst_125 = arith.constant dense<0.000000e+00> : vector<128x128xf32>
    %107 = tpu.matmul %104, %106, %cst_125 {dimension_numbers = #tpu.dot_dimension_numbers<[1], [0], [0], [1], [0, 0, 1, 1], [], []>} : vector<128x32xbf16>, vector<32x128xbf16>, vector<128x128xf32> -> vector<128x128xf32>
    %108 = arith.addf %102, %107 : vector<128x128xf32>
    %c0_126 = arith.constant 0 : index
    %c3_127 = arith.constant 3 : index
    %c3_128 = arith.constant 3 : index
    %c0_129 = arith.constant 0 : index
    %109 = vector.load %arg1[%c0_126, %c3_127, %c3_128, %c0_129] : memref<2x12x12x32xbf16, #tpu.memory_space<vmem>>, vector<2x8x8x32xbf16>
    %110 = vector.shape_cast %109 : vector<2x8x8x32xbf16> to vector<128x32xbf16>
    %c18 = arith.constant 18 : index
    %c0_130 = arith.constant 0 : index
    %c0_131 = arith.constant 0 : index
    %111 = vector.load %arg2[%c18, %c0_130, %c0_131] : memref<25x32x128xbf16, #tpu.memory_space<vmem>>, vector<1x32x128xbf16>
    %112 = vector.shape_cast %111 : vector<1x32x128xbf16> to vector<32x128xbf16>
    %cst_132 = arith.constant dense<0.000000e+00> : vector<128x128xf32>
    %113 = tpu.matmul %110, %112, %cst_132 {dimension_numbers = #tpu.dot_dimension_numbers<[1], [0], [0], [1], [0, 0, 1, 1], [], []>} : vector<128x32xbf16>, vector<32x128xbf16>, vector<128x128xf32> -> vector<128x128xf32>
    %114 = arith.addf %108, %113 : vector<128x128xf32>
    %c0_133 = arith.constant 0 : index
    %c3_134 = arith.constant 3 : index
    %c4_135 = arith.constant 4 : index
    %c0_136 = arith.constant 0 : index
    %115 = vector.load %arg1[%c0_133, %c3_134, %c4_135, %c0_136] : memref<2x12x12x32xbf16, #tpu.memory_space<vmem>>, vector<2x8x8x32xbf16>
    %116 = vector.shape_cast %115 : vector<2x8x8x32xbf16> to vector<128x32xbf16>
    %c19 = arith.constant 19 : index
    %c0_137 = arith.constant 0 : index
    %c0_138 = arith.constant 0 : index
    %117 = vector.load %arg2[%c19, %c0_137, %c0_138] : memref<25x32x128xbf16, #tpu.memory_space<vmem>>, vector<1x32x128xbf16>
    %118 = vector.shape_cast %117 : vector<1x32x128xbf16> to vector<32x128xbf16>
    %cst_139 = arith.constant dense<0.000000e+00> : vector<128x128xf32>
    %119 = tpu.matmul %116, %118, %cst_139 {dimension_numbers = #tpu.dot_dimension_numbers<[1], [0], [0], [1], [0, 0, 1, 1], [], []>} : vector<128x32xbf16>, vector<32x128xbf16>, vector<128x128xf32> -> vector<128x128xf32>
    %120 = arith.addf %114, %119 : vector<128x128xf32>
    %c0_140 = arith.constant 0 : index
    %c4_141 = arith.constant 4 : index
    %c0_142 = arith.constant 0 : index
    %c0_143 = arith.constant 0 : index
    %121 = vector.load %arg1[%c0_140, %c4_141, %c0_142, %c0_143] : memref<2x12x12x32xbf16, #tpu.memory_space<vmem>>, vector<2x8x8x32xbf16>
    %122 = vector.shape_cast %121 : vector<2x8x8x32xbf16> to vector<128x32xbf16>
    %c20 = arith.constant 20 : index
    %c0_144 = arith.constant 0 : index
    %c0_145 = arith.constant 0 : index
    %123 = vector.load %arg2[%c20, %c0_144, %c0_145] : memref<25x32x128xbf16, #tpu.memory_space<vmem>>, vector<1x32x128xbf16>
    %124 = vector.shape_cast %123 : vector<1x32x128xbf16> to vector<32x128xbf16>
    %cst_146 = arith.constant dense<0.000000e+00> : vector<128x128xf32>
    %125 = tpu.matmul %122, %124, %cst_146 {dimension_numbers = #tpu.dot_dimension_numbers<[1], [0], [0], [1], [0, 0, 1, 1], [], []>} : vector<128x32xbf16>, vector<32x128xbf16>, vector<128x128xf32> -> vector<128x128xf32>
    %126 = arith.addf %120, %125 : vector<128x128xf32>
    %c0_147 = arith.constant 0 : index
    %c4_148 = arith.constant 4 : index
    %c1_149 = arith.constant 1 : index
    %c0_150 = arith.constant 0 : index
    %127 = vector.load %arg1[%c0_147, %c4_148, %c1_149, %c0_150] : memref<2x12x12x32xbf16, #tpu.memory_space<vmem>>, vector<2x8x8x32xbf16>
    %128 = vector.shape_cast %127 : vector<2x8x8x32xbf16> to vector<128x32xbf16>
    %c21 = arith.constant 21 : index
    %c0_151 = arith.constant 0 : index
    %c0_152 = arith.constant 0 : index
    %129 = vector.load %arg2[%c21, %c0_151, %c0_152] : memref<25x32x128xbf16, #tpu.memory_space<vmem>>, vector<1x32x128xbf16>
    %130 = vector.shape_cast %129 : vector<1x32x128xbf16> to vector<32x128xbf16>
    %cst_153 = arith.constant dense<0.000000e+00> : vector<128x128xf32>
    %131 = tpu.matmul %128, %130, %cst_153 {dimension_numbers = #tpu.dot_dimension_numbers<[1], [0], [0], [1], [0, 0, 1, 1], [], []>} : vector<128x32xbf16>, vector<32x128xbf16>, vector<128x128xf32> -> vector<128x128xf32>
    %132 = arith.addf %126, %131 : vector<128x128xf32>
    %c0_154 = arith.constant 0 : index
    %c4_155 = arith.constant 4 : index
    %c2_156 = arith.constant 2 : index
    %c0_157 = arith.constant 0 : index
    %133 = vector.load %arg1[%c0_154, %c4_155, %c2_156, %c0_157] : memref<2x12x12x32xbf16, #tpu.memory_space<vmem>>, vector<2x8x8x32xbf16>
    %134 = vector.shape_cast %133 : vector<2x8x8x32xbf16> to vector<128x32xbf16>
    %c22 = arith.constant 22 : index
    %c0_158 = arith.constant 0 : index
    %c0_159 = arith.constant 0 : index
    %135 = vector.load %arg2[%c22, %c0_158, %c0_159] : memref<25x32x128xbf16, #tpu.memory_space<vmem>>, vector<1x32x128xbf16>
    %136 = vector.shape_cast %135 : vector<1x32x128xbf16> to vector<32x128xbf16>
    %cst_160 = arith.constant dense<0.000000e+00> : vector<128x128xf32>
    %137 = tpu.matmul %134, %136, %cst_160 {dimension_numbers = #tpu.dot_dimension_numbers<[1], [0], [0], [1], [0, 0, 1, 1], [], []>} : vector<128x32xbf16>, vector<32x128xbf16>, vector<128x128xf32> -> vector<128x128xf32>
    %138 = arith.addf %132, %137 : vector<128x128xf32>
    %c0_161 = arith.constant 0 : index
    %c4_162 = arith.constant 4 : index
    %c3_163 = arith.constant 3 : index
    %c0_164 = arith.constant 0 : index
    %139 = vector.load %arg1[%c0_161, %c4_162, %c3_163, %c0_164] : memref<2x12x12x32xbf16, #tpu.memory_space<vmem>>, vector<2x8x8x32xbf16>
    %140 = vector.shape_cast %139 : vector<2x8x8x32xbf16> to vector<128x32xbf16>
    %c23 = arith.constant 23 : index
    %c0_165 = arith.constant 0 : index
    %c0_166 = arith.constant 0 : index
    %141 = vector.load %arg2[%c23, %c0_165, %c0_166] : memref<25x32x128xbf16, #tpu.memory_space<vmem>>, vector<1x32x128xbf16>
    %142 = vector.shape_cast %141 : vector<1x32x128xbf16> to vector<32x128xbf16>
    %cst_167 = arith.constant dense<0.000000e+00> : vector<128x128xf32>
    %143 = tpu.matmul %140, %142, %cst_167 {dimension_numbers = #tpu.dot_dimension_numbers<[1], [0], [0], [1], [0, 0, 1, 1], [], []>} : vector<128x32xbf16>, vector<32x128xbf16>, vector<128x128xf32> -> vector<128x128xf32>
    %144 = arith.addf %138, %143 : vector<128x128xf32>
    %c0_168 = arith.constant 0 : index
    %c4_169 = arith.constant 4 : index
    %c4_170 = arith.constant 4 : index
    %c0_171 = arith.constant 0 : index
    %145 = vector.load %arg1[%c0_168, %c4_169, %c4_170, %c0_171] : memref<2x12x12x32xbf16, #tpu.memory_space<vmem>>, vector<2x8x8x32xbf16>
    %146 = vector.shape_cast %145 : vector<2x8x8x32xbf16> to vector<128x32xbf16>
    %c24 = arith.constant 24 : index
    %c0_172 = arith.constant 0 : index
    %c0_173 = arith.constant 0 : index
    %147 = vector.load %arg2[%c24, %c0_172, %c0_173] : memref<25x32x128xbf16, #tpu.memory_space<vmem>>, vector<1x32x128xbf16>
    %148 = vector.shape_cast %147 : vector<1x32x128xbf16> to vector<32x128xbf16>
    %cst_174 = arith.constant dense<0.000000e+00> : vector<128x128xf32>
    %149 = tpu.matmul %146, %148, %cst_174 {dimension_numbers = #tpu.dot_dimension_numbers<[1], [0], [0], [1], [0, 0, 1, 1], [], []>} : vector<128x32xbf16>, vector<32x128xbf16>, vector<128x128xf32> -> vector<128x128xf32>
    %150 = arith.addf %144, %149 : vector<128x128xf32>
    %c0_175 = arith.constant 0 : index
    %c0_176 = arith.constant 0 : index
    %151 = vector.load %arg3[%c0_175, %c0_176] : memref<1x128xf32, #tpu.memory_space<vmem>>, vector<1x128xf32>
    %152 = vector.broadcast %151 : vector<1x128xf32> to vector<128x128xf32>
    %153 = arith.addf %150, %152 : vector<128x128xf32>
    %cst_177 = arith.constant 0.000000e+00 : f32
    %154 = vector.broadcast %cst_177 : f32 to vector<128x128xf32>
    %155 = arith.maximumf %153, %154 : vector<128x128xf32>
    %156 = arith.truncf %155 : vector<128x128xf32> to vector<128x128xbf16>
    %c0_178 = arith.constant 0 : index
    %c0_179 = arith.constant 0 : index
    %157 = vector.load %arg4[%c0_178, %c0_179] : memref<128x128xbf16, #tpu.memory_space<vmem>>, vector<128x128xbf16>
    tpu.vector_store %arg4[%c0_178, %c0_179], %156 {strides = array<i32>} : memref<128x128xbf16, #tpu.memory_space<vmem>>, vector<128x128xbf16>,
    return
  }
  func.func @transform_0(%arg0: i32) -> (i32, i32, i32, i32) {
    %c0_i32 = arith.constant 0 : i32
    %c0_i32_0 = arith.constant 0 : i32
    %c0_i32_1 = arith.constant 0 : i32
    %c0_i32_2 = arith.constant 0 : i32
    return %arg0, %c0_i32, %c0_i32_0, %c0_i32_1 : i32, i32, i32, i32
  }
  func.func @transform_1(%arg0: i32) -> (i32, i32, i32) {
    %c0_i32 = arith.constant 0 : i32
    %c0_i32_0 = arith.constant 0 : i32
    %c0_i32_1 = arith.constant 0 : i32
    %c0_i32_2 = arith.constant 0 : i32
    return %c0_i32, %c0_i32_0, %c0_i32_1 : i32, i32, i32
  }
  func.func @transform_2(%arg0: i32) -> (i32, i32) {
    %c0_i32 = arith.constant 0 : i32
    %c0_i32_0 = arith.constant 0 : i32
    %c0_i32_1 = arith.constant 0 : i32
    return %c0_i32, %c0_i32_0 : i32, i32
  }
  func.func @transform_3(%arg0: i32) -> (i32, i32) {
    %c0_i32 = arith.constant 0 : i32
    %c0_i32_0 = arith.constant 0 : i32
    return %arg0, %c0_i32 : i32, i32
  }
}

module attributes {stable_mosaic.version = 11 : i64} {
  func.func @_pool_fc_kernel(%arg0: i32, %arg1: memref<2x4x2x4x256xbf16, #tpu.memory_space<vmem>>, %arg2: memref<16x128x512xbf16, #tpu.memory_space<vmem>>, %arg3: memref<1x512xf32, #tpu.memory_space<vmem>>, %arg4: memref<512x128xbf16, #tpu.memory_space<vmem>>, %arg5: memref<1x128xf32, #tpu.memory_space<vmem>>, %arg6: memref<2x128xf32, #tpu.memory_space<vmem>>) attributes {dimension_semantics = [#tpu.dimension_semantics<parallel>], iteration_bounds = array<i64: 1>, scalar_prefetch = 0 : i64, scratch_operands = 0 : i64, tpu.core_type = #tpu.core_type<tc>, window_params = [{transform_indices = @transform_0, window_bounds = array<i64: 2, 4, 2, 4, 256>}, {pipeline_mode = #tpu.pipeline_mode<synchronous>, transform_indices = @transform_1, window_bounds = array<i64: 16, 128, 512>}, {pipeline_mode = #tpu.pipeline_mode<synchronous>, transform_indices = @transform_2, window_bounds = array<i64: 1, 512>}, {pipeline_mode = #tpu.pipeline_mode<synchronous>, transform_indices = @transform_3, window_bounds = array<i64: 512, 128>}, {pipeline_mode = #tpu.pipeline_mode<synchronous>, transform_indices = @transform_4, window_bounds = array<i64: 1, 128>}, {transform_indices = @transform_5, window_bounds = array<i64: 2, 128>}]} {
    %c0 = arith.constant 0 : index
    %c0_0 = arith.constant 0 : index
    %c0_1 = arith.constant 0 : index
    %c0_2 = arith.constant 0 : index
    %c0_3 = arith.constant 0 : index
    %0 = vector.load %arg1[%c0, %c0_0, %c0_1, %c0_2, %c0_3] : memref<2x4x2x4x256xbf16, #tpu.memory_space<vmem>>, vector<2x4x2x4x256xbf16>
    %1 = vector.extract_strided_slice %0 {offsets = [0, 0, 0, 0, 0], sizes = [2, 4, 1, 4, 256], strides = [1, 1, 1, 1, 1]} : vector<2x4x2x4x256xbf16> to vector<2x4x1x4x256xbf16>
    %2 = vector.shape_cast %1 : vector<2x4x1x4x256xbf16> to vector<2x4x4x256xbf16>
    %3 = vector.extract_strided_slice %0 {offsets = [0, 0, 1, 0, 0], sizes = [2, 4, 1, 4, 256], strides = [1, 1, 1, 1, 1]} : vector<2x4x2x4x256xbf16> to vector<2x4x1x4x256xbf16>
    %4 = vector.shape_cast %3 : vector<2x4x1x4x256xbf16> to vector<2x4x4x256xbf16>
    %5 = arith.maximumf %2, %4 : vector<2x4x4x256xbf16>
    %6 = vector.extract_strided_slice %5 {offsets = [0, 0, 0, 0], sizes = [2, 4, 4, 128], strides = [1, 1, 1, 1]} : vector<2x4x4x256xbf16> to vector<2x4x4x128xbf16>
    %7 = vector.extract_strided_slice %5 {offsets = [0, 0, 0, 128], sizes = [2, 4, 4, 128], strides = [1, 1, 1, 1]} : vector<2x4x4x256xbf16> to vector<2x4x4x128xbf16>
    %8 = arith.maximumf %6, %7 : vector<2x4x4x128xbf16>
    %cst = arith.constant 0.000000e+00 : f32
    %9 = vector.broadcast %cst : f32 to vector<2x512xf32>
    %10 = vector.extract_strided_slice %8 {offsets = [0, 0, 0, 0], sizes = [2, 1, 1, 128], strides = [1, 1, 1, 1]} : vector<2x4x4x128xbf16> to vector<2x1x1x128xbf16>
    %11 = vector.shape_cast %10 : vector<2x1x1x128xbf16> to vector<2x128xbf16>
    %c0_4 = arith.constant 0 : index
    %c0_5 = arith.constant 0 : index
    %c0_6 = arith.constant 0 : index
    %12 = vector.load %arg2[%c0_4, %c0_5, %c0_6] : memref<16x128x512xbf16, #tpu.memory_space<vmem>>, vector<1x128x512xbf16>
    %13 = vector.shape_cast %12 : vector<1x128x512xbf16> to vector<128x512xbf16>
    %cst_7 = arith.constant dense<0.000000e+00> : vector<2x512xf32>
    %14 = tpu.matmul %11, %13, %cst_7 {dimension_numbers = #tpu.dot_dimension_numbers<[1], [0], [0], [1], [0, 0, 1, 1], [], []>} : vector<2x128xbf16>, vector<128x512xbf16>, vector<2x512xf32> -> vector<2x512xf32>
    %15 = arith.addf %9, %14 : vector<2x512xf32>
    %16 = vector.extract_strided_slice %8 {offsets = [0, 0, 1, 0], sizes = [2, 1, 1, 128], strides = [1, 1, 1, 1]} : vector<2x4x4x128xbf16> to vector<2x1x1x128xbf16>
    %17 = vector.shape_cast %16 : vector<2x1x1x128xbf16> to vector<2x128xbf16>
    %c1 = arith.constant 1 : index
    %c0_8 = arith.constant 0 : index
    %c0_9 = arith.constant 0 : index
    %18 = vector.load %arg2[%c1, %c0_8, %c0_9] : memref<16x128x512xbf16, #tpu.memory_space<vmem>>, vector<1x128x512xbf16>
    %19 = vector.shape_cast %18 : vector<1x128x512xbf16> to vector<128x512xbf16>
    %cst_10 = arith.constant dense<0.000000e+00> : vector<2x512xf32>
    %20 = tpu.matmul %17, %19, %cst_10 {dimension_numbers = #tpu.dot_dimension_numbers<[1], [0], [0], [1], [0, 0, 1, 1], [], []>} : vector<2x128xbf16>, vector<128x512xbf16>, vector<2x512xf32> -> vector<2x512xf32>
    %21 = arith.addf %15, %20 : vector<2x512xf32>
    %22 = vector.extract_strided_slice %8 {offsets = [0, 0, 2, 0], sizes = [2, 1, 1, 128], strides = [1, 1, 1, 1]} : vector<2x4x4x128xbf16> to vector<2x1x1x128xbf16>
    %23 = vector.shape_cast %22 : vector<2x1x1x128xbf16> to vector<2x128xbf16>
    %c2 = arith.constant 2 : index
    %c0_11 = arith.constant 0 : index
    %c0_12 = arith.constant 0 : index
    %24 = vector.load %arg2[%c2, %c0_11, %c0_12] : memref<16x128x512xbf16, #tpu.memory_space<vmem>>, vector<1x128x512xbf16>
    %25 = vector.shape_cast %24 : vector<1x128x512xbf16> to vector<128x512xbf16>
    %cst_13 = arith.constant dense<0.000000e+00> : vector<2x512xf32>
    %26 = tpu.matmul %23, %25, %cst_13 {dimension_numbers = #tpu.dot_dimension_numbers<[1], [0], [0], [1], [0, 0, 1, 1], [], []>} : vector<2x128xbf16>, vector<128x512xbf16>, vector<2x512xf32> -> vector<2x512xf32>
    %27 = arith.addf %21, %26 : vector<2x512xf32>
    %28 = vector.extract_strided_slice %8 {offsets = [0, 0, 3, 0], sizes = [2, 1, 1, 128], strides = [1, 1, 1, 1]} : vector<2x4x4x128xbf16> to vector<2x1x1x128xbf16>
    %29 = vector.shape_cast %28 : vector<2x1x1x128xbf16> to vector<2x128xbf16>
    %c3 = arith.constant 3 : index
    %c0_14 = arith.constant 0 : index
    %c0_15 = arith.constant 0 : index
    %30 = vector.load %arg2[%c3, %c0_14, %c0_15] : memref<16x128x512xbf16, #tpu.memory_space<vmem>>, vector<1x128x512xbf16>
    %31 = vector.shape_cast %30 : vector<1x128x512xbf16> to vector<128x512xbf16>
    %cst_16 = arith.constant dense<0.000000e+00> : vector<2x512xf32>
    %32 = tpu.matmul %29, %31, %cst_16 {dimension_numbers = #tpu.dot_dimension_numbers<[1], [0], [0], [1], [0, 0, 1, 1], [], []>} : vector<2x128xbf16>, vector<128x512xbf16>, vector<2x512xf32> -> vector<2x512xf32>
    %33 = arith.addf %27, %32 : vector<2x512xf32>
    %34 = vector.extract_strided_slice %8 {offsets = [0, 1, 0, 0], sizes = [2, 1, 1, 128], strides = [1, 1, 1, 1]} : vector<2x4x4x128xbf16> to vector<2x1x1x128xbf16>
    %35 = vector.shape_cast %34 : vector<2x1x1x128xbf16> to vector<2x128xbf16>
    %c4 = arith.constant 4 : index
    %c0_17 = arith.constant 0 : index
    %c0_18 = arith.constant 0 : index
    %36 = vector.load %arg2[%c4, %c0_17, %c0_18] : memref<16x128x512xbf16, #tpu.memory_space<vmem>>, vector<1x128x512xbf16>
    %37 = vector.shape_cast %36 : vector<1x128x512xbf16> to vector<128x512xbf16>
    %cst_19 = arith.constant dense<0.000000e+00> : vector<2x512xf32>
    %38 = tpu.matmul %35, %37, %cst_19 {dimension_numbers = #tpu.dot_dimension_numbers<[1], [0], [0], [1], [0, 0, 1, 1], [], []>} : vector<2x128xbf16>, vector<128x512xbf16>, vector<2x512xf32> -> vector<2x512xf32>
    %39 = arith.addf %33, %38 : vector<2x512xf32>
    %40 = vector.extract_strided_slice %8 {offsets = [0, 1, 1, 0], sizes = [2, 1, 1, 128], strides = [1, 1, 1, 1]} : vector<2x4x4x128xbf16> to vector<2x1x1x128xbf16>
    %41 = vector.shape_cast %40 : vector<2x1x1x128xbf16> to vector<2x128xbf16>
    %c5 = arith.constant 5 : index
    %c0_20 = arith.constant 0 : index
    %c0_21 = arith.constant 0 : index
    %42 = vector.load %arg2[%c5, %c0_20, %c0_21] : memref<16x128x512xbf16, #tpu.memory_space<vmem>>, vector<1x128x512xbf16>
    %43 = vector.shape_cast %42 : vector<1x128x512xbf16> to vector<128x512xbf16>
    %cst_22 = arith.constant dense<0.000000e+00> : vector<2x512xf32>
    %44 = tpu.matmul %41, %43, %cst_22 {dimension_numbers = #tpu.dot_dimension_numbers<[1], [0], [0], [1], [0, 0, 1, 1], [], []>} : vector<2x128xbf16>, vector<128x512xbf16>, vector<2x512xf32> -> vector<2x512xf32>
    %45 = arith.addf %39, %44 : vector<2x512xf32>
    %46 = vector.extract_strided_slice %8 {offsets = [0, 1, 2, 0], sizes = [2, 1, 1, 128], strides = [1, 1, 1, 1]} : vector<2x4x4x128xbf16> to vector<2x1x1x128xbf16>
    %47 = vector.shape_cast %46 : vector<2x1x1x128xbf16> to vector<2x128xbf16>
    %c6 = arith.constant 6 : index
    %c0_23 = arith.constant 0 : index
    %c0_24 = arith.constant 0 : index
    %48 = vector.load %arg2[%c6, %c0_23, %c0_24] : memref<16x128x512xbf16, #tpu.memory_space<vmem>>, vector<1x128x512xbf16>
    %49 = vector.shape_cast %48 : vector<1x128x512xbf16> to vector<128x512xbf16>
    %cst_25 = arith.constant dense<0.000000e+00> : vector<2x512xf32>
    %50 = tpu.matmul %47, %49, %cst_25 {dimension_numbers = #tpu.dot_dimension_numbers<[1], [0], [0], [1], [0, 0, 1, 1], [], []>} : vector<2x128xbf16>, vector<128x512xbf16>, vector<2x512xf32> -> vector<2x512xf32>
    %51 = arith.addf %45, %50 : vector<2x512xf32>
    %52 = vector.extract_strided_slice %8 {offsets = [0, 1, 3, 0], sizes = [2, 1, 1, 128], strides = [1, 1, 1, 1]} : vector<2x4x4x128xbf16> to vector<2x1x1x128xbf16>
    %53 = vector.shape_cast %52 : vector<2x1x1x128xbf16> to vector<2x128xbf16>
    %c7 = arith.constant 7 : index
    %c0_26 = arith.constant 0 : index
    %c0_27 = arith.constant 0 : index
    %54 = vector.load %arg2[%c7, %c0_26, %c0_27] : memref<16x128x512xbf16, #tpu.memory_space<vmem>>, vector<1x128x512xbf16>
    %55 = vector.shape_cast %54 : vector<1x128x512xbf16> to vector<128x512xbf16>
    %cst_28 = arith.constant dense<0.000000e+00> : vector<2x512xf32>
    %56 = tpu.matmul %53, %55, %cst_28 {dimension_numbers = #tpu.dot_dimension_numbers<[1], [0], [0], [1], [0, 0, 1, 1], [], []>} : vector<2x128xbf16>, vector<128x512xbf16>, vector<2x512xf32> -> vector<2x512xf32>
    %57 = arith.addf %51, %56 : vector<2x512xf32>
    %58 = vector.extract_strided_slice %8 {offsets = [0, 2, 0, 0], sizes = [2, 1, 1, 128], strides = [1, 1, 1, 1]} : vector<2x4x4x128xbf16> to vector<2x1x1x128xbf16>
    %59 = vector.shape_cast %58 : vector<2x1x1x128xbf16> to vector<2x128xbf16>
    %c8 = arith.constant 8 : index
    %c0_29 = arith.constant 0 : index
    %c0_30 = arith.constant 0 : index
    %60 = vector.load %arg2[%c8, %c0_29, %c0_30] : memref<16x128x512xbf16, #tpu.memory_space<vmem>>, vector<1x128x512xbf16>
    %61 = vector.shape_cast %60 : vector<1x128x512xbf16> to vector<128x512xbf16>
    %cst_31 = arith.constant dense<0.000000e+00> : vector<2x512xf32>
    %62 = tpu.matmul %59, %61, %cst_31 {dimension_numbers = #tpu.dot_dimension_numbers<[1], [0], [0], [1], [0, 0, 1, 1], [], []>} : vector<2x128xbf16>, vector<128x512xbf16>, vector<2x512xf32> -> vector<2x512xf32>
    %63 = arith.addf %57, %62 : vector<2x512xf32>
    %64 = vector.extract_strided_slice %8 {offsets = [0, 2, 1, 0], sizes = [2, 1, 1, 128], strides = [1, 1, 1, 1]} : vector<2x4x4x128xbf16> to vector<2x1x1x128xbf16>
    %65 = vector.shape_cast %64 : vector<2x1x1x128xbf16> to vector<2x128xbf16>
    %c9 = arith.constant 9 : index
    %c0_32 = arith.constant 0 : index
    %c0_33 = arith.constant 0 : index
    %66 = vector.load %arg2[%c9, %c0_32, %c0_33] : memref<16x128x512xbf16, #tpu.memory_space<vmem>>, vector<1x128x512xbf16>
    %67 = vector.shape_cast %66 : vector<1x128x512xbf16> to vector<128x512xbf16>
    %cst_34 = arith.constant dense<0.000000e+00> : vector<2x512xf32>
    %68 = tpu.matmul %65, %67, %cst_34 {dimension_numbers = #tpu.dot_dimension_numbers<[1], [0], [0], [1], [0, 0, 1, 1], [], []>} : vector<2x128xbf16>, vector<128x512xbf16>, vector<2x512xf32> -> vector<2x512xf32>
    %69 = arith.addf %63, %68 : vector<2x512xf32>
    %70 = vector.extract_strided_slice %8 {offsets = [0, 2, 2, 0], sizes = [2, 1, 1, 128], strides = [1, 1, 1, 1]} : vector<2x4x4x128xbf16> to vector<2x1x1x128xbf16>
    %71 = vector.shape_cast %70 : vector<2x1x1x128xbf16> to vector<2x128xbf16>
    %c10 = arith.constant 10 : index
    %c0_35 = arith.constant 0 : index
    %c0_36 = arith.constant 0 : index
    %72 = vector.load %arg2[%c10, %c0_35, %c0_36] : memref<16x128x512xbf16, #tpu.memory_space<vmem>>, vector<1x128x512xbf16>
    %73 = vector.shape_cast %72 : vector<1x128x512xbf16> to vector<128x512xbf16>
    %cst_37 = arith.constant dense<0.000000e+00> : vector<2x512xf32>
    %74 = tpu.matmul %71, %73, %cst_37 {dimension_numbers = #tpu.dot_dimension_numbers<[1], [0], [0], [1], [0, 0, 1, 1], [], []>} : vector<2x128xbf16>, vector<128x512xbf16>, vector<2x512xf32> -> vector<2x512xf32>
    %75 = arith.addf %69, %74 : vector<2x512xf32>
    %76 = vector.extract_strided_slice %8 {offsets = [0, 2, 3, 0], sizes = [2, 1, 1, 128], strides = [1, 1, 1, 1]} : vector<2x4x4x128xbf16> to vector<2x1x1x128xbf16>
    %77 = vector.shape_cast %76 : vector<2x1x1x128xbf16> to vector<2x128xbf16>
    %c11 = arith.constant 11 : index
    %c0_38 = arith.constant 0 : index
    %c0_39 = arith.constant 0 : index
    %78 = vector.load %arg2[%c11, %c0_38, %c0_39] : memref<16x128x512xbf16, #tpu.memory_space<vmem>>, vector<1x128x512xbf16>
    %79 = vector.shape_cast %78 : vector<1x128x512xbf16> to vector<128x512xbf16>
    %cst_40 = arith.constant dense<0.000000e+00> : vector<2x512xf32>
    %80 = tpu.matmul %77, %79, %cst_40 {dimension_numbers = #tpu.dot_dimension_numbers<[1], [0], [0], [1], [0, 0, 1, 1], [], []>} : vector<2x128xbf16>, vector<128x512xbf16>, vector<2x512xf32> -> vector<2x512xf32>
    %81 = arith.addf %75, %80 : vector<2x512xf32>
    %82 = vector.extract_strided_slice %8 {offsets = [0, 3, 0, 0], sizes = [2, 1, 1, 128], strides = [1, 1, 1, 1]} : vector<2x4x4x128xbf16> to vector<2x1x1x128xbf16>
    %83 = vector.shape_cast %82 : vector<2x1x1x128xbf16> to vector<2x128xbf16>
    %c12 = arith.constant 12 : index
    %c0_41 = arith.constant 0 : index
    %c0_42 = arith.constant 0 : index
    %84 = vector.load %arg2[%c12, %c0_41, %c0_42] : memref<16x128x512xbf16, #tpu.memory_space<vmem>>, vector<1x128x512xbf16>
    %85 = vector.shape_cast %84 : vector<1x128x512xbf16> to vector<128x512xbf16>
    %cst_43 = arith.constant dense<0.000000e+00> : vector<2x512xf32>
    %86 = tpu.matmul %83, %85, %cst_43 {dimension_numbers = #tpu.dot_dimension_numbers<[1], [0], [0], [1], [0, 0, 1, 1], [], []>} : vector<2x128xbf16>, vector<128x512xbf16>, vector<2x512xf32> -> vector<2x512xf32>
    %87 = arith.addf %81, %86 : vector<2x512xf32>
    %88 = vector.extract_strided_slice %8 {offsets = [0, 3, 1, 0], sizes = [2, 1, 1, 128], strides = [1, 1, 1, 1]} : vector<2x4x4x128xbf16> to vector<2x1x1x128xbf16>
    %89 = vector.shape_cast %88 : vector<2x1x1x128xbf16> to vector<2x128xbf16>
    %c13 = arith.constant 13 : index
    %c0_44 = arith.constant 0 : index
    %c0_45 = arith.constant 0 : index
    %90 = vector.load %arg2[%c13, %c0_44, %c0_45] : memref<16x128x512xbf16, #tpu.memory_space<vmem>>, vector<1x128x512xbf16>
    %91 = vector.shape_cast %90 : vector<1x128x512xbf16> to vector<128x512xbf16>
    %cst_46 = arith.constant dense<0.000000e+00> : vector<2x512xf32>
    %92 = tpu.matmul %89, %91, %cst_46 {dimension_numbers = #tpu.dot_dimension_numbers<[1], [0], [0], [1], [0, 0, 1, 1], [], []>} : vector<2x128xbf16>, vector<128x512xbf16>, vector<2x512xf32> -> vector<2x512xf32>
    %93 = arith.addf %87, %92 : vector<2x512xf32>
    %94 = vector.extract_strided_slice %8 {offsets = [0, 3, 2, 0], sizes = [2, 1, 1, 128], strides = [1, 1, 1, 1]} : vector<2x4x4x128xbf16> to vector<2x1x1x128xbf16>
    %95 = vector.shape_cast %94 : vector<2x1x1x128xbf16> to vector<2x128xbf16>
    %c14 = arith.constant 14 : index
    %c0_47 = arith.constant 0 : index
    %c0_48 = arith.constant 0 : index
    %96 = vector.load %arg2[%c14, %c0_47, %c0_48] : memref<16x128x512xbf16, #tpu.memory_space<vmem>>, vector<1x128x512xbf16>
    %97 = vector.shape_cast %96 : vector<1x128x512xbf16> to vector<128x512xbf16>
    %cst_49 = arith.constant dense<0.000000e+00> : vector<2x512xf32>
    %98 = tpu.matmul %95, %97, %cst_49 {dimension_numbers = #tpu.dot_dimension_numbers<[1], [0], [0], [1], [0, 0, 1, 1], [], []>} : vector<2x128xbf16>, vector<128x512xbf16>, vector<2x512xf32> -> vector<2x512xf32>
    %99 = arith.addf %93, %98 : vector<2x512xf32>
    %100 = vector.extract_strided_slice %8 {offsets = [0, 3, 3, 0], sizes = [2, 1, 1, 128], strides = [1, 1, 1, 1]} : vector<2x4x4x128xbf16> to vector<2x1x1x128xbf16>
    %101 = vector.shape_cast %100 : vector<2x1x1x128xbf16> to vector<2x128xbf16>
    %c15 = arith.constant 15 : index
    %c0_50 = arith.constant 0 : index
    %c0_51 = arith.constant 0 : index
    %102 = vector.load %arg2[%c15, %c0_50, %c0_51] : memref<16x128x512xbf16, #tpu.memory_space<vmem>>, vector<1x128x512xbf16>
    %103 = vector.shape_cast %102 : vector<1x128x512xbf16> to vector<128x512xbf16>
    %cst_52 = arith.constant dense<0.000000e+00> : vector<2x512xf32>
    %104 = tpu.matmul %101, %103, %cst_52 {dimension_numbers = #tpu.dot_dimension_numbers<[1], [0], [0], [1], [0, 0, 1, 1], [], []>} : vector<2x128xbf16>, vector<128x512xbf16>, vector<2x512xf32> -> vector<2x512xf32>
    %105 = arith.addf %99, %104 : vector<2x512xf32>
    %c0_53 = arith.constant 0 : index
    %c0_54 = arith.constant 0 : index
    %106 = vector.load %arg3[%c0_53, %c0_54] : memref<1x512xf32, #tpu.memory_space<vmem>>, vector<1x512xf32>
    %107 = vector.broadcast %106 : vector<1x512xf32> to vector<2x512xf32>
    %108 = arith.addf %105, %107 : vector<2x512xf32>
    %cst_55 = arith.constant 0.000000e+00 : f32
    %109 = vector.broadcast %cst_55 : f32 to vector<2x512xf32>
    %110 = arith.maximumf %108, %109 : vector<2x512xf32>
    %111 = arith.truncf %110 : vector<2x512xf32> to vector<2x512xbf16>
    %c0_56 = arith.constant 0 : index
    %c0_57 = arith.constant 0 : index
    %112 = vector.load %arg4[%c0_56, %c0_57] : memref<512x128xbf16, #tpu.memory_space<vmem>>, vector<512x128xbf16>
    %cst_58 = arith.constant dense<0.000000e+00> : vector<2x128xf32>
    %113 = tpu.matmul %111, %112, %cst_58 {dimension_numbers = #tpu.dot_dimension_numbers<[1], [0], [0], [1], [0, 0, 1, 1], [], []>} : vector<2x512xbf16>, vector<512x128xbf16>, vector<2x128xf32> -> vector<2x128xf32>
    %c0_59 = arith.constant 0 : index
    %c0_60 = arith.constant 0 : index
    %114 = vector.load %arg5[%c0_59, %c0_60] : memref<1x128xf32, #tpu.memory_space<vmem>>, vector<1x128xf32>
    %115 = vector.broadcast %114 : vector<1x128xf32> to vector<2x128xf32>
    %116 = arith.addf %113, %115 : vector<2x128xf32>
    %c0_61 = arith.constant 0 : index
    %c0_62 = arith.constant 0 : index
    %117 = vector.load %arg6[%c0_61, %c0_62] : memref<2x128xf32, #tpu.memory_space<vmem>>, vector<2x128xf32>
    tpu.vector_store %arg6[%c0_61, %c0_62], %116 {strides = array<i32>} : memref<2x128xf32, #tpu.memory_space<vmem>>, vector<2x128xf32>,
    return
  }
  func.func @transform_0(%arg0: i32) -> (i32, i32, i32, i32, i32) {
    %c0_i32 = arith.constant 0 : i32
    %c0_i32_0 = arith.constant 0 : i32
    %c0_i32_1 = arith.constant 0 : i32
    %c0_i32_2 = arith.constant 0 : i32
    %c0_i32_3 = arith.constant 0 : i32
    return %arg0, %c0_i32, %c0_i32_0, %c0_i32_1, %c0_i32_2 : i32, i32, i32, i32, i32
  }
  func.func @transform_1(%arg0: i32) -> (i32, i32, i32) {
    %c0_i32 = arith.constant 0 : i32
    %c0_i32_0 = arith.constant 0 : i32
    %c0_i32_1 = arith.constant 0 : i32
    %c0_i32_2 = arith.constant 0 : i32
    return %c0_i32, %c0_i32_0, %c0_i32_1 : i32, i32, i32
  }
  func.func @transform_2(%arg0: i32) -> (i32, i32) {
    %c0_i32 = arith.constant 0 : i32
    %c0_i32_0 = arith.constant 0 : i32
    %c0_i32_1 = arith.constant 0 : i32
    return %c0_i32, %c0_i32_0 : i32, i32
  }
  func.func @transform_3(%arg0: i32) -> (i32, i32) {
    %c0_i32 = arith.constant 0 : i32
    %c0_i32_0 = arith.constant 0 : i32
    %c0_i32_1 = arith.constant 0 : i32
    return %c0_i32, %c0_i32_0 : i32, i32
  }
  func.func @transform_4(%arg0: i32) -> (i32, i32) {
    %c0_i32 = arith.constant 0 : i32
    %c0_i32_0 = arith.constant 0 : i32
    %c0_i32_1 = arith.constant 0 : i32
    return %c0_i32, %c0_i32_0 : i32, i32
  }
  func.func @transform_5(%arg0: i32) -> (i32, i32) {
    %c0_i32 = arith.constant 0 : i32
    %c0_i32_0 = arith.constant 0 : i32
    return %arg0, %c0_i32 : i32, i32
  }
}

</mosaic_0001>

<bundles_post_ra>
// kernel: cnn_forward.3
= control target key start
LH: loop header
LB: loop body
LE: loop exit
PB: predicated region body
PF: predicated region fallthrough
CT: control target
= control target key end

     0   :  { %vm542_vm0 = vcmask 261120   ;;  %vm1764_vm1 = vcmask 257024   ;;  %s3357_s1 = inlined_call_operand.vmem [shape: bf16[32,32], index: 1, kind: input, shape index: {}]   ;;  %s3358_s0 = inlined_call_operand.vmem [shape: bf16[2,4,144,32], index: 0, kind: input, shape index: {}]   ;;  %s3359_s2 = inlined_call_operand.vmem [shape: f32[1,32], index: 2, kind: input, shape index: {}]   ;;  %s3360_s3 = inlined_call_operand.vmem [shape: bf16[2,144,32], index: 3, kind: output, shape index: {}]  }
   0x1   :  { %v2250_v0 = vld [vmem:[%s3357_s1 + $0x8] sm:$0xff]   ;;  %v2251_v1 = vld [vmem:[%s3357_s1] sm:$0xff]   ;;  %v2256_v6 = vld [vmem:[%s3358_s0 + $0x10] sm:$0xff]  }
   0x2   :  { %2098 = vmatprep.subr.bf16.mxu0 %v2250_v0  ;;  %2246 = vmatprep.subr.bf16.mxu1 %v2250_v0  ;;  %v2252_v2 = vld [vmem:[%s3358_s0] sm:$0xff]   ;;  %v2254_v4 = vld [vmem:[%s3358_s0 + $0x8] sm:$0xff]   ;;  %v2257_v7 = vld [vmem:[%s3358_s0 + $0x130] sm:$0xff]  }
   0x3   :  { %2099 = vmatpush3.bf16.msra.mxu0 %v2250_v0  ;;  %2248 = vmatpush3.bf16.msra.mxu1 %v2250_v0  ;;  %v2253_v3 = vld [vmem:[%s3358_s0 + $0x120] sm:$0xff]   ;;  %v2255_v5 = vld [vmem:[%s3358_s0 + $0x128] sm:$0xff]   ;;  %v2258_v8 = vld [vmem:[%s3358_s0 + $0x18] sm:$0xff]  }
   0x4   :  { %2100 = vmatprep.subr.bf16.mxu0 %v2251_v1  ;;  %2247 = vmatprep.subr.bf16.mxu1 %v2251_v1  ;;  %v2259_v9 = vld [vmem:[%s3358_s0 + $0x138] sm:$0xff]   ;;  %v2260_v10 = vld [vmem:[%s3358_s0 + $0x20] sm:$0xff]   ;;  %v2262_v12 = vld [vmem:[%s3358_s0 + $0x28] sm:$0xff]  }
   0x5   :  { %2102 = vmatprep.mubr.msk.bf16.mxu0 %vm542_vm0, %v2252_v2  ;;  %2174 = vmatprep.mubr.msk.bf16.mxu1 %vm542_vm0, %v2253_v3  ;;  %v2261_v11 = vld [vmem:[%s3358_s0 + $0x140] sm:$0xff]   ;;  %v2263_v13 = vld [vmem:[%s3358_s0 + $0x148] sm:$0xff]   ;;  %v2264_v14 = vld [vmem:[%s3358_s0 + $0x30] sm:$0xff]  }
   0x6   :  { %v2265_v15 = vld [vmem:[%s3358_s0 + $0x150] sm:$0xff]   ;;  %v2266_v16 = vld [vmem:[%s3358_s0 + $0x38] sm:$0xff]   ;;  %v2268_v18 = vld [vmem:[%s3358_s0 + $0x40] sm:$0xff]  }
   0x7   :  { %2101 = vmatpush3.bf16.msra.mxu0 %v2251_v1  ;;  %2249 = vmatpush3.bf16.msra.mxu1 %v2251_v1  ;;  %v2267_v17 = vld [vmem:[%s3358_s0 + $0x158] sm:$0xff]   ;;  %v2269_v19 = vld [vmem:[%s3358_s0 + $0x160] sm:$0xff]   ;;  %v2270_v20 = vld [vmem:[%s3358_s0 + $0x48] sm:$0xff]  }
   0x8   :  { %v2271_v21 = vld [vmem:[%s3358_s0 + $0x168] sm:$0xff]   ;;  %v2272_v22 = vld [vmem:[%s3358_s0 + $0x50] sm:$0xff]   ;;  %v2274_v24 = vld [vmem:[%s3358_s0 + $0x58] sm:$0xff]  }
   0x9   :  { %v2273_v23 = vld [vmem:[%s3358_s0 + $0x170] sm:$0xff]   ;;  %v2275_v25 = vld [vmem:[%s3358_s0 + $0x178] sm:$0xff]   ;;  %v2276_v26 = vld [vmem:[%s3358_s0 + $0x60] sm:$0xff]  }
   0xa   :  { %2103 = vmatmul.mubr.msk.bf16.vlgmr.msra.gmra.mxu0 %vm542_vm0, %v2254_v4  ;;  %2175 = vmatmul.mubr.msk.bf16.vlgmr.msra.gmra.mxu1 %vm542_vm0, %v2255_v5  ;;  %v2277_v27 = vld [vmem:[%s3358_s0 + $0x180] sm:$0xff]   ;;  %v2278_v28 = vld [vmem:[%s3358_s0 + $0x68] sm:$0xff]   ;;  %v2280_v30 = vld [vmem:[%s3358_s0 + $0x70] sm:$0xff]  }
   0xb   :  { %2106 = vmatprep.mubr.msk.bf16.mxu0 %vm542_vm0, %v2256_v6  ;;  %2178 = vmatprep.mubr.msk.bf16.mxu1 %vm542_vm0, %v2257_v7  ;;  %v2279_v29 = vld [vmem:[%s3358_s0 + $0x188] sm:$0xff]   ;;  %v2281_v31 = vld [vmem:[%s3358_s0 + $0x190] sm:$0xff]   ;;  %v2282_v32 = vld [vmem:[%s3358_s0 + $0x78] sm:$0xff]  }
   0xc   :  { %v2283_v33 = vld [vmem:[%s3358_s0 + $0x198] sm:$0xff]   ;;  %v2284_v34 = vld [vmem:[%s3358_s0 + $0x80] sm:$0xff]   ;;  %v2286_v36 = vld [vmem:[%s3358_s0 + $0x88] sm:$0xff]  }
   0xd   :  { %v2285_v35 = vld [vmem:[%s3358_s0 + $0x1a0] sm:$0xff]   ;;  %v2287_v37 = vld [vmem:[%s3358_s0 + $0x1a8] sm:$0xff]   ;;  %v2288_v38 = vld [vmem:[%s3358_s0 + $0x90] sm:$0xff]  }
   0xe   :  { %v2289_v39 = vld [vmem:[%s3358_s0 + $0x1b0] sm:$0xff]   ;;  %v2290_v40 = vld [vmem:[%s3358_s0 + $0x98] sm:$0xff]   ;;  %v2292_v42 = vld [vmem:[%s3358_s0 + $0xa0] sm:$0xff]  }
   0xf   :  { %v2291_v41 = vld [vmem:[%s3358_s0 + $0x1b8] sm:$0xff]   ;;  %v2293_v43 = vld [vmem:[%s3358_s0 + $0x1c0] sm:$0xff]   ;;  %v2294_v44 = vld [vmem:[%s3358_s0 + $0xa8] sm:$0xff]  }
  0x10   :  { %v2295_v45 = vld [vmem:[%s3358_s0 + $0x1c8] sm:$0xff]   ;;  %v2296_v46 = vld [vmem:[%s3358_s0 + $0xb0] sm:$0xff]   ;;  %v2298_v48 = vld [vmem:[%s3358_s0 + $0xb8] sm:$0xff]  }
  0x11   :  { %v2297_v47 = vld [vmem:[%s3358_s0 + $0x1d0] sm:$0xff]   ;;  %v2299_v49 = vld [vmem:[%s3358_s0 + $0x1d8] sm:$0xff]   ;;  %v2300_v50 = vld [vmem:[%s3358_s0 + $0xc0] sm:$0xff]  }
  0x12   :  { %2107 = vmatmul.mubr.msk.bf16.gmra.mxu0 %vm542_vm0, %v2258_v8  ;;  %2179 = vmatmul.mubr.msk.bf16.gmra.mxu1 %vm542_vm0, %v2259_v9  ;;  %v2301_v51 = vld [vmem:[%s3358_s0 + $0x1e0] sm:$0xff]   ;;  %v2302_v52 = vld [vmem:[%s3358_s0 + $0xc8] sm:$0xff]   ;;  %v2304_v54 = vld [vmem:[%s3358_s0 + $0xd0] sm:$0xff]  }
  0x13   :  { %2110 = vmatprep.mubr.msk.bf16.mxu0 %vm542_vm0, %v2260_v10  ;;  %2182 = vmatprep.mubr.msk.bf16.mxu1 %vm542_vm0, %v2261_v11  ;;  %v2303_v53 = vld [vmem:[%s3358_s0 + $0x1e8] sm:$0xff]   ;;  %v2305_v55 = vld [vmem:[%s3358_s0 + $0x1f0] sm:$0xff]   ;;  %v2306_v56 = vld [vmem:[%s3358_s0 + $0xd8] sm:$0xff]  }
  0x14   :  { %v2307_v57 = vld [vmem:[%s3358_s0 + $0x1f8] sm:$0xff]   ;;  %v2308_v58 = vld [vmem:[%s3358_s0 + $0xe0] sm:$0xff]   ;;  %v2310_v60 = vld [vmem:[%s3358_s0 + $0xe8] sm:$0xff]  }
  0x15   :  { %v2309_v59 = vld [vmem:[%s3358_s0 + $0x200] sm:$0xff]   ;;  %v2311_v61 = vld [vmem:[%s3358_s0 + $0x208] sm:$0xff]   ;;  %v2312_v62 = vld [vmem:[%s3358_s0 + $0xf0] sm:$0xff]  }
  0x16   :  { %v2313_v63 = vld [vmem:[%s3358_s0 + $0x210] sm:$0xff]   ;;  %v2314_v0 = vld [vmem:[%s3358_s0 + $0xf8] sm:$0xff]   ;;  %v2316_v2 = vld [vmem:[%s3358_s0 + $0x100] sm:$0xff]  }
  0x17   :  { %v2315_v1 = vld [vmem:[%s3358_s0 + $0x218] sm:$0xff]   ;;  %v2317_v3 = vld [vmem:[%s3358_s0 + $0x220] sm:$0xff]   ;;  %v2318_v4 = vld [vmem:[%s3358_s0 + $0x108] sm:$0xff]  }
  0x18   :  { %v2319_v5 = vld [vmem:[%s3358_s0 + $0x228] sm:$0xff]   ;;  %v2320_v6 = vld [vmem:[%s3358_s0 + $0x110] sm:$0xff]   ;;  %v2322_v8 = vld [vmem:[%s3358_s0 + $0x118] sm:$0xff]  }
  0x19   :  { %v2321_v7 = vld [vmem:[%s3358_s0 + $0x230] sm:$0xff]   ;;  %v2323_v9 = vld [vmem:[%s3358_s0 + $0x238] sm:$0xff]  }
  0x1a   :  { %2111 = vmatmul.mubr.msk.bf16.gmra.mxu0 %vm542_vm0, %v2262_v12  ;;  %2183 = vmatmul.mubr.msk.bf16.gmra.mxu1 %vm542_vm0, %v2263_v13 }
  0x1b   :  { %2114 = vmatprep.mubr.msk.bf16.mxu0 %vm542_vm0, %v2264_v14  ;;  %2186 = vmatprep.mubr.msk.bf16.mxu1 %vm542_vm0, %v2265_v15 }
  0x22   :  { %2115 = vmatmul.mubr.msk.bf16.gmra.mxu0 %vm542_vm0, %v2266_v16  ;;  %2187 = vmatmul.mubr.msk.bf16.gmra.mxu1 %vm542_vm0, %v2267_v17 }
  0x23   :  { %2118 = vmatprep.mubr.msk.bf16.mxu0 %vm542_vm0, %v2268_v18  ;;  %2190 = vmatprep.mubr.msk.bf16.mxu1 %vm542_vm0, %v2269_v19 }
  0x2a   :  { %2119 = vmatmul.mubr.msk.bf16.gmra.mxu0 %vm542_vm0, %v2270_v20  ;;  %2191 = vmatmul.mubr.msk.bf16.gmra.mxu1 %vm542_vm0, %v2271_v21 }
  0x2b   :  { %2122 = vmatprep.mubr.msk.bf16.mxu0 %vm542_vm0, %v2272_v22  ;;  %2194 = vmatprep.mubr.msk.bf16.mxu1 %vm542_vm0, %v2273_v23 }
  0x32   :  { %2123 = vmatmul.mubr.msk.bf16.gmra.mxu0 %vm542_vm0, %v2274_v24  ;;  %2195 = vmatmul.mubr.msk.bf16.gmra.mxu1 %vm542_vm0, %v2275_v25 }
  0x33   :  { %2126 = vmatprep.mubr.msk.bf16.mxu0 %vm542_vm0, %v2276_v26  ;;  %2198 = vmatprep.mubr.msk.bf16.mxu1 %vm542_vm0, %v2277_v27 }
  0x3a   :  { %2127 = vmatmul.mubr.msk.bf16.gmra.mxu0 %vm542_vm0, %v2278_v28  ;;  %2199 = vmatmul.mubr.msk.bf16.gmra.mxu1 %vm542_vm0, %v2279_v29 }
  0x3b   :  { %2130 = vmatprep.mubr.msk.bf16.mxu0 %vm542_vm0, %v2280_v30  ;;  %2202 = vmatprep.mubr.msk.bf16.mxu1 %vm542_vm0, %v2281_v31 }
  0x42   :  { %2131 = vmatmul.mubr.msk.bf16.gmra.mxu0 %vm542_vm0, %v2282_v32  ;;  %2203 = vmatmul.mubr.msk.bf16.gmra.mxu1 %vm542_vm0, %v2283_v33 }
  0x43   :  { %2134 = vmatprep.mubr.msk.bf16.mxu0 %vm542_vm0, %v2284_v34  ;;  %2206 = vmatprep.mubr.msk.bf16.mxu1 %vm542_vm0, %v2285_v35  ;;  %v2654_v34 = vld [vmem:[%s3359_s2] ss:$0 sm:$0xff] }
  0x4a   :  { %2135 = vmatmul.mubr.msk.bf16.gmra.mxu0 %vm542_vm0, %v2286_v36  ;;  %2207 = vmatmul.mubr.msk.bf16.gmra.mxu1 %vm542_vm0, %v2287_v37 }
  0x4b   :  { %2138 = vmatprep.mubr.msk.bf16.mxu0 %vm542_vm0, %v2288_v38  ;;  %2210 = vmatprep.mubr.msk.bf16.mxu1 %vm542_vm0, %v2289_v39 }
  0x52   :  { %2139 = vmatmul.mubr.msk.bf16.gmra.mxu0 %vm542_vm0, %v2290_v40  ;;  %2211 = vmatmul.mubr.msk.bf16.gmra.mxu1 %vm542_vm0, %v2291_v41 }
  0x53   :  { %2142 = vmatprep.mubr.msk.bf16.mxu0 %vm542_vm0, %v2292_v42  ;;  %2214 = vmatprep.mubr.msk.bf16.mxu1 %vm542_vm0, %v2293_v43 }
  0x5a   :  { %2143 = vmatmul.mubr.msk.bf16.gmra.mxu0 %vm542_vm0, %v2294_v44  ;;  %2215 = vmatmul.mubr.msk.bf16.gmra.mxu1 %vm542_vm0, %v2295_v45 }
  0x5b   :  { %2146 = vmatprep.mubr.msk.bf16.mxu0 %vm542_vm0, %v2296_v46  ;;  %2218 = vmatprep.mubr.msk.bf16.mxu1 %vm542_vm0, %v2297_v47 }
  0x62   :  { %2147 = vmatmul.mubr.msk.bf16.gmra.mxu0 %vm542_vm0, %v2298_v48  ;;  %2219 = vmatmul.mubr.msk.bf16.gmra.mxu1 %vm542_vm0, %v2299_v49 }
  0x63   :  { %2150 = vmatprep.mubr.msk.bf16.mxu0 %vm542_vm0, %v2300_v50  ;;  %2222 = vmatprep.mubr.msk.bf16.mxu1 %vm542_vm0, %v2301_v51 }
  0x6a   :  { %2151 = vmatmul.mubr.msk.bf16.gmra.mxu0 %vm542_vm0, %v2302_v52  ;;  %2223 = vmatmul.mubr.msk.bf16.gmra.mxu1 %vm542_vm0, %v2303_v53 }
  0x6b   :  { %2154 = vmatprep.mubr.msk.bf16.mxu0 %vm542_vm0, %v2304_v54  ;;  %2226 = vmatprep.mubr.msk.bf16.mxu1 %vm542_vm0, %v2305_v55 }
  0x72   :  { %2155 = vmatmul.mubr.msk.bf16.gmra.mxu0 %vm542_vm0, %v2306_v56  ;;  %2227 = vmatmul.mubr.msk.bf16.gmra.mxu1 %vm542_vm0, %v2307_v57 }
  0x73   :  { %2158 = vmatprep.mubr.msk.bf16.mxu0 %vm542_vm0, %v2308_v58  ;;  %2230 = vmatprep.mubr.msk.bf16.mxu1 %vm542_vm0, %v2309_v59 }
  0x7a   :  { %2159 = vmatmul.mubr.msk.bf16.gmra.mxu0 %vm542_vm0, %v2310_v60  ;;  %2231 = vmatmul.mubr.msk.bf16.gmra.mxu1 %vm542_vm0, %v2311_v61 }
  0x7b   :  { %2162 = vmatprep.mubr.msk.bf16.mxu0 %vm542_vm0, %v2312_v62  ;;  %2234 = vmatprep.mubr.msk.bf16.mxu1 %vm542_vm0, %v2313_v63 }
  0x82   :  { %2163 = vmatmul.mubr.msk.bf16.gmra.mxu0 %vm542_vm0, %v2314_v0  ;;  %2235 = vmatmul.mubr.msk.bf16.gmra.mxu1 %vm542_vm0, %v2315_v1 }
  0x83   :  { %2166 = vmatprep.mubr.msk.bf16.mxu0 %vm542_vm0, %v2316_v2  ;;  %2238 = vmatprep.mubr.msk.bf16.mxu1 %vm542_vm0, %v2317_v3 }
  0x8a   :  { %2167 = vmatmul.mubr.msk.bf16.gmra.mxu0 %vm542_vm0, %v2318_v4  ;;  %2239 = vmatmul.mubr.msk.bf16.gmra.mxu1 %vm542_vm0, %v2319_v5 }
  0x8b   :  { %2170 = vmatprep.mubr.msk.bf16.mxu0 %vm542_vm0, %v2320_v6  ;;  %2242 = vmatprep.mubr.msk.bf16.mxu1 %vm542_vm0, %v2321_v7 }
  0x92   :  { %2171 = vmatmul.mubr.msk.bf16.gmra.mxu0 %vm542_vm0, %v2322_v8  ;;  %2243 = vmatmul.mubr.msk.bf16.gmra.mxu1 %vm542_vm0, %v2323_v9 }
  0xca   :  { %v2104_v10 = vpop.f32.mrf.mxu0  ;;  %v2176_v11 = vpop.f32.mrf.mxu1 }
  0xcb   :  { %v2665_v39 = vadd.f32 %v2104_v10, %v2654_v34  ;;  %v2668_v40 = vadd.f32 %v2176_v11, %v2654_v34 }
  0xcc   :  { %v793_v12 = vpop.f32.mrf.mxu0  ;;  %v1081_v13 = vpop.f32.mrf.mxu1 }
  0xcd   :  { %v794_v43 = vadd.f32 %v2654_v34, %v793_v12  ;;  %v1082_v44 = vadd.f32 %v2654_v34, %v1081_v13  ;;  %v1370_v51 = vmax.f32 %v2665_v39, 0.0  ;;  %v1442_v52 = vmax.f32 %v2668_v40, 0.0 }
  0xce   :  { %v2105_v14 = vpop.f32.mrf.mxu0  ;;  %v2177_v15 = vpop.f32.mrf.mxu1 }
  0xcf   :  { %v2677_v45 = vadd.f32 %v2105_v14, %v2654_v34  ;;  %v2680_v46 = vadd.f32 %v2177_v15, %v2654_v34  ;;  %v1368_v59 = vmax.f32 %v794_v43, 0.0  ;;  %v1440_v60 = vmax.f32 %v1082_v44, 0.0 }
  0xd0   :  { %v796_v16 = vpop.f32.mrf.mxu0  ;;  %v1084_v17 = vpop.f32.mrf.mxu1 }
  0xd1   :  { %v797_v47 = vadd.f32 %v2654_v34, %v796_v16  ;;  %v1085_v48 = vadd.f32 %v2654_v34, %v1084_v17  ;;  %v1371_v63 = vmax.f32 %v2677_v45, 0.0  ;;  %v1443_v0 = vmax.f32 %v2680_v46, 0.0 }
  0xd2   :  { %v2108_v18 = vpop.f32.mrf.mxu0  ;;  %v2180_v19 = vpop.f32.mrf.mxu1 }
  0xd3   :  { %v2691_v53 = vadd.f32 %v2108_v18, %v2654_v34  ;;  %v2694_v54 = vadd.f32 %v2180_v19, %v2654_v34  ;;  %v1369_v1 = vmax.f32 %v797_v47, 0.0  ;;  %v1441_v2 = vmax.f32 %v1085_v48, 0.0 }
  0xd4   :  { %v809_v20 = vpop.f32.mrf.mxu0  ;;  %v1097_v21 = vpop.f32.mrf.mxu1 }
  0xd5   :  { %v2697_v55 = vadd.f32 %v2654_v34, %v809_v20  ;;  %v2700_v56 = vadd.f32 %v2654_v34, %v1097_v21  ;;  %v1374_v9 = vmax.f32 %v2691_v53, 0.0  ;;  %v1446_v10 = vmax.f32 %v2694_v54, 0.0 }
  0xd6   :  { %v2109_v22 = vpop.f32.mrf.mxu0  ;;  %v2181_v23 = vpop.f32.mrf.mxu1 }
  0xd7   :  { %v2711_v5 = vadd.f32 %v2109_v22, %v2654_v34  ;;  %v2714_v6 = vadd.f32 %v2181_v23, %v2654_v34  ;;  %v1372_v11 = vmax.f32 %v2697_v55, 0.0  ;;  %v1444_v12 = vmax.f32 %v2700_v56, 0.0 }
  0xd8   :  { %v812_v24 = vpop.f32.mrf.mxu0  ;;  %v1100_v25 = vpop.f32.mrf.mxu1 }
  0xd9   :  { %v2721_v15 = vadd.f32 %v2654_v34, %v812_v24  ;;  %v2724_v16 = vadd.f32 %v2654_v34, %v1100_v25  ;;  %v1375_v25 = vmax.f32 %v2711_v5, 0.0  ;;  %v1447_v43 = vmax.f32 %v2714_v6, 0.0 }
  0xda   :  { %v2112_v26 = vpop.f32.mrf.mxu0  ;;  %v2184_v27 = vpop.f32.mrf.mxu1 }
  0xdb   :  { %v2731_v19 = vadd.f32 %v2112_v26, %v2654_v34  ;;  %v2734_v20 = vadd.f32 %v2184_v27, %v2654_v34 }
  0xdc   :  { %v2639_v28 = vpop.f32.mrf.mxu0  ;;  %v2641_v29 = vpop.f32.mrf.mxu1 }
  0xdd   :  { %v2746_v44 = vadd.f32 %v2654_v34, %v2639_v28  ;;  %v2750_v26 = vadd.f32 %v2654_v34, %v2641_v29  ;;  %v1445_v28 = vmax.f32 %v2724_v16, 0.0 }
  0xde   :  { %v2643_v30 = vpop.f32.mrf.mxu0  ;;  %v2645_v31 = vpop.f32.mrf.mxu1 }
  0xdf   :  { %v2754_v27 = vadd.f32 %v2643_v30, %v2654_v34  ;;  %v2758_v47 = vadd.f32 %v2645_v31, %v2654_v34  ;;  %v1450_v30 = vmax.f32 %v2734_v20, 0.0  ;;  %v1376_v16 = vmax.f32 %v2746_v44, 0.0 }
  0xe0   :  { %v2647_v32 = vpop.f32.mrf.mxu0  ;;  %v2649_v33 = vpop.f32.mrf.mxu1 }
  0xe1   :  { %v1117_v44 = vadd.f32 %v2654_v34, %v2649_v33 }
  0xe2   :  { %v2656_v35 = vpop.f32.mrf.mxu0  ;;  %v2658_v36 = vpop.f32.mrf.mxu1 }
  0xe3   :  { %v2798_v33 = vadd.f32 %v2656_v35, %v2654_v34 }
  0xe4   :  { %v2660_v37 = vpop.f32.mrf.mxu0  ;;  %v2662_v38 = vpop.f32.mrf.mxu1 }
  0xe6   :  { %v2670_v41 = vpop.f32.mrf.mxu0  ;;  %v2672_v42 = vpop.f32.mrf.mxu1 }
  0xe8   :  { %v2684_v49 = vpop.f32.mrf.mxu0  ;;  %v2686_v50 = vpop.f32.mrf.mxu1 }
  0xea   :  { %v2120_v57 = vpop.f32.mrf.mxu0  ;;  %v2192_v58 = vpop.f32.mrf.mxu1 }
  0xeb   :  { %v866_v61 = vadd.f32 %v2120_v57, %v2654_v34  ;;  %v1154_v62 = vadd.f32 %v2192_v58, %v2654_v34  ;;  %v1373_v58 = vmax.f32 %v2721_v15, 0.0 }
  0xec   :  { %v2706_v3 = vpop.f32.mrf.mxu0  ;;  %v2708_v4 = vpop.f32.mrf.mxu1 }
  0xed   :  { %v1386_v7 = vmax.f32 %v866_v61, 0.0  ;;  %v1458_v8 = vmax.f32 %v1154_v62, 0.0  ;;  %v858_v6 = vadd.f32 %v2654_v34, %v2706_v3  ;;  %v853_v3 = vadd.f32 %v2670_v41, %v2654_v34 }
  0xee   :  { %v2121_v13 = vpop.f32.mrf.mxu0  ;;  %v2193_v14 = vpop.f32.mrf.mxu1 }
  0xef   :  { %v2726_v17 = vmax.f32 %v1368_v59, %v1386_v7  ;;  %v2728_v18 = vmax.f32 %v1440_v60, %v1458_v8  ;;  %v869_v21 = vadd.f32 %v2121_v13, %v2654_v34  ;;  %v1157_v22 = vadd.f32 %v2193_v14, %v2654_v34 }
  0xf0   :  { %v2738_v23 = vpop.f32.mrf.mxu0  ;;  %v2740_v24 = vpop.f32.mrf.mxu1  ;;  %v1378_v60 = vmax.f32 %v2731_v19, 0.0 }
  0xf1   :  { %v1387_v48 = vmax.f32 %v869_v21, 0.0  ;;  %v1459_v55 = vmax.f32 %v1157_v22, 0.0  ;;  %v1448_v21 = vmax.f32 %v2750_v26, 0.0 }
  0xf2   :  { %v2124_v56 = vpop.f32.mrf.mxu0  ;;  %v2196_v57 = vpop.f32.mrf.mxu1 }
  0xf3   :  { %v882_v59 = vadd.f32 %v2124_v56, %v2654_v34  ;;  %v1170_v29 = vadd.f32 %v2196_v57, %v2654_v34  ;;  %v2766_v61 = vmax.f32 %v1369_v1, %v1387_v48  ;;  %v2768_v31 = vmax.f32 %v1441_v2, %v1459_v55 }
  0xf4   :  { %v873_v62 = vpop.f32.mrf.mxu0  ;;  %v1161_v7 = vpop.f32.mrf.mxu1 }
  0xf5   :  { %v1390_v8 = vmax.f32 %v882_v59, 0.0  ;;  %v1462_v13 = vmax.f32 %v1170_v29, 0.0  ;;  %v874_v14 = vadd.f32 %v2654_v34, %v873_v62  ;;  %v1162_v15 = vadd.f32 %v2654_v34, %v1161_v7 }
  0xf6   :  { %v2125_v1 = vpop.f32.mrf.mxu0  ;;  %v2197_v48 = vpop.f32.mrf.mxu1  ;;  %v829_v29 = vadd.f32 %v2654_v34, %v2647_v32 }
  0xf7   :  { %v2776_v2 = vmax.f32 %v1372_v11, %v1390_v8  ;;  %v2778_v55 = vmax.f32 %v1444_v12, %v1462_v13  ;;  %v1388_v57 = vmax.f32 %v874_v14, 0.0  ;;  %v1460_v59 = vmax.f32 %v1162_v15, 0.0 }
  0xf8   :  { %v885_v26 = vadd.f32 %v2125_v1, %v2654_v34  ;;  %v1173_v62 = vadd.f32 %v2197_v48, %v2654_v34  ;;  %v876_v7 = vpop.f32.mrf.mxu0  ;;  %v1164_v56 = vpop.f32.mrf.mxu1  ;;  %v2802_v13 = vadd.f32 %v2658_v36, %v2654_v34 }
  0xf9   :  { %v2788_v11 = vmax.f32 %v1370_v51, %v1388_v57  ;;  %v2792_v12 = vmax.f32 %v1442_v52, %v1460_v59  ;;  %v877_v8 = vadd.f32 %v2654_v34, %v876_v7  ;;  %v1165_v32 = vadd.f32 %v2654_v34, %v1164_v56 }
  0xfa   :  { %v1391_v14 = vmax.f32 %v885_v26, 0.0  ;;  %v1463_v39 = vmax.f32 %v1173_v62, 0.0  ;;  %v2128_v51 = vpop.f32.mrf.mxu0  ;;  %v2200_v15 = vpop.f32.mrf.mxu1  ;;  %v1377_v57 = vmax.f32 %v829_v29, 0.0  ;;  %v1449_v56 = vmax.f32 %v1117_v44, 0.0 }
  0xfb   :  { %v1389_v1 = vmax.f32 %v877_v8, 0.0  ;;  %v1461_v40 = vmax.f32 %v1165_v32, 0.0  ;;  %v898_v52 = vadd.f32 %v2128_v51, %v2654_v34  ;;  %v1186_v48 = vadd.f32 %v2200_v15, %v2654_v34 }
  0xfc   :  { %v2806_v59 = vmax.f32 %v1373_v58, %v1391_v14  ;;  %v2808_v35 = vmax.f32 %v1445_v28, %v1463_v39  ;;  %v889_v7 = vpop.f32.mrf.mxu0  ;;  %v1177_v22 = vpop.f32.mrf.mxu1  ;;  %v1382_v32 = vmax.f32 %v2798_v33, 0.0  ;;  %v1454_v29 = vmax.f32 %v2802_v13, 0.0 }
  0xfd   :  { %v2812_v36 = vmax.f32 %v1371_v63, %v1389_v1  ;;  %v2816_v26 = vmax.f32 %v1443_v0, %v1461_v40  ;;  %v1394_v62 = vmax.f32 %v898_v52, 0.0  ;;  %v1466_v8 = vmax.f32 %v1186_v48, 0.0 }
  0xfe   :  { %v890_v58 = vadd.f32 %v2654_v34, %v889_v7  ;;  %v1178_v28 = vadd.f32 %v2654_v34, %v1177_v22  ;;  %v2129_v44 = vpop.f32.mrf.mxu0  ;;  %v2201_v14 = vpop.f32.mrf.mxu1  ;;  %v842_v0 = vadd.f32 %v2654_v34, %v2660_v37  ;;  %v1130_v51 = vadd.f32 %v2654_v34, %v2662_v38 }
  0xff   :  { %v2822_v39 = vmax.f32 %v1376_v16, %v1394_v62  ;;  %v2824_v45 = vmax.f32 %v1448_v21, %v1466_v8  ;;  %v901_v46 = vadd.f32 %v2129_v44, %v2654_v34  ;;  %v1189_v63 = vadd.f32 %v2201_v14, %v2654_v34 }
 0x100   :  { %v1392_v15 = vmax.f32 %v890_v58, 0.0  ;;  %v1464_v1 = vmax.f32 %v1178_v28, 0.0  ;;  %v892_v40 = vpop.f32.mrf.mxu0  ;;  %v1180_v22 = vpop.f32.mrf.mxu1  ;;  %v845_v7 = vadd.f32 %v2654_v34, %v2684_v49  ;;  %v1133_v62 = vadd.f32 %v2654_v34, %v2686_v50 }
 0x101   :  { %v1395_v52 = vmax.f32 %v901_v46, 0.0  ;;  %v1467_v48 = vmax.f32 %v1189_v63, 0.0  ;;  %v893_v16 = vadd.f32 %v2654_v34, %v892_v40  ;;  %v1181_v21 = vadd.f32 %v2654_v34, %v1180_v22 }
 0x102   :  { %v2840_v37 = vmax.f32 %v1374_v9, %v1392_v15  ;;  %v2844_v38 = vmax.f32 %v1446_v10, %v1464_v1  ;;  %v2132_v8 = vpop.f32.mrf.mxu0  ;;  %v2204_v58 = vpop.f32.mrf.mxu1  ;;  %v1380_v49 = vmax.f32 %v842_v0, 0.0  ;;  %v1452_v63 = vmax.f32 %v1130_v51, 0.0 }
 0x103   :  { %v2846_v28 = vmax.f32 %v1377_v57, %v1395_v52  ;;  %v2848_v44 = vmax.f32 %v1449_v56, %v1467_v48  ;;  %v1393_v14 = vmax.f32 %v893_v16, 0.0  ;;  %v1465_v46 = vmax.f32 %v1181_v21, 0.0 }
 0x104   :  { %v914_v50 = vadd.f32 %v2132_v8, %v2654_v34  ;;  %v1202_v53 = vadd.f32 %v2204_v58, %v2654_v34  ;;  %v905_v9 = vpop.f32.mrf.mxu0  ;;  %v1193_v15 = vpop.f32.mrf.mxu1  ;;  %v1381_v0 = vmax.f32 %v845_v7, 0.0  ;;  %v1453_v51 = vmax.f32 %v1133_v62, 0.0 }
 0x105   :  { %v2854_v54 = vmax.f32 %v1375_v25, %v1393_v14  ;;  %v2858_v10 = vmax.f32 %v1447_v43, %v1465_v46  ;;  %v906_v57 = vadd.f32 %v2654_v34, %v905_v9  ;;  %v1194_v56 = vadd.f32 %v2654_v34, %v1193_v15 }
 0x106   :  { %v1398_v1 = vmax.f32 %v914_v50, 0.0  ;;  %v1470_v40 = vmax.f32 %v1202_v53, 0.0  ;;  %v2133_v22 = vpop.f32.mrf.mxu0  ;;  %v2205_v52 = vpop.f32.mrf.mxu1  ;;  %v1146_v43 = vadd.f32 %v2654_v34, %v2708_v4  ;;  %v1141_v4 = vadd.f32 %v2672_v42, %v2654_v34 }
 0x107   :  { %3368 = vst [vmem:[#allocation2_spill] sm:$0xff] %v2858_v10  ;;  %v1396_v48 = vmax.f32 %v906_v57, 0.0  ;;  %v1468_v16 = vmax.f32 %v1194_v56, 0.0  ;;  %v917_v5 = vadd.f32 %v2133_v22, %v2654_v34  ;;  %v1205_v25 = vadd.f32 %v2205_v52, %v2654_v34 }
 0x108   :  { %v2868_v21 = vmax.f32 %v1380_v49, %v1398_v1  ;;  %v2870_v7 = vmax.f32 %v1452_v63, %v1470_v40  ;;  %v908_v62 = vpop.f32.mrf.mxu0  ;;  %v1196_v8 = vpop.f32.mrf.mxu1  ;;  %v1384_v15 = vmax.f32 %v858_v6, 0.0  ;;  %v1456_v57 = vmax.f32 %v1146_v43, 0.0 }
 0x109   :  { %v2874_v58 = vmax.f32 %v1378_v60, %v1396_v48  ;;  %v2878_v14 = vmax.f32 %v1450_v30, %v1468_v16  ;;  %v1399_v46 = vmax.f32 %v917_v5, 0.0  ;;  %v1471_v50 = vmax.f32 %v1205_v25, 0.0 }
 0x10a   :  { %3369 = vst [vmem:[#allocation3_spill] sm:$0xff] %v2868_v21  ;;  %3370 = vst [vmem:[#allocation4_spill] sm:$0xff] %v2870_v7  ;;  %v909_v49 = vadd.f32 %v2654_v34, %v908_v62  ;;  %v1197_v63 = vadd.f32 %v2654_v34, %v1196_v8  ;;  %v2136_v53 = vpop.f32.mrf.mxu0  ;;  %v2208_v19 = vpop.f32.mrf.mxu1  ;;  %v3375_v16 = vmax.f32 %v2754_v27, 0.0  ;;  %v3377_v25 = vmax.f32 %v2758_v47, 0.0 }
 0x10b   :  { %3371 = vst [vmem:[#allocation5_spill] sm:$0xff] %v2874_v58  ;;  %3372 = vst [vmem:[#allocation6_spill] sm:$0xff] %v2878_v14  ;;  %v2886_v60 = vmax.f32 %v1381_v0, %v1399_v46  ;;  %v2888_v9 = vmax.f32 %v1453_v51, %v1471_v50  ;;  %v930_v20 = vadd.f32 %v2136_v53, %v2654_v34 }
 0x10c   :  { %v1218_v30 = vadd.f32 %v2208_v19, %v2654_v34  ;;  %v1397_v41 = vmax.f32 %v909_v49, 0.0  ;;  %v1469_v56 = vmax.f32 %v1197_v63, 0.0  ;;  %v921_v1 = vpop.f32.mrf.mxu0  ;;  %v1209_v42 = vpop.f32.mrf.mxu1  ;;  %v861_v0 = vadd.f32 %v2654_v34, %v2738_v23 }
 0x10d   :  { %3373 = vst [vmem:[#allocation7_spill] sm:$0xff] %v2886_v60  ;;  %3374 = vst [vmem:[#allocation8_spill] sm:$0xff] %v2888_v9  ;;  %v1402_v40 = vmax.f32 %v930_v20, 0.0  ;;  %v922_v52 = vadd.f32 %v2654_v34, %v921_v1  ;;  %v1210_v48 = vadd.f32 %v2654_v34, %v1209_v42  ;;  %v1149_v51 = vadd.f32 %v2654_v34, %v2740_v24 }
 0x10e   :  { %v1474_v22 = vmax.f32 %v1218_v30, 0.0  ;;  %v2900_v5 = vmax.f32 %v3375_v16, %v1397_v41  ;;  %v2904_v6 = vmax.f32 %v3377_v25, %v1469_v56  ;;  %v2137_v43 = vpop.f32.mrf.mxu0  ;;  %v2209_v62 = vpop.f32.mrf.mxu1  ;;  %v1385_v30 = vmax.f32 %v861_v0, 0.0 }
 0x10f   :  { %v2906_v8 = vmax.f32 %v1384_v15, %v1402_v40  ;;  %v1400_v50 = vmax.f32 %v922_v52, 0.0  ;;  %v1472_v49 = vmax.f32 %v1210_v48, 0.0  ;;  %v933_v23 = vadd.f32 %v2137_v43, %v2654_v34 }
 0x110   :  { %3376 = vst [vmem:[#allocation9_spill] sm:$0xff] %v2900_v5  ;;  %3378 = vst [vmem:[#allocation10_spill] sm:$0xff] %v2904_v6  ;;  %v2908_v46 = vmax.f32 %v1456_v57, %v1474_v22  ;;  %v1221_v24 = vadd.f32 %v2209_v62, %v2654_v34  ;;  %v924_v63 = vpop.f32.mrf.mxu0  ;;  %v1212_v27 = vpop.f32.mrf.mxu1  ;;  %v1457_v15 = vmax.f32 %v1149_v51, 0.0  ;;  %v1383_v42 = vmax.f32 %v853_v3, 0.0 }
 0x111   :  { %3379 = vst [vmem:[#allocation11_spill] sm:$0xff] %v2906_v8  ;;  %v2914_v53 = vmax.f32 %v1382_v32, %v1400_v50  ;;  %v2918_v47 = vmax.f32 %v1454_v29, %v1472_v49  ;;  %v925_v19 = vadd.f32 %v2654_v34, %v924_v63  ;;  %v1213_v20 = vadd.f32 %v2654_v34, %v1212_v27 }
 0x112   :  { %3380 = vst [vmem:[#allocation12_spill] sm:$0xff] %v2908_v46  ;;  %v1403_v57 = vmax.f32 %v933_v23, 0.0  ;;  %v1475_v41 = vmax.f32 %v1221_v24, 0.0  ;;  %v2140_v56 = vpop.f32.mrf.mxu0  ;;  %v2212_v1 = vpop.f32.mrf.mxu1  ;;  %v1455_v40 = vmax.f32 %v1141_v4, 0.0 }
 0x113   :  { %3381 = vst [vmem:[#allocation13_spill] sm:$0xff] %v2914_v53  ;;  %3382 = vst [vmem:[#allocation14_spill] sm:$0xff] %v2918_v47  ;;  %v1401_v22 = vmax.f32 %v925_v19, 0.0  ;;  %v1473_v33 = vmax.f32 %v1213_v20, 0.0 }
 0x114   :  { %v2922_v32 = vmax.f32 %v1385_v30, %v1403_v57  ;;  %v2924_v52 = vmax.f32 %v1457_v15, %v1475_v41  ;;  %v937_v13 = vpop.f32.mrf.mxu0  ;;  %v1225_v29 = vpop.f32.mrf.mxu1  ;;  %v2931_v15 = vadd.f32 %v2140_v56, %v2654_v34  ;;  %v2934_v57 = vadd.f32 %v2212_v1, %v2654_v34 }
 0x115   :  { %v2926_v48 = vmax.f32 %v1383_v42, %v1401_v22  ;;  %v2928_v16 = vmax.f32 %v1455_v40, %v1473_v33  ;;  %v2937_v41 = vadd.f32 %v2654_v34, %v937_v13  ;;  %v2940_v42 = vadd.f32 %v2654_v34, %v1225_v29 }
 0x116   :  { %3383 = vst [vmem:[#allocation15_spill] sm:$0xff] %v2922_v32  ;;  %3384 = vst [vmem:[#allocation16_spill] sm:$0xff] %v2924_v52  ;;  %v2141_v0 = vpop.f32.mrf.mxu0  ;;  %v2213_v51 = vpop.f32.mrf.mxu1 }
 0x117   :  { %3385 = vst [vmem:[#allocation17_spill] sm:$0xff] %v2926_v48  ;;  %3386 = vst [vmem:[#allocation18_spill] sm:$0xff] %v2928_v16  ;;  %v2943_v33 = vadd.f32 %v2141_v0, %v2654_v34  ;;  %v2946_v16 = vadd.f32 %v2213_v51, %v2654_v34 }
 0x118   :  { %v940_v25 = vpop.f32.mrf.mxu0  ;;  %v1228_v43 = vpop.f32.mrf.mxu1 }
 0x119   :  { %v2949_v56 = vadd.f32 %v2654_v34, %v940_v25  ;;  %v2952_v1 = vadd.f32 %v2654_v34, %v1228_v43 }
 0x11a   :  { %v2144_v62 = vpop.f32.mrf.mxu0  ;;  %v2216_v50 = vpop.f32.mrf.mxu1 }
 0x11b   :  { %v2957_v32 = vadd.f32 %v2144_v62, %v2654_v34  ;;  %v2960_v0 = vadd.f32 %v2216_v50, %v2654_v34 }
 0x11c   :  { %v953_v3 = vpop.f32.mrf.mxu0  ;;  %v1241_v4 = vpop.f32.mrf.mxu1 }
 0x11d   :  { %v2965_v47 = vadd.f32 %v2654_v34, %v953_v3  ;;  %v2968_v43 = vadd.f32 %v2654_v34, %v1241_v4 }
 0x11e   :  { %v2145_v49 = vpop.f32.mrf.mxu0  ;;  %v2217_v23 = vpop.f32.mrf.mxu1 }
 0x11f   :  { %v2973_v46 = vadd.f32 %v2145_v49, %v2654_v34  ;;  %v2976_v50 = vadd.f32 %v2217_v23, %v2654_v34 }
 0x120   :  { %v956_v24 = vpop.f32.mrf.mxu0  ;;  %v1244_v63 = vpop.f32.mrf.mxu1 }
 0x121   :  { %v2981_v51 = vadd.f32 %v2654_v34, %v956_v24  ;;  %v2984_v4 = vadd.f32 %v2654_v34, %v1244_v63 }
 0x122   :  { %v2148_v27 = vpop.f32.mrf.mxu0  ;;  %v2220_v19 = vpop.f32.mrf.mxu1 }
 0x123   :  { %v2989_v6 = vadd.f32 %v2148_v27, %v2654_v34  ;;  %v2992_v23 = vadd.f32 %v2220_v19, %v2654_v34 }
 0x124   :  { %v969_v20 = vpop.f32.mrf.mxu0  ;;  %v1257_v30 = vpop.f32.mrf.mxu1 }
 0x125   :  { %3387 = vst [vmem:[#allocation19_spill] sm:$0xff] %v2989_v6  ;;  %3388 = vst [vmem:[#allocation20_spill] sm:$0xff] %v2992_v23  ;;  %v2997_v25 = vadd.f32 %v2654_v34, %v969_v20  ;;  %v3000_v63 = vadd.f32 %v2654_v34, %v1257_v30  ;;  %v3394_v6 = vmax.f32 %v2937_v41, 0.0 }
 0x126   :  { %v2149_v40 = vpop.f32.mrf.mxu0  ;;  %v2221_v22 = vpop.f32.mrf.mxu1 }
 0x127   :  { %v3005_v9 = vadd.f32 %v2149_v40, %v2654_v34  ;;  %v3008_v19 = vadd.f32 %v2221_v22, %v2654_v34  ;;  %v3395_v40 = vmax.f32 %v2940_v42, 0.0 }
 0x128   :  { %v972_v48 = vpop.f32.mrf.mxu0  ;;  %v1260_v13 = vpop.f32.mrf.mxu1 }
 0x129   :  { %3389 = vst [vmem:[#allocation21_spill] sm:$0xff] %v3005_v9  ;;  %3390 = vst [vmem:[#allocation22_spill] sm:$0xff] %v3008_v19  ;;  %v3013_v3 = vadd.f32 %v2654_v34, %v972_v48  ;;  %v3016_v30 = vadd.f32 %v2654_v34, %v1260_v13 }
 0x12a   :  { %v2152_v53 = vpop.f32.mrf.mxu0  ;;  %v2224_v52 = vpop.f32.mrf.mxu1 }
 0x12b   :  { %v3021_v14 = vadd.f32 %v2152_v53, %v2654_v34  ;;  %v3024_v22 = vadd.f32 %v2224_v52, %v2654_v34 }
 0x12c   :  { %v985_v8 = vpop.f32.mrf.mxu0  ;;  %v1273_v29 = vpop.f32.mrf.mxu1 }
 0x12d   :  { %3391 = vst [vmem:[#allocation23_spill] sm:$0xff] %v3024_v22  ;;  %v3029_v24 = vadd.f32 %v2654_v34, %v985_v8  ;;  %v3032_v13 = vadd.f32 %v2654_v34, %v1273_v29 }
 0x12e   :  { %v2153_v5 = vpop.f32.mrf.mxu0  ;;  %v2225_v62 = vpop.f32.mrf.mxu1 }
 0x12f   :  { %v3041_v8 = vadd.f32 %v2153_v5, %v2654_v34  ;;  %v3044_v29 = vadd.f32 %v2225_v62, %v2654_v34 }
 0x130   :  { %v988_v60 = vpop.f32.mrf.mxu0  ;;  %v1276_v49 = vpop.f32.mrf.mxu1 }
 0x131   :  { %3392 = vst [vmem:[#allocation24_spill] sm:$0xff] %v3041_v8  ;;  %3393 = vst [vmem:[#allocation25_spill] sm:$0xff] %v3044_v29  ;;  %v3051_v48 = vadd.f32 %v2654_v34, %v988_v60  ;;  %v3054_v5 = vadd.f32 %v2654_v34, %v1276_v49 }
 0x132   :  { %v2156_v58 = vpop.f32.mrf.mxu0  ;;  %v2228_v27 = vpop.f32.mrf.mxu1 }
 0x133   :  { %v1010_v52 = vadd.f32 %v2156_v58, %v2654_v34  ;;  %v1298_v7 = vadd.f32 %v2228_v27, %v2654_v34 }
 0x134   :  { %v1001_v21 = vpop.f32.mrf.mxu0  ;;  %v1289_v23 = vpop.f32.mrf.mxu1 }
 0x135   :  { %v1422_v19 = vmax.f32 %v1010_v52, 0.0  ;;  %v1494_v58 = vmax.f32 %v1298_v7, 0.0  ;;  %v3061_v7 = vadd.f32 %v2654_v34, %v1001_v21  ;;  %v3064_v52 = vadd.f32 %v2654_v34, %v1289_v23 }
 0x136   :  { %v2157_v62 = vpop.f32.mrf.mxu0  ;;  %v2229_v9 = vpop.f32.mrf.mxu1 }
 0x137   :  { %v1548_v10 = vmax.f32 %v3394_v6, %v1422_v19  ;;  %v1566_v53 = vmax.f32 %v3395_v40, %v1494_v58  ;;  %v1013_v49 = vadd.f32 %v2157_v62, %v2654_v34  ;;  %v1301_v27 = vadd.f32 %v2229_v9, %v2654_v34 }
 0x138   :  { %v1004_v22 = vpop.f32.mrf.mxu0  ;;  %v1292_v41 = vpop.f32.mrf.mxu1 }
 0x139   :  { %v1584_v6 = vmax.f32 %v2726_v17, %v1548_v10  ;;  %v1602_v42 = vmax.f32 %v2728_v18, %v1566_v53  ;;  %v3073_v21 = vadd.f32 %v2654_v34, %v1004_v22  ;;  %v3076_v23 = vadd.f32 %v2654_v34, %v1292_v41 }
 0x13a   :  { %v1423_v58 = vmax.f32 %v1013_v49, 0.0  ;;  %v1495_v62 = vmax.f32 %v1301_v27, 0.0  ;;  %v2160_v20 = vpop.f32.mrf.mxu0  ;;  %v2232_v9 = vpop.f32.mrf.mxu1  ;;  %v3396_v10 = vmax.f32 %v2949_v56, 0.0  ;;  %v3397_v53 = vmax.f32 %v2952_v1, 0.0 }
 0x13b   :  { %v1988_v60 = vpack.c.bf16 %v1584_v6, %v1584_v6  ;;  %v2006_v29 = vpack.c.bf16 %v1602_v42, %v1602_v42  ;;  %v1026_v19 = vadd.f32 %v2160_v20, %v2654_v34  ;;  %v1314_v40 = vadd.f32 %v2232_v9, %v2654_v34 }
 0x13c   :  { %v1549_v22 = vmax.f32 %v3396_v10, %v1423_v58  ;;  %v1567_v41 = vmax.f32 %v3397_v53, %v1495_v62  ;;  %v1017_v49 = vpop.f32.mrf.mxu0  ;;  %v1305_v27 = vpop.f32.mrf.mxu1 }
 0x13d   :  { %1765 = vst.msk [vmem:[%s3360_s3] sm:$0xf] %vm1764_vm1, %v1988_v60  ;;  %1783 = vst.msk [vmem:[%s3360_s3 + $0x48] sm:$0xf] %vm1764_vm1, %v2006_v29  ;;  %v1018_v20 = vadd.f32 %v2654_v34, %v1017_v49  ;;  %v1306_v6 = vadd.f32 %v2654_v34, %v1305_v27  ;;  %v1426_v62 = vmax.f32 %v1026_v19, 0.0  ;;  %v1498_v9 = vmax.f32 %v1314_v40, 0.0 }
 0x13e   :  { %v1585_v42 = vmax.f32 %v2766_v61, %v1549_v22  ;;  %v1603_v58 = vmax.f32 %v2768_v31, %v1567_v41  ;;  %v2161_v60 = vpop.f32.mrf.mxu0  ;;  %v2233_v10 = vpop.f32.mrf.mxu1  ;;  %v3398_v49 = vmax.f32 %v2965_v47, 0.0  ;;  %v3399_v27 = vmax.f32 %v2968_v43, 0.0 }
 0x13f   :  { %v1424_v53 = vmax.f32 %v1018_v20, 0.0  ;;  %v1496_v18 = vmax.f32 %v1306_v6, 0.0  ;;  %v1029_v29 = vadd.f32 %v2161_v60, %v2654_v34  ;;  %v1317_v56 = vadd.f32 %v2233_v10, %v2654_v34 }
 0x140   :  { %v1989_v17 = vpack.c.bf16 %v1585_v42, %v1585_v42  ;;  %v2007_v1 = vpack.c.bf16 %v1603_v58, %v1603_v58  ;;  %v1552_v8 = vmax.f32 %v3398_v49, %v1426_v62  ;;  %v1570_v61 = vmax.f32 %v3399_v27, %v1498_v9  ;;  %v1020_v22 = vpop.f32.mrf.mxu0  ;;  %v1308_v31 = vpop.f32.mrf.mxu1 }
 0x141   :  { %v3400_v19 = vmax.f32 %v2931_v15, 0.0  ;;  %v3401_v41 = vmax.f32 %v2934_v57, 0.0  ;;  %v1427_v6 = vmax.f32 %v1029_v29, 0.0  ;;  %v1499_v60 = vmax.f32 %v1317_v56, 0.0 }
 0x142   :  { %1766 = vst.msk [vmem:[%s3360_s3 + $0x4] sm:$0xf] %vm1764_vm1, %v1989_v17  ;;  %1784 = vst.msk [vmem:[%s3360_s3 + $0x4c] sm:$0xf] %vm1764_vm1, %v2007_v1  ;;  %v1588_v47 = vmax.f32 %v2776_v2, %v1552_v8  ;;  %v1606_v15 = vmax.f32 %v2778_v55, %v1570_v61  ;;  %v1021_v43 = vadd.f32 %v2654_v34, %v1020_v22  ;;  %v2236_v56 = vpop.f32.mrf.mxu1  ;;  %v3402_v17 = vmax.f32 %v2981_v51, 0.0 }
 0x143   :  { %v1550_v40 = vmax.f32 %v3400_v19, %v1424_v53  ;;  %v1568_v20 = vmax.f32 %v3401_v41, %v1496_v18  ;;  %v1309_v57 = vadd.f32 %v2654_v34, %v1308_v31  ;;  %v2164_v18 = vpop.f32.mrf.mxu0  ;;  %v3403_v9 = vmax.f32 %v2984_v4, 0.0 }
 0x144   :  { %v1553_v62 = vmax.f32 %v3402_v17, %v1427_v6  ;;  %v1992_v10 = vpack.c.bf16 %v1588_v47, %v1588_v47  ;;  %v2010_v2 = vpack.c.bf16 %v1606_v15, %v1606_v15  ;;  %v1425_v8 = vmax.f32 %v1021_v43, 0.0  ;;  %v1321_v29 = vpop.f32.mrf.mxu1 }
 0x145   :  { %v1586_v42 = vmax.f32 %v2788_v11, %v1550_v40  ;;  %v1604_v58 = vmax.f32 %v2792_v12, %v1568_v20  ;;  %v1571_v1 = vmax.f32 %v3403_v9, %v1499_v60  ;;  %v1497_v55 = vmax.f32 %v1309_v57, 0.0  ;;  %v1033_v53 = vpop.f32.mrf.mxu0 }
 0x146   :  { %v1589_v61 = vmax.f32 %v2806_v59, %v1553_v62  ;;  %1769 = vst.msk [vmem:[%s3360_s3 + $0x10] sm:$0xf] %vm1764_vm1, %v1992_v10  ;;  %1787 = vst.msk [vmem:[%s3360_s3 + $0x58] sm:$0xf] %vm1764_vm1, %v2010_v2  ;;  %v3404_v12 = vmax.f32 %v2943_v33, 0.0  ;;  %v3405_v4 = vmax.f32 %v2946_v16, 0.0  ;;  %v1042_v59 = vadd.f32 %v2164_v18, %v2654_v34  ;;  %v2237_v19 = vpop.f32.mrf.mxu1 }
 0x147   :  { %v1990_v49 = vpack.c.bf16 %v1586_v42, %v1586_v42  ;;  %v2008_v27 = vpack.c.bf16 %v1604_v58, %v1604_v58  ;;  %v1607_v11 = vmax.f32 %v2808_v35, %v1571_v1  ;;  %v1330_v35 = vadd.f32 %v2236_v56, %v2654_v34  ;;  %v2165_v31 = vpop.f32.mrf.mxu0 }
 0x148   :  { %v1551_v51 = vmax.f32 %v3404_v12, %v1425_v8  ;;  %v1569_v22 = vmax.f32 %v3405_v4, %v1497_v55  ;;  %v1993_v33 = vpack.c.bf16 %v1589_v61, %v1589_v61  ;;  %v1034_v16 = vadd.f32 %v2654_v34, %v1033_v53  ;;  %v1324_v43 = vpop.f32.mrf.mxu1 }
 0x149   :  { %1767 = vst.msk [vmem:[%s3360_s3 + $0x8] sm:$0xf] %vm1764_vm1, %v1990_v49  ;;  %1785 = vst.msk [vmem:[%s3360_s3 + $0x50] sm:$0xf] %vm1764_vm1, %v2008_v27  ;;  %v2011_v40 = vpack.c.bf16 %v1607_v11, %v1607_v11  ;;  %v1322_v41 = vadd.f32 %v2654_v34, %v1321_v29  ;;  %v1430_v60 = vmax.f32 %v1042_v59, 0.0  ;;  %v1502_v47 = vmax.f32 %v1330_v35, 0.0  ;;  %v1036_v15 = vpop.f32.mrf.mxu0 }
 0x14a   :  { %v1587_v20 = vmax.f32 %v2812_v36, %v1551_v51  ;;  %v1605_v6 = vmax.f32 %v2816_v26, %v1569_v22  ;;  %1770 = vst.msk [vmem:[%s3360_s3 + $0x14] sm:$0xf] %vm1764_vm1, %v1993_v33  ;;  %v1428_v57 = vmax.f32 %v1034_v16, 0.0  ;;  %v1045_v36 = vadd.f32 %v2165_v31, %v2654_v34  ;;  %v2240_v10 = vpop.f32.mrf.mxu1 }
 0x14b   :  { %1788 = vst.msk [vmem:[%s3360_s3 + $0x5c] sm:$0xf] %vm1764_vm1, %v2011_v40  ;;  %v1500_v18 = vmax.f32 %v1322_v41, 0.0  ;;  %v1333_v26 = vadd.f32 %v2237_v19, %v2654_v34  ;;  %v3406_v58 = vmax.f32 %v2997_v25, 0.0  ;;  %v3407_v62 = vmax.f32 %v3000_v63, 0.0  ;;  %v2168_v1 = vpop.f32.mrf.mxu0 }
 0x14c   :  { %v1991_v56 = vpack.c.bf16 %v1587_v20, %v1587_v20  ;;  %v2009_v42 = vpack.c.bf16 %v1605_v6, %v1605_v6  ;;  %v3408_v2 = vmax.f32 %v2957_v32, 0.0  ;;  %v3409_v55 = vmax.f32 %v2960_v0, 0.0  ;;  %v1337_v61 = vpop.f32.mrf.mxu1 }
 0x14d   :  { %v1556_v17 = vmax.f32 %v3406_v58, %v1430_v60  ;;  %v1574_v9 = vmax.f32 %v3407_v62, %v1502_v47  ;;  %v1431_v29 = vmax.f32 %v1045_v36, 0.0  ;;  %v1503_v49 = vmax.f32 %v1333_v26, 0.0  ;;  %v1049_v27 = vpop.f32.mrf.mxu0 }
 0x14e   :  { %v1554_v8 = vmax.f32 %v3408_v2, %v1428_v57  ;;  %v1572_v53 = vmax.f32 %v3409_v55, %v1500_v18  ;;  %1768 = vst.msk [vmem:[%s3360_s3 + $0xc] sm:$0xf] %vm1764_vm1, %v1991_v56  ;;  %1786 = vst.msk [vmem:[%s3360_s3 + $0x54] sm:$0xf] %vm1764_vm1, %v2009_v42  ;;  %v1037_v63 = vadd.f32 %v2654_v34, %v1036_v15  ;;  %v3410_v51 = vmax.f32 %v3013_v3, 0.0  ;;  %v2241_v33 = vpop.f32.mrf.mxu1  ;;  %v3414_v57 = vld [vmem:[#allocation2_spill] sm:$0xff] }
 0x14f   :  { %v1592_v25 = vmax.f32 %v2822_v39, %v1556_v17  ;;  %v1610_v32 = vmax.f32 %v2824_v45, %v1574_v9  ;;  %v1325_v0 = vadd.f32 %v2654_v34, %v1324_v43  ;;  %v3411_v22 = vmax.f32 %v3016_v30, 0.0  ;;  %v2169_v19 = vpop.f32.mrf.mxu0 }
 0x150   :  { %v1590_v11 = vmax.f32 %v2840_v37, %v1554_v8  ;;  %v1608_v12 = vmax.f32 %v2844_v38, %v1572_v53  ;;  %v1557_v4 = vmax.f32 %v3410_v51, %v1431_v29  ;;  %v1429_v31 = vmax.f32 %v1037_v63, 0.0  ;;  %v1340_v60 = vpop.f32.mrf.mxu1  ;;  %v3417_v53 = vld [vmem:[#allocation19_spill] sm:$0xff] }
 0x151   :  { %v1575_v59 = vmax.f32 %v3411_v22, %v1503_v49  ;;  %v1996_v35 = vpack.c.bf16 %v1592_v25, %v1592_v25  ;;  %v2014_v39 = vpack.c.bf16 %v1610_v32, %v1610_v32  ;;  %v1501_v45 = vmax.f32 %v1325_v0, 0.0  ;;  %v1052_v6 = vpop.f32.mrf.mxu0  ;;  %v3419_v25 = vld [vmem:[#allocation20_spill] sm:$0xff] }
 0x152   :  { %v1994_v40 = vpack.c.bf16 %v1590_v11, %v1590_v11  ;;  %v2012_v16 = vpack.c.bf16 %v1608_v12, %v1608_v12  ;;  %v1593_v41 = vmax.f32 %v2846_v28, %v1557_v4  ;;  %v3412_v38 = vmax.f32 %v2973_v46, 0.0  ;;  %v2244_v42 = vpop.f32.mrf.mxu1  ;;  %v3422_v12 = vld [vmem:[#allocation4_spill] sm:$0xff] }
 0x153   :  { %v1611_v37 = vmax.f32 %v2848_v44, %v1575_v59  ;;  %1773 = vst.msk [vmem:[%s3360_s3 + $0x20] sm:$0xf] %vm1764_vm1, %v1996_v35  ;;  %1791 = vst.msk [vmem:[%s3360_s3 + $0x68] sm:$0xf] %vm1764_vm1, %v2014_v39  ;;  %v3413_v30 = vmax.f32 %v2976_v50, 0.0  ;;  %v1058_v28 = vadd.f32 %v2168_v1, %v2654_v34  ;;  %v1346_v44 = vadd.f32 %v2240_v10, %v2654_v34  ;;  %v2172_v56 = vpop.f32.mrf.mxu0  ;;  %v3423_v59 = vld [vmem:[#allocation5_spill] sm:$0xff] }
 0x154   :  { %v1555_v3 = vmax.f32 %v3412_v38, %v1429_v31  ;;  %1771 = vst.msk [vmem:[%s3360_s3 + $0x18] sm:$0xf] %vm1764_vm1, %v1994_v40  ;;  %1789 = vst.msk [vmem:[%s3360_s3 + $0x60] sm:$0xf] %vm1764_vm1, %v2012_v16  ;;  %v1997_v46 = vpack.c.bf16 %v1593_v41, %v1593_v41  ;;  %v1050_v50 = vadd.f32 %v2654_v34, %v1049_v27  ;;  %v3415_v10 = vmax.f32 %v3029_v24, 0.0  ;;  %v1353_v11 = vpop.f32.mrf.mxu1  ;;  %v3421_v24 = vld [vmem:[#allocation3_spill] sm:$0xff] }
 0x155   :  { %v1573_v20 = vmax.f32 %v3413_v30, %v1501_v45  ;;  %v2015_v47 = vpack.c.bf16 %v1611_v37, %v1611_v37  ;;  %v1338_v15 = vadd.f32 %v2654_v34, %v1337_v61  ;;  %v1434_v36 = vmax.f32 %v1058_v28, 0.0  ;;  %v1065_v61 = vpop.f32.mrf.mxu0  ;;  %v3424_v39 = vld [vmem:[#allocation6_spill] sm:$0xff] }
 0x156   :  { %v1591_v43 = vmax.f32 %v2854_v54, %v1555_v3  ;;  %v1506_v26 = vmax.f32 %v1346_v44, 0.0  ;;  %1774 = vst.msk [vmem:[%s3360_s3 + $0x24] sm:$0xf] %vm1764_vm1, %v1997_v46  ;;  %v1432_v58 = vmax.f32 %v1050_v50, 0.0  ;;  %v1061_v54 = vadd.f32 %v2169_v19, %v2654_v34  ;;  %v3428_v44 = vld [vmem:[#allocation8_spill] sm:$0xff] }
 0x157   :  { %v1609_v18 = vmax.f32 %v3414_v57, %v1573_v20  ;;  %1792 = vst.msk [vmem:[%s3360_s3 + $0x6c] sm:$0xf] %vm1764_vm1, %v2015_v47  ;;  %v1504_v17 = vmax.f32 %v1338_v15, 0.0  ;;  %v1349_v62 = vadd.f32 %v2241_v33, %v2654_v34  ;;  %v1560_v2 = vmax.f32 %v3415_v10, %v1434_v36  ;;  %v3427_v20 = vld [vmem:[#allocation7_spill] sm:$0xff]  ;;  %v3431_v47 = vld [vmem:[#allocation22_spill] sm:$0xff] }
 0x158   :  { %v1995_v9 = vpack.c.bf16 %v1591_v43, %v1591_v43  ;;  %v3416_v8 = vmax.f32 %v3032_v13, 0.0  ;;  %v3418_v29 = vmax.f32 %v3417_v53, 0.0  ;;  %v3420_v32 = vmax.f32 %v3419_v25, 0.0  ;;  %v2324_v43 = vld [vmem:[%s3359_s2] ss:$0 sm:$0xff] }
 0x159   :  { %v2013_v1 = vpack.c.bf16 %v1609_v18, %v1609_v18  ;;  %v1435_v0 = vmax.f32 %v1061_v54, 0.0  ;;  %v1507_v27 = vmax.f32 %v1349_v62, 0.0  ;;  %v1596_v13 = vmax.f32 %v3421_v24, %v1560_v2  ;;  %v3433_v54 = vld [vmem:[#allocation9_spill] sm:$0xff]  ;;  %v3438_v24 = vld [vmem:[#allocation23_spill] sm:$0xff] }
 0x15a   :  { %v1578_v55 = vmax.f32 %v3416_v8, %v1506_v26  ;;  %v1558_v49 = vmax.f32 %v3418_v29, %v1432_v58  ;;  %v1576_v63 = vmax.f32 %v3420_v32, %v1504_v17  ;;  %1772 = vst.msk [vmem:[%s3360_s3 + $0x1c] sm:$0xf] %vm1764_vm1, %v1995_v9  ;;  %v1053_v4 = vadd.f32 %v2654_v34, %v1052_v6  ;;  %v2173_v6 = vpop.f32.mrf.mxu0  ;;  %v3434_v9 = vld [vmem:[#allocation10_spill] sm:$0xff] }
 0x15b   :  { %1790 = vst.msk [vmem:[%s3360_s3 + $0x64] sm:$0xf] %vm1764_vm1, %v2013_v1  ;;  %v1341_v22 = vadd.f32 %v2654_v34, %v1340_v60  ;;  %v3425_v45 = vmax.f32 %v3051_v48, 0.0  ;;  %v3426_v33 = vmax.f32 %v3054_v5, 0.0  ;;  %v2000_v16 = vpack.c.bf16 %v1596_v13, %v1596_v13  ;;  %v2245_v60 = vpop.f32.mrf.mxu1  ;;  %v3429_v48 = vld [vmem:[#allocation21_spill] sm:$0xff] }
 0x15c   :  { %v1614_v51 = vmax.f32 %v3422_v12, %v1578_v55  ;;  %v1594_v35 = vmax.f32 %v3423_v59, %v1558_v49  ;;  %v1612_v31 = vmax.f32 %v3424_v39, %v1576_v63  ;;  %v1433_v37 = vmax.f32 %v1053_v4, 0.0  ;;  %v1068_v53 = vpop.f32.mrf.mxu0  ;;  %v3442_v39 = vld [vmem:[#allocation13_spill] sm:$0xff] }
 0x15d   :  { %v1561_v19 = vmax.f32 %v3425_v45, %v1435_v0  ;;  %v1579_v40 = vmax.f32 %v3426_v33, %v1507_v27  ;;  %v1505_v38 = vmax.f32 %v1341_v22, 0.0  ;;  %1777 = vst.msk [vmem:[%s3360_s3 + $0x30] sm:$0xf] %vm1764_vm1, %v2000_v16  ;;  %v3430_v5 = vmax.f32 %v3429_v48, 0.0  ;;  %v1356_v29 = vpop.f32.mrf.mxu1  ;;  %v3441_v22 = vld [vmem:[#allocation12_spill] sm:$0xff]  ;;  %v3443_v45 = vld [vmem:[#allocation14_spill] sm:$0xff] }
 0x15e   :  { %v2018_v41 = vpack.c.bf16 %v1614_v51, %v1614_v51  ;;  %v1998_v3 = vpack.c.bf16 %v1594_v35, %v1594_v35  ;;  %v2016_v30 = vpack.c.bf16 %v1612_v31, %v1612_v31  ;;  %v3432_v50 = vmax.f32 %v3431_v47, 0.0 }
 0x15f   :  { %v1597_v28 = vmax.f32 %v3427_v20, %v1561_v19  ;;  %v1615_v34 = vmax.f32 %v3428_v44, %v1579_v40  ;;  %v1559_v46 = vmax.f32 %v3430_v5, %v1433_v37  ;;  %v1074_v57 = vadd.f32 %v2324_v43, %v2172_v56  ;;  %v3446_v44 = vld [vmem:[#allocation15_spill] sm:$0xff]  ;;  %v3450_v5 = vld [vmem:[#allocation25_spill] sm:$0xff] }
 0x160   :  { %1795 = vst.msk [vmem:[%s3360_s3 + $0x78] sm:$0xf] %vm1764_vm1, %v2018_v41  ;;  %v1577_v15 = vmax.f32 %v3432_v50, %v1505_v38  ;;  %v1362_v18 = vadd.f32 %v2324_v43, %v2244_v42  ;;  %1775 = vst.msk [vmem:[%s3360_s3 + $0x28] sm:$0xf] %vm1764_vm1, %v1998_v3  ;;  %v1066_v58 = vadd.f32 %v2324_v43, %v1065_v61  ;;  %v3435_v32 = vmax.f32 %v3061_v7, 0.0  ;;  %v3440_v7 = vld [vmem:[#allocation11_spill] sm:$0xff] }
 0x161   :  { %1793 = vst.msk [vmem:[%s3360_s3 + $0x70] sm:$0xf] %vm1764_vm1, %v2016_v30  ;;  %v2001_v36 = vpack.c.bf16 %v1597_v28, %v1597_v28  ;;  %v2019_v26 = vpack.c.bf16 %v1615_v34, %v1615_v34  ;;  %v1354_v17 = vadd.f32 %v2324_v43, %v1353_v11  ;;  %v1595_v62 = vmax.f32 %v3433_v54, %v1559_v46 }
 0x162   :  { %v1613_v1 = vmax.f32 %v3434_v9, %v1577_v15  ;;  %v1438_v56 = vmax.f32 %v1074_v57, 0.0  ;;  %v1510_v42 = vmax.f32 %v1362_v18, 0.0  ;;  %v1436_v10 = vmax.f32 %v1066_v58, 0.0  ;;  %v3453_v18 = vld [vmem:[#allocation18_spill] sm:$0xff] }
 0x163   :  { %1778 = vst.msk [vmem:[%s3360_s3 + $0x34] sm:$0xf] %vm1764_vm1, %v2001_v36  ;;  %1796 = vst.msk [vmem:[%s3360_s3 + $0x7c] sm:$0xf] %vm1764_vm1, %v2019_v26  ;;  %v1508_v2 = vmax.f32 %v1354_v17, 0.0  ;;  %v1077_v8 = vadd.f32 %v2324_v43, %v2173_v6  ;;  %v1365_v55 = vadd.f32 %v2324_v43, %v2245_v60  ;;  %v1999_v49 = vpack.c.bf16 %v1595_v62, %v1595_v62  ;;  %v3447_v6 = vld [vmem:[#allocation16_spill] sm:$0xff] }
 0x164   :  { %v2017_v25 = vpack.c.bf16 %v1613_v1, %v1613_v1  ;;  %v1564_v63 = vmax.f32 %v3435_v32, %v1438_v56  ;;  %v3436_v0 = vmax.f32 %v3064_v52, 0.0  ;;  %v3437_v61 = vmax.f32 %v3021_v14, 0.0 }
 0x165   :  { %v3439_v13 = vmax.f32 %v3438_v24, 0.0  ;;  %v1439_v51 = vmax.f32 %v1077_v8, 0.0  ;;  %v1511_v4 = vmax.f32 %v1365_v55, 0.0  ;;  %1776 = vst.msk [vmem:[%s3360_s3 + $0x2c] sm:$0xf] %vm1764_vm1, %v1999_v49  ;;  %v1069_v59 = vadd.f32 %v2324_v43, %v1068_v53 }
 0x166   :  { %v1582_v27 = vmax.f32 %v3436_v0, %v1510_v42  ;;  %v1562_v11 = vmax.f32 %v3437_v61, %v1436_v10  ;;  %1794 = vst.msk [vmem:[%s3360_s3 + $0x74] sm:$0xf] %vm1764_vm1, %v2017_v25  ;;  %v1600_v52 = vmax.f32 %v3440_v7, %v1564_v63  ;;  %v1357_v35 = vadd.f32 %v2324_v43, %v1356_v29  ;;  %v3452_v43 = vld [vmem:[#allocation17_spill] sm:$0xff] }
 0x167   :  { %v1580_v12 = vmax.f32 %v3439_v13, %v1508_v2  ;;  %v3444_v33 = vmax.f32 %v3073_v21, 0.0  ;;  %v3445_v16 = vmax.f32 %v3076_v23, 0.0  ;;  %v1437_v3 = vmax.f32 %v1069_v59, 0.0  ;;  %v3448_v21 = vld [vmem:[#allocation24_spill] sm:$0xff] }
 0x168   :  { %v1618_v14 = vmax.f32 %v3441_v22, %v1582_v27  ;;  %v1598_v31 = vmax.f32 %v3442_v39, %v1562_v11  ;;  %v2004_v37 = vpack.c.bf16 %v1600_v52, %v1600_v52  ;;  %v1509_v30 = vmax.f32 %v1357_v35, 0.0 }
 0x169   :  { %v1616_v19 = vmax.f32 %v3443_v45, %v1580_v12  ;;  %v1565_v40 = vmax.f32 %v3444_v33, %v1439_v51  ;;  %v1583_v41 = vmax.f32 %v3445_v16, %v1511_v4  ;;  %v3449_v23 = vmax.f32 %v3448_v21, 0.0 }
 0x16a   :  { %v2022_v38 = vpack.c.bf16 %v1618_v14, %v1618_v14  ;;  %v2002_v20 = vpack.c.bf16 %v1598_v31, %v1598_v31  ;;  %1781 = vst.msk [vmem:[%s3360_s3 + $0x40] sm:$0xf] %vm1764_vm1, %v2004_v37  ;;  %v3451_v46 = vmax.f32 %v3450_v5, 0.0 }
 0x16b   :  { %v2020_v28 = vpack.c.bf16 %v1616_v19, %v1616_v19  ;;  %v1601_v34 = vmax.f32 %v3446_v44, %v1565_v40  ;;  %v1619_v60 = vmax.f32 %v3447_v6, %v1583_v41  ;;  %v1563_v48 = vmax.f32 %v3449_v23, %v1437_v3 }
 0x16c   :  { %1799 = vst.msk [vmem:[%s3360_s3 + $0x88] sm:$0xf] %vm1764_vm1, %v2022_v38  ;;  %v1581_v47 = vmax.f32 %v3451_v46, %v1509_v30  ;;  %1779 = vst.msk [vmem:[%s3360_s3 + $0x38] sm:$0xf] %vm1764_vm1, %v2002_v20 }
 0x16d   :  { %1797 = vst.msk [vmem:[%s3360_s3 + $0x80] sm:$0xf] %vm1764_vm1, %v2020_v28  ;;  %v2005_v50 = vpack.c.bf16 %v1601_v34, %v1601_v34  ;;  %v2023_v15 = vpack.c.bf16 %v1619_v60, %v1619_v60  ;;  %v1599_v57 = vmax.f32 %v3452_v43, %v1563_v48 }
 0x16e   :  { %v1617_v36 = vmax.f32 %v3453_v18, %v1581_v47 }
 0x16f   :  { %1782 = vst.msk [vmem:[%s3360_s3 + $0x44] sm:$0xf] %vm1764_vm1, %v2005_v50  ;;  %1800 = vst.msk [vmem:[%s3360_s3 + $0x8c] sm:$0xf] %vm1764_vm1, %v2023_v15  ;;  %v2003_v26 = vpack.c.bf16 %v1599_v57, %v1599_v57 }
 0x170   :  { %v2021_v58 = vpack.c.bf16 %v1617_v36, %v1617_v36 }
 0x171   :  { %1780 = vst.msk [vmem:[%s3360_s3 + $0x3c] sm:$0xf] %vm1764_vm1, %v2003_v26 }
 0x172   :  { %1798 = vst.msk [vmem:[%s3360_s3 + $0x84] sm:$0xf] %vm1764_vm1, %v2021_v58 }

// kernel: cnn_forward.5
= control target key start
LH: loop header
LB: loop body
LE: loop exit
PB: predicated region body
PF: predicated region fallthrough
CT: control target
= control target key end

     0   :  { %v6964_v2 = vmov 0   ;;  %v6965_v22 = vmov 1983009808   ;;  %v148_v24 = vlaneseq  ;;  %vm162_vm0 = vcmask 1041409   ;;  %s8919_s0 = inlined_call_operand.vmem [shape: bf16[2,4,2,4,256], index: 0, kind: input, shape index: {}]   ;;  %s8920_s1 = inlined_call_operand.vmem [shape: bf16[16,128,512], index: 1, kind: input, shape index: {}]   ;;  %s8921_s2 = inlined_call_operand.vmem [shape: f32[1,512], index: 2, kind: input, shape index: {}]   ;;  %s8922_s3 = inlined_call_operand.vmem [shape: bf16[512,128], index: 3, kind: input, shape index: {}]   ;;  %s8923_s4 = inlined_call_operand.vmem [shape: f32[1,128], index: 4, kind: input, shape index: {}]   ;;  %s8924_s5 = inlined_call_operand.hbm [shape: f32[2,128], index: 5, kind: output, shape index: {}]  }
   0x1   :  { %v6142_v0 = vld [vmem:[%s8920_s1 + $0x1e4] ss:$16 sps:$4 sm:$0xff]   ;;  %v6144_v1 = vld [vmem:[%s8920_s1 + $0x1ec] ss:$16 sps:$4 sm:$0xff]   ;;  %358 = vmatprep.mubr.bf16.mxu0 %v6964_v2  ;;  %399 = vmatprep.mubr.bf16.mxu1 %v6964_v2  ;;  %v6146_v3 = vld [vmem:[%s8920_s1 + $0x1e0] ss:$16 sps:$4 sm:$0xff]   ;;  %v146_v23 = vunpack.c.l.s4 %v6965_v22 }
   0x2   :  { %326 = vmatprep.subr.bf16.mxu0 %v6142_v0  ;;  %v6147_v4 = vld [vmem:[%s8920_s1 + $0x1e8] ss:$16 sps:$4 sm:$0xff]   ;;  %367 = vmatprep.subr.bf16.mxu1 %v6144_v1  ;;  %v6148_v5 = vld [vmem:[%s8920_s1 + $0x1c4] ss:$16 sps:$4 sm:$0xff]   ;;  %v6150_v6 = vld [vmem:[%s8920_s1 + $0x1cc] ss:$16 sps:$4 sm:$0xff]  }
   0x3   :  { %327 = vmatpush1.bf16.msra.mxu0 %v6146_v3  ;;  %368 = vmatpush1.bf16.msra.mxu1 %v6147_v4  ;;  %v6152_v7 = vld [vmem:[%s8920_s1 + $0x1c0] ss:$16 sps:$4 sm:$0xff]   ;;  %v6153_v8 = vld [vmem:[%s8920_s1 + $0x1c8] ss:$16 sps:$4 sm:$0xff]   ;;  %v6154_v9 = vld [vmem:[%s8920_s1 + $0x1a4] ss:$16 sps:$4 sm:$0xff]   ;;  %v147_v29 = vunpack.c.0.s8 %v146_v23 }
   0x4   :  { %328 = vmatprep.subr.bf16.mxu0 %v6148_v5  ;;  %369 = vmatprep.subr.bf16.mxu1 %v6150_v6  ;;  %v6156_v10 = vld [vmem:[%s8920_s1 + $0x1ac] ss:$16 sps:$4 sm:$0xff]   ;;  %v6158_v11 = vld [vmem:[%s8920_s1 + $0x1a0] ss:$16 sps:$4 sm:$0xff]   ;;  %v6159_v12 = vld [vmem:[%s8920_s1 + $0x1a8] ss:$16 sps:$4 sm:$0xff]  }
   0x5   :  { %v6160_v13 = vld [vmem:[%s8920_s1 + $0x184] ss:$16 sps:$4 sm:$0xff]   ;;  %v6162_v14 = vld [vmem:[%s8920_s1 + $0x18c] ss:$16 sps:$4 sm:$0xff]   ;;  %v6164_v15 = vld [vmem:[%s8920_s1 + $0x180] ss:$16 sps:$4 sm:$0xff]  }
   0x6   :  { %v6165_v16 = vld [vmem:[%s8920_s1 + $0x188] ss:$16 sps:$4 sm:$0xff]   ;;  %v6166_v17 = vld [vmem:[%s8920_s1 + $0x164] ss:$16 sps:$4 sm:$0xff]   ;;  %v6168_v18 = vld [vmem:[%s8920_s1 + $0x16c] ss:$16 sps:$4 sm:$0xff]  }
   0x7   :  { %329 = vmatpush1.bf16.msra.mxu0 %v6152_v7  ;;  %370 = vmatpush1.bf16.msra.mxu1 %v6153_v8  ;;  %v6170_v19 = vld [vmem:[%s8920_s1 + $0x160] ss:$16 sps:$4 sm:$0xff]   ;;  %v6171_v20 = vld [vmem:[%s8920_s1 + $0x168] ss:$16 sps:$4 sm:$0xff]   ;;  %v6172_v21 = vld [vmem:[%s8920_s1 + $0x144] ss:$16 sps:$4 sm:$0xff]  }
   0x8   :  { %330 = vmatprep.subr.bf16.mxu0 %v6154_v9  ;;  %371 = vmatprep.subr.bf16.mxu1 %v6156_v10  ;;  %v6174_v25 = vld [vmem:[%s8920_s1 + $0x14c] ss:$16 sps:$4 sm:$0xff]   ;;  %v6176_v26 = vld [vmem:[%s8920_s1 + $0x140] ss:$16 sps:$4 sm:$0xff]   ;;  %v6177_v27 = vld [vmem:[%s8920_s1 + $0x148] ss:$16 sps:$4 sm:$0xff]  }
   0x9   :  { %v6178_v28 = vld [vmem:[%s8920_s1 + $0x124] ss:$16 sps:$4 sm:$0xff]   ;;  %v7074_v30 = vshrl.u32 %v148_v24, 7  ;;  %v6180_v31 = vld [vmem:[%s8920_s1 + $0x12c] ss:$16 sps:$4 sm:$0xff]  }
   0xa   :  { %v22_v32 = vld [vmem:[%s8919_s0] sm:$0xf]  ;;  %v23_v33 = vld [vmem:[%s8919_s0 + $0x4] sm:$0xf]  ;;  %v6183_v38 = vld [vmem:[%s8920_s1 + $0x128] ss:$16 sps:$4 sm:$0xff]  }
   0xb   :  { %331 = vmatpush1.bf16.msra.mxu0 %v6158_v11  ;;  %372 = vmatpush1.bf16.msra.mxu1 %v6159_v12  ;;  %v30_v34 = vld [vmem:[%s8919_s0 + $0x20] sm:$0xf]  ;;  %v31_v35 = vld [vmem:[%s8919_s0 + $0x24] sm:$0xf]  ;;  %v38_v36 = vmax.bf16 %v23_v33, %v22_v32  ;;  %v7101_v42 = vsub.s32 %v147_v29, %v7074_v30  ;;  %v6186_v43 = vld [vmem:[%s8920_s1 + $0x10c] ss:$16 sps:$4 sm:$0xff]  }
   0xc   :  { %332 = vmatprep.subr.bf16.mxu0 %v6160_v13  ;;  %373 = vmatprep.subr.bf16.mxu1 %v6162_v14  ;;  %v6182_v37 = vld [vmem:[%s8920_s1 + $0x120] ss:$16 sps:$4 sm:$0xff]   ;;  %v42_v39 = vmax.bf16 %v31_v35, %v30_v34  ;;  %v6184_v40 = vld [vmem:[%s8920_s1 + $0x104] ss:$16 sps:$4 sm:$0xff]   ;;  %v6189_v47 = vld [vmem:[%s8920_s1 + $0x108] ss:$16 sps:$4 sm:$0xff]  }
   0xd   :  { %v54_v41 = vrot.slane %v38_v36, 2  ;;  %v6188_v46 = vld [vmem:[%s8920_s1 + $0x100] ss:$16 sps:$4 sm:$0xff]   ;;  %v6192_v50 = vld [vmem:[%s8920_s1 + $0xe4] ss:$16 sps:$4 sm:$0xff]  }
   0xe   :  { %v58_v44 = vrot.slane %v42_v39, 2  ;;  %v6195_v52 = vld [vmem:[%s8920_s1 + $0xec] ss:$16 sps:$4 sm:$0xff]   ;;  %v6190_v57 = vld [vmem:[%s8920_s1 + $0xe0] ss:$16 sps:$4 sm:$0xff]  }
   0xf   :  { %333 = vmatpush1.bf16.msra.mxu0 %v6164_v15  ;;  %374 = vmatpush1.bf16.msra.mxu1 %v6165_v16  ;;  %v70_v45 = vmax.bf16 %v54_v41, %v38_v36  ;;  %v6193_v58 = vld [vmem:[%s8920_s1 + $0xe8] ss:$16 sps:$4 sm:$0xff]   ;;  %v6198_v61 = vld [vmem:[%s8920_s1 + $0xc4] ss:$16 sps:$4 sm:$0xff]   ;;  %v6201_v62 = vld [vmem:[%s8920_s1 + $0xcc] ss:$16 sps:$4 sm:$0xff]  }
  0x10   :  { %334 = vmatprep.subr.bf16.mxu0 %v6166_v17  ;;  %375 = vmatprep.subr.bf16.mxu1 %v6168_v18  ;;  %v74_v48 = vmax.bf16 %v58_v44, %v42_v39  ;;  %v6196_v1 = vld [vmem:[%s8920_s1 + $0xc0] ss:$16 sps:$4 sm:$0xff]   ;;  %v6199_v3 = vld [vmem:[%s8920_s1 + $0xc8] ss:$16 sps:$4 sm:$0xff]   ;;  %v6204_v4 = vld [vmem:[%s8920_s1 + $0xa4] ss:$16 sps:$4 sm:$0xff]  }
  0x11   :  { %v151_v49 = vrot.slane %v70_v45, %v7101_v42  ;;  %v6207_v5 = vld [vmem:[%s8920_s1 + $0xac] ss:$16 sps:$4 sm:$0xff]   ;;  %v6202_v6 = vld [vmem:[%s8920_s1 + $0xa0] ss:$16 sps:$4 sm:$0xff]   ;;  %v6205_v7 = vld [vmem:[%s8920_s1 + $0xa8] ss:$16 sps:$4 sm:$0xff]  }
  0x12   :  { %v158_v51 = vrot.slane %v74_v48, %v7101_v42  ;;  %v6210_v8 = vld [vmem:[%s8920_s1 + $0x84] ss:$16 sps:$4 sm:$0xff]   ;;  %v6213_v9 = vld [vmem:[%s8920_s1 + $0x8c] ss:$16 sps:$4 sm:$0xff]   ;;  %v6208_v10 = vld [vmem:[%s8920_s1 + $0x80] ss:$16 sps:$4 sm:$0xff]  }
  0x13   :  { %335 = vmatpush1.bf16.msra.mxu0 %v6170_v19  ;;  %376 = vmatpush1.bf16.msra.mxu1 %v6171_v20  ;;  %v7120_v53 = vunpack.c.l.b16 %v151_v49  ;;  %v6211_v11 = vld [vmem:[%s8920_s1 + $0x88] ss:$16 sps:$4 sm:$0xff]   ;;  %v6216_v12 = vld [vmem:[%s8920_s1 + $0x64] ss:$16 sps:$4 sm:$0xff]   ;;  %v6219_v13 = vld [vmem:[%s8920_s1 + $0x6c] ss:$16 sps:$4 sm:$0xff]  }
  0x14   :  { %336 = vmatprep.subr.bf16.mxu0 %v6172_v21  ;;  %377 = vmatprep.subr.bf16.mxu1 %v6174_v25  ;;  %v7122_v54 = vunpack.c.l.b16 %v158_v51  ;;  %v6214_v14 = vld [vmem:[%s8920_s1 + $0x60] ss:$16 sps:$4 sm:$0xff]   ;;  %v6217_v15 = vld [vmem:[%s8920_s1 + $0x68] ss:$16 sps:$4 sm:$0xff]   ;;  %v6222_v16 = vld [vmem:[%s8920_s1 + $0x44] ss:$16 sps:$4 sm:$0xff]  }
  0x15   :  { %v161_v55 = vrot.slane %v7120_v53, 1  ;;  %v971_v59 = vrot.slane %v7120_v53, 3  ;;  %v6225_v17 = vld [vmem:[%s8920_s1 + $0x4c] ss:$16 sps:$4 sm:$0xff]   ;;  %v6220_v18 = vld [vmem:[%s8920_s1 + $0x40] ss:$16 sps:$4 sm:$0xff]  }
  0x16   :  { %v972_v63 = vrot.slane %v7122_v54, 2  ;;  %v6223_v19 = vld [vmem:[%s8920_s1 + $0x48] ss:$16 sps:$4 sm:$0xff]   ;;  %v6228_v20 = vld [vmem:[%s8920_s1 + $0x24] ss:$16 sps:$4 sm:$0xff]   ;;  %v408_v24 = vrot.slane %v7122_v54, 7 }
  0x17   :  { %337 = vmatpush1.bf16.msra.mxu0 %v6176_v26  ;;  %378 = vmatpush1.bf16.msra.mxu1 %v6177_v27  ;;  %v163_v56 = vsel %vm162_vm0, %v7122_v54, %v161_v55  ;;  %v6231_v21 = vld [vmem:[%s8920_s1 + $0x2c] ss:$16 sps:$4 sm:$0xff]   ;;  %v6226_v22 = vld [vmem:[%s8920_s1 + $0x20] ss:$16 sps:$4 sm:$0xff]   ;;  %v6229_v23 = vld [vmem:[%s8920_s1 + $0x28] ss:$16 sps:$4 sm:$0xff]  }
  0x18   :  { %338 = vmatprep.subr.bf16.mxu0 %v6178_v28  ;;  %379 = vmatprep.subr.bf16.mxu1 %v6180_v31  ;;  %v164_v60 = vpack.c.b16 %v163_v56, %v163_v56  ;;  %v7142_v0 = vsel %vm162_vm0, %v972_v63, %v971_v59  ;;  %v6234_v25 = vld [vmem:[%s8920_s1 + $0x4] ss:$16 sps:$4 sm:$0xff]   ;;  %v6237_v26 = vld [vmem:[%s8920_s1 + $0xc] ss:$16 sps:$4 sm:$0xff]   ;;  %v6232_v27 = vld [vmem:[%s8920_s1] ss:$16 sps:$4 sm:$0xff]   ;;  %v409_v29 = vsel %vm162_vm0, %v408_v24, %v7120_v53 }
  0x19   :  { %v6235_v28 = vld [vmem:[%s8920_s1 + $0x8] ss:$16 sps:$4 sm:$0xff]   ;;  %v6240_v31 = vld [vmem:[%s8920_s1 + $0x2e4] ss:$16 sps:$4 sm:$0xff]   ;;  %v6243_v32 = vld [vmem:[%s8920_s1 + $0x2ec] ss:$16 sps:$4 sm:$0xff]   ;;  %v410_v33 = vpack.c.b16 %v409_v29, %v409_v29 }
  0x1a   :  { %v6238_v34 = vld [vmem:[%s8920_s1 + $0x2e0] ss:$16 sps:$4 sm:$0xff]   ;;  %v6241_v35 = vld [vmem:[%s8920_s1 + $0x2e8] ss:$16 sps:$4 sm:$0xff]   ;;  %v6246_v36 = vld [vmem:[%s8920_s1 + $0x2c4] ss:$16 sps:$4 sm:$0xff]  }
  0x1b   :  { %339 = vmatpush1.bf16.msra.mxu0 %v6182_v37  ;;  %380 = vmatpush1.bf16.msra.mxu1 %v6183_v38  ;;  %v6249_v37 = vld [vmem:[%s8920_s1 + $0x2cc] ss:$16 sps:$4 sm:$0xff]   ;;  %v6244_v38 = vld [vmem:[%s8920_s1 + $0x2c0] ss:$16 sps:$4 sm:$0xff]   ;;  %v6247_v39 = vld [vmem:[%s8920_s1 + $0x2c8] ss:$16 sps:$4 sm:$0xff]  }
  0x1c   :  { %340 = vmatprep.subr.bf16.mxu0 %v6184_v40  ;;  %381 = vmatprep.subr.bf16.mxu1 %v6186_v43  ;;  %v6252_v40 = vld [vmem:[%s8920_s1 + $0x2a4] ss:$16 sps:$4 sm:$0xff]   ;;  %v6255_v41 = vld [vmem:[%s8920_s1 + $0x2ac] ss:$16 sps:$4 sm:$0xff]   ;;  %v6250_v43 = vld [vmem:[%s8920_s1 + $0x2a0] ss:$16 sps:$4 sm:$0xff]  }
  0x1d   :  { %v6253_v44 = vld [vmem:[%s8920_s1 + $0x2a8] ss:$16 sps:$4 sm:$0xff]   ;;  %v6258_v45 = vld [vmem:[%s8920_s1 + $0x284] ss:$16 sps:$4 sm:$0xff]   ;;  %v6262_v51 = vld [vmem:[%s8920_s1 + $0x260] ss:$16 sps:$4 sm:$0xff]  }
  0x1e   :  { %v6259_v48 = vld [vmem:[%s8920_s1 + $0x288] ss:$16 sps:$4 sm:$0xff]   ;;  %v6264_v49 = vld [vmem:[%s8920_s1 + $0x264] ss:$16 sps:$4 sm:$0xff]   ;;  %v6273_v56 = vld [vmem:[%s8920_s1 + $0x24c] ss:$16 sps:$4 sm:$0xff]  }
  0x1f   :  { %341 = vmatpush1.bf16.msra.mxu0 %v6188_v46  ;;  %382 = vmatpush1.bf16.msra.mxu1 %v6189_v47  ;;  %v6261_v46 = vld [vmem:[%s8920_s1 + $0x28c] ss:$16 sps:$4 sm:$0xff]   ;;  %v6256_v47 = vld [vmem:[%s8920_s1 + $0x280] ss:$16 sps:$4 sm:$0xff]   ;;  %v6270_v55 = vld [vmem:[%s8920_s1 + $0x244] ss:$16 sps:$4 sm:$0xff]  }
  0x20   :  { %572 = vmatprep.subr.bf16.mxu0 %v6192_v50  ;;  %613 = vmatprep.subr.bf16.mxu1 %v6195_v52  ;;  %v6267_v50 = vld [vmem:[%s8920_s1 + $0x26c] ss:$16 sps:$4 sm:$0xff]   ;;  %v6265_v52 = vld [vmem:[%s8920_s1 + $0x268] ss:$16 sps:$4 sm:$0xff]   ;;  %v6276_v59 = vld [vmem:[%s8920_s1 + $0x224] ss:$16 sps:$4 sm:$0xff]  }
  0x21   :  { %v6277_v63 = vld [vmem:[%s8920_s1 + $0x228] ss:$16 sps:$4 sm:$0xff]   ;;  %v33_v24 = vld [vmem:[%s8919_s0 + $0x2c] sm:$0xf]  ;;  %v6312_v29 = vld [vmem:[%s8920_s1 + $0x364] ss:$16 sps:$4 sm:$0xff]  }
  0x22   :  { %359 = vmatmul.mubr.bf16.vlgmr.msra.gmra.mxu0 %v164_v60  ;;  %400 = vmatmul.mubr.bf16.vlgmr.msra.gmra.mxu1 %v164_v60  ;;  %v6279_v60 = vld [vmem:[%s8920_s1 + $0x22c] ss:$16 sps:$4 sm:$0xff]  }
  0x23   :  { %573 = vmatpush1.bf16.msra.mxu0 %v6190_v57  ;;  %614 = vmatpush1.bf16.msra.mxu1 %v6193_v58  ;;  %v6268_v57 = vld [vmem:[%s8920_s1 + $0x240] ss:$16 sps:$4 sm:$0xff]   ;;  %v6271_v58 = vld [vmem:[%s8920_s1 + $0x248] ss:$16 sps:$4 sm:$0xff]  }
  0x24   :  { %574 = vmatprep.subr.bf16.mxu0 %v6198_v61  ;;  %615 = vmatprep.subr.bf16.mxu1 %v6201_v62  ;;  %v687_v61 = vrot.slane %v7120_v53, 2  ;;  %v6274_v62 = vld [vmem:[%s8920_s1 + $0x220] ss:$16 sps:$4 sm:$0xff]   ;;  %v6285_v53 = vld [vmem:[%s8920_s1 + $0x20c] ss:$16 sps:$4 sm:$0xff]  }
  0x25   :  { %604 = vmatprep.mubr.bf16.mxu0 %v6964_v2  ;;  %645 = vmatprep.mubr.bf16.mxu1 %v6964_v2 }
  0x27   :  { %575 = vmatpush1.bf16.msra.mxu0 %v6196_v1  ;;  %616 = vmatpush1.bf16.msra.mxu1 %v6199_v3  ;;  %v688_v1 = vrot.slane %v7122_v54, 1  ;;  %v6282_v3 = vld [vmem:[%s8920_s1 + $0x204] ss:$16 sps:$4 sm:$0xff]   ;;  %v6283_v54 = vld [vmem:[%s8920_s1 + $0x208] ss:$16 sps:$4 sm:$0xff]  }
  0x28   :  { %576 = vmatprep.subr.bf16.mxu0 %v6204_v4  ;;  %617 = vmatprep.subr.bf16.mxu1 %v6207_v5  ;;  %v6280_v4 = vld [vmem:[%s8920_s1 + $0x200] ss:$16 sps:$4 sm:$0xff]  }
  0x29   :  { %v689_v5 = vsel %vm162_vm0, %v688_v1, %v687_v61  ;;  %v974_v61 = vpack.c.b16 %v7142_v0, %v7142_v0  ;;  %v6345_v0 = vld [vmem:[%s8920_s1 + $0x4cc] ss:$16 sps:$4 sm:$0xff]  }
  0x2b   :  { %577 = vmatpush1.bf16.msra.mxu0 %v6202_v6  ;;  %618 = vmatpush1.bf16.msra.mxu1 %v6205_v7  ;;  %v6288_v6 = vld [vmem:[%s8920_s1 + $0x3e4] ss:$16 sps:$4 sm:$0xff]   ;;  %v6291_v7 = vld [vmem:[%s8920_s1 + $0x3ec] ss:$16 sps:$4 sm:$0xff]  }
  0x2c   :  { %578 = vmatprep.subr.bf16.mxu0 %v6210_v8  ;;  %619 = vmatprep.subr.bf16.mxu1 %v6213_v9  ;;  %v690_v8 = vpack.c.b16 %v689_v5, %v689_v5  ;;  %v6286_v9 = vld [vmem:[%s8920_s1 + $0x3e0] ss:$16 sps:$4 sm:$0xff]   ;;  %v6351_v5 = vld [vmem:[%s8920_s1 + $0x4ac] ss:$16 sps:$4 sm:$0xff]  }
  0x2f   :  { %579 = vmatpush1.bf16.msra.mxu0 %v6208_v10  ;;  %620 = vmatpush1.bf16.msra.mxu1 %v6211_v11  ;;  %v6289_v10 = vld [vmem:[%s8920_s1 + $0x3e8] ss:$16 sps:$4 sm:$0xff]   ;;  %v6294_v11 = vld [vmem:[%s8920_s1 + $0x3c4] ss:$16 sps:$4 sm:$0xff]  }
  0x30   :  { %580 = vmatprep.subr.bf16.mxu0 %v6216_v12  ;;  %621 = vmatprep.subr.bf16.mxu1 %v6219_v13  ;;  %v6297_v12 = vld [vmem:[%s8920_s1 + $0x3cc] ss:$16 sps:$4 sm:$0xff]   ;;  %v6292_v13 = vld [vmem:[%s8920_s1 + $0x3c0] ss:$16 sps:$4 sm:$0xff]  }
  0x33   :  { %581 = vmatpush1.bf16.msra.mxu0 %v6214_v14  ;;  %622 = vmatpush1.bf16.msra.mxu1 %v6217_v15  ;;  %v6295_v14 = vld [vmem:[%s8920_s1 + $0x3c8] ss:$16 sps:$4 sm:$0xff]   ;;  %v6300_v15 = vld [vmem:[%s8920_s1 + $0x3a4] ss:$16 sps:$4 sm:$0xff]  }
  0x34   :  { %582 = vmatprep.subr.bf16.mxu0 %v6222_v16  ;;  %623 = vmatprep.subr.bf16.mxu1 %v6225_v17  ;;  %v6303_v16 = vld [vmem:[%s8920_s1 + $0x3ac] ss:$16 sps:$4 sm:$0xff]   ;;  %v6298_v17 = vld [vmem:[%s8920_s1 + $0x3a0] ss:$16 sps:$4 sm:$0xff]  }
  0x37   :  { %583 = vmatpush1.bf16.msra.mxu0 %v6220_v18  ;;  %624 = vmatpush1.bf16.msra.mxu1 %v6223_v19  ;;  %v6301_v18 = vld [vmem:[%s8920_s1 + $0x3a8] ss:$16 sps:$4 sm:$0xff]   ;;  %v6306_v19 = vld [vmem:[%s8920_s1 + $0x384] ss:$16 sps:$4 sm:$0xff]  }
  0x38   :  { %584 = vmatprep.subr.bf16.mxu0 %v6228_v20  ;;  %625 = vmatprep.subr.bf16.mxu1 %v6231_v21  ;;  %v6309_v20 = vld [vmem:[%s8920_s1 + $0x38c] ss:$16 sps:$4 sm:$0xff]   ;;  %v24_v21 = vld [vmem:[%s8919_s0 + $0x8] sm:$0xf] }
  0x3b   :  { %585 = vmatpush1.bf16.msra.mxu0 %v6226_v22  ;;  %626 = vmatpush1.bf16.msra.mxu1 %v6229_v23  ;;  %v25_v22 = vld [vmem:[%s8919_s0 + $0xc] sm:$0xf]  ;;  %v32_v23 = vld [vmem:[%s8919_s0 + $0x28] sm:$0xf] }
  0x3c   :  { %586 = vmatprep.subr.bf16.mxu0 %v6234_v25  ;;  %627 = vmatprep.subr.bf16.mxu1 %v6237_v26  ;;  %v6304_v25 = vld [vmem:[%s8920_s1 + $0x380] ss:$16 sps:$4 sm:$0xff]   ;;  %v6307_v26 = vld [vmem:[%s8920_s1 + $0x388] ss:$16 sps:$4 sm:$0xff]  }
  0x3f   :  { %587 = vmatpush1.bf16.msra.mxu0 %v6232_v27  ;;  %628 = vmatpush1.bf16.msra.mxu1 %v6235_v28  ;;  %v39_v27 = vmax.bf16 %v25_v22, %v24_v21  ;;  %v43_v28 = vmax.bf16 %v33_v24, %v32_v23  ;;  %v6375_v21 = vld [vmem:[%s8920_s1 + $0x42c] ss:$16 sps:$4 sm:$0xff]   ;;  %v6370_v22 = vld [vmem:[%s8920_s1 + $0x420] ss:$16 sps:$4 sm:$0xff]   ;;  %v6373_v23 = vld [vmem:[%s8920_s1 + $0x428] ss:$16 sps:$4 sm:$0xff]  }
  0x40   :  { %852 = vmatprep.subr.bf16.mxu0 %v6240_v31  ;;  %893 = vmatprep.subr.bf16.mxu1 %v6243_v32  ;;  %v6315_v31 = vld [vmem:[%s8920_s1 + $0x36c] ss:$16 sps:$4 sm:$0xff]   ;;  %v6310_v32 = vld [vmem:[%s8920_s1 + $0x360] ss:$16 sps:$4 sm:$0xff]  }
  0x42   :  { %605 = vmatmul.mubr.bf16.vlgmr.msra.gmra.mxu0 %v410_v33  ;;  %646 = vmatmul.mubr.bf16.vlgmr.msra.gmra.mxu1 %v410_v33  ;;  %v6313_v33 = vld [vmem:[%s8920_s1 + $0x368] ss:$16 sps:$4 sm:$0xff]  }
  0x43   :  { %853 = vmatpush1.bf16.msra.mxu0 %v6238_v34  ;;  %894 = vmatpush1.bf16.msra.mxu1 %v6241_v35  ;;  %v55_v34 = vrot.slane %v39_v27, 2  ;;  %v59_v35 = vrot.slane %v43_v28, 2 }
  0x44   :  { %854 = vmatprep.subr.bf16.mxu0 %v6246_v36  ;;  %895 = vmatprep.subr.bf16.mxu1 %v6249_v37  ;;  %v6318_v36 = vld [vmem:[%s8920_s1 + $0x344] ss:$16 sps:$4 sm:$0xff]   ;;  %v6321_v37 = vld [vmem:[%s8920_s1 + $0x34c] ss:$16 sps:$4 sm:$0xff]  }
  0x45   :  { %884 = vmatprep.mubr.bf16.mxu0 %v6964_v2  ;;  %925 = vmatprep.mubr.bf16.mxu1 %v6964_v2 }
  0x47   :  { %855 = vmatpush1.bf16.msra.mxu0 %v6244_v38  ;;  %896 = vmatpush1.bf16.msra.mxu1 %v6247_v39  ;;  %v6316_v38 = vld [vmem:[%s8920_s1 + $0x340] ss:$16 sps:$4 sm:$0xff]   ;;  %v6319_v39 = vld [vmem:[%s8920_s1 + $0x348] ss:$16 sps:$4 sm:$0xff]  }
  0x48   :  { %856 = vmatprep.subr.bf16.mxu0 %v6252_v40  ;;  %897 = vmatprep.subr.bf16.mxu1 %v6255_v41  ;;  %v71_v40 = vmax.bf16 %v55_v34, %v39_v27  ;;  %v75_v41 = vmax.bf16 %v59_v35, %v43_v28  ;;  %v6376_v27 = vld [vmem:[%s8920_s1 + $0x400] ss:$16 sps:$4 sm:$0xff]   ;;  %v6379_v28 = vld [vmem:[%s8920_s1 + $0x408] ss:$16 sps:$4 sm:$0xff]  }
  0x49   :  { %v6382_v34 = vld [vmem:[%s8920_s1 + $0x5e0] ss:$16 sps:$4 sm:$0xff]   ;;  %v6385_v35 = vld [vmem:[%s8920_s1 + $0x5e8] ss:$16 sps:$4 sm:$0xff]  }
  0x4b   :  { %857 = vmatpush1.bf16.msra.mxu0 %v6250_v43  ;;  %898 = vmatpush1.bf16.msra.mxu1 %v6253_v44  ;;  %v6324_v43 = vld [vmem:[%s8920_s1 + $0x324] ss:$16 sps:$4 sm:$0xff]   ;;  %v6327_v44 = vld [vmem:[%s8920_s1 + $0x32c] ss:$16 sps:$4 sm:$0xff]  }
  0x4c   :  { %858 = vmatprep.subr.bf16.mxu0 %v6258_v45  ;;  %899 = vmatprep.subr.bf16.mxu1 %v6261_v46  ;;  %v6322_v45 = vld [vmem:[%s8920_s1 + $0x320] ss:$16 sps:$4 sm:$0xff]   ;;  %v6325_v46 = vld [vmem:[%s8920_s1 + $0x328] ss:$16 sps:$4 sm:$0xff]  }
  0x4f   :  { %859 = vmatpush1.bf16.msra.mxu0 %v6256_v47  ;;  %900 = vmatpush1.bf16.msra.mxu1 %v6259_v48  ;;  %v1263_v47 = vrot.slane %v71_v40, %v7101_v42  ;;  %v1270_v48 = vrot.slane %v75_v41, %v7101_v42  ;;  %v6396_v40 = vld [vmem:[%s8920_s1 + $0x5a4] ss:$16 sps:$4 sm:$0xff]   ;;  %v6399_v41 = vld [vmem:[%s8920_s1 + $0x5ac] ss:$16 sps:$4 sm:$0xff]  }
  0x50   :  { %860 = vmatprep.subr.bf16.mxu0 %v6264_v49  ;;  %901 = vmatprep.subr.bf16.mxu1 %v6267_v50  ;;  %v6330_v49 = vld [vmem:[%s8920_s1 + $0x304] ss:$16 sps:$4 sm:$0xff]   ;;  %v6333_v50 = vld [vmem:[%s8920_s1 + $0x30c] ss:$16 sps:$4 sm:$0xff]  }
  0x53   :  { %861 = vmatpush1.bf16.msra.mxu0 %v6262_v51  ;;  %902 = vmatpush1.bf16.msra.mxu1 %v6265_v52  ;;  %v6328_v51 = vld [vmem:[%s8920_s1 + $0x300] ss:$16 sps:$4 sm:$0xff]   ;;  %v6331_v52 = vld [vmem:[%s8920_s1 + $0x308] ss:$16 sps:$4 sm:$0xff]  }
  0x54   :  { %862 = vmatprep.subr.bf16.mxu0 %v6270_v55  ;;  %903 = vmatprep.subr.bf16.mxu1 %v6273_v56  ;;  %v7440_v55 = vunpack.c.l.b16 %v1263_v47  ;;  %v7442_v56 = vunpack.c.l.b16 %v1270_v48  ;;  %v6400_v47 = vld [vmem:[%s8920_s1 + $0x580] ss:$16 sps:$4 sm:$0xff]   ;;  %v6403_v48 = vld [vmem:[%s8920_s1 + $0x588] ss:$16 sps:$4 sm:$0xff]  }
  0x56   :  { %v1273_v24 = vrot.slane %v7442_v56, 7 }
  0x57   :  { %863 = vmatpush1.bf16.msra.mxu0 %v6268_v57  ;;  %904 = vmatpush1.bf16.msra.mxu1 %v6271_v58  ;;  %v6336_v57 = vld [vmem:[%s8920_s1 + $0x4e4] ss:$16 sps:$4 sm:$0xff]   ;;  %v6339_v58 = vld [vmem:[%s8920_s1 + $0x4ec] ss:$16 sps:$4 sm:$0xff]  }
  0x58   :  { %864 = vmatprep.subr.bf16.mxu0 %v6276_v59  ;;  %905 = vmatprep.subr.bf16.mxu1 %v6279_v60  ;;  %v2123_v59 = vrot.slane %v7440_v55, 3  ;;  %v2124_v60 = vrot.slane %v7442_v56, 2 }
  0x5a   :  { %v7461_v1 = vsel %vm162_vm0, %v2124_v60, %v2123_v59  ;;  %v6412_v59 = vld [vmem:[%s8920_s1 + $0x540] ss:$16 sps:$4 sm:$0xff]   ;;  %v6415_v60 = vld [vmem:[%s8920_s1 + $0x548] ss:$16 sps:$4 sm:$0xff]  }
  0x5b   :  { %865 = vmatpush1.bf16.msra.mxu0 %v6274_v62  ;;  %906 = vmatpush1.bf16.msra.mxu1 %v6277_v63  ;;  %v6334_v62 = vld [vmem:[%s8920_s1 + $0x4e0] ss:$16 sps:$4 sm:$0xff]   ;;  %v6337_v63 = vld [vmem:[%s8920_s1 + $0x4e8] ss:$16 sps:$4 sm:$0xff]  }
  0x5c   :  { %866 = vmatprep.subr.bf16.mxu0 %v6282_v3  ;;  %907 = vmatprep.subr.bf16.mxu1 %v6285_v53  ;;  %v6342_v3 = vld [vmem:[%s8920_s1 + $0x4c4] ss:$16 sps:$4 sm:$0xff]   ;;  %v6340_v53 = vld [vmem:[%s8920_s1 + $0x4c0] ss:$16 sps:$4 sm:$0xff]  }
  0x5f   :  { %867 = vmatpush1.bf16.msra.mxu0 %v6280_v4  ;;  %908 = vmatpush1.bf16.msra.mxu1 %v6283_v54  ;;  %v6343_v4 = vld [vmem:[%s8920_s1 + $0x4c8] ss:$16 sps:$4 sm:$0xff]   ;;  %v6348_v54 = vld [vmem:[%s8920_s1 + $0x4a4] ss:$16 sps:$4 sm:$0xff]  }
  0x60   :  { %1136 = vmatprep.subr.bf16.mxu0 %v6288_v6  ;;  %1177 = vmatprep.subr.bf16.mxu1 %v6291_v7  ;;  %v6346_v6 = vld [vmem:[%s8920_s1 + $0x4a0] ss:$16 sps:$4 sm:$0xff]   ;;  %v6349_v7 = vld [vmem:[%s8920_s1 + $0x4a8] ss:$16 sps:$4 sm:$0xff]  }
  0x62   :  { %885 = vmatmul.mubr.bf16.vlgmr.msra.gmra.mxu0 %v690_v8  ;;  %926 = vmatmul.mubr.bf16.vlgmr.msra.gmra.mxu1 %v690_v8  ;;  %v6354_v8 = vld [vmem:[%s8920_s1 + $0x484] ss:$16 sps:$4 sm:$0xff]  }
  0x63   :  { %1137 = vmatpush1.bf16.msra.mxu0 %v6286_v9  ;;  %1178 = vmatpush1.bf16.msra.mxu1 %v6289_v10  ;;  %v6357_v9 = vld [vmem:[%s8920_s1 + $0x48c] ss:$16 sps:$4 sm:$0xff]   ;;  %v6352_v10 = vld [vmem:[%s8920_s1 + $0x480] ss:$16 sps:$4 sm:$0xff]  }
  0x64   :  { %1138 = vmatprep.subr.bf16.mxu0 %v6294_v11  ;;  %1179 = vmatprep.subr.bf16.mxu1 %v6297_v12  ;;  %v6355_v11 = vld [vmem:[%s8920_s1 + $0x488] ss:$16 sps:$4 sm:$0xff]   ;;  %v6360_v12 = vld [vmem:[%s8920_s1 + $0x464] ss:$16 sps:$4 sm:$0xff]  }
  0x65   :  { %1168 = vmatprep.mubr.bf16.mxu0 %v6964_v2  ;;  %1209 = vmatprep.mubr.bf16.mxu1 %v6964_v2 }
  0x67   :  { %1139 = vmatpush1.bf16.msra.mxu0 %v6292_v13  ;;  %1180 = vmatpush1.bf16.msra.mxu1 %v6295_v14  ;;  %v6363_v13 = vld [vmem:[%s8920_s1 + $0x46c] ss:$16 sps:$4 sm:$0xff]   ;;  %v6358_v14 = vld [vmem:[%s8920_s1 + $0x460] ss:$16 sps:$4 sm:$0xff]  }
  0x68   :  { %1140 = vmatprep.subr.bf16.mxu0 %v6300_v15  ;;  %1181 = vmatprep.subr.bf16.mxu1 %v6303_v16  ;;  %v6361_v15 = vld [vmem:[%s8920_s1 + $0x468] ss:$16 sps:$4 sm:$0xff]   ;;  %v6366_v16 = vld [vmem:[%s8920_s1 + $0x444] ss:$16 sps:$4 sm:$0xff]  }
  0x6b   :  { %1141 = vmatpush1.bf16.msra.mxu0 %v6298_v17  ;;  %1182 = vmatpush1.bf16.msra.mxu1 %v6301_v18  ;;  %v6369_v17 = vld [vmem:[%s8920_s1 + $0x44c] ss:$16 sps:$4 sm:$0xff]   ;;  %v6364_v18 = vld [vmem:[%s8920_s1 + $0x440] ss:$16 sps:$4 sm:$0xff]  }
  0x6c   :  { %1142 = vmatprep.subr.bf16.mxu0 %v6306_v19  ;;  %1183 = vmatprep.subr.bf16.mxu1 %v6309_v20  ;;  %v6367_v19 = vld [vmem:[%s8920_s1 + $0x448] ss:$16 sps:$4 sm:$0xff]   ;;  %v6372_v20 = vld [vmem:[%s8920_s1 + $0x424] ss:$16 sps:$4 sm:$0xff]  }
  0x6f   :  { %1143 = vmatpush1.bf16.msra.mxu0 %v6304_v25  ;;  %1184 = vmatpush1.bf16.msra.mxu1 %v6307_v26  ;;  %v6378_v25 = vld [vmem:[%s8920_s1 + $0x404] ss:$16 sps:$4 sm:$0xff]   ;;  %v6381_v26 = vld [vmem:[%s8920_s1 + $0x40c] ss:$16 sps:$4 sm:$0xff]  }
  0x70   :  { %1144 = vmatprep.subr.bf16.mxu0 %v6312_v29  ;;  %1185 = vmatprep.subr.bf16.mxu1 %v6315_v31  ;;  %v1274_v29 = vsel %vm162_vm0, %v1273_v24, %v7440_v55  ;;  %v6384_v31 = vld [vmem:[%s8920_s1 + $0x5e4] ss:$16 sps:$4 sm:$0xff]  }
  0x71   :  { %v6456_v24 = vld [vmem:[%s8920_s1 + $0x664] ss:$16 sps:$4 sm:$0xff]  }
  0x73   :  { %1145 = vmatpush1.bf16.msra.mxu0 %v6310_v32  ;;  %1186 = vmatpush1.bf16.msra.mxu1 %v6313_v33  ;;  %v6387_v32 = vld [vmem:[%s8920_s1 + $0x5ec] ss:$16 sps:$4 sm:$0xff]   ;;  %v1275_v33 = vpack.c.b16 %v1274_v29, %v1274_v29 }
  0x74   :  { %1146 = vmatprep.subr.bf16.mxu0 %v6318_v36  ;;  %1187 = vmatprep.subr.bf16.mxu1 %v6321_v37  ;;  %v6390_v36 = vld [vmem:[%s8920_s1 + $0x5c4] ss:$16 sps:$4 sm:$0xff]   ;;  %v6393_v37 = vld [vmem:[%s8920_s1 + $0x5cc] ss:$16 sps:$4 sm:$0xff]  }
  0x75   :  { %v6465_v29 = vld [vmem:[%s8920_s1 + $0x64c] ss:$16 sps:$4 sm:$0xff]  }
  0x77   :  { %1147 = vmatpush1.bf16.msra.mxu0 %v6316_v38  ;;  %1188 = vmatpush1.bf16.msra.mxu1 %v6319_v39  ;;  %v6388_v38 = vld [vmem:[%s8920_s1 + $0x5c0] ss:$16 sps:$4 sm:$0xff]   ;;  %v6391_v39 = vld [vmem:[%s8920_s1 + $0x5c8] ss:$16 sps:$4 sm:$0xff]  }
  0x78   :  { %1148 = vmatprep.subr.bf16.mxu0 %v6324_v43  ;;  %1189 = vmatprep.subr.bf16.mxu1 %v6327_v44  ;;  %v6394_v43 = vld [vmem:[%s8920_s1 + $0x5a0] ss:$16 sps:$4 sm:$0xff]   ;;  %v6397_v44 = vld [vmem:[%s8920_s1 + $0x5a8] ss:$16 sps:$4 sm:$0xff]  }
  0x7b   :  { %1149 = vmatpush1.bf16.msra.mxu0 %v6322_v45  ;;  %1190 = vmatpush1.bf16.msra.mxu1 %v6325_v46  ;;  %v6402_v45 = vld [vmem:[%s8920_s1 + $0x584] ss:$16 sps:$4 sm:$0xff]   ;;  %v6405_v46 = vld [vmem:[%s8920_s1 + $0x58c] ss:$16 sps:$4 sm:$0xff]  }
  0x7c   :  { %1150 = vmatprep.subr.bf16.mxu0 %v6330_v49  ;;  %1191 = vmatprep.subr.bf16.mxu1 %v6333_v50  ;;  %v6408_v49 = vld [vmem:[%s8920_s1 + $0x564] ss:$16 sps:$4 sm:$0xff]   ;;  %v6411_v50 = vld [vmem:[%s8920_s1 + $0x56c] ss:$16 sps:$4 sm:$0xff]  }
  0x7f   :  { %1151 = vmatpush1.bf16.msra.mxu0 %v6328_v51  ;;  %1192 = vmatpush1.bf16.msra.mxu1 %v6331_v52  ;;  %v6406_v51 = vld [vmem:[%s8920_s1 + $0x560] ss:$16 sps:$4 sm:$0xff]   ;;  %v6409_v52 = vld [vmem:[%s8920_s1 + $0x568] ss:$16 sps:$4 sm:$0xff]  }
  0x80   :  { %1437 = vmatprep.subr.bf16.mxu0 %v6336_v57  ;;  %1478 = vmatprep.subr.bf16.mxu1 %v6339_v58  ;;  %v6414_v57 = vld [vmem:[%s8920_s1 + $0x544] ss:$16 sps:$4 sm:$0xff]   ;;  %v6417_v58 = vld [vmem:[%s8920_s1 + $0x54c] ss:$16 sps:$4 sm:$0xff]  }
  0x82   :  { %1169 = vmatmul.mubr.bf16.vlgmr.msra.gmra.mxu0 %v974_v61  ;;  %1210 = vmatmul.mubr.bf16.vlgmr.msra.gmra.mxu1 %v974_v61  ;;  %v6420_v61 = vld [vmem:[%s8920_s1 + $0x524] ss:$16 sps:$4 sm:$0xff]  }
  0x83   :  { %1438 = vmatpush1.bf16.msra.mxu0 %v6334_v62  ;;  %1479 = vmatpush1.bf16.msra.mxu1 %v6337_v63  ;;  %v6423_v62 = vld [vmem:[%s8920_s1 + $0x52c] ss:$16 sps:$4 sm:$0xff]   ;;  %v6418_v63 = vld [vmem:[%s8920_s1 + $0x520] ss:$16 sps:$4 sm:$0xff]  }
  0x84   :  { %1439 = vmatprep.subr.bf16.mxu0 %v6342_v3  ;;  %1480 = vmatprep.subr.bf16.mxu1 %v6345_v0  ;;  %v6421_v3 = vld [vmem:[%s8920_s1 + $0x528] ss:$16 sps:$4 sm:$0xff]   ;;  %v1556_v0 = vrot.slane %v7440_v55, 1 }
  0x85   :  { %1469 = vmatprep.mubr.bf16.mxu0 %v6964_v2  ;;  %1510 = vmatprep.mubr.bf16.mxu1 %v6964_v2 }
  0x87   :  { %1440 = vmatpush1.bf16.msra.mxu0 %v6340_v53  ;;  %1481 = vmatpush1.bf16.msra.mxu1 %v6343_v4  ;;  %v6426_v53 = vld [vmem:[%s8920_s1 + $0x504] ss:$16 sps:$4 sm:$0xff]   ;;  %v6429_v4 = vld [vmem:[%s8920_s1 + $0x50c] ss:$16 sps:$4 sm:$0xff]  }
  0x88   :  { %1441 = vmatprep.subr.bf16.mxu0 %v6348_v54  ;;  %1482 = vmatprep.subr.bf16.mxu1 %v6351_v5  ;;  %v6424_v54 = vld [vmem:[%s8920_s1 + $0x500] ss:$16 sps:$4 sm:$0xff]   ;;  %v6427_v5 = vld [vmem:[%s8920_s1 + $0x508] ss:$16 sps:$4 sm:$0xff]  }
  0x8b   :  { %1442 = vmatpush1.bf16.msra.mxu0 %v6346_v6  ;;  %1483 = vmatpush1.bf16.msra.mxu1 %v6349_v7  ;;  %v1557_v6 = vsel %vm162_vm0, %v7442_v56, %v1556_v0  ;;  %v6432_v7 = vld [vmem:[%s8920_s1 + $0x6e4] ss:$16 sps:$4 sm:$0xff]  }
  0x8c   :  { %1443 = vmatprep.subr.bf16.mxu0 %v6354_v8  ;;  %1484 = vmatprep.subr.bf16.mxu1 %v6357_v9  ;;  %v6435_v8 = vld [vmem:[%s8920_s1 + $0x6ec] ss:$16 sps:$4 sm:$0xff]   ;;  %v1558_v9 = vpack.c.b16 %v1557_v6, %v1557_v6  ;;  %v34_v6 = vld [vmem:[%s8919_s0 + $0x30] sm:$0xf] }
  0x8f   :  { %1444 = vmatpush1.bf16.msra.mxu0 %v6352_v10  ;;  %1485 = vmatpush1.bf16.msra.mxu1 %v6355_v11  ;;  %v6430_v10 = vld [vmem:[%s8920_s1 + $0x6e0] ss:$16 sps:$4 sm:$0xff]   ;;  %v6433_v11 = vld [vmem:[%s8920_s1 + $0x6e8] ss:$16 sps:$4 sm:$0xff]  }
  0x90   :  { %1445 = vmatprep.subr.bf16.mxu0 %v6360_v12  ;;  %1486 = vmatprep.subr.bf16.mxu1 %v6363_v13  ;;  %v6438_v12 = vld [vmem:[%s8920_s1 + $0x6c4] ss:$16 sps:$4 sm:$0xff]   ;;  %v6441_v13 = vld [vmem:[%s8920_s1 + $0x6cc] ss:$16 sps:$4 sm:$0xff]  }
  0x93   :  { %1446 = vmatpush1.bf16.msra.mxu0 %v6358_v14  ;;  %1487 = vmatpush1.bf16.msra.mxu1 %v6361_v15  ;;  %v6436_v14 = vld [vmem:[%s8920_s1 + $0x6c0] ss:$16 sps:$4 sm:$0xff]   ;;  %v6439_v15 = vld [vmem:[%s8920_s1 + $0x6c8] ss:$16 sps:$4 sm:$0xff]  }
  0x94   :  { %1447 = vmatprep.subr.bf16.mxu0 %v6366_v16  ;;  %1488 = vmatprep.subr.bf16.mxu1 %v6369_v17  ;;  %v6444_v16 = vld [vmem:[%s8920_s1 + $0x6a4] ss:$16 sps:$4 sm:$0xff]   ;;  %v6447_v17 = vld [vmem:[%s8920_s1 + $0x6ac] ss:$16 sps:$4 sm:$0xff]  }
  0x97   :  { %1448 = vmatpush1.bf16.msra.mxu0 %v6364_v18  ;;  %1489 = vmatpush1.bf16.msra.mxu1 %v6367_v19  ;;  %v6442_v18 = vld [vmem:[%s8920_s1 + $0x6a0] ss:$16 sps:$4 sm:$0xff]   ;;  %v6445_v19 = vld [vmem:[%s8920_s1 + $0x6a8] ss:$16 sps:$4 sm:$0xff]  }
  0x98   :  { %1449 = vmatprep.subr.bf16.mxu0 %v6372_v20  ;;  %1490 = vmatprep.subr.bf16.mxu1 %v6375_v21  ;;  %v6450_v20 = vld [vmem:[%s8920_s1 + $0x684] ss:$16 sps:$4 sm:$0xff]   ;;  %v6453_v21 = vld [vmem:[%s8920_s1 + $0x68c] ss:$16 sps:$4 sm:$0xff]  }
  0x9b   :  { %1450 = vmatpush1.bf16.msra.mxu0 %v6370_v22  ;;  %1491 = vmatpush1.bf16.msra.mxu1 %v6373_v23  ;;  %v6448_v22 = vld [vmem:[%s8920_s1 + $0x680] ss:$16 sps:$4 sm:$0xff]   ;;  %v6451_v23 = vld [vmem:[%s8920_s1 + $0x688] ss:$16 sps:$4 sm:$0xff]  }
  0x9c   :  { %1451 = vmatprep.subr.bf16.mxu0 %v6378_v25  ;;  %1492 = vmatprep.subr.bf16.mxu1 %v6381_v26  ;;  %v6459_v25 = vld [vmem:[%s8920_s1 + $0x66c] ss:$16 sps:$4 sm:$0xff]   ;;  %v6454_v26 = vld [vmem:[%s8920_s1 + $0x660] ss:$16 sps:$4 sm:$0xff]  }
  0x9f   :  { %1452 = vmatpush1.bf16.msra.mxu0 %v6376_v27  ;;  %1493 = vmatpush1.bf16.msra.mxu1 %v6379_v28  ;;  %v6457_v27 = vld [vmem:[%s8920_s1 + $0x668] ss:$16 sps:$4 sm:$0xff]   ;;  %v6462_v28 = vld [vmem:[%s8920_s1 + $0x644] ss:$16 sps:$4 sm:$0xff]  }
  0xa0   :  { %1720 = vmatprep.subr.bf16.mxu0 %v6384_v31  ;;  %1761 = vmatprep.subr.bf16.mxu1 %v6387_v32  ;;  %v6460_v31 = vld [vmem:[%s8920_s1 + $0x640] ss:$16 sps:$4 sm:$0xff]   ;;  %v6463_v32 = vld [vmem:[%s8920_s1 + $0x648] ss:$16 sps:$4 sm:$0xff]  }
  0xa2   :  { %1470 = vmatmul.mubr.bf16.vlgmr.msra.gmra.mxu0 %v1275_v33  ;;  %1511 = vmatmul.mubr.bf16.vlgmr.msra.gmra.mxu1 %v1275_v33  ;;  %v6468_v33 = vld [vmem:[%s8920_s1 + $0x624] ss:$16 sps:$4 sm:$0xff]  }
  0xa3   :  { %1721 = vmatpush1.bf16.msra.mxu0 %v6382_v34  ;;  %1762 = vmatpush1.bf16.msra.mxu1 %v6385_v35  ;;  %v6471_v34 = vld [vmem:[%s8920_s1 + $0x62c] ss:$16 sps:$4 sm:$0xff]   ;;  %v6466_v35 = vld [vmem:[%s8920_s1 + $0x620] ss:$16 sps:$4 sm:$0xff]  }
  0xa4   :  { %1722 = vmatprep.subr.bf16.mxu0 %v6390_v36  ;;  %1763 = vmatprep.subr.bf16.mxu1 %v6393_v37  ;;  %v1839_v36 = vrot.slane %v7440_v55, 2  ;;  %v6469_v37 = vld [vmem:[%s8920_s1 + $0x628] ss:$16 sps:$4 sm:$0xff]   ;;  %v6472_v55 = vld [vmem:[%s8920_s1 + $0x600] ss:$16 sps:$4 sm:$0xff]  }
  0xa5   :  { %1752 = vmatprep.mubr.bf16.mxu0 %v6964_v2  ;;  %1793 = vmatprep.mubr.bf16.mxu1 %v6964_v2 }
  0xa7   :  { %1723 = vmatpush1.bf16.msra.mxu0 %v6388_v38  ;;  %1764 = vmatpush1.bf16.msra.mxu1 %v6391_v39  ;;  %v6474_v38 = vld [vmem:[%s8920_s1 + $0x604] ss:$16 sps:$4 sm:$0xff]   ;;  %v1840_v39 = vrot.slane %v7442_v56, 1 }
  0xa8   :  { %1724 = vmatprep.subr.bf16.mxu0 %v6396_v40  ;;  %1765 = vmatprep.subr.bf16.mxu1 %v6399_v41  ;;  %v6477_v40 = vld [vmem:[%s8920_s1 + $0x60c] ss:$16 sps:$4 sm:$0xff]   ;;  %v6475_v41 = vld [vmem:[%s8920_s1 + $0x608] ss:$16 sps:$4 sm:$0xff]   ;;  %v6480_v56 = vld [vmem:[%s8920_s1 + $0x7e4] ss:$16 sps:$4 sm:$0xff]  }
  0xab   :  { %1725 = vmatpush1.bf16.msra.mxu0 %v6394_v43  ;;  %1766 = vmatpush1.bf16.msra.mxu1 %v6397_v44  ;;  %v1841_v43 = vsel %vm162_vm0, %v1840_v39, %v1839_v36  ;;  %v6483_v44 = vld [vmem:[%s8920_s1 + $0x7ec] ss:$16 sps:$4 sm:$0xff]   ;;  %v6523_v36 = vld [vmem:[%s8920_s1 + $0x708] ss:$16 sps:$4 sm:$0xff]  }
  0xac   :  { %1726 = vmatprep.subr.bf16.mxu0 %v6402_v45  ;;  %1767 = vmatprep.subr.bf16.mxu1 %v6405_v46  ;;  %v1842_v45 = vpack.c.b16 %v1841_v43, %v1841_v43  ;;  %v6478_v46 = vld [vmem:[%s8920_s1 + $0x7e0] ss:$16 sps:$4 sm:$0xff]   ;;  %v2126_v43 = vpack.c.b16 %v7461_v1, %v7461_v1  ;;  %v6537_v1 = vld [vmem:[%s8920_s1 + $0x8cc] ss:$16 sps:$4 sm:$0xff]  }
  0xaf   :  { %1727 = vmatpush1.bf16.msra.mxu0 %v6400_v47  ;;  %1768 = vmatpush1.bf16.msra.mxu1 %v6403_v48  ;;  %v6481_v47 = vld [vmem:[%s8920_s1 + $0x7e8] ss:$16 sps:$4 sm:$0xff]   ;;  %v6486_v48 = vld [vmem:[%s8920_s1 + $0x7c4] ss:$16 sps:$4 sm:$0xff]  }
  0xb0   :  { %1728 = vmatprep.subr.bf16.mxu0 %v6408_v49  ;;  %1769 = vmatprep.subr.bf16.mxu1 %v6411_v50  ;;  %v6489_v49 = vld [vmem:[%s8920_s1 + $0x7cc] ss:$16 sps:$4 sm:$0xff]  }
  0xb3   :  { %1729 = vmatpush1.bf16.msra.mxu0 %v6406_v51  ;;  %1770 = vmatpush1.bf16.msra.mxu1 %v6409_v52  ;;  %v6484_v52 = vld [vmem:[%s8920_s1 + $0x7c0] ss:$16 sps:$4 sm:$0xff]  }
  0xb4   :  { %1730 = vmatprep.subr.bf16.mxu0 %v6414_v57  ;;  %1771 = vmatprep.subr.bf16.mxu1 %v6417_v58  ;;  %v6487_v57 = vld [vmem:[%s8920_s1 + $0x7c8] ss:$16 sps:$4 sm:$0xff]   ;;  %v6492_v58 = vld [vmem:[%s8920_s1 + $0x7a4] ss:$16 sps:$4 sm:$0xff]  }
  0xb7   :  { %1731 = vmatpush1.bf16.msra.mxu0 %v6412_v59  ;;  %1772 = vmatpush1.bf16.msra.mxu1 %v6415_v60 }
  0xb8   :  { %1732 = vmatprep.subr.bf16.mxu0 %v6420_v61  ;;  %1773 = vmatprep.subr.bf16.mxu1 %v6423_v62  ;;  %v6495_v61 = vld [vmem:[%s8920_s1 + $0x7ac] ss:$16 sps:$4 sm:$0xff]   ;;  %v6490_v62 = vld [vmem:[%s8920_s1 + $0x7a0] ss:$16 sps:$4 sm:$0xff]  }
  0xbb   :  { %1733 = vmatpush1.bf16.msra.mxu0 %v6418_v63  ;;  %1774 = vmatpush1.bf16.msra.mxu1 %v6421_v3  ;;  %v6493_v63 = vld [vmem:[%s8920_s1 + $0x7a8] ss:$16 sps:$4 sm:$0xff]  }
  0xbc   :  { %1734 = vmatprep.subr.bf16.mxu0 %v6426_v53  ;;  %1775 = vmatprep.subr.bf16.mxu1 %v6429_v4  ;;  %v6498_v53 = vld [vmem:[%s8920_s1 + $0x784] ss:$16 sps:$4 sm:$0xff]   ;;  %v6501_v4 = vld [vmem:[%s8920_s1 + $0x78c] ss:$16 sps:$4 sm:$0xff]  }
  0xbf   :  { %1735 = vmatpush1.bf16.msra.mxu0 %v6424_v54  ;;  %1776 = vmatpush1.bf16.msra.mxu1 %v6427_v5  ;;  %v26_v54 = vld [vmem:[%s8919_s0 + $0x10] sm:$0xf]  ;;  %v27_v5 = vld [vmem:[%s8919_s0 + $0x14] sm:$0xf] }
  0xc0   :  { %2004 = vmatprep.subr.bf16.mxu0 %v6432_v7  ;;  %2045 = vmatprep.subr.bf16.mxu1 %v6435_v8 }
  0xc2   :  { %1753 = vmatmul.mubr.bf16.vlgmr.msra.gmra.mxu0 %v1558_v9  ;;  %1794 = vmatmul.mubr.bf16.vlgmr.msra.gmra.mxu1 %v1558_v9  ;;  %v35_v9 = vld [vmem:[%s8919_s0 + $0x34] sm:$0xf] }
  0xc3   :  { %2005 = vmatpush1.bf16.msra.mxu0 %v6430_v10  ;;  %2046 = vmatpush1.bf16.msra.mxu1 %v6433_v11  ;;  %v6496_v10 = vld [vmem:[%s8920_s1 + $0x780] ss:$16 sps:$4 sm:$0xff]   ;;  %v6499_v11 = vld [vmem:[%s8920_s1 + $0x788] ss:$16 sps:$4 sm:$0xff]  }
  0xc4   :  { %2006 = vmatprep.subr.bf16.mxu0 %v6438_v12  ;;  %2047 = vmatprep.subr.bf16.mxu1 %v6441_v13  ;;  %v6504_v12 = vld [vmem:[%s8920_s1 + $0x764] ss:$16 sps:$4 sm:$0xff]   ;;  %v40_v13 = vmax.bf16 %v27_v5, %v26_v54  ;;  %v6541_v54 = vld [vmem:[%s8920_s1 + $0x8a8] ss:$16 sps:$4 sm:$0xff]  }
  0xc5   :  { %2036 = vmatprep.mubr.bf16.mxu0 %v6964_v2  ;;  %2077 = vmatprep.mubr.bf16.mxu1 %v6964_v2 }
  0xc7   :  { %2007 = vmatpush1.bf16.msra.mxu0 %v6436_v14  ;;  %2048 = vmatpush1.bf16.msra.mxu1 %v6439_v15  ;;  %v44_v14 = vmax.bf16 %v35_v9, %v34_v6  ;;  %v6507_v15 = vld [vmem:[%s8920_s1 + $0x76c] ss:$16 sps:$4 sm:$0xff]   ;;  %v6552_v9 = vld [vmem:[%s8920_s1 + $0x864] ss:$16 sps:$4 sm:$0xff]  }
  0xc8   :  { %2008 = vmatprep.subr.bf16.mxu0 %v6444_v16  ;;  %2049 = vmatprep.subr.bf16.mxu1 %v6447_v17  ;;  %v6502_v16 = vld [vmem:[%s8920_s1 + $0x760] ss:$16 sps:$4 sm:$0xff]   ;;  %v6505_v17 = vld [vmem:[%s8920_s1 + $0x768] ss:$16 sps:$4 sm:$0xff]   ;;  %v6549_v6 = vld [vmem:[%s8920_s1 + $0x88c] ss:$16 sps:$4 sm:$0xff]  }
  0xcb   :  { %2009 = vmatpush1.bf16.msra.mxu0 %v6442_v18  ;;  %2050 = vmatpush1.bf16.msra.mxu1 %v6445_v19  ;;  %v6510_v18 = vld [vmem:[%s8920_s1 + $0x744] ss:$16 sps:$4 sm:$0xff]   ;;  %v56_v19 = vrot.slane %v40_v13, 2 }
  0xcc   :  { %2010 = vmatprep.subr.bf16.mxu0 %v6450_v20  ;;  %2051 = vmatprep.subr.bf16.mxu1 %v6453_v21  ;;  %v60_v20 = vrot.slane %v44_v14, 2  ;;  %v6513_v21 = vld [vmem:[%s8920_s1 + $0x74c] ss:$16 sps:$4 sm:$0xff]  }
  0xcf   :  { %2011 = vmatpush1.bf16.msra.mxu0 %v6448_v22  ;;  %2052 = vmatpush1.bf16.msra.mxu1 %v6451_v23  ;;  %v6508_v22 = vld [vmem:[%s8920_s1 + $0x740] ss:$16 sps:$4 sm:$0xff]   ;;  %v6511_v23 = vld [vmem:[%s8920_s1 + $0x748] ss:$16 sps:$4 sm:$0xff]  }
  0xd0   :  { %2012 = vmatprep.subr.bf16.mxu0 %v6456_v24  ;;  %2053 = vmatprep.subr.bf16.mxu1 %v6459_v25  ;;  %v6516_v24 = vld [vmem:[%s8920_s1 + $0x724] ss:$16 sps:$4 sm:$0xff]   ;;  %v72_v25 = vmax.bf16 %v56_v19, %v40_v13  ;;  %v6562_v19 = vld [vmem:[%s8920_s1 + $0x820] ss:$16 sps:$4 sm:$0xff]  }
  0xd1   :  { %v6558_v13 = vld [vmem:[%s8920_s1 + $0x844] ss:$16 sps:$4 sm:$0xff]  }
  0xd3   :  { %2013 = vmatpush1.bf16.msra.mxu0 %v6454_v26  ;;  %2054 = vmatpush1.bf16.msra.mxu1 %v6457_v27  ;;  %v76_v26 = vmax.bf16 %v60_v20, %v44_v14  ;;  %v6519_v27 = vld [vmem:[%s8920_s1 + $0x72c] ss:$16 sps:$4 sm:$0xff]   ;;  %v6565_v20 = vld [vmem:[%s8920_s1 + $0x828] ss:$16 sps:$4 sm:$0xff]  }
  0xd4   :  { %2014 = vmatprep.subr.bf16.mxu0 %v6462_v28  ;;  %2055 = vmatprep.subr.bf16.mxu1 %v6465_v29  ;;  %v6514_v28 = vld [vmem:[%s8920_s1 + $0x720] ss:$16 sps:$4 sm:$0xff]   ;;  %v6517_v29 = vld [vmem:[%s8920_s1 + $0x728] ss:$16 sps:$4 sm:$0xff]   ;;  %v6561_v14 = vld [vmem:[%s8920_s1 + $0x84c] ss:$16 sps:$4 sm:$0xff]  }
  0xd7   :  { %2015 = vmatpush1.bf16.msra.mxu0 %v6460_v31  ;;  %2056 = vmatpush1.bf16.msra.mxu1 %v6463_v32  ;;  %v6522_v31 = vld [vmem:[%s8920_s1 + $0x704] ss:$16 sps:$4 sm:$0xff]   ;;  %v2415_v32 = vrot.slane %v72_v25, %v7101_v42  ;;  %v6571_v25 = vld [vmem:[%s8920_s1 + $0x808] ss:$16 sps:$4 sm:$0xff]  }
  0xd8   :  { %2016 = vmatprep.subr.bf16.mxu0 %v6468_v33  ;;  %2057 = vmatprep.subr.bf16.mxu1 %v6471_v34  ;;  %v2422_v33 = vrot.slane %v76_v26, %v7101_v42  ;;  %v6525_v34 = vld [vmem:[%s8920_s1 + $0x70c] ss:$16 sps:$4 sm:$0xff]  }
  0xda   :  { %v7879_v39 = vunpack.c.l.b16 %v2422_v33  ;;  %v6582_v33 = vld [vmem:[%s8920_s1 + $0x9c4] ss:$16 sps:$4 sm:$0xff]  }
  0xdb   :  { %2017 = vmatpush1.bf16.msra.mxu0 %v6466_v35  ;;  %2058 = vmatpush1.bf16.msra.mxu1 %v6469_v37  ;;  %v6520_v35 = vld [vmem:[%s8920_s1 + $0x700] ss:$16 sps:$4 sm:$0xff]   ;;  %v6528_v37 = vld [vmem:[%s8920_s1 + $0x8e4] ss:$16 sps:$4 sm:$0xff]  }
  0xdc   :  { %2018 = vmatprep.subr.bf16.mxu0 %v6474_v38  ;;  %2059 = vmatprep.subr.bf16.mxu1 %v6477_v40  ;;  %v7877_v38 = vunpack.c.l.b16 %v2415_v32  ;;  %v6531_v40 = vld [vmem:[%s8920_s1 + $0x8ec] ss:$16 sps:$4 sm:$0xff]  }
  0xdf   :  { %2019 = vmatpush1.bf16.msra.mxu0 %v6472_v55  ;;  %2060 = vmatpush1.bf16.msra.mxu1 %v6475_v41  ;;  %v3275_v55 = vrot.slane %v7877_v38, 3  ;;  %v3276_v41 = vrot.slane %v7879_v39, 2 }
  0xe0   :  { %2288 = vmatprep.subr.bf16.mxu0 %v6480_v56  ;;  %2329 = vmatprep.subr.bf16.mxu1 %v6483_v44  ;;  %v6526_v56 = vld [vmem:[%s8920_s1 + $0x8e0] ss:$16 sps:$4 sm:$0xff]   ;;  %v6529_v44 = vld [vmem:[%s8920_s1 + $0x8e8] ss:$16 sps:$4 sm:$0xff]  }
  0xe2   :  { %v7772_v50 = vpop.f32.mrf.mxu0  ;;  %v7774_v51 = vpop.f32.mrf.mxu1  ;;  %2037 = vmatmul.mubr.bf16.vlgmr.msra.gmra.mxu0 %v1842_v45  ;;  %2078 = vmatmul.mubr.bf16.vlgmr.msra.gmra.mxu1 %v1842_v45  ;;  %v6534_v45 = vld [vmem:[%s8920_s1 + $0x8c4] ss:$16 sps:$4 sm:$0xff]  }
  0xe3   :  { %2289 = vmatpush1.bf16.msra.mxu0 %v6478_v46  ;;  %2330 = vmatpush1.bf16.msra.mxu1 %v6481_v47  ;;  %v7898_v46 = vsel %vm162_vm0, %v3276_v41, %v3275_v55 }
  0xe4   :  { %v7785_v59 = vpop.f32.mrf.mxu0  ;;  %v7787_v60 = vpop.f32.mrf.mxu1  ;;  %2290 = vmatprep.subr.bf16.mxu0 %v6486_v48  ;;  %2331 = vmatprep.subr.bf16.mxu1 %v6489_v49  ;;  %v6532_v49 = vld [vmem:[%s8920_s1 + $0x8c0] ss:$16 sps:$4 sm:$0xff]  }
  0xe5   :  { %2320 = vmatprep.mubr.bf16.mxu0 %v6964_v2  ;;  %2361 = vmatprep.mubr.bf16.mxu1 %v6964_v2 }
  0xe6   :  { %v364_v3 = vpop.f32.mrf.mxu0  ;;  %v405_v0 = vpop.f32.mrf.mxu1 }
  0xe7   :  { %2291 = vmatpush1.bf16.msra.mxu0 %v6484_v52  ;;  %2332 = vmatpush1.bf16.msra.mxu1 %v6487_v57 }
  0xe8   :  { %v365_v7 = vpop.f32.mrf.mxu0  ;;  %v406_v8 = vpop.f32.mrf.mxu1  ;;  %2292 = vmatprep.subr.bf16.mxu0 %v6492_v58  ;;  %2333 = vmatprep.subr.bf16.mxu1 %v6495_v61  ;;  %v6535_v58 = vld [vmem:[%s8920_s1 + $0x8c8] ss:$16 sps:$4 sm:$0xff]   ;;  %v6540_v61 = vld [vmem:[%s8920_s1 + $0x8a4] ss:$16 sps:$4 sm:$0xff]  }
  0xe9   :  { %v6544_v7 = vld [vmem:[%s8920_s1 + $0x880] ss:$16 sps:$4 sm:$0xff]   ;;  %v6547_v8 = vld [vmem:[%s8920_s1 + $0x888] ss:$16 sps:$4 sm:$0xff]  }
  0xeb   :  { %2293 = vmatpush1.bf16.msra.mxu0 %v6490_v62  ;;  %2334 = vmatpush1.bf16.msra.mxu1 %v6493_v63 }
  0xec   :  { %2294 = vmatprep.subr.bf16.mxu0 %v6498_v53  ;;  %2335 = vmatprep.subr.bf16.mxu1 %v6501_v4  ;;  %v6538_v4 = vld [vmem:[%s8920_s1 + $0x8a0] ss:$16 sps:$4 sm:$0xff]  }
  0xef   :  { %2295 = vmatpush1.bf16.msra.mxu0 %v6496_v10  ;;  %2336 = vmatpush1.bf16.msra.mxu1 %v6499_v11  ;;  %v6555_v10 = vld [vmem:[%s8920_s1 + $0x86c] ss:$16 sps:$4 sm:$0xff]   ;;  %v6550_v11 = vld [vmem:[%s8920_s1 + $0x860] ss:$16 sps:$4 sm:$0xff]  }
  0xf0   :  { %2296 = vmatprep.subr.bf16.mxu0 %v6504_v12  ;;  %2337 = vmatprep.subr.bf16.mxu1 %v6507_v15  ;;  %v6553_v12 = vld [vmem:[%s8920_s1 + $0x868] ss:$16 sps:$4 sm:$0xff]   ;;  %v6556_v15 = vld [vmem:[%s8920_s1 + $0x840] ss:$16 sps:$4 sm:$0xff]  }
  0xf3   :  { %2297 = vmatpush1.bf16.msra.mxu0 %v6502_v16  ;;  %2338 = vmatpush1.bf16.msra.mxu1 %v6505_v17  ;;  %v6559_v16 = vld [vmem:[%s8920_s1 + $0x848] ss:$16 sps:$4 sm:$0xff]   ;;  %v6564_v17 = vld [vmem:[%s8920_s1 + $0x824] ss:$16 sps:$4 sm:$0xff]  }
  0xf4   :  { %2298 = vmatprep.subr.bf16.mxu0 %v6510_v18  ;;  %2339 = vmatprep.subr.bf16.mxu1 %v6513_v21  ;;  %v6567_v18 = vld [vmem:[%s8920_s1 + $0x82c] ss:$16 sps:$4 sm:$0xff]   ;;  %v2425_v21 = vrot.slane %v7879_v39, 7 }
  0xf6   :  { %v2426_v26 = vsel %vm162_vm0, %v2425_v21, %v7877_v38  ;;  %v6630_v21 = vld [vmem:[%s8920_s1 + $0xac4] ss:$16 sps:$4 sm:$0xff]  }
  0xf7   :  { %2299 = vmatpush1.bf16.msra.mxu0 %v6508_v22  ;;  %2340 = vmatpush1.bf16.msra.mxu1 %v6511_v23  ;;  %v6570_v22 = vld [vmem:[%s8920_s1 + $0x804] ss:$16 sps:$4 sm:$0xff]   ;;  %v6573_v23 = vld [vmem:[%s8920_s1 + $0x80c] ss:$16 sps:$4 sm:$0xff]   ;;  %v2427_v32 = vpack.c.b16 %v2426_v26, %v2426_v26 }
  0xf8   :  { %2300 = vmatprep.subr.bf16.mxu0 %v6516_v24  ;;  %2341 = vmatprep.subr.bf16.mxu1 %v6519_v27  ;;  %v6568_v24 = vld [vmem:[%s8920_s1 + $0x800] ss:$16 sps:$4 sm:$0xff]   ;;  %v6576_v27 = vld [vmem:[%s8920_s1 + $0x9e4] ss:$16 sps:$4 sm:$0xff]  }
  0xfb   :  { %2301 = vmatpush1.bf16.msra.mxu0 %v6514_v28  ;;  %2342 = vmatpush1.bf16.msra.mxu1 %v6517_v29  ;;  %v6579_v28 = vld [vmem:[%s8920_s1 + $0x9ec] ss:$16 sps:$4 sm:$0xff]   ;;  %v6574_v29 = vld [vmem:[%s8920_s1 + $0x9e0] ss:$16 sps:$4 sm:$0xff]  }
  0xfc   :  { %2302 = vmatprep.subr.bf16.mxu0 %v6522_v31  ;;  %2343 = vmatprep.subr.bf16.mxu1 %v6525_v34  ;;  %v6577_v31 = vld [vmem:[%s8920_s1 + $0x9e8] ss:$16 sps:$4 sm:$0xff]   ;;  %v6585_v34 = vld [vmem:[%s8920_s1 + $0x9cc] ss:$16 sps:$4 sm:$0xff]  }
  0xff   :  { %2303 = vmatpush1.bf16.msra.mxu0 %v6520_v35  ;;  %2344 = vmatpush1.bf16.msra.mxu1 %v6523_v36  ;;  %v6580_v35 = vld [vmem:[%s8920_s1 + $0x9c0] ss:$16 sps:$4 sm:$0xff]   ;;  %v6583_v36 = vld [vmem:[%s8920_s1 + $0x9c8] ss:$16 sps:$4 sm:$0xff]  }
 0x100   :  { %2589 = vmatprep.subr.bf16.mxu0 %v6528_v37  ;;  %2630 = vmatprep.subr.bf16.mxu1 %v6531_v40 }
 0x102   :  { %v606_v47 = vpop.f32.mrf.mxu0  ;;  %v647_v48 = vpop.f32.mrf.mxu1  ;;  %2321 = vmatmul.mubr.bf16.vlgmr.msra.gmra.mxu0 %v2126_v43  ;;  %2362 = vmatmul.mubr.bf16.vlgmr.msra.gmra.mxu1 %v2126_v43 }
 0x103   :  { %v7907_v52 = vadd.f32 %v606_v47, %v7772_v50  ;;  %v7910_v57 = vadd.f32 %v647_v48, %v7774_v51  ;;  %2590 = vmatpush1.bf16.msra.mxu0 %v6526_v56  ;;  %2631 = vmatpush1.bf16.msra.mxu1 %v6529_v44  ;;  %v6543_v50 = vld [vmem:[%s8920_s1 + $0x8ac] ss:$16 sps:$4 sm:$0xff]   ;;  %v6588_v44 = vld [vmem:[%s8920_s1 + $0x9a4] ss:$16 sps:$4 sm:$0xff]   ;;  %v6586_v48 = vld [vmem:[%s8920_s1 + $0x9a0] ss:$16 sps:$4 sm:$0xff]  }
 0x104   :  { %v608_v62 = vpop.f32.mrf.mxu0  ;;  %v649_v63 = vpop.f32.mrf.mxu1  ;;  %2591 = vmatprep.subr.bf16.mxu0 %v6534_v45  ;;  %2632 = vmatprep.subr.bf16.mxu1 %v6537_v1  ;;  %v6591_v45 = vld [vmem:[%s8920_s1 + $0x9ac] ss:$16 sps:$4 sm:$0xff]  }
 0x105   :  { %v7922_v51 = vadd.f32 %v608_v62, %v7785_v59  ;;  %v7925_v3 = vadd.f32 %v649_v63, %v7787_v60  ;;  %2621 = vmatprep.mubr.bf16.mxu0 %v6964_v2  ;;  %2662 = vmatprep.mubr.bf16.mxu1 %v6964_v2  ;;  %v6546_v60 = vld [vmem:[%s8920_s1 + $0x884] ss:$16 sps:$4 sm:$0xff]   ;;  %v6597_v63 = vld [vmem:[%s8920_s1 + $0x98c] ss:$16 sps:$4 sm:$0xff]  }
 0x106   :  { %v610_v0 = vpop.f32.mrf.mxu0  ;;  %v651_v53 = vpop.f32.mrf.mxu1  ;;  %v6594_v62 = vld [vmem:[%s8920_s1 + $0x984] ss:$16 sps:$4 sm:$0xff]  }
 0x107   :  { %2592 = vmatpush1.bf16.msra.mxu0 %v6532_v49  ;;  %2633 = vmatpush1.bf16.msra.mxu1 %v6535_v58  ;;  %v6589_v49 = vld [vmem:[%s8920_s1 + $0x9a8] ss:$16 sps:$4 sm:$0xff]   ;;  %v6603_v0 = vld [vmem:[%s8920_s1 + $0x96c] ss:$16 sps:$4 sm:$0xff]   ;;  %v6598_v53 = vld [vmem:[%s8920_s1 + $0x960] ss:$16 sps:$4 sm:$0xff]  }
 0x108   :  { %v611_v59 = vpop.f32.mrf.mxu0  ;;  %v652_v5 = vpop.f32.mrf.mxu1  ;;  %2593 = vmatprep.subr.bf16.mxu0 %v6540_v61  ;;  %2634 = vmatprep.subr.bf16.mxu1 %v6543_v50  ;;  %v6592_v50 = vld [vmem:[%s8920_s1 + $0x980] ss:$16 sps:$4 sm:$0xff]  }
 0x109   :  { %v6609_v59 = vld [vmem:[%s8920_s1 + $0x94c] ss:$16 sps:$4 sm:$0xff]   ;;  %v6604_v5 = vld [vmem:[%s8920_s1 + $0x940] ss:$16 sps:$4 sm:$0xff]  }
 0x10b   :  { %2594 = vmatpush1.bf16.msra.mxu0 %v6538_v4  ;;  %2635 = vmatpush1.bf16.msra.mxu1 %v6541_v54  ;;  %v6601_v4 = vld [vmem:[%s8920_s1 + $0x968] ss:$16 sps:$4 sm:$0xff]   ;;  %v6606_v54 = vld [vmem:[%s8920_s1 + $0x944] ss:$16 sps:$4 sm:$0xff]  }
 0x10c   :  { %2595 = vmatprep.subr.bf16.mxu0 %v6546_v60  ;;  %2636 = vmatprep.subr.bf16.mxu1 %v6549_v6  ;;  %v6607_v60 = vld [vmem:[%s8920_s1 + $0x948] ss:$16 sps:$4 sm:$0xff]   ;;  %v6612_v6 = vld [vmem:[%s8920_s1 + $0x924] ss:$16 sps:$4 sm:$0xff]  }
 0x10f   :  { %2596 = vmatpush1.bf16.msra.mxu0 %v6544_v7  ;;  %2637 = vmatpush1.bf16.msra.mxu1 %v6547_v8  ;;  %v6615_v7 = vld [vmem:[%s8920_s1 + $0x92c] ss:$16 sps:$4 sm:$0xff]   ;;  %v6610_v8 = vld [vmem:[%s8920_s1 + $0x920] ss:$16 sps:$4 sm:$0xff]  }
 0x110   :  { %2597 = vmatprep.subr.bf16.mxu0 %v6552_v9  ;;  %2638 = vmatprep.subr.bf16.mxu1 %v6555_v10  ;;  %v6613_v9 = vld [vmem:[%s8920_s1 + $0x928] ss:$16 sps:$4 sm:$0xff]   ;;  %v2708_v10 = vrot.slane %v7877_v38, 1 }
 0x113   :  { %2598 = vmatpush1.bf16.msra.mxu0 %v6550_v11  ;;  %2639 = vmatpush1.bf16.msra.mxu1 %v6553_v12  ;;  %v6618_v11 = vld [vmem:[%s8920_s1 + $0x904] ss:$16 sps:$4 sm:$0xff]   ;;  %v6621_v12 = vld [vmem:[%s8920_s1 + $0x90c] ss:$16 sps:$4 sm:$0xff]  }
 0x114   :  { %2599 = vmatprep.subr.bf16.mxu0 %v6558_v13  ;;  %2640 = vmatprep.subr.bf16.mxu1 %v6561_v14  ;;  %v6616_v13 = vld [vmem:[%s8920_s1 + $0x900] ss:$16 sps:$4 sm:$0xff]   ;;  %v6619_v14 = vld [vmem:[%s8920_s1 + $0x908] ss:$16 sps:$4 sm:$0xff]  }
 0x117   :  { %2600 = vmatpush1.bf16.msra.mxu0 %v6556_v15  ;;  %2641 = vmatpush1.bf16.msra.mxu1 %v6559_v16  ;;  %v2709_v15 = vsel %vm162_vm0, %v7879_v39, %v2708_v10  ;;  %v6624_v16 = vld [vmem:[%s8920_s1 + $0xae4] ss:$16 sps:$4 sm:$0xff]   ;;  %v6681_v10 = vld [vmem:[%s8920_s1 + $0xbcc] ss:$16 sps:$4 sm:$0xff]  }
 0x118   :  { %2601 = vmatprep.subr.bf16.mxu0 %v6564_v17  ;;  %2642 = vmatprep.subr.bf16.mxu1 %v6567_v18  ;;  %v6627_v17 = vld [vmem:[%s8920_s1 + $0xaec] ss:$16 sps:$4 sm:$0xff]   ;;  %v6622_v18 = vld [vmem:[%s8920_s1 + $0xae0] ss:$16 sps:$4 sm:$0xff]  }
 0x11b   :  { %2602 = vmatpush1.bf16.msra.mxu0 %v6562_v19  ;;  %2643 = vmatpush1.bf16.msra.mxu1 %v6565_v20  ;;  %v6625_v19 = vld [vmem:[%s8920_s1 + $0xae8] ss:$16 sps:$4 sm:$0xff]   ;;  %v2710_v20 = vpack.c.b16 %v2709_v15, %v2709_v15 }
 0x11c   :  { %2603 = vmatprep.subr.bf16.mxu0 %v6570_v22  ;;  %2644 = vmatprep.subr.bf16.mxu1 %v6573_v23  ;;  %v6633_v22 = vld [vmem:[%s8920_s1 + $0xacc] ss:$16 sps:$4 sm:$0xff]   ;;  %v6628_v23 = vld [vmem:[%s8920_s1 + $0xac0] ss:$16 sps:$4 sm:$0xff]  }
 0x11f   :  { %2604 = vmatpush1.bf16.msra.mxu0 %v6568_v24  ;;  %2645 = vmatpush1.bf16.msra.mxu1 %v6571_v25  ;;  %v6631_v24 = vld [vmem:[%s8920_s1 + $0xac8] ss:$16 sps:$4 sm:$0xff]  }
 0x120   :  { %2872 = vmatprep.subr.bf16.mxu0 %v6576_v27  ;;  %2913 = vmatprep.subr.bf16.mxu1 %v6579_v28 }
 0x122   :  { %v886_v37 = vpop.f32.mrf.mxu0  ;;  %v927_v40 = vpop.f32.mrf.mxu1  ;;  %2622 = vmatmul.mubr.bf16.vlgmr.msra.gmra.mxu0 %v2427_v32  ;;  %2663 = vmatmul.mubr.bf16.vlgmr.msra.gmra.mxu1 %v2427_v32  ;;  %v6636_v32 = vld [vmem:[%s8920_s1 + $0xaa4] ss:$16 sps:$4 sm:$0xff]  }
 0x123   :  { %v8023_v55 = vadd.f32 %v886_v37, %v7907_v52  ;;  %v8026_v41 = vadd.f32 %v927_v40, %v7910_v57  ;;  %2873 = vmatpush1.bf16.msra.mxu0 %v6574_v29  ;;  %2914 = vmatpush1.bf16.msra.mxu1 %v6577_v31  ;;  %v6637_v37 = vld [vmem:[%s8920_s1 + $0xaa8] ss:$16 sps:$4 sm:$0xff]  }
 0x124   :  { %v888_v43 = vpop.f32.mrf.mxu0  ;;  %v929_v56 = vpop.f32.mrf.mxu1  ;;  %2874 = vmatprep.subr.bf16.mxu0 %v6582_v33  ;;  %2915 = vmatprep.subr.bf16.mxu1 %v6585_v34  ;;  %v6639_v33 = vld [vmem:[%s8920_s1 + $0xaac] ss:$16 sps:$4 sm:$0xff]  }
 0x125   :  { %v8035_v1 = vadd.f32 %v888_v43, %v7922_v51  ;;  %v8038_v47 = vadd.f32 %v929_v56, %v7925_v3  ;;  %2904 = vmatprep.mubr.bf16.mxu0 %v6964_v2  ;;  %2945 = vmatprep.mubr.bf16.mxu1 %v6964_v2  ;;  %v6595_v51 = vld [vmem:[%s8920_s1 + $0x988] ss:$16 sps:$4 sm:$0xff]   ;;  %v6600_v3 = vld [vmem:[%s8920_s1 + $0x964] ss:$16 sps:$4 sm:$0xff]  }
 0x126   :  { %v890_v52 = vpop.f32.mrf.mxu0  ;;  %v931_v57 = vpop.f32.mrf.mxu1  ;;  %v6642_v56 = vld [vmem:[%s8920_s1 + $0xa84] ss:$16 sps:$4 sm:$0xff]  }
 0x127   :  { %2875 = vmatpush1.bf16.msra.mxu0 %v6580_v35  ;;  %2916 = vmatpush1.bf16.msra.mxu1 %v6583_v36  ;;  %v6634_v36 = vld [vmem:[%s8920_s1 + $0xaa0] ss:$16 sps:$4 sm:$0xff]   ;;  %v6649_v52 = vld [vmem:[%s8920_s1 + $0xa68] ss:$16 sps:$4 sm:$0xff]   ;;  %v6654_v57 = vld [vmem:[%s8920_s1 + $0xa44] ss:$16 sps:$4 sm:$0xff]  }
 0x128   :  { %v891_v58 = vpop.f32.mrf.mxu0  ;;  %v932_v61 = vpop.f32.mrf.mxu1  ;;  %2876 = vmatprep.subr.bf16.mxu0 %v6588_v44  ;;  %2917 = vmatprep.subr.bf16.mxu1 %v6591_v45  ;;  %v6645_v44 = vld [vmem:[%s8920_s1 + $0xa8c] ss:$16 sps:$4 sm:$0xff]   ;;  %v2991_v45 = vrot.slane %v7877_v38, 2 }
 0x129   :  { %v6651_v38 = vld [vmem:[%s8920_s1 + $0xa6c] ss:$16 sps:$4 sm:$0xff]   ;;  %v6652_v61 = vld [vmem:[%s8920_s1 + $0xa40] ss:$16 sps:$4 sm:$0xff]  }
 0x12a   :  { %v6657_v58 = vld [vmem:[%s8920_s1 + $0xa4c] ss:$16 sps:$4 sm:$0xff]  }
 0x12b   :  { %2877 = vmatpush1.bf16.msra.mxu0 %v6586_v48  ;;  %2918 = vmatpush1.bf16.msra.mxu1 %v6589_v49  ;;  %v6643_v48 = vld [vmem:[%s8920_s1 + $0xa88] ss:$16 sps:$4 sm:$0xff]   ;;  %v6648_v49 = vld [vmem:[%s8920_s1 + $0xa64] ss:$16 sps:$4 sm:$0xff]  }
 0x12c   :  { %2878 = vmatprep.subr.bf16.mxu0 %v6594_v62  ;;  %2919 = vmatprep.subr.bf16.mxu1 %v6597_v63  ;;  %v6655_v62 = vld [vmem:[%s8920_s1 + $0xa48] ss:$16 sps:$4 sm:$0xff]   ;;  %v6660_v63 = vld [vmem:[%s8920_s1 + $0xa24] ss:$16 sps:$4 sm:$0xff]  }
 0x12f   :  { %2879 = vmatpush1.bf16.msra.mxu0 %v6592_v50  ;;  %2920 = vmatpush1.bf16.msra.mxu1 %v6595_v51  ;;  %v6663_v50 = vld [vmem:[%s8920_s1 + $0xa2c] ss:$16 sps:$4 sm:$0xff]   ;;  %v6658_v51 = vld [vmem:[%s8920_s1 + $0xa20] ss:$16 sps:$4 sm:$0xff]  }
 0x130   :  { %2880 = vmatprep.subr.bf16.mxu0 %v6600_v3  ;;  %2921 = vmatprep.subr.bf16.mxu1 %v6603_v0  ;;  %v6661_v3 = vld [vmem:[%s8920_s1 + $0xa28] ss:$16 sps:$4 sm:$0xff]   ;;  %v6666_v0 = vld [vmem:[%s8920_s1 + $0xa04] ss:$16 sps:$4 sm:$0xff]  }
 0x133   :  { %2881 = vmatpush1.bf16.msra.mxu0 %v6598_v53  ;;  %2922 = vmatpush1.bf16.msra.mxu1 %v6601_v4  ;;  %v6669_v53 = vld [vmem:[%s8920_s1 + $0xa0c] ss:$16 sps:$4 sm:$0xff]   ;;  %v6664_v4 = vld [vmem:[%s8920_s1 + $0xa00] ss:$16 sps:$4 sm:$0xff]  }
 0x134   :  { %2882 = vmatprep.subr.bf16.mxu0 %v6606_v54  ;;  %2923 = vmatprep.subr.bf16.mxu1 %v6609_v59  ;;  %v6667_v54 = vld [vmem:[%s8920_s1 + $0xa08] ss:$16 sps:$4 sm:$0xff]  }
 0x137   :  { %2883 = vmatpush1.bf16.msra.mxu0 %v6604_v5  ;;  %2924 = vmatpush1.bf16.msra.mxu1 %v6607_v60  ;;  %v6672_v5 = vld [vmem:[%s8920_s1 + $0xbe4] ss:$16 sps:$4 sm:$0xff]   ;;  %v6675_v60 = vld [vmem:[%s8920_s1 + $0xbec] ss:$16 sps:$4 sm:$0xff]  }
 0x138   :  { %2884 = vmatprep.subr.bf16.mxu0 %v6612_v6  ;;  %2925 = vmatprep.subr.bf16.mxu1 %v6615_v7  ;;  %v6670_v6 = vld [vmem:[%s8920_s1 + $0xbe0] ss:$16 sps:$4 sm:$0xff]   ;;  %v6673_v7 = vld [vmem:[%s8920_s1 + $0xbe8] ss:$16 sps:$4 sm:$0xff]  }
 0x13b   :  { %2885 = vmatpush1.bf16.msra.mxu0 %v6610_v8  ;;  %2926 = vmatpush1.bf16.msra.mxu1 %v6613_v9  ;;  %v6678_v9 = vld [vmem:[%s8920_s1 + $0xbc4] ss:$16 sps:$4 sm:$0xff]  }
 0x13c   :  { %2886 = vmatprep.subr.bf16.mxu0 %v6618_v11  ;;  %2927 = vmatprep.subr.bf16.mxu1 %v6621_v12  ;;  %v6676_v11 = vld [vmem:[%s8920_s1 + $0xbc0] ss:$16 sps:$4 sm:$0xff]   ;;  %v6679_v12 = vld [vmem:[%s8920_s1 + $0xbc8] ss:$16 sps:$4 sm:$0xff]  }
 0x13f   :  { %2887 = vmatpush1.bf16.msra.mxu0 %v6616_v13  ;;  %2928 = vmatpush1.bf16.msra.mxu1 %v6619_v14 }
 0x140   :  { %3156 = vmatprep.subr.bf16.mxu0 %v6624_v16  ;;  %3197 = vmatprep.subr.bf16.mxu1 %v6627_v17 }
 0x142   :  { %v1170_v25 = vpop.f32.mrf.mxu0  ;;  %v1211_v26 = vpop.f32.mrf.mxu1  ;;  %2905 = vmatmul.mubr.bf16.vlgmr.msra.gmra.mxu0 %v2710_v20  ;;  %2946 = vmatmul.mubr.bf16.vlgmr.msra.gmra.mxu1 %v2710_v20  ;;  %v6687_v20 = vld [vmem:[%s8920_s1 + $0xbac] ss:$16 sps:$4 sm:$0xff]  }
 0x143   :  { %v8136_v27 = vadd.f32 %v1170_v25, %v8023_v55  ;;  %v8139_v28 = vadd.f32 %v1211_v26, %v8026_v41  ;;  %3157 = vmatpush1.bf16.msra.mxu0 %v6622_v18  ;;  %3198 = vmatpush1.bf16.msra.mxu1 %v6625_v19  ;;  %v6684_v19 = vld [vmem:[%s8920_s1 + $0xba4] ss:$16 sps:$4 sm:$0xff]  }
 0x144   :  { %v1172_v29 = vpop.f32.mrf.mxu0  ;;  %v1213_v31 = vpop.f32.mrf.mxu1  ;;  %3158 = vmatprep.subr.bf16.mxu0 %v6630_v21  ;;  %3199 = vmatprep.subr.bf16.mxu1 %v6633_v22 }
 0x145   :  { %v8148_v34 = vadd.f32 %v1172_v29, %v8035_v1  ;;  %v8151_v35 = vadd.f32 %v1213_v31, %v8038_v47  ;;  %3188 = vmatprep.mubr.bf16.mxu0 %v6964_v2  ;;  %3229 = vmatprep.mubr.bf16.mxu1 %v6964_v2  ;;  %v2992_v1 = vrot.slane %v7879_v39, 1  ;;  %v6640_v47 = vld [vmem:[%s8920_s1 + $0xa80] ss:$16 sps:$4 sm:$0xff]  }
 0x146   :  { %v1174_v40 = vpop.f32.mrf.mxu0  ;;  %v1215_v55 = vpop.f32.mrf.mxu1  ;;  %v6646_v39 = vld [vmem:[%s8920_s1 + $0xa60] ss:$16 sps:$4 sm:$0xff]  }
 0x147   :  { %3159 = vmatpush1.bf16.msra.mxu0 %v6628_v23  ;;  %3200 = vmatpush1.bf16.msra.mxu1 %v6631_v24  ;;  %v2993_v59 = vsel %vm162_vm0, %v2992_v1, %v2991_v45 }
 0x148   :  { %v1175_v41 = vpop.f32.mrf.mxu0  ;;  %v1216_v43 = vpop.f32.mrf.mxu1  ;;  %3160 = vmatprep.subr.bf16.mxu0 %v6636_v32  ;;  %3201 = vmatprep.subr.bf16.mxu1 %v6639_v33  ;;  %v2994_v8 = vpack.c.b16 %v2993_v59, %v2993_v59 }
 0x14b   :  { %3161 = vmatpush1.bf16.msra.mxu0 %v6634_v36  ;;  %3202 = vmatpush1.bf16.msra.mxu1 %v6637_v37 }
 0x14c   :  { %3162 = vmatprep.subr.bf16.mxu0 %v6642_v56  ;;  %3203 = vmatprep.subr.bf16.mxu1 %v6645_v44 }
 0x14f   :  { %3163 = vmatpush1.bf16.msra.mxu0 %v6640_v47  ;;  %3204 = vmatpush1.bf16.msra.mxu1 %v6643_v48 }
 0x150   :  { %3164 = vmatprep.subr.bf16.mxu0 %v6648_v49  ;;  %3205 = vmatprep.subr.bf16.mxu1 %v6651_v38 }
 0x153   :  { %3165 = vmatpush1.bf16.msra.mxu0 %v6646_v39  ;;  %3206 = vmatpush1.bf16.msra.mxu1 %v6649_v52 }
 0x154   :  { %3166 = vmatprep.subr.bf16.mxu0 %v6654_v57  ;;  %3207 = vmatprep.subr.bf16.mxu1 %v6657_v58 }
 0x157   :  { %3167 = vmatpush1.bf16.msra.mxu0 %v6652_v61  ;;  %3208 = vmatpush1.bf16.msra.mxu1 %v6655_v62 }
 0x158   :  { %3168 = vmatprep.subr.bf16.mxu0 %v6660_v63  ;;  %3209 = vmatprep.subr.bf16.mxu1 %v6663_v50 }
 0x15b   :  { %3169 = vmatpush1.bf16.msra.mxu0 %v6658_v51  ;;  %3210 = vmatpush1.bf16.msra.mxu1 %v6661_v3 }
 0x15c   :  { %3170 = vmatprep.subr.bf16.mxu0 %v6666_v0  ;;  %3211 = vmatprep.subr.bf16.mxu1 %v6669_v53 }
 0x15f   :  { %3171 = vmatpush1.bf16.msra.mxu0 %v6664_v4  ;;  %3212 = vmatpush1.bf16.msra.mxu1 %v6667_v54 }
 0x160   :  { %3440 = vmatprep.subr.bf16.mxu0 %v6672_v5  ;;  %3481 = vmatprep.subr.bf16.mxu1 %v6675_v60 }
 0x162   :  { %v1471_v13 = vpop.f32.mrf.mxu0  ;;  %v1512_v14 = vpop.f32.mrf.mxu1  ;;  %3189 = vmatmul.mubr.bf16.vlgmr.msra.gmra.mxu0 %v2994_v8  ;;  %3230 = vmatmul.mubr.bf16.vlgmr.msra.gmra.mxu1 %v2994_v8 }
 0x163   :  { %v8249_v15 = vadd.f32 %v1471_v13, %v8136_v27  ;;  %v8252_v16 = vadd.f32 %v1512_v14, %v8139_v28  ;;  %3441 = vmatpush1.bf16.msra.mxu0 %v6670_v6  ;;  %3482 = vmatpush1.bf16.msra.mxu1 %v6673_v7 }
 0x164   :  { %v1473_v17 = vpop.f32.mrf.mxu0  ;;  %v1514_v18 = vpop.f32.mrf.mxu1  ;;  %3442 = vmatprep.subr.bf16.mxu0 %v6678_v9  ;;  %3483 = vmatprep.subr.bf16.mxu1 %v6681_v10 }
 0x165   :  { %v8261_v21 = vadd.f32 %v1473_v17, %v8148_v34  ;;  %v8264_v22 = vadd.f32 %v1514_v18, %v8151_v35  ;;  %3472 = vmatprep.mubr.bf16.mxu0 %v6964_v2  ;;  %3513 = vmatprep.mubr.bf16.mxu1 %v6964_v2 }
 0x166   :  { %10 = vsyncpa [#allocation3], 0  ;;  %v1475_v23 = vpop.f32.mrf.mxu0  ;;  %v1516_v24 = vpop.f32.mrf.mxu1  ;;  %v6682_v25 = vld [vmem:[%s8920_s1 + $0xba0] ss:$16 sps:$4 sm:$0xff]   ;;  %v6685_v26 = vld [vmem:[%s8920_s1 + $0xba8] ss:$16 sps:$4 sm:$0xff]   ;;  %v3278_v57 = vpack.c.b16 %v7898_v46, %v7898_v46 }
 0x167   :  { %3443 = vmatpush1.bf16.msra.mxu0 %v6676_v11  ;;  %3484 = vmatpush1.bf16.msra.mxu1 %v6679_v12  ;;  %v6690_v29 = vld [vmem:[%s8920_s1 + $0xb84] ss:$16 sps:$4 sm:$0xff]   ;;  %v6693_v31 = vld [vmem:[%s8920_s1 + $0xb8c] ss:$16 sps:$4 sm:$0xff]   ;;  %v6688_v32 = vld [vmem:[%s8920_s1 + $0xb80] ss:$16 sps:$4 sm:$0xff]  }
 0x168   :  { %v1476_v27 = vpop.f32.mrf.mxu0  ;;  %v1517_v28 = vpop.f32.mrf.mxu1  ;;  %3444 = vmatprep.subr.bf16.mxu0 %v6684_v19  ;;  %3485 = vmatprep.subr.bf16.mxu1 %v6687_v20  ;;  %v6691_v33 = vld [vmem:[%s8920_s1 + $0xb88] ss:$16 sps:$4 sm:$0xff]   ;;  %v6696_v34 = vld [vmem:[%s8920_s1 + $0xb64] ss:$16 sps:$4 sm:$0xff]   ;;  %v6699_v35 = vld [vmem:[%s8920_s1 + $0xb6c] ss:$16 sps:$4 sm:$0xff]  }
 0x169   :  { %v6694_v36 = vld [vmem:[%s8920_s1 + $0xb60] ss:$16 sps:$4 sm:$0xff]   ;;  %v6697_v37 = vld [vmem:[%s8920_s1 + $0xb68] ss:$16 sps:$4 sm:$0xff]   ;;  %v6702_v40 = vld [vmem:[%s8920_s1 + $0xb44] ss:$16 sps:$4 sm:$0xff]  }
 0x16a   :  { %v6705_v55 = vld [vmem:[%s8920_s1 + $0xb4c] ss:$16 sps:$4 sm:$0xff]   ;;  %v6700_v41 = vld [vmem:[%s8920_s1 + $0xb40] ss:$16 sps:$4 sm:$0xff]   ;;  %v6703_v43 = vld [vmem:[%s8920_s1 + $0xb48] ss:$16 sps:$4 sm:$0xff]  }
 0x16b   :  { %3445 = vmatpush1.bf16.msra.mxu0 %v6682_v25  ;;  %3486 = vmatpush1.bf16.msra.mxu1 %v6685_v26  ;;  %v6708_v56 = vld [vmem:[%s8920_s1 + $0xb24] ss:$16 sps:$4 sm:$0xff]   ;;  %v6711_v44 = vld [vmem:[%s8920_s1 + $0xb2c] ss:$16 sps:$4 sm:$0xff]   ;;  %v6706_v45 = vld [vmem:[%s8920_s1 + $0xb20] ss:$16 sps:$4 sm:$0xff]  }
 0x16c   :  { %3446 = vmatprep.subr.bf16.mxu0 %v6690_v29  ;;  %3487 = vmatprep.subr.bf16.mxu1 %v6693_v31  ;;  %v6709_v1 = vld [vmem:[%s8920_s1 + $0xb28] ss:$16 sps:$4 sm:$0xff]   ;;  %v6714_v47 = vld [vmem:[%s8920_s1 + $0xb04] ss:$16 sps:$4 sm:$0xff]   ;;  %v6717_v48 = vld [vmem:[%s8920_s1 + $0xb0c] ss:$16 sps:$4 sm:$0xff]  }
 0x16d   :  { %v6712_v49 = vld [vmem:[%s8920_s1 + $0xb00] ss:$16 sps:$4 sm:$0xff]   ;;  %v6715_v38 = vld [vmem:[%s8920_s1 + $0xb08] ss:$16 sps:$4 sm:$0xff]   ;;  %v6720_v39 = vld [vmem:[%s8920_s1 + $0xce4] ss:$16 sps:$4 sm:$0xff]  }
 0x16e   :  { %v6723_v52 = vld [vmem:[%s8920_s1 + $0xcec] ss:$16 sps:$4 sm:$0xff]   ;;  %v6718_v58 = vld [vmem:[%s8920_s1 + $0xce0] ss:$16 sps:$4 sm:$0xff]   ;;  %v6721_v61 = vld [vmem:[%s8920_s1 + $0xce8] ss:$16 sps:$4 sm:$0xff]  }
 0x16f   :  { %3447 = vmatpush1.bf16.msra.mxu0 %v6688_v32  ;;  %3488 = vmatpush1.bf16.msra.mxu1 %v6691_v33  ;;  %v6726_v62 = vld [vmem:[%s8920_s1 + $0xcc4] ss:$16 sps:$4 sm:$0xff]   ;;  %v6729_v46 = vld [vmem:[%s8920_s1 + $0xccc] ss:$16 sps:$4 sm:$0xff]   ;;  %v36_v63 = vld [vmem:[%s8919_s0 + $0x38] sm:$0xf] }
 0x170   :  { %3448 = vmatprep.subr.bf16.mxu0 %v6696_v34  ;;  %3489 = vmatprep.subr.bf16.mxu1 %v6699_v35  ;;  %v37_v50 = vld [vmem:[%s8919_s0 + $0x3c] sm:$0xf]  ;;  %v6724_v4 = vld [vmem:[%s8920_s1 + $0xcc0] ss:$16 sps:$4 sm:$0xff]   ;;  %v6727_v54 = vld [vmem:[%s8920_s1 + $0xcc8] ss:$16 sps:$4 sm:$0xff]  }
 0x171   :  { %v6732_v59 = vld [vmem:[%s8920_s1 + $0xca4] ss:$16 sps:$4 sm:$0xff]   ;;  %v45_v5 = vmax.bf16 %v37_v50, %v36_v63  ;;  %v6735_v7 = vld [vmem:[%s8920_s1 + $0xcac] ss:$16 sps:$4 sm:$0xff]   ;;  %v28_v8 = vld [vmem:[%s8919_s0 + $0x18] sm:$0xf] }
 0x172   :  { %v29_v9 = vld [vmem:[%s8919_s0 + $0x1c] sm:$0xf]  ;;  %v6730_v14 = vld [vmem:[%s8920_s1 + $0xca0] ss:$16 sps:$4 sm:$0xff]   ;;  %v6738_v20 = vld [vmem:[%s8920_s1 + $0xc84] ss:$16 sps:$4 sm:$0xff]  }
 0x173   :  { %3449 = vmatpush1.bf16.msra.mxu0 %v6694_v36  ;;  %3490 = vmatpush1.bf16.msra.mxu1 %v6697_v37  ;;  %v61_v17 = vrot.slane %v45_v5, 2  ;;  %v6739_v23 = vld [vmem:[%s8920_s1 + $0xc88] ss:$16 sps:$4 sm:$0xff]   ;;  %v6744_v26 = vld [vmem:[%s8920_s1 + $0xc64] ss:$16 sps:$4 sm:$0xff]   ;;  %s6966_s25 = smov [#allocation2]  }
 0x174   :  { %3450 = vmatprep.subr.bf16.mxu0 %v6702_v40  ;;  %3491 = vmatprep.subr.bf16.mxu1 %v6705_v55  ;;  %v6747_v27 = vld [vmem:[%s8920_s1 + $0xc6c] ss:$16 sps:$4 sm:$0xff]   ;;  %v6742_v28 = vld [vmem:[%s8920_s1 + $0xc60] ss:$16 sps:$4 sm:$0xff]   ;;  %v6745_v29 = vld [vmem:[%s8920_s1 + $0xc68] ss:$16 sps:$4 sm:$0xff]  }
 0x175   :  { %v77_v25 = vmax.bf16 %v61_v17, %v45_v5  ;;  %v6750_v33 = vld [vmem:[%s8920_s1 + $0xc44] ss:$16 sps:$4 sm:$0xff]   ;;  %v6753_v34 = vld [vmem:[%s8920_s1 + $0xc4c] ss:$16 sps:$4 sm:$0xff]   ;;  %v6748_v35 = vld [vmem:[%s8920_s1 + $0xc40] ss:$16 sps:$4 sm:$0xff]  }
 0x176   :  { %v6751_v36 = vld [vmem:[%s8920_s1 + $0xc48] ss:$16 sps:$4 sm:$0xff]   ;;  %v6756_v55 = vld [vmem:[%s8920_s1 + $0xc24] ss:$16 sps:$4 sm:$0xff]   ;;  %v6795_v17 = vld [vmem:[%s8920_s1 + $0xd6c] ss:$16 sps:$4 sm:$0xff]  }
 0x177   :  { %3451 = vmatpush1.bf16.msra.mxu0 %v6700_v41  ;;  %3492 = vmatpush1.bf16.msra.mxu1 %v6703_v43  ;;  %v3574_v32 = vrot.slane %v77_v25, %v7101_v42  ;;  %v6759_v41 = vld [vmem:[%s8920_s1 + $0xc2c] ss:$16 sps:$4 sm:$0xff]   ;;  %v6754_v43 = vld [vmem:[%s8920_s1 + $0xc20] ss:$16 sps:$4 sm:$0xff]   ;;  %s5062_s26 = sshll.u32 %s6966_s25, 4  ;;  %s5063_s26 = int_to_ptr.vmem [resolvable:$true] %s5062_s26 }
 0x178   :  { %3452 = vmatprep.subr.bf16.mxu0 %v6708_v56  ;;  %3493 = vmatprep.subr.bf16.mxu1 %v6711_v44  ;;  %v6807_v25 = vld [vmem:[%s8920_s1 + $0xd2c] ss:$16 sps:$4 sm:$0xff]   ;;  %s6942_s27 = scalar_lea.vmem %s5063_s26, 32  ;;  %p6947_p1 = scmp.lt.s32.totalorder %s5063_s26, %s5063_s26 }
 0x179   :  { %v8436_v40 = vunpack.c.l.b16 %v3574_v32  ;;  %v6808_v32 = vld [vmem:[%s8920_s1 + $0xd00] ss:$16 sps:$4 sm:$0xff]   ;;  %p6943_p0 = scmp.ne.s32.totalorder %s5063_s26, %s6942_s27  ;;  %p6948_p2 = scmp.lt.s32.totalorder %s6942_s27, %s6942_s27 }
 0x17b   :  { %3453 = vmatpush1.bf16.msra.mxu0 %v6706_v45  ;;  %3494 = vmatpush1.bf16.msra.mxu1 %v6709_v1  ;;  %v3577_v44 = vrot.slane %v8436_v40, 7  ;;  %v6762_v45 = vld [vmem:[%s8920_s1 + $0xc04] ss:$16 sps:$4 sm:$0xff]   ;;  %v6765_v1 = vld [vmem:[%s8920_s1 + $0xc0c] ss:$16 sps:$4 sm:$0xff]   ;;  %p6949_p3 = por %p6948_p2, %p6947_p1 }
 0x17c   :  { %3454 = vmatprep.subr.bf16.mxu0 %v6714_v47  ;;  %3495 = vmatprep.subr.bf16.mxu1 %v6717_v48  ;;  %v6760_v47 = vld [vmem:[%s8920_s1 + $0xc00] ss:$16 sps:$4 sm:$0xff]   ;;  %v6763_v48 = vld [vmem:[%s8920_s1 + $0xc08] ss:$16 sps:$4 sm:$0xff]  }
 0x17d   :  { %p6950_p4 = pnand %p6949_p3, %p6943_p0 }
 0x17f   :  { %3455 = vmatpush1.bf16.msra.mxu0 %v6712_v49  ;;  %3496 = vmatpush1.bf16.msra.mxu1 %v6715_v38  ;;  %v6768_v38 = vld [vmem:[%s8920_s1 + $0xde4] ss:$16 sps:$4 sm:$0xff]  }
 0x180   :  { %3741 = vmatprep.subr.bf16.mxu0 %v6720_v39  ;;  %3782 = vmatprep.subr.bf16.mxu1 %v6723_v52  ;;  %v6771_v39 = vld [vmem:[%s8920_s1 + $0xdec] ss:$16 sps:$4 sm:$0xff]  }
 0x182   :  { %v1754_v51 = vpop.f32.mrf.mxu0  ;;  %v1795_v3 = vpop.f32.mrf.mxu1  ;;  %3473 = vmatmul.mubr.bf16.vlgmr.msra.gmra.mxu0 %v3278_v57  ;;  %3514 = vmatmul.mubr.bf16.vlgmr.msra.gmra.mxu1 %v3278_v57  ;;  %v6766_v57 = vld [vmem:[%s8920_s1 + $0xde0] ss:$16 sps:$4 sm:$0xff]  }
 0x183   :  { %v8361_v0 = vadd.f32 %v1754_v51, %v8249_v15  ;;  %v8364_v53 = vadd.f32 %v1795_v3, %v8252_v16  ;;  %3742 = vmatpush1.bf16.msra.mxu0 %v6718_v58  ;;  %3783 = vmatpush1.bf16.msra.mxu1 %v6721_v61  ;;  %v6733_v15 = vld [vmem:[%s8920_s1 + $0xca8] ss:$16 sps:$4 sm:$0xff]   ;;  %v41_v16 = vmax.bf16 %v29_v9, %v28_v8  ;;  %v6774_v61 = vld [vmem:[%s8920_s1 + $0xdc4] ss:$16 sps:$4 sm:$0xff]   ;;  %v6772_v3 = vld [vmem:[%s8920_s1 + $0xdc0] ss:$16 sps:$4 sm:$0xff]  }
 0x184   :  { %v1756_v60 = vpop.f32.mrf.mxu0  ;;  %v1797_v6 = vpop.f32.mrf.mxu1  ;;  %3743 = vmatprep.subr.bf16.mxu0 %v6726_v62  ;;  %3784 = vmatprep.subr.bf16.mxu1 %v6729_v46  ;;  %v6769_v58 = vld [vmem:[%s8920_s1 + $0xde8] ss:$16 sps:$4 sm:$0xff]   ;;  %v6777_v62 = vld [vmem:[%s8920_s1 + $0xdcc] ss:$16 sps:$4 sm:$0xff]   ;;  %v6778_v8 = vld [vmem:[%s8920_s1 + $0xda0] ss:$16 sps:$4 sm:$0xff]  }
 0x185   :  { %v8385_v10 = vadd.f32 %v1756_v60, %v8261_v21  ;;  %v8388_v11 = vadd.f32 %v1797_v6, %v8264_v22  ;;  %3773 = vmatprep.mubr.bf16.mxu0 %v6964_v2  ;;  %3814 = vmatprep.mubr.bf16.mxu1 %v6964_v2  ;;  %v6741_v21 = vld [vmem:[%s8920_s1 + $0xc8c] ss:$16 sps:$4 sm:$0xff]   ;;  %v6736_v22 = vld [vmem:[%s8920_s1 + $0xc80] ss:$16 sps:$4 sm:$0xff]   ;;  %v57_v24 = vrot.slane %v41_v16, 2 }
 0x186   :  { %v1758_v12 = vpop.f32.mrf.mxu0  ;;  %v1799_v13 = vpop.f32.mrf.mxu1  ;;  %v6781_v9 = vld [vmem:[%s8920_s1 + $0xda8] ss:$16 sps:$4 sm:$0xff]  }
 0x187   :  { %3744 = vmatpush1.bf16.msra.mxu0 %v6724_v4  ;;  %3785 = vmatpush1.bf16.msra.mxu1 %v6727_v54  ;;  %v73_v31 = vmax.bf16 %v57_v24, %v41_v16  ;;  %v6775_v4 = vld [vmem:[%s8920_s1 + $0xdc8] ss:$16 sps:$4 sm:$0xff]   ;;  %v6789_v13 = vld [vmem:[%s8920_s1 + $0xd8c] ss:$16 sps:$4 sm:$0xff]   ;;  %v6792_v16 = vld [vmem:[%s8920_s1 + $0xd64] ss:$16 sps:$4 sm:$0xff]  }
 0x188   :  { %v1759_v18 = vpop.f32.mrf.mxu0  ;;  %v1800_v19 = vpop.f32.mrf.mxu1  ;;  %3745 = vmatprep.subr.bf16.mxu0 %v6732_v59  ;;  %3786 = vmatprep.subr.bf16.mxu1 %v6735_v7  ;;  %v6804_v24 = vld [vmem:[%s8920_s1 + $0xd24] ss:$16 sps:$4 sm:$0xff]  }
 0x189   :  { %v3567_v37 = vrot.slane %v73_v31, %v7101_v42  ;;  %v6757_v42 = vld [vmem:[%s8920_s1 + $0xc28] ss:$16 sps:$4 sm:$0xff]   ;;  %v6790_v18 = vld [vmem:[%s8920_s1 + $0xd60] ss:$16 sps:$4 sm:$0xff]   ;;  %v6813_v31 = vld [vmem:[%s8920_s1 + $0xd0c] ss:$16 sps:$4 sm:$0xff]  }
 0x18a   :  { %v6793_v19 = vld [vmem:[%s8920_s1 + $0xd68] ss:$16 sps:$4 sm:$0xff]  }
 0x18b   :  { %3746 = vmatpush1.bf16.msra.mxu0 %v6730_v14  ;;  %3787 = vmatpush1.bf16.msra.mxu1 %v6733_v15  ;;  %v8450_v56 = vunpack.c.l.b16 %v3567_v37  ;;  %v6784_v14 = vld [vmem:[%s8920_s1 + $0xd80] ss:$16 sps:$4 sm:$0xff]   ;;  %v6787_v15 = vld [vmem:[%s8920_s1 + $0xd88] ss:$16 sps:$4 sm:$0xff]  }
 0x18c   :  { %3747 = vmatprep.subr.bf16.mxu0 %v6738_v20  ;;  %3788 = vmatprep.subr.bf16.mxu1 %v6741_v21  ;;  %v6798_v20 = vld [vmem:[%s8920_s1 + $0xd44] ss:$16 sps:$4 sm:$0xff]   ;;  %v6801_v21 = vld [vmem:[%s8920_s1 + $0xd4c] ss:$16 sps:$4 sm:$0xff]  }
 0x18d   :  { %v3578_v49 = vsel %vm162_vm0, %v3577_v44, %v8450_v56 }
 0x18e   :  { %v3579_v52 = vpack.c.b16 %v3578_v49, %v3578_v49  ;;  %v6823_v49 = vld [vmem:[%s8920_s1 + $0xec8] ss:$16 sps:$4 sm:$0xff]  }
 0x18f   :  { %3748 = vmatpush1.bf16.msra.mxu0 %v6736_v22  ;;  %3789 = vmatpush1.bf16.msra.mxu1 %v6739_v23  ;;  %v6796_v22 = vld [vmem:[%s8920_s1 + $0xd40] ss:$16 sps:$4 sm:$0xff]   ;;  %v6799_v23 = vld [vmem:[%s8920_s1 + $0xd48] ss:$16 sps:$4 sm:$0xff]  }
 0x190   :  { %3749 = vmatprep.subr.bf16.mxu0 %v6744_v26  ;;  %3790 = vmatprep.subr.bf16.mxu1 %v6747_v27  ;;  %v6802_v26 = vld [vmem:[%s8920_s1 + $0xd20] ss:$16 sps:$4 sm:$0xff]   ;;  %v6805_v27 = vld [vmem:[%s8920_s1 + $0xd28] ss:$16 sps:$4 sm:$0xff]  }
 0x193   :  { %3750 = vmatpush1.bf16.msra.mxu0 %v6742_v28  ;;  %3791 = vmatpush1.bf16.msra.mxu1 %v6745_v29  ;;  %v3860_v28 = vrot.slane %v8450_v56, 1  ;;  %v6810_v29 = vld [vmem:[%s8920_s1 + $0xd04] ss:$16 sps:$4 sm:$0xff]  }
 0x194   :  { %3751 = vmatprep.subr.bf16.mxu0 %v6750_v33  ;;  %3792 = vmatprep.subr.bf16.mxu1 %v6753_v34  ;;  %v6811_v33 = vld [vmem:[%s8920_s1 + $0xd08] ss:$16 sps:$4 sm:$0xff]  }
 0x195   :  { %v3861_v34 = vsel %vm162_vm0, %v8436_v40, %v3860_v28  ;;  %v6873_v28 = vld [vmem:[%s8920_s1 + $0xfcc] ss:$16 sps:$4 sm:$0xff]  }
 0x196   :  { %v3862_v37 = vpack.c.b16 %v3861_v34, %v3861_v34  ;;  %v6868_v34 = vld [vmem:[%s8920_s1 + $0xfc0] ss:$16 sps:$4 sm:$0xff]  }
 0x197   :  { %3752 = vmatpush1.bf16.msra.mxu0 %v6748_v35  ;;  %3793 = vmatpush1.bf16.msra.mxu1 %v6751_v36  ;;  %v6816_v35 = vld [vmem:[%s8920_s1 + $0xee4] ss:$16 sps:$4 sm:$0xff]   ;;  %v6819_v36 = vld [vmem:[%s8920_s1 + $0xeec] ss:$16 sps:$4 sm:$0xff]  }
 0x198   :  { %3753 = vmatprep.subr.bf16.mxu0 %v6756_v55  ;;  %3794 = vmatprep.subr.bf16.mxu1 %v6759_v41  ;;  %v6814_v55 = vld [vmem:[%s8920_s1 + $0xee0] ss:$16 sps:$4 sm:$0xff]   ;;  %v6817_v41 = vld [vmem:[%s8920_s1 + $0xee8] ss:$16 sps:$4 sm:$0xff]  }
 0x19b   :  { %3754 = vmatpush1.bf16.msra.mxu0 %v6754_v43  ;;  %3795 = vmatpush1.bf16.msra.mxu1 %v6757_v42  ;;  %v6822_v43 = vld [vmem:[%s8920_s1 + $0xec4] ss:$16 sps:$4 sm:$0xff]   ;;  %v6825_v42 = vld [vmem:[%s8920_s1 + $0xecc] ss:$16 sps:$4 sm:$0xff]  }
 0x19c   :  { %3755 = vmatprep.subr.bf16.mxu0 %v6762_v45  ;;  %3796 = vmatprep.subr.bf16.mxu1 %v6765_v1 }
 0x19f   :  { %3756 = vmatpush1.bf16.msra.mxu0 %v6760_v47  ;;  %3797 = vmatpush1.bf16.msra.mxu1 %v6763_v48  ;;  %v6820_v48 = vld [vmem:[%s8920_s1 + $0xec0] ss:$16 sps:$4 sm:$0xff]  }
 0x1a0   :  { %4024 = vmatprep.subr.bf16.mxu0 %v6768_v38  ;;  %4065 = vmatprep.subr.bf16.mxu1 %v6771_v39 }
 0x1a2   :  { %v2038_v46 = vpop.f32.mrf.mxu0  ;;  %v2079_v63 = vpop.f32.mrf.mxu1  ;;  %3774 = vmatmul.mubr.bf16.vlgmr.msra.gmra.mxu0 %v3579_v52  ;;  %3815 = vmatmul.mubr.bf16.vlgmr.msra.gmra.mxu1 %v3579_v52  ;;  %v6828_v52 = vld [vmem:[%s8920_s1 + $0xea4] ss:$16 sps:$4 sm:$0xff]  }
 0x1a3   :  { %v8486_v50 = vadd.f32 %v2038_v46, %v8361_v0  ;;  %v8489_v51 = vadd.f32 %v2079_v63, %v8364_v53  ;;  %4025 = vmatpush1.bf16.msra.mxu0 %v6766_v57  ;;  %4066 = vmatpush1.bf16.msra.mxu1 %v6769_v58  ;;  %v6780_v0 = vld [vmem:[%s8920_s1 + $0xda4] ss:$16 sps:$4 sm:$0xff]   ;;  %v6783_v53 = vld [vmem:[%s8920_s1 + $0xdac] ss:$16 sps:$4 sm:$0xff]   ;;  %v6826_v63 = vld [vmem:[%s8920_s1 + $0xea0] ss:$16 sps:$4 sm:$0xff]  }
 0x1a4   :  { %v2040_v54 = vpop.f32.mrf.mxu0  ;;  %v2081_v59 = vpop.f32.mrf.mxu1  ;;  %4026 = vmatprep.subr.bf16.mxu0 %v6774_v61  ;;  %4067 = vmatprep.subr.bf16.mxu1 %v6777_v62  ;;  %v6831_v57 = vld [vmem:[%s8920_s1 + $0xeac] ss:$16 sps:$4 sm:$0xff]  }
 0x1a5   :  { %v8504_v5 = vadd.f32 %v2040_v54, %v8385_v10  ;;  %v8507_v60 = vadd.f32 %v2081_v59, %v8388_v11  ;;  %4056 = vmatprep.mubr.bf16.mxu0 %v6964_v2  ;;  %4097 = vmatprep.mubr.bf16.mxu1 %v6964_v2  ;;  %v6786_v11 = vld [vmem:[%s8920_s1 + $0xd84] ss:$16 sps:$4 sm:$0xff]   ;;  %v6837_v54 = vld [vmem:[%s8920_s1 + $0xe8c] ss:$16 sps:$4 sm:$0xff]   ;;  %v6832_v59 = vld [vmem:[%s8920_s1 + $0xe80] ss:$16 sps:$4 sm:$0xff]  }
 0x1a6   :  { %v2042_v6 = vpop.f32.mrf.mxu0  ;;  %v2083_v7 = vpop.f32.mrf.mxu1 }
 0x1a7   :  { %4027 = vmatpush1.bf16.msra.mxu0 %v6772_v3  ;;  %4068 = vmatpush1.bf16.msra.mxu1 %v6775_v4  ;;  %v6834_v4 = vld [vmem:[%s8920_s1 + $0xe84] ss:$16 sps:$4 sm:$0xff]   ;;  %v6841_v6 = vld [vmem:[%s8920_s1 + $0xe68] ss:$16 sps:$4 sm:$0xff]  }
 0x1a8   :  { %v2043_v10 = vpop.f32.mrf.mxu0  ;;  %v2084_v12 = vpop.f32.mrf.mxu1  ;;  %4028 = vmatprep.subr.bf16.mxu0 %v6780_v0  ;;  %4069 = vmatprep.subr.bf16.mxu1 %v6783_v53  ;;  %v6835_v0 = vld [vmem:[%s8920_s1 + $0xe88] ss:$16 sps:$4 sm:$0xff]   ;;  %v6840_v53 = vld [vmem:[%s8920_s1 + $0xe64] ss:$16 sps:$4 sm:$0xff]  }
 0x1a9   :  { %v6846_v7 = vld [vmem:[%s8920_s1 + $0xe44] ss:$16 sps:$4 sm:$0xff]   ;;  %v6847_v10 = vld [vmem:[%s8920_s1 + $0xe48] ss:$16 sps:$4 sm:$0xff]  }
 0x1aa   :  { %v6852_v12 = vld [vmem:[%s8920_s1 + $0xe24] ss:$16 sps:$4 sm:$0xff]  }
 0x1ab   :  { %4029 = vmatpush1.bf16.msra.mxu0 %v6778_v8  ;;  %4070 = vmatpush1.bf16.msra.mxu1 %v6781_v9  ;;  %v6849_v8 = vld [vmem:[%s8920_s1 + $0xe4c] ss:$16 sps:$4 sm:$0xff]   ;;  %v6844_v9 = vld [vmem:[%s8920_s1 + $0xe40] ss:$16 sps:$4 sm:$0xff]  }
 0x1ac   :  { %4030 = vmatprep.subr.bf16.mxu0 %v6786_v11  ;;  %4071 = vmatprep.subr.bf16.mxu1 %v6789_v13  ;;  %v6855_v11 = vld [vmem:[%s8920_s1 + $0xe2c] ss:$16 sps:$4 sm:$0xff]   ;;  %v6850_v13 = vld [vmem:[%s8920_s1 + $0xe20] ss:$16 sps:$4 sm:$0xff]  }
 0x1af   :  { %4031 = vmatpush1.bf16.msra.mxu0 %v6784_v14  ;;  %4072 = vmatpush1.bf16.msra.mxu1 %v6787_v15  ;;  %v6853_v14 = vld [vmem:[%s8920_s1 + $0xe28] ss:$16 sps:$4 sm:$0xff]   ;;  %v4143_v15 = vrot.slane %v8450_v56, 2 }
 0x1b0   :  { %4032 = vmatprep.subr.bf16.mxu0 %v6792_v16  ;;  %4073 = vmatprep.subr.bf16.mxu1 %v6795_v17  ;;  %v4144_v16 = vrot.slane %v8436_v40, 1  ;;  %v6858_v17 = vld [vmem:[%s8920_s1 + $0xe04] ss:$16 sps:$4 sm:$0xff]  }
 0x1b3   :  { %4033 = vmatpush1.bf16.msra.mxu0 %v6790_v18  ;;  %4074 = vmatpush1.bf16.msra.mxu1 %v6793_v19  ;;  %v6861_v18 = vld [vmem:[%s8920_s1 + $0xe0c] ss:$16 sps:$4 sm:$0xff]   ;;  %v6856_v19 = vld [vmem:[%s8920_s1 + $0xe00] ss:$16 sps:$4 sm:$0xff]  }
 0x1b4   :  { %4034 = vmatprep.subr.bf16.mxu0 %v6798_v20  ;;  %4075 = vmatprep.subr.bf16.mxu1 %v6801_v21  ;;  %v6859_v20 = vld [vmem:[%s8920_s1 + $0xe08] ss:$16 sps:$4 sm:$0xff]   ;;  %v4145_v21 = vsel %vm162_vm0, %v4144_v16, %v4143_v15 }
 0x1b7   :  { %4035 = vmatpush1.bf16.msra.mxu0 %v6796_v22  ;;  %4076 = vmatpush1.bf16.msra.mxu1 %v6799_v23  ;;  %v6864_v22 = vld [vmem:[%s8920_s1 + $0xfe4] ss:$16 sps:$4 sm:$0xff]   ;;  %v6867_v23 = vld [vmem:[%s8920_s1 + $0xfec] ss:$16 sps:$4 sm:$0xff]  }
 0x1b8   :  { %4036 = vmatprep.subr.bf16.mxu0 %v6804_v24  ;;  %4077 = vmatprep.subr.bf16.mxu1 %v6807_v25  ;;  %v4146_v24 = vpack.c.b16 %v4145_v21, %v4145_v21  ;;  %v6862_v25 = vld [vmem:[%s8920_s1 + $0xfe0] ss:$16 sps:$4 sm:$0xff]  }
 0x1bb   :  { %4037 = vmatpush1.bf16.msra.mxu0 %v6802_v26  ;;  %4078 = vmatpush1.bf16.msra.mxu1 %v6805_v27  ;;  %v6865_v26 = vld [vmem:[%s8920_s1 + $0xfe8] ss:$16 sps:$4 sm:$0xff]   ;;  %v6870_v27 = vld [vmem:[%s8920_s1 + $0xfc4] ss:$16 sps:$4 sm:$0xff]  }
 0x1bc   :  { %4038 = vmatprep.subr.bf16.mxu0 %v6810_v29  ;;  %4079 = vmatprep.subr.bf16.mxu1 %v6813_v31 }
 0x1bf   :  { %4039 = vmatpush1.bf16.msra.mxu0 %v6808_v32  ;;  %4080 = vmatpush1.bf16.msra.mxu1 %v6811_v33 }
 0x1c0   :  { %4308 = vmatprep.subr.bf16.mxu0 %v6816_v35  ;;  %4349 = vmatprep.subr.bf16.mxu1 %v6819_v36  ;;  %v6871_v35 = vld [vmem:[%s8920_s1 + $0xfc8] ss:$16 sps:$4 sm:$0xff]  }
 0x1c2   :  { %v2322_v44 = vpop.f32.mrf.mxu0  ;;  %v2363_v45 = vpop.f32.mrf.mxu1  ;;  %4057 = vmatmul.mubr.bf16.vlgmr.msra.gmra.mxu0 %v3862_v37  ;;  %4098 = vmatmul.mubr.bf16.vlgmr.msra.gmra.mxu1 %v3862_v37 }
 0x1c3   :  { %v8599_v1 = vadd.f32 %v2322_v44, %v8486_v50  ;;  %v8602_v47 = vadd.f32 %v2363_v45, %v8489_v51  ;;  %4309 = vmatpush1.bf16.msra.mxu0 %v6814_v55  ;;  %4350 = vmatpush1.bf16.msra.mxu1 %v6817_v41  ;;  %v6829_v50 = vld [vmem:[%s8920_s1 + $0xea8] ss:$16 sps:$4 sm:$0xff]   ;;  %v6876_v55 = vld [vmem:[%s8920_s1 + $0xfa4] ss:$16 sps:$4 sm:$0xff]   ;;  %v6879_v41 = vld [vmem:[%s8920_s1 + $0xfac] ss:$16 sps:$4 sm:$0xff]  }
 0x1c4   :  { %v2324_v38 = vpop.f32.mrf.mxu0  ;;  %v2365_v39 = vpop.f32.mrf.mxu1  ;;  %4310 = vmatprep.subr.bf16.mxu0 %v6822_v43  ;;  %4351 = vmatprep.subr.bf16.mxu1 %v6825_v42 }
 0x1c5   :  { %v8617_v58 = vadd.f32 %v2324_v38, %v8504_v5  ;;  %v8620_v61 = vadd.f32 %v2365_v39, %v8507_v60  ;;  %4340 = vmatprep.mubr.bf16.mxu0 %v6964_v2  ;;  %4381 = vmatprep.mubr.bf16.mxu1 %v6964_v2  ;;  %v6843_v5 = vld [vmem:[%s8920_s1 + $0xe6c] ss:$16 sps:$4 sm:$0xff]   ;;  %v6838_v60 = vld [vmem:[%s8920_s1 + $0xe60] ss:$16 sps:$4 sm:$0xff]  }
 0x1c6   :  { %v2326_v62 = vpop.f32.mrf.mxu0  ;;  %v2367_v46 = vpop.f32.mrf.mxu1  ;;  %v6885_v38 = vld [vmem:[%s8920_s1 + $0xf8c] ss:$16 sps:$4 sm:$0xff]   ;;  %v6880_v39 = vld [vmem:[%s8920_s1 + $0xf80] ss:$16 sps:$4 sm:$0xff]  }
 0x1c7   :  { %4311 = vmatpush1.bf16.msra.mxu0 %v6820_v48  ;;  %4352 = vmatpush1.bf16.msra.mxu1 %v6823_v49  ;;  %v6889_v62 = vld [vmem:[%s8920_s1 + $0xf68] ss:$16 sps:$4 sm:$0xff]   ;;  %v6894_v46 = vld [vmem:[%s8920_s1 + $0xf44] ss:$16 sps:$4 sm:$0xff]  }
 0x1c8   :  { %v2327_v51 = vpop.f32.mrf.mxu0  ;;  %v2368_v3 = vpop.f32.mrf.mxu1  ;;  %4312 = vmatprep.subr.bf16.mxu0 %v6828_v52  ;;  %4353 = vmatprep.subr.bf16.mxu1 %v6831_v57  ;;  %v6883_v52 = vld [vmem:[%s8920_s1 + $0xf88] ss:$16 sps:$4 sm:$0xff]   ;;  %v6888_v57 = vld [vmem:[%s8920_s1 + $0xf64] ss:$16 sps:$4 sm:$0xff]  }
 0x1c9   :  { %v6895_v51 = vld [vmem:[%s8920_s1 + $0xf48] ss:$16 sps:$4 sm:$0xff]   ;;  %v6900_v3 = vld [vmem:[%s8920_s1 + $0xf24] ss:$16 sps:$4 sm:$0xff]  }
 0x1cb   :  { %4313 = vmatpush1.bf16.msra.mxu0 %v6826_v63  ;;  %4354 = vmatpush1.bf16.msra.mxu1 %v6829_v50  ;;  %v6897_v63 = vld [vmem:[%s8920_s1 + $0xf4c] ss:$16 sps:$4 sm:$0xff]   ;;  %v6892_v50 = vld [vmem:[%s8920_s1 + $0xf40] ss:$16 sps:$4 sm:$0xff]  }
 0x1cc   :  { %4314 = vmatprep.subr.bf16.mxu0 %v6834_v4  ;;  %4355 = vmatprep.subr.bf16.mxu1 %v6837_v54  ;;  %v6903_v4 = vld [vmem:[%s8920_s1 + $0xf2c] ss:$16 sps:$4 sm:$0xff]   ;;  %v6898_v54 = vld [vmem:[%s8920_s1 + $0xf20] ss:$16 sps:$4 sm:$0xff]  }
 0x1cf   :  { %4315 = vmatpush1.bf16.msra.mxu0 %v6832_v59  ;;  %4356 = vmatpush1.bf16.msra.mxu1 %v6835_v0  ;;  %v6901_v59 = vld [vmem:[%s8920_s1 + $0xf28] ss:$16 sps:$4 sm:$0xff]   ;;  %v4427_v0 = vrot.slane %v8450_v56, 3 }
 0x1d0   :  { %4316 = vmatprep.subr.bf16.mxu0 %v6840_v53  ;;  %4357 = vmatprep.subr.bf16.mxu1 %v6843_v5  ;;  %v4428_v53 = vrot.slane %v8436_v40, 2  ;;  %v6906_v5 = vld [vmem:[%s8920_s1 + $0xf04] ss:$16 sps:$4 sm:$0xff]   ;;  %v6907_v40 = vld [vmem:[%s8920_s1 + $0xf08] ss:$16 sps:$4 sm:$0xff]  }
 0x1d2   :  { %v4429_v56 = vsel %vm162_vm0, %v4428_v53, %v4427_v0  ;;  %v6935_v0 = vld [vmem:[%s8922_s3 + $0xc8] sm:$0xff]  }
 0x1d3   :  { %4317 = vmatpush1.bf16.msra.mxu0 %v6838_v60  ;;  %4358 = vmatpush1.bf16.msra.mxu1 %v6841_v6  ;;  %v6909_v60 = vld [vmem:[%s8920_s1 + $0xf0c] ss:$16 sps:$4 sm:$0xff]   ;;  %v6904_v6 = vld [vmem:[%s8920_s1 + $0xf00] ss:$16 sps:$4 sm:$0xff]  }
 0x1d4   :  { %4318 = vmatprep.subr.bf16.mxu0 %v6846_v7  ;;  %4359 = vmatprep.subr.bf16.mxu1 %v6849_v8  ;;  %v4430_v7 = vpack.c.b16 %v4429_v56, %v4429_v56 }
 0x1d7   :  { %4319 = vmatpush1.bf16.msra.mxu0 %v6844_v9  ;;  %4360 = vmatpush1.bf16.msra.mxu1 %v6847_v10 }
 0x1d8   :  { %4320 = vmatprep.subr.bf16.mxu0 %v6852_v12  ;;  %4361 = vmatprep.subr.bf16.mxu1 %v6855_v11 }
 0x1db   :  { %4321 = vmatpush1.bf16.msra.mxu0 %v6850_v13  ;;  %4362 = vmatpush1.bf16.msra.mxu1 %v6853_v14 }
 0x1dc   :  { %4322 = vmatprep.subr.bf16.mxu0 %v6858_v17  ;;  %4363 = vmatprep.subr.bf16.mxu1 %v6861_v18 }
 0x1df   :  { %4323 = vmatpush1.bf16.msra.mxu0 %v6856_v19  ;;  %4364 = vmatpush1.bf16.msra.mxu1 %v6859_v20 }
 0x1e0   :  { %4592 = vmatprep.subr.bf16.mxu0 %v6864_v22  ;;  %4633 = vmatprep.subr.bf16.mxu1 %v6867_v23 }
 0x1e2   :  { %v2623_v29 = vpop.f32.mrf.mxu0  ;;  %v2664_v31 = vpop.f32.mrf.mxu1  ;;  %4341 = vmatmul.mubr.bf16.vlgmr.msra.gmra.mxu0 %v4146_v24  ;;  %4382 = vmatmul.mubr.bf16.vlgmr.msra.gmra.mxu1 %v4146_v24 }
 0x1e3   :  { %v8712_v32 = vadd.f32 %v2623_v29, %v8599_v1  ;;  %v8715_v33 = vadd.f32 %v2664_v31, %v8602_v47  ;;  %4593 = vmatpush1.bf16.msra.mxu0 %v6862_v25  ;;  %4634 = vmatpush1.bf16.msra.mxu1 %v6865_v26  ;;  %v6874_v1 = vld [vmem:[%s8920_s1 + $0xfa0] ss:$16 sps:$4 sm:$0xff]   ;;  %v6877_v47 = vld [vmem:[%s8920_s1 + $0xfa8] ss:$16 sps:$4 sm:$0xff]  }
 0x1e4   :  { %v2625_v36 = vpop.f32.mrf.mxu0  ;;  %v2666_v37 = vpop.f32.mrf.mxu1  ;;  %4594 = vmatprep.subr.bf16.mxu0 %v6870_v27  ;;  %4635 = vmatprep.subr.bf16.mxu1 %v6873_v28 }
 0x1e5   :  { %v8730_v43 = vadd.f32 %v2625_v36, %v8617_v58  ;;  %v8733_v42 = vadd.f32 %v2666_v37, %v8620_v61  ;;  %4624 = vmatprep.mubr.bf16.mxu0 %v6964_v2  ;;  %4665 = vmatprep.mubr.bf16.mxu1 %v6964_v2  ;;  %v6882_v2 = vld [vmem:[%s8920_s1 + $0xf84] ss:$16 sps:$4 sm:$0xff]   ;;  %v6891_v58 = vld [vmem:[%s8920_s1 + $0xf6c] ss:$16 sps:$4 sm:$0xff]   ;;  %v6886_v61 = vld [vmem:[%s8920_s1 + $0xf60] ss:$16 sps:$4 sm:$0xff]  }
 0x1e6   :  { %v2627_v44 = vpop.f32.mrf.mxu0  ;;  %v2668_v45 = vpop.f32.mrf.mxu1  ;;  %v6913_v36 = vld [vmem:[%s8922_s3 + $0xb8] sm:$0xff]   ;;  %v6914_v37 = vld [vmem:[%s8922_s3 + $0x70] sm:$0xff]  }
 0x1e7   :  { %4595 = vmatpush1.bf16.msra.mxu0 %v6868_v34  ;;  %4636 = vmatpush1.bf16.msra.mxu1 %v6871_v35  ;;  %v6911_v34 = vld [vmem:[%s8922_s3 + $0xf8] sm:$0xff]   ;;  %v6919_v44 = vld [vmem:[%s8922_s3 + $0xe8] sm:$0xff]  }
 0x1e8   :  { %v2628_v48 = vpop.f32.mrf.mxu0  ;;  %v2669_v49 = vpop.f32.mrf.mxu1  ;;  %4596 = vmatprep.subr.bf16.mxu0 %v6876_v55  ;;  %4637 = vmatprep.subr.bf16.mxu1 %v6879_v41  ;;  %v6912_v35 = vld [vmem:[%s8922_s3 + $0x38] sm:$0xff]   ;;  %v6915_v55 = vld [vmem:[%s8922_s3 + $0xf0] sm:$0xff]   ;;  %v6920_v45 = vld [vmem:[%s8922_s3 + $0x28] sm:$0xff]  }
 0x1e9   :  { %v6916_v41 = vld [vmem:[%s8922_s3 + $0x30] sm:$0xff]   ;;  %v6923_v48 = vld [vmem:[%s8922_s3 + $0xe0] sm:$0xff]  }
 0x1ea   :  { %v6924_v49 = vld [vmem:[%s8922_s3 + $0x20] sm:$0xff]  }
 0x1eb   :  { %4597 = vmatpush1.bf16.msra.mxu0 %v6874_v1  ;;  %4638 = vmatpush1.bf16.msra.mxu1 %v6877_v47  ;;  %v6921_v1 = vld [vmem:[%s8922_s3 + $0xa8] sm:$0xff]   ;;  %v6922_v47 = vld [vmem:[%s8922_s3 + $0x60] sm:$0xff]  }
 0x1ec   :  { %4598 = vmatprep.subr.bf16.mxu0 %v6882_v2  ;;  %4639 = vmatprep.subr.bf16.mxu1 %v6885_v38  ;;  %v6925_v2 = vld [vmem:[%s8922_s3 + $0xa0] sm:$0xff]   ;;  %v6926_v38 = vld [vmem:[%s8922_s3 + $0x58] sm:$0xff]  }
 0x1ef   :  { %4599 = vmatpush1.bf16.msra.mxu0 %v6880_v39  ;;  %4640 = vmatpush1.bf16.msra.mxu1 %v6883_v52  ;;  %v6927_v39 = vld [vmem:[%s8922_s3 + $0xd8] sm:$0xff]  }
 0x1f0   :  { %4600 = vmatprep.subr.bf16.mxu0 %v6888_v57  ;;  %4641 = vmatprep.subr.bf16.mxu1 %v6891_v58  ;;  %v6928_v52 = vld [vmem:[%s8922_s3 + $0x18] sm:$0xff]   ;;  %v6930_v58 = vld [vmem:[%s8922_s3 + $0x50] sm:$0xff]  }
 0x1f1   :  { %v6929_v57 = vld [vmem:[%s8922_s3 + $0x98] sm:$0xff]  }
 0x1f3   :  { %4601 = vmatpush1.bf16.msra.mxu0 %v6886_v61  ;;  %4642 = vmatpush1.bf16.msra.mxu1 %v6889_v62  ;;  %v6931_v61 = vld [vmem:[%s8922_s3 + $0xd0] sm:$0xff]  }
 0x1f4   :  { %4602 = vmatprep.subr.bf16.mxu0 %v6894_v46  ;;  %4643 = vmatprep.subr.bf16.mxu1 %v6897_v63  ;;  %v6932_v62 = vld [vmem:[%s8922_s3 + $0x10] sm:$0xff]  }
 0x1f5   :  { %v6933_v46 = vld [vmem:[%s8922_s3 + $0x90] sm:$0xff]  }
 0x1f7   :  { %4603 = vmatpush1.bf16.msra.mxu0 %v6892_v50  ;;  %4644 = vmatpush1.bf16.msra.mxu1 %v6895_v51 }
 0x1f8   :  { %4604 = vmatprep.subr.bf16.mxu0 %v6900_v3  ;;  %4645 = vmatprep.subr.bf16.mxu1 %v6903_v4 }
 0x1fb   :  { %4605 = vmatpush1.bf16.msra.mxu0 %v6898_v54  ;;  %4646 = vmatpush1.bf16.msra.mxu1 %v6901_v59  ;;  %v6934_v59 = vld [vmem:[%s8922_s3 + $0x48] sm:$0xff]  }
 0x1fc   :  { %4606 = vmatprep.subr.bf16.mxu0 %v6906_v5  ;;  %4647 = vmatprep.subr.bf16.mxu1 %v6909_v60  ;;  %v6936_v60 = vld [vmem:[%s8922_s3 + $0x8] sm:$0xff]  }
 0x1ff   :  { %4607 = vmatpush1.bf16.msra.mxu0 %v6904_v6  ;;  %4648 = vmatpush1.bf16.msra.mxu1 %v6907_v40  ;;  %v6937_v6 = vld [vmem:[%s8922_s3 + $0x88] sm:$0xff]  }
 0x200   :  { %6117 = vmatprep.subr.bf16.mxu1 %v6911_v34 }
 0x202   :  { %v2906_v8 = vpop.f32.mrf.mxu0  ;;  %v2947_v9 = vpop.f32.mrf.mxu1  ;;  %4625 = vmatmul.mubr.bf16.vlgmr.msra.gmra.mxu0 %v4430_v7  ;;  %4666 = vmatmul.mubr.bf16.vlgmr.msra.gmra.mxu1 %v4430_v7 }
 0x203   :  { %v2954_v10 = vadd.f32 %v2906_v8, %v8712_v32  ;;  %v2956_v12 = vadd.f32 %v2947_v9, %v8715_v33  ;;  %v6910_v33 = vld [vmem:[%s8922_s3 + $0x78] sm:$0xff]   ;;  %6118 = vmatpush3.bf16.msra.mxu1 %v6913_v36  ;;  %v6938_v9 = vld [vmem:[%s8922_s3 + $0x40] sm:$0xff]  }
 0x204   :  { %v2908_v11 = vpop.f32.mrf.mxu0  ;;  %v2949_v13 = vpop.f32.mrf.mxu1  ;;  %6095 = vmatprep.subr.bf16.mxu0 %v6910_v33  ;;  %6119 = vmatprep.subr.bf16.mxu1 %v6915_v55 }
 0x205   :  { %v2955_v14 = vadd.f32 %v2908_v11, %v8730_v43  ;;  %v2957_v15 = vadd.f32 %v2949_v13, %v8733_v42  ;;  %6096 = vmatpush3.bf16.msra.mxu0 %v6912_v35  ;;  %v6917_v43 = vld [vmem:[%s8922_s3 + $0xb0] sm:$0xff]   ;;  %v6918_v42 = vld [vmem:[%s8922_s3 + $0x68] sm:$0xff]   ;;  %v6941_v11 = vld [vmem:[%s8922_s3 + $0x80] sm:$0xff]  }
 0x206   :  { %v2910_v16 = vpop.f32.mrf.mxu0  ;;  %v2951_v17 = vpop.f32.mrf.mxu1  ;;  %6097 = vmatprep.subr.bf16.mxu0 %v6914_v37 }
 0x207   :  { %6120 = vmatpush3.bf16.msra.mxu1 %v6917_v43 }
 0x208   :  { %v2911_v18 = vpop.f32.mrf.mxu0  ;;  %v2952_v19 = vpop.f32.mrf.mxu1  ;;  %6121 = vmatprep.subr.bf16.mxu1 %v6919_v44  ;;  %v4682_v44 = vsub.s32 0, %v7074_v30 }
 0x209   :  { %6098 = vmatpush3.bf16.msra.mxu0 %v6916_v41 }
 0x20a   :  { %6099 = vmatprep.subr.bf16.mxu0 %v6918_v42 }
 0x20b   :  { %6122 = vmatpush3.bf16.msra.mxu1 %v6921_v1  ;;  %v4678_v1 = vld [vmem:[%s8921_s2] sm:$0xf] }
 0x20c   :  { %6123 = vmatprep.subr.bf16.mxu1 %v6923_v48  ;;  %v4694_v48 = vsub.s32 3, %v7074_v30 }
 0x20d   :  { %6100 = vmatpush3.bf16.msra.mxu0 %v6920_v45  ;;  %v4690_v45 = vsub.s32 2, %v7074_v30 }
 0x20e   :  { %6101 = vmatprep.subr.bf16.mxu0 %v6922_v47  ;;  %v4686_v47 = vsub.s32 1, %v7074_v30 }
 0x20f   :  { %6124 = vmatpush3.bf16.msra.mxu1 %v6925_v2 }
 0x210   :  { %6125 = vmatprep.subr.bf16.mxu1 %v6927_v39  ;;  %v4691_v39 = vrot.slane %v4678_v1, %v4690_v45 }
 0x211   :  { %6102 = vmatpush3.bf16.msra.mxu0 %v6924_v49 }
 0x212   :  { %6103 = vmatprep.subr.bf16.mxu0 %v6926_v38  ;;  %v4683_v38 = vrot.slane %v4678_v1, %v4682_v44 }
 0x213   :  { %6126 = vmatpush3.bf16.msra.mxu1 %v6929_v57 }
 0x214   :  { %6127 = vmatprep.subr.bf16.mxu1 %v6931_v61 }
 0x215   :  { %6104 = vmatpush3.bf16.msra.mxu0 %v6928_v52 }
 0x216   :  { %6105 = vmatprep.subr.bf16.mxu0 %v6930_v58 }
 0x217   :  { %6128 = vmatpush3.bf16.msra.mxu1 %v6933_v46 }
 0x218   :  { %6129 = vmatprep.subr.bf16.mxu1 %v6935_v0 }
 0x219   :  { %6106 = vmatpush3.bf16.msra.mxu0 %v6932_v62 }
 0x21a   :  { %6107 = vmatprep.subr.bf16.mxu0 %v6934_v59 }
 0x21b   :  { %6130 = vmatpush3.bf16.msra.mxu1 %v6937_v6 }
 0x21d   :  { %6108 = vmatpush3.bf16.msra.mxu0 %v6936_v60 }
 0x21e   :  { %6109 = vmatprep.subr.bf16.mxu0 %v6938_v9 }
 0x222   :  { %v3190_v20 = vpop.f32.mrf.mxu0  ;;  %v3231_v21 = vpop.f32.mrf.mxu1 }
 0x223   :  { %v3238_v22 = vadd.f32 %v3190_v20, %v2954_v10  ;;  %v3240_v23 = vadd.f32 %v3231_v21, %v2956_v12  ;;  %v6939_v10 = vld [vmem:[%s8922_s3 + $0xc0] sm:$0xff]  }
 0x224   :  { %v3192_v24 = vpop.f32.mrf.mxu0  ;;  %v3233_v25 = vpop.f32.mrf.mxu1  ;;  %v6940_v12 = vld [vmem:[%s8922_s3] sm:$0xff]   ;;  %6131 = vmatprep.subr.bf16.mxu1 %v6939_v10 }
 0x225   :  { %v3239_v26 = vadd.f32 %v3192_v24, %v2955_v14  ;;  %v3241_v27 = vadd.f32 %v3233_v25, %v2957_v15  ;;  %6110 = vmatpush3.bf16.msra.mxu0 %v6940_v12  ;;  %6132 = vmatpush3.bf16.msra.mxu1 %v6941_v11 }
 0x226   :  { %v3194_v28 = vpop.f32.mrf.mxu0  ;;  %v3235_v29 = vpop.f32.mrf.mxu1 }
 0x228   :  { %v3195_v31 = vpop.f32.mrf.mxu0  ;;  %v3236_v32 = vpop.f32.mrf.mxu1 }
 0x242   :  { %v3474_v63 = vpop.f32.mrf.mxu0  ;;  %v3515_v50 = vpop.f32.mrf.mxu1 }
 0x243   :  { %v3522_v51 = vadd.f32 %v3474_v63, %v3238_v22  ;;  %v3524_v3 = vadd.f32 %v3515_v50, %v3240_v23  ;;  %v4687_v63 = vrot.slane %v4678_v1, %v4686_v47  ;;  %v4695_v50 = vrot.slane %v4678_v1, %v4694_v48 }
 0x244   :  { %v3476_v4 = vpop.f32.mrf.mxu0  ;;  %v3517_v54 = vpop.f32.mrf.mxu1 }
 0x245   :  { %v3523_v53 = vadd.f32 %v3476_v4, %v3239_v26  ;;  %v3525_v5 = vadd.f32 %v3517_v54, %v3241_v27 }
 0x246   :  { %v3478_v40 = vpop.f32.mrf.mxu0  ;;  %v3519_v56 = vpop.f32.mrf.mxu1 }
 0x248   :  { %v3479_v7 = vpop.f32.mrf.mxu0  ;;  %v3520_v8 = vpop.f32.mrf.mxu1 }
 0x262   :  { %v3775_v13 = vpop.f32.mrf.mxu0  ;;  %v3816_v14 = vpop.f32.mrf.mxu1 }
 0x263   :  { %v3823_v15 = vadd.f32 %v3775_v13, %v3522_v51  ;;  %v3825_v16 = vadd.f32 %v3816_v14, %v3524_v3 }
 0x264   :  { %v3777_v17 = vpop.f32.mrf.mxu0  ;;  %v3818_v18 = vpop.f32.mrf.mxu1 }
 0x265   :  { %v3824_v19 = vadd.f32 %v3777_v17, %v3523_v53  ;;  %v3826_v20 = vadd.f32 %v3818_v18, %v3525_v5 }
 0x266   :  { %v3779_v21 = vpop.f32.mrf.mxu0  ;;  %v3820_v22 = vpop.f32.mrf.mxu1 }
 0x268   :  { %v3780_v23 = vpop.f32.mrf.mxu0  ;;  %v3821_v24 = vpop.f32.mrf.mxu1 }
 0x282   :  { %v4058_v25 = vpop.f32.mrf.mxu0  ;;  %v4099_v26 = vpop.f32.mrf.mxu1 }
 0x283   :  { %v4106_v49 = vadd.f32 %v4058_v25, %v3823_v15  ;;  %v4108_v2 = vadd.f32 %v4099_v26, %v3825_v16 }
 0x284   :  { %v4060_v27 = vpop.f32.mrf.mxu0  ;;  %v4101_v28 = vpop.f32.mrf.mxu1 }
 0x285   :  { %v4107_v52 = vadd.f32 %v4060_v27, %v3824_v19  ;;  %v4109_v57 = vadd.f32 %v4101_v28, %v3826_v20  ;;  %v6062_v20 = vld [vmem:[%s8923_s4] ss:$0 sm:$0xff] }
 0x286   :  { %v4062_v29 = vpop.f32.mrf.mxu0  ;;  %v4103_v31 = vpop.f32.mrf.mxu1 }
 0x288   :  { %v4063_v32 = vpop.f32.mrf.mxu0  ;;  %v4104_v33 = vpop.f32.mrf.mxu1 }
 0x2a2   :  { %v4342_v34 = vpop.f32.mrf.mxu0  ;;  %v4383_v35 = vpop.f32.mrf.mxu1 }
 0x2a3   :  { %v4390_v58 = vadd.f32 %v4342_v34, %v4106_v49  ;;  %v4392_v61 = vadd.f32 %v4383_v35, %v4108_v2 }
 0x2a4   :  { %v4344_v36 = vpop.f32.mrf.mxu0  ;;  %v4385_v37 = vpop.f32.mrf.mxu1 }
 0x2a5   :  { %v4391_v51 = vadd.f32 %v4344_v36, %v4107_v52  ;;  %v4393_v3 = vadd.f32 %v4385_v37, %v4109_v57 }
 0x2a6   :  { %v4346_v55 = vpop.f32.mrf.mxu0  ;;  %v4387_v41 = vpop.f32.mrf.mxu1 }
 0x2a8   :  { %v4347_v43 = vpop.f32.mrf.mxu0  ;;  %v4388_v42 = vpop.f32.mrf.mxu1 }
 0x2c2   :  { %v4626_v62 = vpop.f32.mrf.mxu0  ;;  %v4667_v46 = vpop.f32.mrf.mxu1 }
 0x2c3   :  { %v4674_v4 = vadd.f32 %v4626_v62, %v4390_v58  ;;  %v4676_v54 = vadd.f32 %v4667_v46, %v4392_v61 }
 0x2c4   :  { %v4628_v59 = vpop.f32.mrf.mxu0  ;;  %v4669_v0 = vpop.f32.mrf.mxu1 }
 0x2c5   :  { %v4700_v53 = vadd.f32 %v4683_v38, %v4674_v4  ;;  %v4702_v30 = vadd.f32 %v4691_v39, %v4676_v54  ;;  %v4675_v5 = vadd.f32 %v4628_v59, %v4391_v51  ;;  %v4677_v60 = vadd.f32 %v4669_v0, %v4393_v3 }
 0x2c6   :  { %v4630_v6 = vpop.f32.mrf.mxu0  ;;  %v4671_v40 = vpop.f32.mrf.mxu1 }
 0x2c7   :  { %v4701_v56 = vadd.f32 %v4687_v63, %v4675_v5  ;;  %v4703_v7 = vadd.f32 %v4695_v50, %v4677_v60  ;;  %v4704_v8 = vmax.f32 %v4700_v53, 0.0  ;;  %v4706_v9 = vmax.f32 %v4702_v30, 0.0 }
 0x2c8   :  { %v4631_v10 = vpop.f32.mrf.mxu0  ;;  %v4672_v12 = vpop.f32.mrf.mxu1 }
 0x2c9   :  { %v4705_v11 = vmax.f32 %v4701_v56, 0.0  ;;  %v4707_v13 = vmax.f32 %v4703_v7, 0.0  ;;  %v4708_v16 = vpack.c.bf16 %v4704_v8, %v4704_v8  ;;  %v4710_v17 = vpack.c.bf16 %v4706_v9, %v4706_v9 }
 0x2cb   :  { %v4709_v14 = vpack.c.bf16 %v4705_v11, %v4705_v11  ;;  %v4711_v15 = vpack.c.bf16 %v4707_v13, %v4707_v13 }
 0x2cd   :  { %5007 = vmatprep.mubr.bf16.mxu0 %v4709_v14  ;;  %5047 = vmatprep.mubr.bf16.mxu1 %v4711_v15 }
 0x2ce   :  { %5008 = vmatmul.mubr.bf16.vlgmr.msra.gmra.mxu0 %v4708_v16  ;;  %5048 = vmatmul.mubr.bf16.vlgmr.msra.gmra.mxu1 %v4710_v17 }
 0x38e   :  { %v6111_v18 = vpop.f32.mrf.mxu0  ;;  %v6133_v19 = vpop.f32.mrf.mxu1 }
 0x390   :  { %v6112_v21 = vpop.f32.mrf.mxu0  ;;  %v6134_v22 = vpop.f32.mrf.mxu1 }
 0x391   :  { %v6113_v23 = vadd.f32 %v6112_v21, %v6111_v18  ;;  %v6135_v27 = vadd.f32 %v6134_v22, %v6133_v19 }
 0x392   :  { %v6114_v24 = vpop.f32.mrf.mxu0  ;;  %v6136_v25 = vpop.f32.mrf.mxu1 }
 0x393   :  { %v5010_v26 = vadd.f32 %v6113_v23, %v6062_v20 }
 0x394   :  { %v6115_v28 = vpop.f32.mrf.mxu0  ;;  %v6137_v29 = vpop.f32.mrf.mxu1 }
 0x395   :  { %v5050_v31 = vadd.f32 %v6135_v27, %v5010_v26 }
 0x397   :  { %5055 = vst [vmem:[#allocation2] sm:$0x3] %v5050_v31 }
 0x398   :  { %6953 = shalt.err (!%p6950_p4)
}
 0x399   :  { %5065 = dma.vmem_to_hbm [thread:$0]  %s5063_s26, 32, %s8924_s5, [#allocation3]  }
 0x39a   :  { %6962 = dma.done.wait [#allocation3], 32  }
 0x39b   :  { %6963 = vsyncadd [#allocation3], 4294967264 }
 0x39c   :  { %5069 = vsyncpa [#allocation3], 1 }

// kernel: cnn_forward.4
= control target key start
LH: loop header
LB: loop body
LE: loop exit
PB: predicated region body
PF: predicated region fallthrough
CT: control target
= control target key end

     0   :  { %vm51_vm0 = vsmask.f32 3328  ;;  %vm52_vm1 = vsmask.f32 7440  ;;  %vm319_vm2 = vcmask 261120   ;;  %v15289_v31 = vmov 0  ;;  %s15269_s1 = inlined_call_operand.vmem [shape: bf16[25,32,128], index: 1, kind: input, shape index: {}]   ;;  %s15270_s0 = inlined_call_operand.vmem [shape: bf16[2,12,12,32], index: 0, kind: input, shape index: {}]   ;;  %s15271_s2 = inlined_call_operand.vmem [shape: f32[1,128], index: 2, kind: input, shape index: {}]   ;;  %s15272_s3 = inlined_call_operand.vmem [shape: bf16[128,128], index: 3, kind: output, shape index: {}]  }
   0x1   :  { %v10560_v0 = vld [vmem:[%s15269_s1 + $0x18] sm:$0xff]   ;;  %v10561_v1 = vld [vmem:[%s15269_s1 + $0x10] sm:$0xff]   ;;  %v10679_v2 = vld [vmem:[%s15270_s0] sm:$0xf]  ;;  %vm662_vm4 = vcmask 1042432   ;;  %vm663_vm5 = vcmask 1046532  }
   0x2   :  { %10556 = vmatprep.subr.bf16.mxu1 %v10560_v0  ;;  %10056 = vmatprep.subr.bf16.mxu0 %v10560_v0  ;;  %v10684_v3 = vld [vmem:[%s15270_s0 + $0x8] sm:$0xf]  ;;  %v10689_v4 = vld [vmem:[%s15270_s0 + $0x4] sm:$0x1]  ;;  %v10694_v5 = vld [vmem:[%s15270_s0 + $0xc] sm:$0x1] }
   0x3   :  { %10558 = vmatpush3.bf16.msra.mxu1 %v10560_v0  ;;  %10057 = vmatpush3.bf16.msra.mxu0 %v10560_v0  ;;  %v55_v6 = vshrl.u32 %v10679_v2, 16  ;;  %v58_v7 = vshll.u32 %v10679_v2, 16  ;;  %v64_v8 = vshll.u32 %v10689_v4, 16  ;;  %v69_v9 = vshrl.u32 %v10684_v3, 16  ;;  %v10707_v14 = vld [vmem:[%s15270_s0 + $0x60] sm:$0xf]  ;;  %vm10738_vm3 = vmor %vm51_vm0, %vm52_vm1 }
   0x4   :  { %10557 = vmatprep.subr.bf16.mxu1 %v10561_v1  ;;  %10058 = vmatprep.subr.bf16.mxu0 %v10561_v1  ;;  %v72_v10 = vshll.u32 %v10684_v3, 16  ;;  %v78_v11 = vshll.u32 %v10694_v5, 16  ;;  %v667_v12 = vrot.slane %v10689_v4, 5  ;;  %v671_v13 = vrot.slane %v10694_v5, 5  ;;  %v10712_v19 = vld [vmem:[%s15270_s0 + $0x68] sm:$0xf]  ;;  %vm10980_vm6 = vmor %vm662_vm4, %vm663_vm5 }
   0x5   :  { %v57_v15 = vrot.slane %v55_v6, 4  ;;  %v60_v16 = vrot.slane %v58_v7, 5  ;;  %v66_v17 = vrot.slane %v64_v8, 5  ;;  %v71_v18 = vrot.slane %v69_v9, 4  ;;  %v10717_v22 = vld [vmem:[%s15270_s0 + $0x64] sm:$0x1] }
   0x6   :  { %v74_v20 = vrot.slane %v72_v10, 5  ;;  %v80_v21 = vrot.slane %v78_v11, 5  ;;  %v10722_v23 = vld [vmem:[%s15270_s0 + $0x6c] sm:$0x1]  ;;  %v167_v27 = vshrl.u32 %v10707_v14, 16  ;;  %v170_v28 = vshll.u32 %v10707_v14, 16 }
   0x7   :  { %10559 = vmatpush3.bf16.msra.mxu1 %v10561_v1  ;;  %10059 = vmatpush3.bf16.msra.mxu0 %v10561_v1  ;;  %v61_v26 = vor.u32 %v60_v16, %v57_v15  ;;  %v176_v29 = vshll.u32 %v10717_v22, 16  ;;  %v10734_v30 = vld [vmem:[%s15269_s1 + $0x8] sm:$0xff]   ;;  %v15290_v31 = vsel %vm10738_vm3, 4294967295, %v15289_v31  ;;  %v181_v33 = vshrl.u32 %v10712_v19, 16  ;;  %v10754_v41 = vld [vmem:[%s15270_s0 + $0x10] sm:$0xf] }
   0x8   :  { %15291 = vst [vmem:[#allocation2_spill] sm:$0xff] %v15290_v31  ;;  %v75_v32 = vor.u32 %v74_v20, %v71_v18  ;;  %v184_v34 = vshll.u32 %v10712_v19, 16  ;;  %v190_v35 = vshll.u32 %v10722_v23, 16  ;;  %v10748_v36 = vld [vmem:[%s15269_s1 + $0x28] sm:$0xff]   ;;  %v169_v38 = vrot.slane %v167_v27, 4  ;;  %10076 = vmatprep.subr.bf16.mxu1 %v10734_v30 }
   0x9   :  { %v62_v37 = vrot.slane %v61_v26, 4  ;;  %v172_v39 = vrot.slane %v170_v28, 5  ;;  %v178_v40 = vrot.slane %v176_v29, 5  ;;  %v183_v43 = vrot.slane %v181_v33, 4  ;;  %v10759_v46 = vld [vmem:[%s15270_s0 + $0x18] sm:$0xf]  ;;  %10096 = vmatprep.subr.bf16.mxu0 %v10748_v36 }
   0xa   :  { %v76_v42 = vrot.slane %v75_v32, 4  ;;  %v186_v44 = vrot.slane %v184_v34, 5  ;;  %v192_v45 = vrot.slane %v190_v35, 5  ;;  %v10769_v51 = vld [vmem:[%s15270_s0 + $0x14] sm:$0x1]  ;;  %v83_v55 = vshrl.u32 %v10754_v41, 16 }
   0xb   :  { %v67_v47 = vsel %vm10738_vm3, %v62_v37, %v66_v17  ;;  %v173_v48 = vor.u32 %v172_v39, %v169_v38  ;;  %v10776_v54 = vld [vmem:[%s15270_s0 + $0x1c] sm:$0x1]  ;;  %v86_v56 = vshll.u32 %v10754_v41, 16  ;;  %v92_v59 = vshll.u32 %v10769_v51, 16  ;;  %v10785_v61 = vld [vmem:[%s15270_s0 + $0x70] sm:$0xf] }
   0xc   :  { %v81_v52 = vsel %vm10738_vm3, %v76_v42, %v80_v21  ;;  %v187_v53 = vor.u32 %v186_v44, %v183_v43  ;;  %v97_v60 = vshrl.u32 %v10759_v46, 16  ;;  %v85_v63 = vrot.slane %v83_v55, 4  ;;  %v10791_v6 = vld [vmem:[%s15270_s0 + $0x78] sm:$0xf]  ;;  %v10796_v7 = vld [vmem:[%s15270_s0 + $0x74] sm:$0x1] }
   0xd   :  { %v8640_v57 = vcombine.low %v67_v47, %v81_v52  ;;  %v174_v58 = vrot.slane %v173_v48, 4  ;;  %v88_v0 = vrot.slane %v86_v56, 5  ;;  %v100_v1 = vshll.u32 %v10759_v46, 16  ;;  %v10808_v20 = vld [vmem:[%s15270_s0 + $0x7c] sm:$0x1] }
   0xe   :  { %v188_v62 = vrot.slane %v187_v53, 4  ;;  %v94_v9 = vrot.slane %v92_v59, 5  ;;  %v99_v10 = vrot.slane %v97_v60, 4  ;;  %v106_v11 = vshll.u32 %v10776_v54, 16  ;;  %v10817_v35 = vld [vmem:[%s15270_s0 + $0x20] sm:$0xf] }
   0xf   :  { %10060 = vmatprep.mubr.msk.bf16.mxu0 %vm319_vm2, %v8640_v57  ;;  %v179_v8 = vsel %vm10738_vm3, %v174_v58, %v178_v40  ;;  %v89_v16 = vor.u32 %v88_v0, %v85_v63  ;;  %v102_v17 = vrot.slane %v100_v1, 5  ;;  %v675_v18 = vrot.slane %v10769_v51, 5  ;;  %v10826_v42 = vld [vmem:[%s15270_s0 + $0x24] sm:$0x1]  ;;  %v10833_v48 = vld [vmem:[%s15270_s0 + $0x28] sm:$0xf] }
  0x10   :  { %v193_v15 = vsel %vm10738_vm3, %v188_v62, %v192_v45  ;;  %v108_v26 = vrot.slane %v106_v11, 5  ;;  %v679_v27 = vrot.slane %v10776_v54, 5  ;;  %v195_v28 = vshrl.u32 %v10785_v61, 16  ;;  %v10565_v57 = vld [vmem:[%s15269_s1 + $0x20] sm:$0xff]   ;;  %v10844_v60 = vld [vmem:[%s15270_s0 + $0x2c] sm:$0x1] }
  0x11   :  { %v8644_v21 = vcombine.low %v179_v8, %v193_v15  ;;  %v90_v29 = vrot.slane %v89_v16, 4  ;;  %v103_v32 = vor.u32 %v102_v17, %v99_v10  ;;  %v198_v33 = vshll.u32 %v10785_v61, 16  ;;  %v10851_v0 = vld [vmem:[%s15270_s0 + $0x80] sm:$0xf]  ;;  %v11022_v5 = vld [vmem:[%s15270_s0 + $0x30] sm:$0xe] }
  0x12   :  { %v204_v34 = vshll.u32 %v10796_v7, 16  ;;  %v197_v37 = vrot.slane %v195_v28, 4  ;;  %v209_v38 = vshrl.u32 %v10791_v6, 16  ;;  %v212_v39 = vshll.u32 %v10791_v6, 16 }
  0x13   :  { %10068 = vmatprep.mubr.msk.bf16.mxu1 %vm319_vm2, %v8644_v21  ;;  %v218_v40 = vshll.u32 %v10808_v20, 16  ;;  %v95_v43 = vsel %vm10738_vm3, %v90_v29, %v94_v9  ;;  %v104_v44 = vrot.slane %v103_v32, 4  ;;  %v200_v45 = vrot.slane %v198_v33, 5  ;;  %v10858_v21 = vld [vmem:[%s15270_s0 + $0x84] sm:$0x1] }
  0x14   :  { %v206_v47 = vrot.slane %v204_v34, 5  ;;  %v211_v52 = vrot.slane %v209_v38, 4  ;;  %v214_v53 = vrot.slane %v212_v39, 5  ;;  %v111_v56 = vshrl.u32 %v10817_v35, 16  ;;  %v10869_v38 = vld [vmem:[%s15270_s0 + $0x88] sm:$0xf] }
  0x15   :  { %v220_v55 = vrot.slane %v218_v40, 5  ;;  %v109_v58 = vsel %vm10738_vm3, %v104_v44, %v108_v26  ;;  %v201_v59 = vor.u32 %v200_v45, %v197_v37  ;;  %v114_v62 = vshll.u32 %v10817_v35, 16  ;;  %v10874_v39 = vld [vmem:[%s15270_s0 + $0x8c] sm:$0x1] }
  0x16   :  { %v120_v63 = vshll.u32 %v10826_v42, 16  ;;  %v8641_v1 = vcombine.low %v95_v43, %v109_v58  ;;  %v215_v8 = vor.u32 %v214_v53, %v211_v52  ;;  %v113_v9 = vrot.slane %v111_v56, 4  ;;  %v10564_v43 = vld [vmem:[%s15269_s1] sm:$0xff]   ;;  %v10886_v52 = vld [vmem:[%s15270_s0 + $0x30] sm:$0xf]  ;;  %v10891_v53 = vld [vmem:[%s15269_s1 + $0x48] sm:$0xff]  }
  0x17   :  { %v125_v10 = vshrl.u32 %v10833_v48, 16  ;;  %v202_v11 = vrot.slane %v201_v59, 4  ;;  %v116_v15 = vrot.slane %v114_v62, 5  ;;  %v128_v17 = vshll.u32 %v10833_v48, 16 }
  0x18   :  { %v122_v16 = vrot.slane %v120_v63, 5  ;;  %10061 = vmatmul.mubr.msk.bf16.vlgmr.msra.gmra.mxu0 %vm319_vm2, %v8641_v1  ;;  %v216_v26 = vrot.slane %v215_v8, 4  ;;  %v134_v29 = vshll.u32 %v10844_v60, 16  ;;  %v223_v32 = vshrl.u32 %v10851_v0, 16  ;;  %v10901_v63 = vld [vmem:[%s15270_s0 + $0x34] sm:$0x1] }
  0x19   :  { %v127_v28 = vrot.slane %v125_v10, 4  ;;  %v207_v33 = vsel %vm10738_vm3, %v202_v11, %v206_v47  ;;  %10097 = vmatpush3.bf16.msra.mxu0 %v10748_v36  ;;  %v117_v34 = vor.u32 %v116_v15, %v113_v9  ;;  %v130_v37 = vrot.slane %v128_v17, 5  ;;  %v10909_v11 = vld [vmem:[%s15270_s0 + $0x3c] sm:$0x1] }
  0x1a   :  { %v226_v40 = vshll.u32 %v10851_v0, 16  ;;  %v221_v36 = vsel %vm10738_vm3, %v216_v26, %v220_v55  ;;  %v136_v44 = vrot.slane %v134_v29, 5  ;;  %v225_v45 = vrot.slane %v223_v32, 4  ;;  %10098 = vmatprep.subr.bf16.mxu0 %v10565_v57  ;;  %v10896_v55 = vld [vmem:[%s15270_s0 + $0x38] sm:$0xf] }
  0x1b   :  { %v232_v47 = vshll.u32 %v10858_v21, 16  ;;  %v8645_v56 = vcombine.low %v207_v33, %v221_v36  ;;  %v118_v58 = vrot.slane %v117_v34, 4  ;;  %v131_v59 = vor.u32 %v130_v37, %v127_v28  ;;  %v10920_v37 = vld [vmem:[%s15270_s0 + $0x90] sm:$0xf]  ;;  %v10929_v36 = vld [vmem:[%s15270_s0 + $0x98] sm:$0xf] }
  0x1c   :  { %v228_v62 = vrot.slane %v226_v40, 5  ;;  %v237_v8 = vshrl.u32 %v10869_v38, 16  ;;  %v240_v9 = vshll.u32 %v10869_v38, 16  ;;  %v246_v10 = vshll.u32 %v10874_v39, 16 }
  0x1d   :  { %v234_v1 = vrot.slane %v232_v47, 5  ;;  %10069 = vmatmul.mubr.msk.bf16.vlgmr.msra.gmra.mxu1 %vm319_vm2, %v8645_v56  ;;  %v123_v15 = vsel %vm10738_vm3, %v118_v58, %v122_v16  ;;  %v132_v17 = vrot.slane %v131_v59, 4  ;;  %v139_v28 = vshrl.u32 %v10886_v52, 16  ;;  %10099 = vmatpush3.bf16.msra.mxu0 %v10565_v57  ;;  %v10939_v47 = vld [vmem:[%s15269_s1 + $0x38] sm:$0xff]  }
  0x1e   :  { %v229_v26 = vor.u32 %v228_v62, %v225_v45  ;;  %10077 = vmatpush3.bf16.msra.mxu1 %v10734_v30  ;;  %v239_v29 = vrot.slane %v237_v8, 4  ;;  %v242_v32 = vrot.slane %v240_v9, 5  ;;  %v248_v33 = vrot.slane %v246_v10, 5  ;;  %10136 = vmatprep.subr.bf16.mxu0 %v10891_v53  ;;  %v10934_v45 = vld [vmem:[%s15270_s0 + $0x94] sm:$0x1] }
  0x1f   :  { %v142_v34 = vshll.u32 %v10886_v52, 16  ;;  %v137_v16 = vsel %vm10738_vm3, %v132_v17, %v136_v44  ;;  %10078 = vmatprep.subr.bf16.mxu1 %v10564_v43  ;;  %v141_v57 = vrot.slane %v139_v28, 4  ;;  %v148_v30 = vshll.u32 %v10901_v63, 16  ;;  %v10949_v17 = vld [vmem:[%s15270_s0 + $0x9c] sm:$0x1] }
  0x20   :  { %v230_v40 = vrot.slane %v229_v26, 4  ;;  %v8642_v44 = vcombine.low %v123_v15, %v137_v16  ;;  %v243_v56 = vor.u32 %v242_v32, %v239_v29  ;;  %v153_v59 = vshrl.u32 %v10896_v55, 16  ;;  %v10961_v32 = vld [vmem:[%s15270_s0 + $0x8] sm:$0xe] }
  0x21   :  { %v144_v58 = vrot.slane %v142_v34, 5  ;;  %v150_v8 = vrot.slane %v148_v30, 5  ;;  %v156_v9 = vshll.u32 %v10896_v55, 16  ;;  %v162_v10 = vshll.u32 %v10909_v11, 16 }
  0x22   :  { %v235_v62 = vsel %vm10738_vm3, %v230_v40, %v234_v1  ;;  %10064 = vmatprep.mubr.msk.bf16.mxu0 %vm319_vm2, %v8642_v44  ;;  %v244_v15 = vrot.slane %v243_v56, 4  ;;  %v155_v28 = vrot.slane %v153_v59, 4  ;;  %v251_v29 = vshrl.u32 %v10920_v37, 16  ;;  %10079 = vmatpush3.bf16.msra.mxu1 %v10564_v43  ;;  %v10956_v1 = vld [vmem:[%s15270_s0] sm:$0xe] }
  0x23   :  { %v145_v26 = vor.u32 %v144_v58, %v141_v57  ;;  %v158_v34 = vrot.slane %v156_v9, 5  ;;  %v164_v16 = vrot.slane %v162_v10, 5  ;;  %v254_v40 = vshll.u32 %v10920_v37, 16  ;;  %10116 = vmatprep.subr.bf16.mxu1 %v10939_v47  ;;  %v10972_v9 = vld [vmem:[%s15270_s0 + $0x10] sm:$0xe] }
  0x24   :  { %v260_v57 = vshll.u32 %v10934_v45, 16  ;;  %v249_v43 = vsel %vm10738_vm3, %v244_v15, %v248_v33  ;;  %v253_v44 = vrot.slane %v251_v29, 4  ;;  %v265_v56 = vshrl.u32 %v10929_v36, 16 }
  0x25   :  { %v146_v30 = vrot.slane %v145_v26, 4  ;;  %v8646_v58 = vcombine.low %v235_v62, %v249_v43  ;;  %v159_v59 = vor.u32 %v158_v34, %v155_v28  ;;  %v256_v25 = vrot.slane %v254_v40, 5 }
  0x26   :  { %v262_v50 = vrot.slane %v260_v57, 5  ;;  %v267_v49 = vrot.slane %v265_v56, 4  ;;  %v268_v24 = vshll.u32 %v10929_v36, 16  ;;  %v274_v33 = vshll.u32 %v10949_v17, 16 }
  0x27   :  { %v151_v10 = vsel %vm10738_vm3, %v146_v30, %v150_v8  ;;  %v15292_v62 = vmov 0  ;;  %10072 = vmatprep.mubr.msk.bf16.mxu1 %vm319_vm2, %v8646_v58  ;;  %v160_v15 = vrot.slane %v159_v59, 4  ;;  %v257_v26 = vor.u32 %v256_v25, %v253_v44  ;;  %v10990_v8 = vld [vmem:[%s15270_s0 + $0x18] sm:$0xe]  ;;  %v10998_v25 = vld [vmem:[%s15270_s0 + $0x20] sm:$0xe] }
  0x28   :  { %v15293_v62 = vsel %vm10980_vm6, 4294967295, %v15292_v62  ;;  %v8676_v28 = vrot.slane %v10956_v1, 9  ;;  %v8677_v29 = vrot.slane %v10961_v32, 9  ;;  %v270_v34 = vrot.slane %v268_v24, 5  ;;  %v11013_v58 = vld [vmem:[%s15270_s0 + $0x28] sm:$0xe] }
  0x29   :  { %15294 = vst [vmem:[#allocation3_spill] sm:$0xff] %v15293_v62  ;;  %v276_v40 = vrot.slane %v274_v33, 5  ;;  %v8678_v43 = vrot.slane %v10972_v9, 9  ;;  %v165_v30 = vsel %vm10738_vm3, %v160_v15, %v164_v16  ;;  %v258_v44 = vrot.slane %v257_v26, 4 }
  0x2a   :  { %v668_v24 = vsel %vm10980_vm6, %v8676_v28, %v667_v12  ;;  %v672_v56 = vsel %vm10980_vm6, %v8677_v29, %v671_v13  ;;  %v8643_v59 = vcombine.low %v151_v10, %v165_v30  ;;  %v271_v33 = vor.u32 %v270_v34, %v267_v49  ;;  %v11056_v34 = vld [vmem:[%s15270_s0 + $0x68] sm:$0xe]  ;;  %v11072_v30 = vld [vmem:[%s15270_s0 + $0x78] sm:$0xe] }
  0x2b   :  { %v8696_v57 = vcombine.low %v668_v24, %v672_v56  ;;  %v676_v4 = vsel %vm10980_vm6, %v8678_v43, %v675_v18  ;;  %v263_v12 = vsel %vm10738_vm3, %v258_v44, %v262_v50  ;;  %v8679_v13 = vrot.slane %v10990_v8, 9  ;;  %v11037_v50 = vld [vmem:[%s15270_s0 + $0x38] sm:$0xe]  ;;  %v11067_v43 = vld [vmem:[%s15270_s0 + $0x70] sm:$0xe] }
  0x2c   :  { %v8660_v16 = vcombine.low %v10817_v35, %v10833_v48  ;;  %v8680_v49 = vrot.slane %v10998_v25, 9  ;;  %10065 = vmatmul.mubr.msk.bf16.gmra.mxu0 %vm319_vm2, %v8643_v59  ;;  %v272_v51 = vrot.slane %v271_v33, 4  ;;  %v683_v18 = vrot.slane %v10826_v42, 5  ;;  %v11082_v59 = vld [vmem:[%s15270_s0 + $0x80] sm:$0xe]  ;;  %v11214_v35 = vld [vmem:[%s15269_s1 + $0x58] sm:$0xff]  }
  0x2d   :  { %v8681_v10 = vrot.slane %v11013_v58, 9  ;;  %v687_v15 = vrot.slane %v10844_v60, 5  ;;  %10100 = vmatprep.mubr.msk.bf16.mxu0 %vm319_vm2, %v8696_v57  ;;  %v680_v26 = vsel %vm10980_vm6, %v8679_v13, %v679_v27  ;;  %v8661_v28 = vcombine.low %v10886_v52, %v10896_v55  ;;  %v11051_v60 = vld [vmem:[%s15270_s0 + $0x60] sm:$0xe]  ;;  %v11087_v33 = vld [vmem:[%s15270_s0 + $0x88] sm:$0xe] }
  0x2e   :  { %v8682_v42 = vrot.slane %v11022_v5, 9  ;;  %v691_v29 = vrot.slane %v10901_v63, 5  ;;  %v277_v54 = vsel %vm10738_vm3, %v272_v51, %v276_v40  ;;  %v8697_v27 = vcombine.low %v676_v4, %v680_v26 }
  0x2f   :  { %v684_v57 = vsel %vm10980_vm6, %v8680_v49, %v683_v18  ;;  %v688_v63 = vsel %vm10980_vm6, %v8681_v10, %v687_v15  ;;  %v8647_v44 = vcombine.low %v263_v12, %v277_v54  ;;  %v8683_v56 = vrot.slane %v11037_v50, 9 }
  0x30   :  { %v8698_v24 = vcombine.low %v684_v57, %v688_v63  ;;  %v11076_v40 = vsel %vm10980_vm6, %v8682_v42, %v691_v29  ;;  %v695_v4 = vrot.slane %v10909_v11, 5  ;;  %v8684_v12 = vrot.slane %v11051_v60, 9 }
  0x31   :  { %v8685_v13 = vrot.slane %v11056_v34, 9  ;;  %v8663_v49 = vcombine.low %v10785_v61, %v10791_v6  ;;  %10073 = vmatmul.mubr.msk.bf16.gmra.mxu1 %vm319_vm2, %v8647_v44  ;;  %v8686_v51 = vrot.slane %v11067_v43, 9  ;;  %v707_v18 = vrot.slane %v10796_v7, 5  ;;  %v11141_v44 = vld [vmem:[%s15270_s0 + $0x98] sm:$0xe] }
  0x32   :  { %v8687_v10 = vrot.slane %v11072_v30, 9  ;;  %v711_v15 = vrot.slane %v10808_v20, 5  ;;  %vm1440_vm7 = vcmask 1041408   ;;  %v15295_v11 = vcombine.low %v10679_v2, %v10684_v3  ;;  %v10575_v2 = vld [vmem:[%s15269_s1 + $0x40] sm:$0xff]  }
  0x33   :  { %v696_v26 = vsel %vm10980_vm6, %v8683_v56, %v695_v4  ;;  %v15296_v42 = vrot.slane %v10717_v22, 5  ;;  %v15297_v7 = vrot.slane %v10722_v23, 5  ;;  %v11125_v22 = vld [vmem:[%s15270_s0 + $0x90] sm:$0xe]  ;;  %v11132_v57 = vsel %vm10980_vm6, %v8686_v51, %v707_v18  ;;  %v910_v51 = vld [vmem:[%s15270_s0 + $0x1c] sm:$0x3] }
  0x34   :  { %10080 = vmatprep.mubr.msk.bf16.mxu1 %vm319_vm2, %v15295_v11  ;;  %v8699_v54 = vcombine.low %v11076_v40, %v696_v26  ;;  %v11136_v63 = vsel %vm10980_vm6, %v8687_v10, %v711_v15  ;;  %10101 = vmatmul.mubr.msk.bf16.vlgmr.msra.gmra.mxu0 %vm319_vm2, %v8697_v27  ;;  %v8688_v56 = vrot.slane %v11082_v59, 9  ;;  %v715_v4 = vrot.slane %v10858_v21, 5  ;;  %v907_v10 = vld [vmem:[%s15270_s0 + $0x4] sm:$0x3]  ;;  %v10573_v21 = vld [vmem:[%s15269_s1 + $0x30] sm:$0xff]  }
  0x35   :  { %v11109_v29 = vsel %vm10980_vm6, %v8684_v12, %v15296_v42  ;;  %v11115_v20 = vsel %vm10980_vm6, %v8685_v13, %v15297_v7  ;;  %v8701_v40 = vcombine.low %v11132_v57, %v11136_v63  ;;  %v8689_v12 = vrot.slane %v11087_v33, 9  ;;  %10137 = vmatpush3.bf16.msra.mxu0 %v10891_v53  ;;  %10104 = vmatprep.mubr.msk.bf16.mxu0 %vm319_vm2, %v8698_v24  ;;  %v908_v11 = vld [vmem:[%s15270_s0 + $0xc] sm:$0x3] }
  0x36   :  { %v8700_v23 = vcombine.low %v11109_v29, %v11115_v20  ;;  %v719_v13 = vrot.slane %v10874_v39, 5  ;;  %v8690_v27 = vrot.slane %v11125_v22, 9  ;;  %v723_v18 = vrot.slane %v10934_v45, 5  ;;  %10138 = vmatprep.subr.bf16.mxu0 %v10575_v2 }
  0x37   :  { %v11164_v53 = vsel %vm10980_vm6, %v8688_v56, %v715_v4  ;;  %v8691_v39 = vrot.slane %v11141_v44, 9  ;;  %v727_v24 = vrot.slane %v10949_v17, 5  ;;  %vm923_vm8 = vsmask.f32 2304  ;;  %v11183_v17 = vld [vmem:[%s15269_s1 + $0x68] sm:$0xff]  }
  0x38   :  { %v11170_v45 = vsel %vm10980_vm6, %v8689_v12, %v719_v13  ;;  %v11174_v15 = vsel %vm10980_vm6, %v8690_v27, %v723_v18  ;;  %vm924_vm9 = vsmask.f32 6416  ;;  %v927_v26 = vshrl.u32 %v10956_v1, 16  ;;  %v1392_v18 = vld [vmem:[%s15270_s0] sm:$0xc] }
  0x39   :  { %v8702_v42 = vcombine.low %v11164_v53, %v11170_v45  ;;  %v11189_v29 = vsel %vm10980_vm6, %v8691_v39, %v727_v24  ;;  %v930_v7 = vshll.u32 %v10956_v1, 16  ;;  %v936_v20 = vshrl.u32 %v907_v10, 16  ;;  %10139 = vmatpush3.bf16.msra.mxu0 %v10575_v2  ;;  %v1393_v39 = vld [vmem:[%s15270_s0 + $0x8] sm:$0xc]  ;;  %vm11229_vm12 = vmor %vm923_vm8, %vm924_vm9 }
  0x3a   :  { %v15298_v56 = vcombine.low %v10754_v41, %v10759_v46  ;;  %v929_v12 = vrot.slane %v927_v26, 5  ;;  %v939_v13 = vshll.u32 %v907_v10, 16  ;;  %v945_v27 = vshrl.u32 %v10961_v32, 16  ;;  %10176 = vmatprep.subr.bf16.mxu0 %v11183_v17 }
  0x3b   :  { %v932_v41 = vrot.slane %v930_v7, 6  ;;  %v938_v46 = vrot.slane %v936_v20, 5  ;;  %v948_v1 = vshll.u32 %v10961_v32, 16  ;;  %v954_v2 = vshrl.u32 %v908_v11, 16  ;;  %v909_v20 = vld [vmem:[%s15270_s0 + $0x14] sm:$0x3] }
  0x3c   :  { %10081 = vmatmul.mubr.msk.bf16.vlgmr.msra.gmra.mxu1 %vm319_vm2, %v15298_v56  ;;  %v941_v24 = vrot.slane %v939_v13, 6  ;;  %v947_v26 = vrot.slane %v945_v27, 5  ;;  %v957_v56 = vshll.u32 %v908_v11, 16  ;;  %vm1441_vm10 = vcmask 1045508   ;;  %10105 = vmatmul.mubr.msk.bf16.gmra.mxu0 %vm319_vm2, %v8699_v54 }
  0x3d   :  { %10117 = vmatpush3.bf16.msra.mxu1 %v10939_v47  ;;  %10084 = vmatprep.mubr.msk.bf16.mxu1 %vm319_vm2, %v8660_v16  ;;  %v933_v48 = vor.u32 %v932_v41, %v929_v12  ;;  %v950_v47 = vrot.slane %v948_v1, 6  ;;  %v956_v32 = vrot.slane %v954_v2, 5  ;;  %vm11219_vm11 = vmor %vm1440_vm7, %vm1441_vm10  ;;  %v15299_v16 = vmov 0 }
  0x3e   :  { %10118 = vmatprep.subr.bf16.mxu1 %v10573_v21  ;;  %v15300_v16 = vsel %vm11219_vm11, 4294967295, %v15299_v16  ;;  %v8736_v7 = vrot.slane %v1392_v18, 10  ;;  %10108 = vmatprep.mubr.msk.bf16.mxu0 %vm319_vm2, %v8700_v23  ;;  %v942_v54 = vor.u32 %v941_v24, %v938_v46  ;;  %v959_v12 = vrot.slane %v957_v56, 6 }
  0x3f   :  { %15301 = vst [vmem:[#allocation4_spill] sm:$0xff] %v15300_v16  ;;  %v1445_v27 = vrot.slane %v907_v10, 6  ;;  %v8737_v41 = vrot.slane %v1393_v39, 10  ;;  %v934_v1 = vrot.slane %v933_v48, 4  ;;  %v951_v2 = vor.u32 %v950_v47, %v947_v26  ;;  %v1394_v47 = vld [vmem:[%s15270_s0 + $0x10] sm:$0xc] }
  0x40   :  { %v1449_v18 = vrot.slane %v908_v11, 6  ;;  %v963_v23 = vshrl.u32 %v10972_v9, 16  ;;  %v960_v4 = vor.u32 %v959_v12, %v956_v32  ;;  %v966_v10 = vshll.u32 %v10972_v9, 16  ;;  %v13115_v16 = vld [vmem:[%s15270_s0 + $0x2c] sm:$0x1] }
  0x41   :  { %10119 = vmatpush3.bf16.msra.mxu1 %v10573_v21  ;;  %v11239_v3 = vsel %vm11219_vm11, %v8736_v7, %v1445_v27  ;;  %v972_v46 = vshrl.u32 %v909_v20, 16  ;;  %v11245_v21 = vsel %vm11229_vm12, %v934_v1, %v942_v54  ;;  %v952_v11 = vrot.slane %v951_v2, 4  ;;  %v1395_v7 = vld [vmem:[%s15270_s0 + $0x18] sm:$0xc] }
  0x42   :  { %10156 = vmatprep.subr.bf16.mxu1 %v11214_v35  ;;  %v11249_v39 = vsel %vm11219_vm11, %v8737_v41, %v1449_v18  ;;  %v965_v24 = vrot.slane %v963_v23, 5  ;;  %v968_v9 = vrot.slane %v966_v10, 6  ;;  %v975_v48 = vshll.u32 %v909_v20, 16  ;;  %v911_v10 = vld [vmem:[%s15270_s0 + $0x24] sm:$0x3] }
  0x43   :  { %v8756_v26 = vcombine.low %v11239_v3, %v11249_v39  ;;  %v974_v56 = vrot.slane %v972_v46, 5  ;;  %v15304_v32 = vcombine.low %v10707_v14, %v10712_v19  ;;  %v11266_v52 = vsel %vm11229_vm12, %v952_v11, %v960_v4 }
  0x44   :  { %10085 = vmatmul.mubr.msk.bf16.gmra.mxu1 %vm319_vm2, %v8661_v28  ;;  %v981_v55 = vshrl.u32 %v10990_v8, 16  ;;  %v984_v28 = vshll.u32 %v10990_v8, 16  ;;  %v990_v3 = vshrl.u32 %v910_v51, 16  ;;  %v8718_v54 = vcombine.low %v11245_v21, %v11266_v52  ;;  %10109 = vmatmul.mubr.msk.bf16.gmra.mxu0 %vm319_vm2, %v8701_v40  ;;  %v1399_v21 = vld [vmem:[%s15270_s0 + $0x38] sm:$0xc] }
  0x45   :  { %10088 = vmatprep.mubr.msk.bf16.mxu1 %vm319_vm2, %v15304_v32  ;;  %v969_v12 = vor.u32 %v968_v9, %v965_v24  ;;  %v977_v14 = vrot.slane %v975_v48, 6  ;;  %v993_v19 = vshll.u32 %v910_v51, 16  ;;  %v8738_v8 = vrot.slane %v1394_v47, 10  ;;  %10112 = vmatprep.mubr.msk.bf16.mxu0 %vm319_vm2, %v8702_v42  ;;  %v912_v42 = vld [vmem:[%s15270_s0 + $0x2c] sm:$0x3] }
  0x46   :  { %v983_v4 = vrot.slane %v981_v55, 5  ;;  %v986_v27 = vrot.slane %v984_v28, 6  ;;  %v992_v41 = vrot.slane %v990_v3, 5  ;;  %v1453_v23 = vrot.slane %v909_v20, 6  ;;  %v1397_v3 = vld [vmem:[%s15270_s0 + $0x28] sm:$0xc] }
  0x47   :  { %v970_v1 = vrot.slane %v969_v12, 4  ;;  %v978_v2 = vor.u32 %v977_v14, %v974_v56  ;;  %v995_v18 = vrot.slane %v993_v19, 6  ;;  %v8739_v63 = vrot.slane %v1395_v7, 10 }
  0x48   :  { %v987_v57 = vor.u32 %v986_v27, %v983_v4  ;;  %v1457_v40 = vrot.slane %v910_v51, 6  ;;  %v999_v46 = vshrl.u32 %v10998_v25, 16  ;;  %v11293_v45 = vsel %vm11219_vm11, %v8738_v8, %v1453_v23 }
  0x49   :  { %v11289_v11 = vsel %vm11229_vm12, %v970_v1, %v978_v2  ;;  %v996_v53 = vor.u32 %v995_v18, %v992_v41  ;;  %v1002_v20 = vshll.u32 %v10998_v25, 16  ;;  %v1008_v9 = vshrl.u32 %v911_v10, 16  ;;  %v1396_v25 = vld [vmem:[%s15270_s0 + $0x20] sm:$0xc]  ;;  %v913_v41 = vld [vmem:[%s15270_s0 + $0x34] sm:$0x3] }
  0x4a   :  { %v988_v39 = vrot.slane %v987_v57, 4  ;;  %v1458_v51 = vsel %vm11219_vm11, %v8739_v63, %v1457_v40  ;;  %v1001_v24 = vrot.slane %v999_v46, 5  ;;  %v1011_v47 = vshll.u32 %v911_v10, 16 }
  0x4b   :  { %v8757_v56 = vcombine.low %v11293_v45, %v1458_v51  ;;  %v1004_v48 = vrot.slane %v1002_v20, 6  ;;  %v1017_v32 = vshrl.u32 %v11013_v58, 16  ;;  %v15305_v55 = vcombine.low %v10851_v0, %v10869_v38 }
  0x4c   :  { %10089 = vmatmul.mubr.msk.bf16.gmra.mxu1 %vm319_vm2, %v8663_v49  ;;  %v11316_v61 = vsel %vm11229_vm12, %v988_v39, %v996_v53  ;;  %v1010_v6 = vrot.slane %v1008_v9, 5  ;;  %v1020_v49 = vshll.u32 %v11013_v58, 16  ;;  %v1026_v28 = vshrl.u32 %v912_v42, 16  ;;  %v1398_v53 = vld [vmem:[%s15270_s0 + $0x30] sm:$0xc] }
  0x4d   :  { %10092 = vmatprep.mubr.msk.bf16.mxu1 %vm319_vm2, %v15305_v55  ;;  %v8719_v7 = vcombine.low %v11289_v11, %v11316_v61  ;;  %v1005_v12 = vor.u32 %v1004_v48, %v1001_v24  ;;  %v1013_v14 = vrot.slane %v1011_v47, 6  ;;  %v1019_v0 = vrot.slane %v1017_v32, 5  ;;  %v1401_v11 = vld [vmem:[%s15270_s0 + $0x68] sm:$0xc] }
  0x4e   :  { %v15306_v38 = vcombine.low %v11174_v15, %v11189_v29  ;;  %v1022_v19 = vrot.slane %v1020_v49, 6  ;;  %v1028_v4 = vrot.slane %v1026_v28, 5  ;;  %v1029_v27 = vshll.u32 %v912_v42, 16 }
  0x4f   :  { %v8740_v58 = vrot.slane %v1396_v25, 10  ;;  %v1006_v8 = vrot.slane %v1005_v12, 4  ;;  %v1014_v1 = vor.u32 %v1013_v14, %v1010_v6  ;;  %v1461_v2 = vrot.slane %v911_v10, 6 }
  0x50   :  { %10113 = vmatmul.mubr.msk.bf16.gmra.mxu0 %vm319_vm2, %v15306_v38  ;;  %v8741_v18 = vrot.slane %v1397_v3, 10  ;;  %v1023_v23 = vor.u32 %v1022_v19, %v1019_v0  ;;  %v1031_v57 = vrot.slane %v1029_v27, 6  ;;  %v1465_v63 = vrot.slane %v912_v42, 6  ;;  %v915_v19 = vld [vmem:[%s15270_s0 + $0x64] sm:$0x3] }
  0x51   :  { %10140 = vmatprep.mubr.msk.bf16.mxu0 %vm319_vm2, %v8756_v26  ;;  %v1035_v15 = vshrl.u32 %v11022_v5, 16  ;;  %v11335_v29 = vsel %vm11229_vm12, %v1006_v8, %v1014_v1  ;;  %v1462_v40 = vsel %vm11219_vm11, %v8740_v58, %v1461_v2  ;;  %v914_v26 = vld [vmem:[%s15270_s0 + $0x3c] sm:$0x3]  ;;  %v1038_v46 = vshll.u32 %v11022_v5, 16 }
  0x52   :  { %v1044_v10 = vshrl.u32 %v913_v41, 16  ;;  %v1024_v45 = vrot.slane %v1023_v23, 4  ;;  %v1032_v42 = vor.u32 %v1031_v57, %v1028_v4  ;;  %v1466_v20 = vsel %vm11219_vm11, %v8741_v18, %v1465_v63  ;;  %v1400_v23 = vld [vmem:[%s15270_s0 + $0x60] sm:$0xc]  ;;  %v11391_v57 = vld [vmem:[%s15269_s1 + $0x88] sm:$0xff]  }
  0x53   :  { %v1037_v39 = vrot.slane %v1035_v15, 5  ;;  %v15307_v51 = vcombine.low %v10920_v37, %v10929_v36  ;;  %v8758_v24 = vcombine.low %v1462_v40, %v1466_v20  ;;  %v1040_v9 = vrot.slane %v1038_v46, 6  ;;  %v10581_v37 = vld [vmem:[%s15269_s1 + $0x60] sm:$0xff]  }
  0x54   :  { %v1046_v48 = vrot.slane %v1044_v10, 5  ;;  %v1047_v5 = vshll.u32 %v913_v41, 16  ;;  %v1033_v47 = vsel %vm11229_vm12, %v1024_v45, %v1032_v42  ;;  %v1053_v32 = vshrl.u32 %v11037_v50, 16 }
  0x55   :  { %10093 = vmatmul.mubr.msk.bf16.gmra.mxu1 %vm319_vm2, %v15307_v51  ;;  %v1056_v25 = vshll.u32 %v11037_v50, 16  ;;  %v1062_v55 = vshrl.u32 %v914_v26, 16  ;;  %v8720_v36 = vcombine.low %v11335_v29, %v1033_v47  ;;  %v1041_v6 = vor.u32 %v1040_v9, %v1037_v39 }
  0x56   :  { %10120 = vmatprep.mubr.msk.bf16.mxu1 %vm319_vm2, %v8718_v54  ;;  %v1049_v49 = vrot.slane %v1047_v5, 6  ;;  %v1065_v28 = vshll.u32 %v914_v26, 16  ;;  %v1055_v52 = vrot.slane %v1053_v32, 5  ;;  %v8742_v50 = vrot.slane %v1398_v53, 10  ;;  %v917_v5 = vld [vmem:[%s15270_s0 + $0x74] sm:$0x3] }
  0x57   :  { %v1058_v54 = vrot.slane %v1056_v25, 6  ;;  %v1064_v3 = vrot.slane %v1062_v55, 5  ;;  %v1042_v12 = vrot.slane %v1041_v6, 4  ;;  %v1469_v38 = vrot.slane %v913_v41, 6 }
  0x58   :  { %10141 = vmatmul.mubr.msk.bf16.vlgmr.msra.gmra.mxu0 %vm319_vm2, %v8757_v56  ;;  %v1050_v14 = vor.u32 %v1049_v49, %v1046_v48  ;;  %v1067_v0 = vrot.slane %v1065_v28, 6  ;;  %v8743_v27 = vrot.slane %v1399_v21, 10  ;;  %v1473_v58 = vrot.slane %v914_v26, 6  ;;  %v916_v56 = vld [vmem:[%s15270_s0 + $0x6c] sm:$0x3] }
  0x59   :  { %10177 = vmatpush3.bf16.msra.mxu0 %v11183_v17  ;;  %10144 = vmatprep.mubr.msk.bf16.mxu0 %vm319_vm2, %v8758_v24  ;;  %v1059_v4 = vor.u32 %v1058_v54, %v1055_v52  ;;  %v1071_v8 = vshrl.u32 %v11051_v60, 16  ;;  %v10580_v17 = vld [vmem:[%s15269_s1 + $0x50] sm:$0xff]   ;;  %v1470_v2 = vsel %vm11219_vm11, %v8742_v50, %v1469_v38  ;;  %v1074_v18 = vshll.u32 %v11051_v60, 16  ;;  %v918_v52 = vld [vmem:[%s15270_s0 + $0x7c] sm:$0x3] }
  0x5a   :  { %10178 = vmatprep.subr.bf16.mxu0 %v10581_v37  ;;  %v1051_v41 = vsel %vm11229_vm12, %v1042_v12, %v1050_v14  ;;  %v1068_v1 = vor.u32 %v1067_v0, %v1064_v3  ;;  %v1474_v15 = vsel %vm11219_vm11, %v8743_v27, %v1473_v58  ;;  %v1080_v40 = vshrl.u32 %v915_v19, 16  ;;  %v1402_v58 = vld [vmem:[%s15270_s0 + $0x70] sm:$0xc] }
  0x5b   :  { %v1060_v63 = vrot.slane %v1059_v4, 4  ;;  %v1073_v29 = vrot.slane %v1071_v8, 5  ;;  %v8759_v60 = vcombine.low %v1470_v2, %v1474_v15  ;;  %v1076_v26 = vrot.slane %v1074_v18, 6 }
  0x5c   :  { %v1083_v46 = vshll.u32 %v915_v19, 16  ;;  %v1089_v10 = vshrl.u32 %v11056_v34, 16  ;;  %v1082_v45 = vrot.slane %v1080_v40, 5  ;;  %v1092_v42 = vshll.u32 %v11056_v34, 16 }
  0x5d   :  { %10121 = vmatmul.mubr.msk.bf16.vlgmr.msra.gmra.mxu1 %vm319_vm2, %v8719_v7  ;;  %10179 = vmatpush3.bf16.msra.mxu0 %v10581_v37  ;;  %v1069_v53 = vsel %vm11229_vm12, %v1060_v63, %v1068_v1  ;;  %v1098_v20 = vshrl.u32 %v916_v56, 16  ;;  %v1077_v7 = vor.u32 %v1076_v26, %v1073_v29  ;;  %v1101_v9 = vshll.u32 %v916_v56, 16 }
  0x5e   :  { %10157 = vmatpush3.bf16.msra.mxu1 %v11214_v35  ;;  %10124 = vmatprep.mubr.msk.bf16.mxu1 %vm319_vm2, %v8720_v36  ;;  %v8721_v61 = vcombine.low %v1051_v41, %v1069_v53  ;;  %v1085_v39 = vrot.slane %v1083_v46, 6  ;;  %v1091_v51 = vrot.slane %v1089_v10, 5  ;;  %v11411_v35 = vld [vmem:[%s15269_s1 + $0x78] sm:$0xff]   ;;  %v1094_v34 = vrot.slane %v1092_v42, 6  ;;  %v919_v10 = vld [vmem:[%s15270_s0 + $0x84] sm:$0x3] }
  0x5f   :  { %10158 = vmatprep.subr.bf16.mxu1 %v10580_v17  ;;  %10216 = vmatprep.subr.bf16.mxu0 %v11391_v57  ;;  %v1100_v24 = vrot.slane %v1098_v20, 5  ;;  %v8744_v48 = vrot.slane %v1400_v23, 10  ;;  %v1078_v47 = vrot.slane %v1077_v7, 4  ;;  %v1477_v25 = vrot.slane %v915_v19, 6  ;;  %v1403_v41 = vld [vmem:[%s15270_s0 + $0x78] sm:$0xc] }
  0x60   :  { %10145 = vmatmul.mubr.msk.bf16.gmra.mxu0 %vm319_vm2, %v8759_v60  ;;  %v1086_v32 = vor.u32 %v1085_v39, %v1082_v45  ;;  %v8745_v55 = vrot.slane %v1401_v11, 10  ;;  %v1095_v37 = vor.u32 %v1094_v34, %v1091_v51  ;;  %v1103_v36 = vrot.slane %v1101_v9, 6  ;;  %v920_v39 = vld [vmem:[%s15270_s0 + $0x8c] sm:$0x3]  ;;  %v1404_v34 = vld [vmem:[%s15270_s0 + $0x80] sm:$0xc] }
  0x61   :  { %v1481_v6 = vrot.slane %v916_v56, 6  ;;  %v1107_v49 = vshrl.u32 %v11067_v43, 16  ;;  %v1478_v21 = vsel %vm11219_vm11, %v8744_v48, %v1477_v25  ;;  %v1110_v54 = vshll.u32 %v11067_v43, 16 }
  0x62   :  { %10159 = vmatpush3.bf16.msra.mxu1 %v10580_v17  ;;  %v1087_v28 = vsel %vm11229_vm12, %v1078_v47, %v1086_v32  ;;  %v1116_v3 = vshrl.u32 %v917_v5, 16  ;;  %v1096_v50 = vrot.slane %v1095_v37, 4  ;;  %v1104_v12 = vor.u32 %v1103_v36, %v1100_v24  ;;  %v1405_v47 = vld [vmem:[%s15270_s0 + $0x88] sm:$0xc] }
  0x63   :  { %10196 = vmatprep.subr.bf16.mxu1 %v11411_v35  ;;  %v1482_v14 = vsel %vm11219_vm11, %v8745_v55, %v1481_v6  ;;  %v1109_v0 = vrot.slane %v1107_v49, 5  ;;  %v1112_v19 = vrot.slane %v1110_v54, 6  ;;  %v1119_v27 = vshll.u32 %v917_v5, 16 }
  0x64   :  { %v8760_v38 = vcombine.low %v1478_v21, %v1482_v14  ;;  %v1118_v4 = vrot.slane %v1116_v3, 5  ;;  %v1105_v43 = vsel %vm11229_vm12, %v1096_v50, %v1104_v12  ;;  %v1125_v56 = vshrl.u32 %v11072_v30, 16 }
  0x65   :  { %10125 = vmatmul.mubr.msk.bf16.gmra.mxu1 %vm319_vm2, %v8721_v61  ;;  %v1128_v8 = vshll.u32 %v11072_v30, 16  ;;  %v1134_v17 = vshrl.u32 %v918_v52, 16  ;;  %v8722_v1 = vcombine.low %v1087_v28, %v1105_v43  ;;  %v1113_v2 = vor.u32 %v1112_v19, %v1109_v0  ;;  %v921_v0 = vld [vmem:[%s15270_s0 + $0x94] sm:$0x3] }
  0x66   :  { %10148 = vmatprep.mubr.msk.bf16.mxu0 %vm319_vm2, %v8760_v38  ;;  %v1121_v18 = vrot.slane %v1119_v27, 6  ;;  %v1137_v23 = vshll.u32 %v918_v52, 16  ;;  %v1127_v63 = vrot.slane %v1125_v56, 5  ;;  %v8746_v40 = vrot.slane %v1402_v58, 10  ;;  %v922_v56 = vld [vmem:[%s15270_s0 + $0x9c] sm:$0x3] }
  0x67   :  { %v1130_v15 = vrot.slane %v1128_v8, 6  ;;  %v1136_v29 = vrot.slane %v1134_v17, 5  ;;  %10128 = vmatprep.mubr.msk.bf16.mxu1 %vm319_vm2, %v8722_v1  ;;  %v1114_v60 = vrot.slane %v1113_v2, 4  ;;  %v1485_v46 = vrot.slane %v917_v5, 6 }
  0x68   :  { %v1122_v26 = vor.u32 %v1121_v18, %v1118_v4  ;;  %v1139_v30 = vrot.slane %v1137_v23, 6  ;;  %v8747_v45 = vrot.slane %v1403_v41, 10  ;;  %v1489_v42 = vrot.slane %v918_v52, 6  ;;  %v1406_v18 = vld [vmem:[%s15270_s0 + $0x90] sm:$0xc] }
  0x69   :  { %v1131_v53 = vor.u32 %v1130_v15, %v1127_v63  ;;  %v1143_v20 = vshrl.u32 %v11082_v59, 16  ;;  %v1486_v7 = vsel %vm11219_vm11, %v8746_v40, %v1485_v46  ;;  %v1146_v51 = vshll.u32 %v11082_v59, 16 }
  0x6a   :  { %v1123_v11 = vsel %vm11229_vm12, %v1114_v60, %v1122_v26  ;;  %v1140_v61 = vor.u32 %v1139_v30, %v1136_v29  ;;  %v1490_v9 = vsel %vm11219_vm11, %v8747_v45, %v1489_v42  ;;  %v1152_v5 = vshrl.u32 %v919_v10, 16  ;;  %v1407_v45 = vld [vmem:[%s15270_s0 + $0x98] sm:$0xc] }
  0x6b   :  { %v1132_v24 = vrot.slane %v1131_v53, 4  ;;  %v1145_v48 = vrot.slane %v1143_v20, 5  ;;  %v8761_v32 = vcombine.low %v1486_v7, %v1490_v9  ;;  %v1148_v25 = vrot.slane %v1146_v51, 6  ;;  %v8812_v7 = vld [vmem:[%s15270_s0 + $0x8] sm:$0xf] }
  0x6c   :  { %v1155_v55 = vshll.u32 %v919_v10, 16  ;;  %v1161_v37 = vshrl.u32 %v11087_v33, 16  ;;  %v1154_v36 = vrot.slane %v1152_v5, 5  ;;  %v1164_v6 = vshll.u32 %v11087_v33, 16  ;;  %v8814_v9 = vld [vmem:[%s15270_s0 + $0x10] sm:$0xf] }
  0x6d   :  { %v1141_v59 = vsel %vm11229_vm12, %v1132_v24, %v1140_v61  ;;  %v1170_v49 = vshrl.u32 %v920_v39, 16  ;;  %10149 = vmatmul.mubr.msk.bf16.gmra.mxu0 %vm319_vm2, %v8761_v32  ;;  %v1149_v21 = vor.u32 %v1148_v25, %v1145_v48  ;;  %v1173_v12 = vshll.u32 %v920_v39, 16  ;;  %v11509_v25 = vld [vmem:[%s15270_s0 + $0x14] sm:$0x1] }
  0x6e   :  { %v8723_v28 = vcombine.low %v1123_v11, %v1141_v59  ;;  %v1157_v52 = vrot.slane %v1155_v55, 6  ;;  %v1163_v54 = vrot.slane %v1161_v37, 5  ;;  %v1166_v3 = vrot.slane %v1164_v6, 6 }
  0x6f   :  { %v1172_v50 = vrot.slane %v1170_v49, 5  ;;  %v8748_v14 = vrot.slane %v1404_v34, 10  ;;  %v1150_v38 = vrot.slane %v1149_v21, 4  ;;  %v1493_v33 = vrot.slane %v919_v10, 6 }
  0x70   :  { %10129 = vmatmul.mubr.msk.bf16.gmra.mxu1 %vm319_vm2, %v8723_v28  ;;  %v1158_v19 = vor.u32 %v1157_v52, %v1154_v36  ;;  %v8749_v4 = vrot.slane %v1405_v47, 10  ;;  %v1167_v27 = vor.u32 %v1166_v3, %v1163_v54  ;;  %v1175_v58 = vrot.slane %v1173_v12, 6  ;;  %v8816_v52 = vld [vmem:[%s15270_s0 + $0x18] sm:$0xf] }
  0x71   :  { %v1497_v43 = vrot.slane %v920_v39, 6  ;;  %v1179_v8 = vshrl.u32 %v11125_v22, 16  ;;  %v1494_v41 = vsel %vm11219_vm11, %v8748_v14, %v1493_v33  ;;  %v1182_v1 = vshll.u32 %v11125_v22, 16  ;;  %v11500_v39 = vld [vmem:[%s15270_s0 + $0xc] sm:$0x1] }
  0x72   :  { %v1159_v17 = vsel %vm11229_vm12, %v1150_v38, %v1158_v19  ;;  %v1188_v2 = vshrl.u32 %v921_v0, 16  ;;  %v1168_v23 = vrot.slane %v1167_v27, 4  ;;  %v1176_v63 = vor.u32 %v1175_v58, %v1172_v50  ;;  %v10582_v50 = vld [vmem:[%s15270_s0 + $0x8] ss:$8 sps:$4 sm:$0xff]  }
  0x73   :  { %v1498_v15 = vsel %vm11219_vm11, %v8749_v4, %v1497_v43  ;;  %v1181_v29 = vrot.slane %v1179_v8, 5  ;;  %v1184_v60 = vrot.slane %v1182_v1, 6  ;;  %v1191_v30 = vshll.u32 %v921_v0, 16  ;;  %v11527_v4 = vld [vmem:[%s15270_s0 + $0x1c] sm:$0x1] }
  0x74   :  { %v8762_v40 = vcombine.low %v1494_v41, %v1498_v15  ;;  %v1190_v26 = vrot.slane %v1188_v2, 5  ;;  %v1177_v46 = vsel %vm11229_vm12, %v1168_v23, %v1176_v63  ;;  %v1197_v22 = vshrl.u32 %v11141_v44, 16  ;;  %v8820_v23 = vld [vmem:[%s15270_s0 + $0x28] sm:$0xf] }
  0x75   :  { %v1200_v10 = vshll.u32 %v11141_v44, 16  ;;  %v1206_v53 = vshrl.u32 %v922_v56, 16  ;;  %v8724_v42 = vcombine.low %v1159_v17, %v1177_v46  ;;  %v1185_v20 = vor.u32 %v1184_v60, %v1181_v29  ;;  %v11548_v60 = vld [vmem:[%s15270_s0 + $0x2c] sm:$0x1] }
  0x76   :  { %10152 = vmatprep.mubr.msk.bf16.mxu0 %vm319_vm2, %v8762_v40  ;;  %v1193_v11 = vrot.slane %v1191_v30, 6  ;;  %v1209_v61 = vshll.u32 %v922_v56, 16  ;;  %v1199_v44 = vrot.slane %v1197_v22, 5  ;;  %v8750_v24 = vrot.slane %v1406_v18, 10  ;;  %v11539_v18 = vld [vmem:[%s15270_s0 + $0x24] sm:$0x1] }
  0x77   :  { %v1202_v51 = vrot.slane %v1200_v10, 6  ;;  %v1208_v34 = vrot.slane %v1206_v53, 5  ;;  %10132 = vmatprep.mubr.msk.bf16.mxu1 %vm319_vm2, %v8724_v42  ;;  %v1186_v48 = vrot.slane %v1185_v20, 4  ;;  %v1501_v32 = vrot.slane %v921_v0, 6  ;;  %v8822_v10 = vld [vmem:[%s15270_s0 + $0x30] sm:$0xf] }
  0x78   :  { %v1194_v5 = vor.u32 %v1193_v11, %v1190_v26  ;;  %v1211_v47 = vrot.slane %v1209_v61, 6  ;;  %v8751_v37 = vrot.slane %v1407_v45, 10  ;;  %v1505_v59 = vrot.slane %v922_v56, 6  ;;  %v8818_v56 = vld [vmem:[%s15270_s0 + $0x20] sm:$0xf] }
  0x79   :  { %v1203_v55 = vor.u32 %v1202_v51, %v1199_v44  ;;  %v1929_v36 = vshrl.u32 %v8812_v7, 16  ;;  %v1502_v28 = vsel %vm11219_vm11, %v8750_v24, %v1501_v32  ;;  %v1932_v21 = vshll.u32 %v8812_v7, 16  ;;  %v11559_v20 = vld [vmem:[%s15270_s0 + $0x34] sm:$0x1]  ;;  %v10584_v44 = vld [vmem:[%s15270_s0 + $0x18] ss:$8 sps:$4 sm:$0xff]  }
  0x7a   :  { %v1195_v6 = vsel %vm11229_vm12, %v1186_v48, %v1194_v5  ;;  %v1212_v49 = vor.u32 %v1211_v47, %v1208_v34  ;;  %v1506_v3 = vsel %vm11219_vm11, %v8751_v37, %v1505_v59  ;;  %v1938_v14 = vshll.u32 %v11500_v39, 16  ;;  %v10586_v48 = vld [vmem:[%s15270_s0 + $0x28] ss:$8 sps:$4 sm:$0xff]  }
  0x7b   :  { %v1204_v54 = vrot.slane %v1203_v55, 4  ;;  %v1931_v12 = vrot.slane %v1929_v36, 4  ;;  %v8763_v0 = vcombine.low %v1502_v28, %v1506_v3  ;;  %v1934_v38 = vrot.slane %v1932_v21, 5  ;;  %v8824_v36 = vld [vmem:[%s15270_s0 + $0x38] sm:$0xf]  ;;  %v10589_v3 = vld [vmem:[%s15269_s1 + $0x70] sm:$0xff]  }
  0x7c   :  { %v1943_v19 = vshrl.u32 %v8814_v9, 16  ;;  %v1946_v33 = vshll.u32 %v8814_v9, 16  ;;  %v1940_v58 = vrot.slane %v1938_v14, 5  ;;  %v1952_v43 = vshll.u32 %v11509_v25, 16 }
  0x7d   :  { %v1213_v27 = vsel %vm11229_vm12, %v1204_v54, %v1212_v49  ;;  %v1957_v8 = vshrl.u32 %v8816_v52, 16  ;;  %10153 = vmatmul.mubr.msk.bf16.gmra.mxu0 %vm319_vm2, %v8763_v0  ;;  %v1935_v41 = vor.u32 %v1934_v38, %v1931_v12  ;;  %v1960_v29 = vshll.u32 %v8816_v52, 16  ;;  %v8826_v54 = vld [vmem:[%s15270_s0 + $0x40] sm:$0xf]  ;;  %v11590_v38 = vld [vmem:[%s15270_s0 + $0x44] sm:$0x1] }
  0x7e   :  { %v8725_v17 = vcombine.low %v1195_v6, %v1213_v27  ;;  %v1945_v1 = vrot.slane %v1943_v19, 4  ;;  %v1948_v2 = vrot.slane %v1946_v33, 5  ;;  %v1954_v63 = vrot.slane %v1952_v43, 5  ;;  %v11578_v6 = vld [vmem:[%s15270_s0 + $0x3c] sm:$0x1] }
  0x7f   :  { %v1959_v15 = vrot.slane %v1957_v8, 4  ;;  %v1966_v40 = vshll.u32 %v11527_v4, 16  ;;  %v1936_v26 = vrot.slane %v1935_v41, 4  ;;  %v1971_v46 = vshrl.u32 %v8818_v56, 16  ;;  %v8828_v41 = vld [vmem:[%s15270_s0 + $0x68] sm:$0xf] }
  0x80   :  { %10133 = vmatmul.mubr.msk.bf16.gmra.mxu1 %vm319_vm2, %v8725_v17  ;;  %v1949_v30 = vor.u32 %v1948_v2, %v1945_v1  ;;  %v1974_v22 = vshll.u32 %v8818_v56, 16  ;;  %v1962_v53 = vrot.slane %v1960_v29, 5  ;;  %v1980_v42 = vshll.u32 %v11539_v18, 16  ;;  %v11610_v29 = vld [vmem:[%s15269_s1 + $0x98] sm:$0xff]  }
  0x81   :  { %10160 = vmatprep.mubr.msk.bf16.mxu1 %vm319_vm2, %v10582_v50  ;;  %v1968_v45 = vrot.slane %v1966_v40, 5  ;;  %v1985_v11 = vshrl.u32 %v8820_v23, 16  ;;  %v1941_v61 = vsel %vm10738_vm3, %v1936_v26, %v1940_v58  ;;  %v1973_v51 = vrot.slane %v1971_v46, 4  ;;  %v10587_v40 = vld [vmem:[%s15270_s0 + $0x38] ss:$8 sps:$4 sm:$0xff]  }
  0x82   :  { %v1950_v7 = vrot.slane %v1949_v30, 4  ;;  %v1976_v34 = vrot.slane %v1974_v22, 5  ;;  %v1963_v24 = vor.u32 %v1962_v53, %v1959_v15  ;;  %v1982_v9 = vrot.slane %v1980_v42, 5  ;;  %v10591_v15 = vld [vmem:[%s15269_s1 + $0x80] sm:$0xff]   ;;  %v11618_v22 = vld [vmem:[%s15270_s0 + $0x6c] sm:$0x1] }
  0x83   :  { %v1987_v5 = vrot.slane %v1985_v11, 4  ;;  %v1988_v47 = vshll.u32 %v8820_v23, 16  ;;  %v1994_v37 = vshll.u32 %v11548_v60, 16  ;;  %v1999_v59 = vshrl.u32 %v8822_v10, 16  ;;  %v10588_v42 = vld [vmem:[%s15270_s0 + $0x68] ss:$8 sps:$4 sm:$0xff]  }
  0x84   :  { %v1955_v32 = vsel %vm10738_vm3, %v1950_v7, %v1954_v63  ;;  %v1977_v55 = vor.u32 %v1976_v34, %v1973_v51  ;;  %v1964_v28 = vrot.slane %v1963_v24, 4  ;;  %v2002_v52 = vshll.u32 %v8822_v10, 16  ;;  %v8830_v11 = vld [vmem:[%s15270_s0 + $0x70] sm:$0xf]  ;;  %v11634_v34 = vld [vmem:[%s15270_s0 + $0x74] sm:$0x1] }
  0x85   :  { %v8848_v49 = vcombine.low %v1941_v61, %v1955_v32  ;;  %v1990_v21 = vrot.slane %v1988_v47, 5  ;;  %v1996_v12 = vrot.slane %v1994_v37, 5  ;;  %v2001_v14 = vrot.slane %v1999_v59, 4 }
  0x86   :  { %v1978_v50 = vrot.slane %v1977_v55, 4  ;;  %v2008_v0 = vshll.u32 %v11559_v20, 16  ;;  %v1969_v19 = vsel %vm10738_vm3, %v1964_v28, %v1968_v45  ;;  %v2004_v27 = vrot.slane %v2002_v52, 5 }
  0x87   :  { %10180 = vmatprep.mubr.msk.bf16.mxu0 %vm319_vm2, %v8848_v49  ;;  %v1991_v33 = vor.u32 %v1990_v21, %v1987_v5  ;;  %v2013_v58 = vshrl.u32 %v8824_v36, 16  ;;  %v2016_v8 = vshll.u32 %v8824_v36, 16  ;;  %v2022_v17 = vshll.u32 %v11578_v6, 16  ;;  %v11645_v36 = vld [vmem:[%s15270_s0 + $0x7c] sm:$0x1]  ;;  %v11651_v49 = vld [vmem:[%s15269_s1 + $0xa8] sm:$0xff]  }
  0x88   :  { %10161 = vmatmul.mubr.msk.bf16.vlgmr.msra.gmra.mxu1 %vm319_vm2, %v10584_v44  ;;  %v1983_v43 = vsel %vm10738_vm3, %v1978_v50, %v1982_v9  ;;  %v2010_v56 = vrot.slane %v2008_v0, 5  ;;  %v2005_v23 = vor.u32 %v2004_v27, %v2001_v14  ;;  %v2027_v30 = vshrl.u32 %v8826_v54, 16  ;;  %v11664_v0 = vld [vmem:[%s15270_s0 + $0x84] sm:$0x1] }
  0x89   :  { %v8849_v1 = vcombine.low %v1969_v19, %v1983_v43  ;;  %10197 = vmatpush3.bf16.msra.mxu1 %v11411_v35  ;;  %10164 = vmatprep.mubr.msk.bf16.mxu1 %vm319_vm2, %v10586_v48  ;;  %v1992_v2 = vrot.slane %v1991_v33, 4  ;;  %v2015_v63 = vrot.slane %v2013_v58, 4  ;;  %v2018_v26 = vrot.slane %v2016_v8, 5  ;;  %v8836_v33 = vld [vmem:[%s15270_s0 + $0x88] sm:$0xf] }
  0x8a   :  { %v2024_v35 = vrot.slane %v2022_v17, 5  ;;  %v2030_v46 = vshll.u32 %v8826_v54, 16  ;;  %10198 = vmatprep.subr.bf16.mxu1 %v10589_v3  ;;  %v2006_v53 = vrot.slane %v2005_v23, 4  ;;  %v2036_v45 = vshll.u32 %v11590_v38, 16 }
  0x8b   :  { %10181 = vmatmul.mubr.msk.bf16.vlgmr.msra.gmra.mxu0 %vm319_vm2, %v8849_v1  ;;  %v1997_v10 = vsel %vm10738_vm3, %v1992_v2, %v1996_v12  ;;  %v2041_v61 = vshrl.u32 %v8828_v41, 16  ;;  %v2019_v7 = vor.u32 %v2018_v26, %v2015_v63  ;;  %v2029_v44 = vrot.slane %v2027_v30, 4  ;;  %v8838_v30 = vld [vmem:[%s15270_s0 + $0x90] sm:$0xf] }
  0x8c   :  { %10217 = vmatpush3.bf16.msra.mxu0 %v11391_v57  ;;  %v2032_v51 = vrot.slane %v2030_v46, 5  ;;  %v2044_v24 = vshll.u32 %v8828_v41, 16  ;;  %v2011_v9 = vsel %vm10738_vm3, %v2006_v53, %v2010_v56  ;;  %v2038_v48 = vrot.slane %v2036_v45, 5  ;;  %v8832_v57 = vld [vmem:[%s15270_s0 + $0x78] sm:$0xf] }
  0x8d   :  { %v2043_v5 = vrot.slane %v2041_v61, 4  ;;  %v2050_v47 = vshll.u32 %v11618_v22, 16  ;;  %10199 = vmatpush3.bf16.msra.mxu1 %v10589_v3  ;;  %10218 = vmatprep.subr.bf16.mxu0 %v10591_v15  ;;  %v8850_v32 = vcombine.low %v1997_v10, %v2011_v9  ;;  %v2020_v55 = vrot.slane %v2019_v7, 4  ;;  %v8834_v3 = vld [vmem:[%s15270_s0 + $0x80] sm:$0xf] }
  0x8e   :  { %v2033_v37 = vor.u32 %v2032_v51, %v2029_v44  ;;  %v2046_v59 = vrot.slane %v2044_v24, 5  ;;  %10236 = vmatprep.subr.bf16.mxu1 %v11610_v29  ;;  %v2055_v21 = vshrl.u32 %v8830_v11, 16  ;;  %v2058_v52 = vshll.u32 %v8830_v11, 16  ;;  %v10590_v41 = vld [vmem:[%s15270_s0 + $0x78] ss:$8 sps:$4 sm:$0xff]  }
  0x8f   :  { %v2052_v28 = vrot.slane %v2050_v47, 5  ;;  %v2064_v54 = vshll.u32 %v11634_v34, 16  ;;  %10184 = vmatprep.mubr.msk.bf16.mxu0 %vm319_vm2, %v8850_v32  ;;  %v2025_v50 = vsel %vm10738_vm3, %v2020_v55, %v2024_v35  ;;  %v2069_v19 = vshrl.u32 %v8832_v57, 16  ;;  %v11683_v35 = vld [vmem:[%s15270_s0 + $0x8c] sm:$0x1] }
  0x90   :  { %10165 = vmatmul.mubr.msk.bf16.gmra.mxu1 %vm319_vm2, %v10587_v40  ;;  %v2034_v12 = vrot.slane %v2033_v37, 4  ;;  %v2047_v14 = vor.u32 %v2046_v59, %v2043_v5  ;;  %v2057_v27 = vrot.slane %v2055_v21, 4  ;;  %v2060_v58 = vrot.slane %v2058_v52, 5  ;;  %10219 = vmatpush3.bf16.msra.mxu0 %v10591_v15  ;;  %v10592_v15 = vld [vmem:[%s15270_s0 + $0x88] ss:$8 sps:$4 sm:$0xff]  }
  0x91   :  { %10168 = vmatprep.mubr.msk.bf16.mxu1 %vm319_vm2, %v10588_v42  ;;  %v2066_v43 = vrot.slane %v2064_v54, 5  ;;  %v2072_v56 = vshll.u32 %v8832_v57, 16  ;;  %v2071_v1 = vrot.slane %v2069_v19, 4  ;;  %v2078_v2 = vshll.u32 %v11645_v36, 16  ;;  %10256 = vmatprep.subr.bf16.mxu0 %v11651_v49  ;;  %v11694_v42 = vld [vmem:[%s15270_s0 + $0x94] sm:$0x1] }
  0x92   :  { %v2039_v8 = vsel %vm10738_vm3, %v2034_v12, %v2038_v48  ;;  %v2048_v17 = vrot.slane %v2047_v14, 4  ;;  %v2061_v63 = vor.u32 %v2060_v58, %v2057_v27  ;;  %v2083_v26 = vshrl.u32 %v8834_v3, 16  ;;  %v8840_v51 = vld [vmem:[%s15270_s0 + $0x98] sm:$0xf]  ;;  %v11707_v52 = vld [vmem:[%s15270_s0 + $0x9c] sm:$0x1] }
  0x93   :  { %v8851_v23 = vcombine.low %v2025_v50, %v2039_v8  ;;  %v2074_v40 = vrot.slane %v2072_v56, 5  ;;  %v2080_v10 = vrot.slane %v2078_v2, 5  ;;  %v2086_v53 = vshll.u32 %v8834_v3, 16  ;;  %v8842_v54 = vld [vmem:[%s15270_s0 + $0xa0] sm:$0xf] }
  0x94   :  { %v2053_v46 = vsel %vm10738_vm3, %v2048_v17, %v2052_v28  ;;  %v2092_v45 = vshll.u32 %v11664_v0, 16  ;;  %v2062_v11 = vrot.slane %v2061_v63, 4  ;;  %v2085_v7 = vrot.slane %v2083_v26, 4  ;;  %v11720_v8 = vld [vmem:[%s15270_s0 + $0xa4] sm:$0x1] }
  0x95   :  { %10185 = vmatmul.mubr.msk.bf16.gmra.mxu0 %vm319_vm2, %v8851_v23  ;;  %v2075_v61 = vor.u32 %v2074_v40, %v2071_v1  ;;  %v2097_v44 = vshrl.u32 %v8836_v33, 16  ;;  %v2088_v24 = vrot.slane %v2086_v53, 5  ;;  %v2100_v48 = vshll.u32 %v8836_v33, 16  ;;  %v10593_v23 = vld [vmem:[%s15270_s0 + $0x98] ss:$8 sps:$4 sm:$0xff]  }
  0x96   :  { %v2094_v9 = vrot.slane %v2092_v45, 5  ;;  %v2106_v5 = vshll.u32 %v11683_v35, 16  ;;  %v2067_v47 = vsel %vm10738_vm3, %v2062_v11, %v2066_v43  ;;  %v2111_v55 = vshrl.u32 %v8838_v30, 16 }
  0x97   :  { %v2076_v57 = vrot.slane %v2075_v61, 4  ;;  %v2099_v32 = vrot.slane %v2097_v44, 4  ;;  %v8852_v37 = vcombine.low %v2053_v46, %v2067_v47  ;;  %v2089_v59 = vor.u32 %v2088_v24, %v2085_v7  ;;  %v8867_v7 = vld [vmem:[%s15270_s0 + $0x10] sm:$0xe]  ;;  %v11740_v44 = vld [vmem:[%s15270_s0 + $0xc] sm:$0x3] }
  0x98   :  { %10169 = vmatmul.mubr.msk.bf16.gmra.mxu1 %vm319_vm2, %v10590_v41  ;;  %v2102_v28 = vrot.slane %v2100_v48, 5  ;;  %v2108_v21 = vrot.slane %v2106_v5, 5  ;;  %v2113_v50 = vrot.slane %v2111_v55, 4  ;;  %v2114_v12 = vshll.u32 %v8838_v30, 16 }
  0x99   :  { %v2081_v3 = vsel %vm10738_vm3, %v2076_v57, %v2080_v10  ;;  %10172 = vmatprep.mubr.msk.bf16.mxu1 %vm319_vm2, %v10592_v15  ;;  %v2120_v14 = vshll.u32 %v11694_v42, 16  ;;  %10188 = vmatprep.mubr.msk.bf16.mxu0 %vm319_vm2, %v8852_v37  ;;  %v2090_v19 = vrot.slane %v2089_v59, 4  ;;  %v2125_v27 = vshrl.u32 %v8840_v51, 16  ;;  %v8866_v10 = vld [vmem:[%s15270_s0 + $0x8] sm:$0xe] }
  0x9a   :  { %v2103_v33 = vor.u32 %v2102_v28, %v2099_v32  ;;  %v2128_v58 = vshll.u32 %v8840_v51, 16  ;;  %v2116_v43 = vrot.slane %v2114_v12, 5  ;;  %v2134_v17 = vshll.u32 %v11707_v52, 16 }
  0x9b   :  { %v2122_v56 = vrot.slane %v2120_v14, 5  ;;  %v2139_v41 = vshrl.u32 %v8842_v54, 16  ;;  %v2095_v1 = vsel %vm10738_vm3, %v2090_v19, %v2094_v9  ;;  %v2127_v63 = vrot.slane %v2125_v27, 4 }
  0x9c   :  { %v2104_v2 = vrot.slane %v2103_v33, 4  ;;  %v2130_v40 = vrot.slane %v2128_v58, 5  ;;  %v8853_v26 = vcombine.low %v2081_v3, %v2095_v1  ;;  %v2117_v15 = vor.u32 %v2116_v43, %v2113_v50 }
  0x9d   :  { %v2136_v30 = vrot.slane %v2134_v17, 5  ;;  %v2141_v46 = vrot.slane %v2139_v41, 4  ;;  %v2142_v11 = vshll.u32 %v8842_v54, 16  ;;  %v2148_v61 = vshll.u32 %v11720_v8, 16 }
  0x9e   :  { %v2109_v53 = vsel %vm10738_vm3, %v2104_v2, %v2108_v21  ;;  %v2131_v45 = vor.u32 %v2130_v40, %v2127_v63  ;;  %10189 = vmatmul.mubr.msk.bf16.gmra.mxu0 %vm319_vm2, %v8853_v26  ;;  %v2118_v51 = vrot.slane %v2117_v15, 4  ;;  %v8882_v24 = vrot.slane %v8866_v10, 9  ;;  %v8868_v2 = vld [vmem:[%s15270_s0 + $0x18] sm:$0xe] }
  0x9f   :  { %v2380_v9 = vrot.slane %v11500_v39, 5  ;;  %v8883_v48 = vrot.slane %v8867_v7, 9  ;;  %v2144_v47 = vrot.slane %v2142_v11, 5  ;;  %v2150_v57 = vrot.slane %v2148_v61, 5  ;;  %v8869_v11 = vld [vmem:[%s15270_s0 + $0x20] sm:$0xe] }
  0xa0   :  { %10173 = vmatmul.mubr.msk.bf16.gmra.mxu1 %vm319_vm2, %v10593_v23  ;;  %v2132_v5 = vrot.slane %v2131_v45, 4  ;;  %v2384_v32 = vrot.slane %v11509_v25, 5  ;;  %v2123_v55 = vsel %vm10738_vm3, %v2118_v51, %v2122_v56  ;;  %v2637_v59 = vshrl.u32 %v8866_v10, 16  ;;  %v11757_v25 = vld [vmem:[%s15270_s0 + $0x14] sm:$0x3] }
  0xa1   :  { %v2381_v37 = vsel %vm10980_vm6, %v8882_v24, %v2380_v9  ;;  %v2640_v28 = vshll.u32 %v8866_v10, 16  ;;  %v8854_v21 = vcombine.low %v2109_v53, %v2123_v55  ;;  %v2145_v54 = vor.u32 %v2144_v47, %v2141_v46  ;;  %v11777_v51 = vld [vmem:[%s15270_s0 + $0x1c] sm:$0x3] }
  0xa2   :  { %v2137_v39 = vsel %vm10738_vm3, %v2132_v5, %v2136_v30  ;;  %v2385_v3 = vsel %vm10980_vm6, %v8883_v48, %v2384_v32  ;;  %v2639_v12 = vrot.slane %v2637_v59, 5  ;;  %v2646_v19 = vshrl.u32 %v11740_v44, 16 }
  0xa3   :  { %v8902_v50 = vcombine.low %v2381_v37, %v2385_v3  ;;  %v2642_v14 = vrot.slane %v2640_v28, 6  ;;  %10192 = vmatprep.mubr.msk.bf16.mxu0 %vm319_vm2, %v8854_v21  ;;  %v2146_v33 = vrot.slane %v2145_v54, 4  ;;  %v2649_v27 = vshll.u32 %v11740_v44, 16  ;;  %v11790_v37 = vld [vmem:[%s15270_s0 + $0x24] sm:$0x3]  ;;  %v10596_v21 = vld [vmem:[%s15269_s1 + $0x90] sm:$0xff]  }
  0xa4   :  { %v2655_v58 = vshrl.u32 %v8867_v7, 16  ;;  %v2658_v43 = vshll.u32 %v8867_v7, 16  ;;  %v2648_v17 = vrot.slane %v2646_v19, 5  ;;  %v2664_v41 = vshrl.u32 %v11757_v25, 16 }
  0xa5   :  { %10200 = vmatprep.mubr.msk.bf16.mxu1 %vm319_vm2, %v8902_v50  ;;  %v2643_v56 = vor.u32 %v2642_v14, %v2639_v12  ;;  %v2667_v1 = vshll.u32 %v11757_v25, 16  ;;  %v2151_v23 = vsel %vm10738_vm3, %v2146_v33, %v2150_v57  ;;  %v2651_v63 = vrot.slane %v2649_v27, 6  ;;  %v8870_v12 = vld [vmem:[%s15270_s0 + $0x28] sm:$0xe] }
  0xa6   :  { %v2657_v40 = vrot.slane %v2655_v58, 5  ;;  %v2660_v26 = vrot.slane %v2658_v43, 6  ;;  %v8855_v15 = vcombine.low %v2137_v39, %v2151_v23  ;;  %v2666_v46 = vrot.slane %v2664_v41, 5  ;;  %v8871_v41 = vld [vmem:[%s15270_s0 + $0x30] sm:$0xe] }
  0xa7   :  { %v2644_v30 = vrot.slane %v2643_v56, 4  ;;  %v2669_v10 = vrot.slane %v2667_v1, 6  ;;  %v2652_v53 = vor.u32 %v2651_v63, %v2648_v17  ;;  %v8884_v61 = vrot.slane %v8868_v2, 9 }
  0xa8   :  { %v2661_v45 = vor.u32 %v2660_v26, %v2657_v40  ;;  %v2388_v7 = vrot.slane %v11527_v4, 5  ;;  %10193 = vmatmul.mubr.msk.bf16.gmra.mxu0 %vm319_vm2, %v8855_v15  ;;  %v8885_v9 = vrot.slane %v8869_v11, 9  ;;  %v2392_v48 = vrot.slane %v11539_v18, 5  ;;  %v11814_v40 = vld [vmem:[%s15270_s0 + $0x2c] sm:$0x3] }
  0xa9   :  { %v2670_v24 = vor.u32 %v2669_v10, %v2666_v46  ;;  %v2673_v5 = vshrl.u32 %v8868_v2, 16  ;;  %v2653_v47 = vsel %vm11229_vm12, %v2644_v30, %v2652_v53  ;;  %v2676_v4 = vshll.u32 %v8868_v2, 16  ;;  %v11819_v10 = vld [vmem:[%s15269_s1 + $0xb8] sm:$0xff]  }
  0xaa   :  { %v2662_v57 = vrot.slane %v2661_v45, 4  ;;  %v2389_v32 = vsel %vm10980_vm6, %v8884_v61, %v2388_v7  ;;  %v2393_v55 = vsel %vm10980_vm6, %v8885_v9, %v2392_v48  ;;  %v2682_v18 = vshrl.u32 %v11777_v51, 16  ;;  %v11829_v7 = vld [vmem:[%s15270_s0 + $0x34] sm:$0x3] }
  0xab   :  { %v2675_v59 = vrot.slane %v2673_v5, 5  ;;  %v2685_v28 = vshll.u32 %v11777_v51, 16  ;;  %v8903_v54 = vcombine.low %v2389_v32, %v2393_v55  ;;  %v2678_v3 = vrot.slane %v2676_v4, 6 }
  0xac   :  { %v2671_v39 = vsel %vm11229_vm12, %v2662_v57, %v2670_v24  ;;  %v2691_v50 = vshrl.u32 %v8869_v11, 16  ;;  %v2684_v19 = vrot.slane %v2682_v18, 5  ;;  %v2694_v27 = vshll.u32 %v8869_v11, 16 }
  0xad   :  { %v8940_v14 = vcombine.low %v2653_v47, %v2671_v39  ;;  %v2687_v33 = vrot.slane %v2685_v28, 6  ;;  %10201 = vmatmul.mubr.msk.bf16.vlgmr.msra.gmra.mxu1 %vm319_vm2, %v8903_v54  ;;  %v2679_v58 = vor.u32 %v2678_v3, %v2675_v59  ;;  %v2700_v56 = vshrl.u32 %v11790_v37, 16  ;;  %v8872_v59 = vld [vmem:[%s15270_s0 + $0x38] sm:$0xe]  ;;  %v10597_v3 = vld [vmem:[%s15269_s1 + $0xa0] sm:$0xff]  }
  0xae   :  { %v2693_v43 = vrot.slane %v2691_v50, 5  ;;  %v2703_v17 = vshll.u32 %v11790_v37, 16  ;;  %v2696_v2 = vrot.slane %v2694_v27, 6  ;;  %10237 = vmatpush3.bf16.msra.mxu1 %v11610_v29  ;;  %v8886_v23 = vrot.slane %v8870_v12, 9 }
  0xaf   :  { %10220 = vmatprep.mubr.msk.bf16.mxu0 %vm319_vm2, %v8940_v14  ;;  %v2688_v1 = vor.u32 %v2687_v33, %v2684_v19  ;;  %v2396_v63 = vrot.slane %v11548_v60, 5  ;;  %v2680_v26 = vrot.slane %v2679_v58, 4  ;;  %v2702_v15 = vrot.slane %v2700_v56, 5  ;;  %10238 = vmatprep.subr.bf16.mxu1 %v10596_v21  ;;  %v11853_v56 = vld [vmem:[%s15270_s0 + $0x3c] sm:$0x3] }
  0xb0   :  { %v2705_v30 = vrot.slane %v2703_v17, 6  ;;  %v8887_v46 = vrot.slane %v8871_v41, 9  ;;  %v2697_v53 = vor.u32 %v2696_v2, %v2693_v43  ;;  %v2400_v60 = vrot.slane %v11559_v20, 5 }
  0xb1   :  { %v2397_v29 = vsel %vm10980_vm6, %v8886_v23, %v2396_v63  ;;  %v2709_v45 = vshrl.u32 %v8870_v12, 16  ;;  %v2689_v11 = vsel %vm11229_vm12, %v2680_v26, %v2688_v1  ;;  %v2712_v24 = vshll.u32 %v8870_v12, 16 }
  0xb2   :  { %v2706_v61 = vor.u32 %v2705_v30, %v2702_v15  ;;  %v2718_v9 = vshrl.u32 %v11814_v40, 16  ;;  %v2698_v48 = vrot.slane %v2697_v53, 4  ;;  %v2401_v5 = vsel %vm10980_vm6, %v8887_v46, %v2400_v60  ;;  %10239 = vmatpush3.bf16.msra.mxu1 %v10596_v21  ;;  %v8873_v21 = vld [vmem:[%s15270_s0 + $0x40] sm:$0xe] }
  0xb3   :  { %v2711_v47 = vrot.slane %v2709_v45, 5  ;;  %v2721_v20 = vshll.u32 %v11814_v40, 16  ;;  %v8904_v57 = vcombine.low %v2397_v29, %v2401_v5  ;;  %v2714_v32 = vrot.slane %v2712_v24, 6  ;;  %10276 = vmatprep.subr.bf16.mxu1 %v11819_v10  ;;  %v11866_v29 = vld [vmem:[%s15270_s0 + $0x44] sm:$0x3] }
  0xb4   :  { %v2720_v4 = vrot.slane %v2718_v9, 5  ;;  %v2727_v55 = vshrl.u32 %v8871_v41, 16  ;;  %v2707_v18 = vsel %vm11229_vm12, %v2698_v48, %v2706_v61  ;;  %v2730_v39 = vshll.u32 %v8871_v41, 16 }
  0xb5   :  { %v2723_v28 = vrot.slane %v2721_v20, 6  ;;  %v2736_v54 = vshrl.u32 %v11829_v7, 16  ;;  %v8941_v50 = vcombine.low %v2689_v11, %v2707_v18  ;;  %10204 = vmatprep.mubr.msk.bf16.mxu1 %vm319_vm2, %v8904_v57  ;;  %v2715_v12 = vor.u32 %v2714_v32, %v2711_v47  ;;  %v8874_v32 = vld [vmem:[%s15270_s0 + $0x68] sm:$0xe] }
  0xb6   :  { %v2729_v14 = vrot.slane %v2727_v55, 5  ;;  %v2739_v19 = vshll.u32 %v11829_v7, 16  ;;  %v2732_v27 = vrot.slane %v2730_v39, 6  ;;  %v8888_v43 = vrot.slane %v8872_v59, 9  ;;  %v11891_v39 = vld [vmem:[%s15270_s0 + $0x6c] sm:$0x3] }
  0xb7   :  { %v2724_v33 = vor.u32 %v2723_v28, %v2720_v4  ;;  %v2738_v58 = vrot.slane %v2736_v54, 5  ;;  %10221 = vmatmul.mubr.msk.bf16.vlgmr.msra.gmra.mxu0 %vm319_vm2, %v8941_v50  ;;  %v2716_v17 = vrot.slane %v2715_v12, 4  ;;  %v2404_v1 = vrot.slane %v11578_v6, 5  ;;  %v8875_v4 = vld [vmem:[%s15270_s0 + $0x70] sm:$0xe] }
  0xb8   :  { %v2741_v41 = vrot.slane %v2739_v19, 6  ;;  %v8889_v2 = vrot.slane %v8873_v21, 9  ;;  %10257 = vmatpush3.bf16.msra.mxu0 %v11651_v49  ;;  %v2733_v23 = vor.u32 %v2732_v27, %v2729_v14  ;;  %v2408_v63 = vrot.slane %v11590_v38, 5  ;;  %v11872_v38 = vld [vmem:[%s15269_s1 + $0xc8] sm:$0xff]  }
  0xb9   :  { %v2745_v26 = vshrl.u32 %v8872_v59, 16  ;;  %v2748_v15 = vshll.u32 %v8872_v59, 16  ;;  %v2725_v30 = vsel %vm11229_vm12, %v2716_v17, %v2724_v33  ;;  %v2405_v53 = vsel %vm10980_vm6, %v8888_v43, %v2404_v1  ;;  %10258 = vmatprep.subr.bf16.mxu0 %v10597_v3 }
  0xba   :  { %v2742_v46 = vor.u32 %v2741_v41, %v2738_v58  ;;  %v2754_v6 = vshrl.u32 %v11853_v56, 16  ;;  %v2734_v49 = vrot.slane %v2733_v23, 4  ;;  %v2409_v60 = vsel %vm10980_vm6, %v8889_v2, %v2408_v63  ;;  %v11904_v23 = vld [vmem:[%s15270_s0 + $0x74] sm:$0x3] }
  0xbb   :  { %v2747_v45 = vrot.slane %v2745_v26, 5  ;;  %v2750_v11 = vrot.slane %v2748_v15, 6  ;;  %v8905_v61 = vcombine.low %v2405_v53, %v2409_v60  ;;  %v2757_v9 = vshll.u32 %v11853_v56, 16 }
  0xbc   :  { %v2756_v24 = vrot.slane %v2754_v6, 5  ;;  %v2763_v48 = vshrl.u32 %v8873_v21, 16  ;;  %v2743_v5 = vsel %vm11229_vm12, %v2734_v49, %v2742_v46  ;;  %v2766_v20 = vshll.u32 %v8873_v21, 16  ;;  %10259 = vmatpush3.bf16.msra.mxu0 %v10597_v3  ;;  %v8876_v49 = vld [vmem:[%s15270_s0 + $0x78] sm:$0xe] }
  0xbd   :  { %v2751_v47 = vor.u32 %v2750_v11, %v2747_v45  ;;  %v2772_v57 = vshrl.u32 %v11866_v29, 16  ;;  %v8942_v55 = vcombine.low %v2725_v30, %v2743_v5  ;;  %10205 = vmatmul.mubr.msk.bf16.gmra.mxu1 %vm319_vm2, %v8905_v61  ;;  %v2759_v59 = vrot.slane %v2757_v9, 6  ;;  %10296 = vmatprep.subr.bf16.mxu0 %v11872_v38  ;;  %v11922_v9 = vld [vmem:[%s15270_s0 + $0x7c] sm:$0x3] }
  0xbe   :  { %v2765_v18 = vrot.slane %v2763_v48, 5  ;;  %v2775_v28 = vshll.u32 %v11866_v29, 16  ;;  %v2768_v21 = vrot.slane %v2766_v20, 6  ;;  %v8890_v12 = vrot.slane %v8874_v32, 9 }
  0xbf   :  { %v2752_v54 = vrot.slane %v2751_v47, 4  ;;  %v2774_v50 = vrot.slane %v2772_v57, 5  ;;  %10224 = vmatprep.mubr.msk.bf16.mxu0 %vm319_vm2, %v8942_v55  ;;  %v2760_v3 = vor.u32 %v2759_v59, %v2756_v24  ;;  %v2412_v19 = vrot.slane %v11618_v22, 5  ;;  %v8877_v24 = vld [vmem:[%s15270_s0 + $0x80] sm:$0xe] }
  0xc0   :  { %v2777_v14 = vrot.slane %v2775_v28, 6  ;;  %v8891_v33 = vrot.slane %v8875_v4, 9  ;;  %v2769_v27 = vor.u32 %v2768_v21, %v2765_v18  ;;  %v2416_v58 = vrot.slane %v11634_v34, 5 }
  0xc1   :  { %v2781_v43 = vshrl.u32 %v8874_v32, 16  ;;  %v2784_v17 = vshll.u32 %v8874_v32, 16  ;;  %v2761_v41 = vsel %vm11229_vm12, %v2752_v54, %v2760_v3  ;;  %v2413_v2 = vsel %vm10980_vm6, %v8890_v12, %v2412_v19 }
  0xc2   :  { %v2778_v1 = vor.u32 %v2777_v14, %v2774_v50  ;;  %v2790_v22 = vshrl.u32 %v11891_v39, 16  ;;  %v2770_v63 = vrot.slane %v2769_v27, 4  ;;  %v2417_v34 = vsel %vm10980_vm6, %v8891_v33, %v2416_v58  ;;  %v11936_v27 = vld [vmem:[%s15270_s0 + $0x84] sm:$0x3] }
  0xc3   :  { %v2783_v26 = vrot.slane %v2781_v43, 5  ;;  %v2786_v15 = vrot.slane %v2784_v17, 6  ;;  %v8906_v30 = vcombine.low %v2413_v2, %v2417_v34  ;;  %v2793_v53 = vshll.u32 %v11891_v39, 16 }
  0xc4   :  { %v2792_v46 = vrot.slane %v2790_v22, 5  ;;  %v2799_v6 = vshrl.u32 %v8875_v4, 16  ;;  %v2779_v60 = vsel %vm11229_vm12, %v2770_v63, %v2778_v1  ;;  %v2802_v11 = vshll.u32 %v8875_v4, 16  ;;  %v8878_v63 = vld [vmem:[%s15270_s0 + $0x88] sm:$0xe] }
  0xc5   :  { %v2787_v45 = vor.u32 %v2786_v15, %v2783_v26  ;;  %v2808_v61 = vshrl.u32 %v11904_v23, 16  ;;  %v8943_v48 = vcombine.low %v2761_v41, %v2779_v60  ;;  %10208 = vmatprep.mubr.msk.bf16.mxu1 %vm319_vm2, %v8906_v30  ;;  %v2795_v5 = vrot.slane %v2793_v53, 6  ;;  %v8879_v60 = vld [vmem:[%s15270_s0 + $0x90] sm:$0xe] }
  0xc6   :  { %v2801_v47 = vrot.slane %v2799_v6, 5  ;;  %v2811_v20 = vshll.u32 %v11904_v23, 16  ;;  %v2804_v32 = vrot.slane %v2802_v11, 6  ;;  %v8892_v55 = vrot.slane %v8876_v49, 9 }
  0xc7   :  { %v2788_v57 = vrot.slane %v2787_v45, 4  ;;  %v2810_v4 = vrot.slane %v2808_v61, 5  ;;  %10225 = vmatmul.mubr.msk.bf16.gmra.mxu0 %vm319_vm2, %v8943_v48  ;;  %v2796_v59 = vor.u32 %v2795_v5, %v2792_v46  ;;  %v2420_v28 = vrot.slane %v11645_v36, 5 }
  0xc8   :  { %v2813_v18 = vrot.slane %v2811_v20, 6  ;;  %v8893_v54 = vrot.slane %v8877_v24, 9  ;;  %v2805_v21 = vor.u32 %v2804_v32, %v2801_v47  ;;  %v2424_v50 = vrot.slane %v11664_v0, 5 }
  0xc9   :  { %v2817_v12 = vshrl.u32 %v8876_v49, 16  ;;  %v2820_v3 = vshll.u32 %v8876_v49, 16  ;;  %v2797_v14 = vsel %vm11229_vm12, %v2788_v57, %v2796_v59  ;;  %v2421_v33 = vsel %vm10980_vm6, %v8892_v55, %v2420_v28 }
  0xca   :  { %v2814_v19 = vor.u32 %v2813_v18, %v2810_v4  ;;  %v2826_v36 = vshrl.u32 %v11922_v9, 16  ;;  %v2806_v58 = vrot.slane %v2805_v21, 4  ;;  %v2425_v0 = vsel %vm10980_vm6, %v8893_v54, %v2424_v50  ;;  %v11968_v21 = vld [vmem:[%s15270_s0 + $0x94] sm:$0x3] }
  0xcb   :  { %v2819_v43 = vrot.slane %v2817_v12, 5  ;;  %v2822_v17 = vrot.slane %v2820_v3, 6  ;;  %v8907_v41 = vcombine.low %v2421_v33, %v2425_v0  ;;  %v2829_v2 = vshll.u32 %v11922_v9, 16 }
  0xcc   :  { %v2828_v1 = vrot.slane %v2826_v36, 5  ;;  %v2835_v22 = vshrl.u32 %v8877_v24, 16  ;;  %v2815_v34 = vsel %vm11229_vm12, %v2806_v58, %v2814_v19  ;;  %v2838_v15 = vshll.u32 %v8877_v24, 16  ;;  %v11956_v24 = vld [vmem:[%s15270_s0 + $0x8c] sm:$0x3] }
  0xcd   :  { %v2823_v26 = vor.u32 %v2822_v17, %v2819_v43  ;;  %v2844_v30 = vshrl.u32 %v11936_v27, 16  ;;  %v8944_v46 = vcombine.low %v2797_v14, %v2815_v34  ;;  %10209 = vmatmul.mubr.msk.bf16.gmra.mxu1 %vm319_vm2, %v8907_v41  ;;  %v2831_v53 = vrot.slane %v2829_v2, 6  ;;  %v8880_v41 = vld [vmem:[%s15270_s0 + $0x98] sm:$0xe]  ;;  %v8881_v34 = vld [vmem:[%s15270_s0 + $0xa0] sm:$0xe] }
  0xce   :  { %v2837_v6 = vrot.slane %v2835_v22, 5  ;;  %v2847_v49 = vshll.u32 %v11936_v27, 16  ;;  %v2840_v11 = vrot.slane %v2838_v15, 6  ;;  %v8894_v48 = vrot.slane %v8878_v63, 9 }
  0xcf   :  { %v2824_v45 = vrot.slane %v2823_v26, 4  ;;  %v2846_v61 = vrot.slane %v2844_v30, 5  ;;  %10228 = vmatprep.mubr.msk.bf16.mxu0 %vm319_vm2, %v8944_v46  ;;  %v2832_v5 = vor.u32 %v2831_v53, %v2828_v1  ;;  %v2428_v20 = vrot.slane %v11683_v35, 5  ;;  %v11988_v53 = vld [vmem:[%s15270_s0 + $0x9c] sm:$0x3] }
  0xd0   :  { %v2849_v47 = vrot.slane %v2847_v49, 6  ;;  %v8895_v57 = vrot.slane %v8879_v60, 9  ;;  %v2841_v32 = vor.u32 %v2840_v11, %v2837_v6  ;;  %v2432_v4 = vrot.slane %v11694_v42, 5 }
  0xd1   :  { %v2853_v55 = vshrl.u32 %v8878_v63, 16  ;;  %v2856_v59 = vshll.u32 %v8878_v63, 16  ;;  %v2833_v18 = vsel %vm11229_vm12, %v2824_v45, %v2832_v5  ;;  %v2429_v54 = vsel %vm10980_vm6, %v8894_v48, %v2428_v20 }
  0xd2   :  { %v2850_v28 = vor.u32 %v2849_v47, %v2846_v61  ;;  %v2862_v35 = vshrl.u32 %v11956_v24, 16  ;;  %v2842_v50 = vrot.slane %v2841_v32, 4  ;;  %v2433_v42 = vsel %vm10980_vm6, %v8895_v57, %v2432_v4  ;;  %v12000_v32 = vld [vmem:[%s15270_s0 + $0xa4] sm:$0x3] }
  0xd3   :  { %v2855_v12 = vrot.slane %v2853_v55, 5  ;;  %v2858_v3 = vrot.slane %v2856_v59, 6  ;;  %v8908_v14 = vcombine.low %v2429_v54, %v2433_v42  ;;  %v2865_v33 = vshll.u32 %v11956_v24, 16  ;;  %v8959_v42 = vld [vmem:[%s15270_s0 + $0x10] sm:$0xc] }
  0xd4   :  { %v2864_v19 = vrot.slane %v2862_v35, 5  ;;  %v2871_v36 = vshrl.u32 %v8879_v60, 16  ;;  %v2851_v58 = vsel %vm11229_vm12, %v2842_v50, %v2850_v28  ;;  %v2874_v43 = vshll.u32 %v8879_v60, 16 }
  0xd5   :  { %v2859_v0 = vor.u32 %v2858_v3, %v2855_v12  ;;  %v2880_v17 = vshrl.u32 %v11968_v21, 16  ;;  %v8945_v1 = vcombine.low %v2833_v18, %v2851_v58  ;;  %10212 = vmatprep.mubr.msk.bf16.mxu1 %vm319_vm2, %v8908_v14  ;;  %v2867_v2 = vrot.slane %v2865_v33, 6  ;;  %v8958_v18 = vld [vmem:[%s15270_s0 + $0x8] sm:$0xc] }
  0xd6   :  { %v2873_v22 = vrot.slane %v2871_v36, 5  ;;  %v2883_v63 = vshll.u32 %v11968_v21, 16  ;;  %v2876_v15 = vrot.slane %v2874_v43, 6  ;;  %v8896_v46 = vrot.slane %v8880_v41, 9  ;;  %v8960_v43 = vld [vmem:[%s15270_s0 + $0x18] sm:$0xc] }
  0xd7   :  { %v2860_v26 = vrot.slane %v2859_v0, 4  ;;  %v2882_v30 = vrot.slane %v2880_v17, 5  ;;  %10229 = vmatmul.mubr.msk.bf16.gmra.mxu0 %vm319_vm2, %v8945_v1  ;;  %v2868_v6 = vor.u32 %v2867_v2, %v2864_v19  ;;  %v2436_v60 = vrot.slane %v11707_v52, 5 }
  0xd8   :  { %v2885_v49 = vrot.slane %v2883_v63, 6  ;;  %v8897_v45 = vrot.slane %v8881_v34, 9  ;;  %v2877_v11 = vor.u32 %v2876_v15, %v2873_v22  ;;  %v2440_v61 = vrot.slane %v11720_v8, 5  ;;  %v8961_v22 = vld [vmem:[%s15270_s0 + $0x20] sm:$0xc]  ;;  %v12023_v63 = vpop.f32.mrf.mxu0 }
  0xd9   :  { %v2889_v48 = vshrl.u32 %v8880_v41, 16  ;;  %v2892_v5 = vshll.u32 %v8880_v41, 16  ;;  %v2869_v47 = vsel %vm11229_vm12, %v2860_v26, %v2868_v6  ;;  %v2437_v57 = vsel %vm10980_vm6, %v8896_v46, %v2436_v60  ;;  %v8962_v46 = vld [vmem:[%s15270_s0 + $0x28] sm:$0xc] }
  0xda   :  { %v2886_v20 = vor.u32 %v2885_v49, %v2882_v30  ;;  %v2898_v52 = vshrl.u32 %v11988_v53, 16  ;;  %v2878_v4 = vrot.slane %v2877_v11, 4  ;;  %v2441_v8 = vsel %vm10980_vm6, %v8897_v45, %v2440_v61  ;;  %v8963_v11 = vld [vmem:[%s15270_s0 + $0x30] sm:$0xc] }
  0xdb   :  { %v2891_v55 = vrot.slane %v2889_v48, 5  ;;  %v2894_v59 = vrot.slane %v2892_v5, 6  ;;  %v8909_v28 = vcombine.low %v2437_v57, %v2441_v8  ;;  %v2901_v35 = vshll.u32 %v11988_v53, 16 }
  0xdc   :  { %v2900_v54 = vrot.slane %v2898_v52, 5  ;;  %v2907_v50 = vshrl.u32 %v8881_v34, 16  ;;  %v2887_v12 = vsel %vm11229_vm12, %v2878_v4, %v2886_v20  ;;  %v2910_v14 = vshll.u32 %v8881_v34, 16  ;;  %v12050_v4 = vpop.f32.mrf.mxu0 }
  0xdd   :  { %v2895_v3 = vor.u32 %v2894_v59, %v2891_v55  ;;  %v2916_v19 = vshrl.u32 %v12000_v32, 16  ;;  %v8946_v33 = vcombine.low %v2869_v47, %v2887_v12  ;;  %10213 = vmatmul.mubr.msk.bf16.gmra.mxu1 %vm319_vm2, %v8909_v28  ;;  %v2903_v36 = vrot.slane %v2901_v35, 6  ;;  %v8964_v47 = vld [vmem:[%s15270_s0 + $0x38] sm:$0xc]  ;;  %v8966_v28 = vld [vmem:[%s15270_s0 + $0x68] sm:$0xc] }
  0xde   :  { %v2909_v58 = vrot.slane %v2907_v50, 5  ;;  %v2919_v0 = vshll.u32 %v12000_v32, 16  ;;  %v2912_v41 = vrot.slane %v2910_v14, 6  ;;  %v8974_v2 = vrot.slane %v8958_v18, 10  ;;  %v8967_v12 = vld [vmem:[%s15270_s0 + $0x70] sm:$0xc] }
  0xdf   :  { %v2896_v17 = vrot.slane %v2895_v3, 4  ;;  %v2918_v1 = vrot.slane %v2916_v19, 5  ;;  %10232 = vmatprep.mubr.msk.bf16.mxu0 %vm319_vm2, %v8946_v33  ;;  %v2904_v34 = vor.u32 %v2903_v36, %v2900_v54  ;;  %v3152_v15 = vrot.slane %v11740_v44, 6  ;;  %v12056_v54 = vpop.f32.mrf.mxu1  ;;  %v10605_v36 = vld [vmem:[%s15269_s1 + $0xb0] sm:$0xff]  }
  0xe0   :  { %v2921_v26 = vrot.slane %v2919_v0, 6  ;;  %v8975_v30 = vrot.slane %v8959_v42, 10  ;;  %v2913_v6 = vor.u32 %v2912_v41, %v2909_v58  ;;  %v3156_v49 = vrot.slane %v11757_v25, 6  ;;  %v8965_v25 = vld [vmem:[%s15270_s0 + $0x40] sm:$0xc]  ;;  %15308 = vst [vmem:[#allocation5_spill] sm:$0xff] %v12056_v54 }
  0xe1   :  { %v8976_v60 = vrot.slane %v8960_v43, 10  ;;  %v3160_v45 = vrot.slane %v11777_v51, 6  ;;  %v2905_v61 = vsel %vm11229_vm12, %v2896_v17, %v2904_v34  ;;  %v3153_v44 = vsel %vm11219_vm11, %v8974_v2, %v3152_v15  ;;  %v8969_v41 = vld [vmem:[%s15270_s0 + $0x80] sm:$0xc] }
  0xe2   :  { %v2922_v48 = vor.u32 %v2921_v26, %v2918_v1  ;;  %v8977_v5 = vrot.slane %v8961_v22, 10  ;;  %v2914_v51 = vrot.slane %v2913_v6, 4  ;;  %v3157_v20 = vsel %vm11219_vm11, %v8975_v30, %v3156_v49  ;;  %v12095_v26 = vpop.f32.mrf.mxu1  ;;  %v12109_v49 = vld [vmem:[%s15269_s1 + $0xd8] sm:$0xff]  }
  0xe3   :  { %v3161_v57 = vsel %vm11219_vm11, %v8976_v60, %v3160_v45  ;;  %v3164_v52 = vrot.slane %v11790_v37, 6  ;;  %v8994_v8 = vcombine.low %v3153_v44, %v3157_v20  ;;  %v8978_v55 = vrot.slane %v8962_v46, 10  ;;  %v10598_v37 = vld [vmem:[%s15270_s0 + $0x10] ss:$8 sps:$4 sm:$0xff]   ;;  %15309 = vst [vmem:[#allocation6_spill] sm:$0xff] %v12095_v26 }
  0xe4   :  { %v3168_v59 = vrot.slane %v11814_v40, 6  ;;  %v8979_v18 = vrot.slane %v8963_v11, 10  ;;  %v2923_v35 = vsel %vm11229_vm12, %v2914_v51, %v2922_v48  ;;  %v3172_v42 = vrot.slane %v11829_v7, 6  ;;  %v8968_v7 = vld [vmem:[%s15270_s0 + $0x78] sm:$0xc] }
  0xe5   :  { %v3165_v50 = vsel %vm11219_vm11, %v8977_v5, %v3164_v52  ;;  %v8980_v40 = vrot.slane %v8964_v47, 10  ;;  %v8947_v3 = vcombine.low %v2905_v61, %v2923_v35  ;;  %10240 = vmatprep.mubr.msk.bf16.mxu1 %vm319_vm2, %v8994_v8  ;;  %v3176_v33 = vrot.slane %v11853_v56, 6  ;;  %v12085_v56 = vpop.f32.mrf.mxu0  ;;  %v8972_v11 = vld [vmem:[%s15270_s0 + $0x98] sm:$0xc]  ;;  %v8973_v61 = vld [vmem:[%s15270_s0 + $0xa0] sm:$0xc] }
  0xe6   :  { %v8995_v14 = vcombine.low %v3161_v57, %v3165_v50  ;;  %v3169_v19 = vsel %vm11219_vm11, %v8978_v55, %v3168_v59  ;;  %v3173_v58 = vsel %vm11219_vm11, %v8979_v18, %v3172_v42  ;;  %v8981_v0 = vrot.slane %v8965_v25, 10  ;;  %v10602_v48 = vld [vmem:[%s15270_s0 + $0x30] ss:$8 sps:$4 sm:$0xff]   ;;  %v9051_v51 = vld [vmem:[%s15270_s0 + $0x14] sm:$0x1]  ;;  %v12153_v18 = vpop.f32.mrf.mxu1  ;;  %v10607_v42 = vld [vmem:[%s15269_s1 + $0xc0] sm:$0xff]  }
  0xe7   :  { %v3180_v43 = vrot.slane %v11866_v29, 6  ;;  %v8982_v17 = vrot.slane %v8966_v28, 10  ;;  %10233 = vmatmul.mubr.msk.bf16.gmra.mxu0 %vm319_vm2, %v8947_v3  ;;  %v8996_v1 = vcombine.low %v3169_v19, %v3173_v58  ;;  %v3177_v2 = vsel %vm11219_vm11, %v8980_v40, %v3176_v33  ;;  %v8970_v29 = vld [vmem:[%s15270_s0 + $0x88] sm:$0xc]  ;;  %v9050_v25 = vld [vmem:[%s15270_s0 + $0x10] sm:$0xf]  ;;  %v12140_v20 = vpop.f32.mrf.mxu0 }
  0xe8   :  { %10241 = vmatmul.mubr.msk.bf16.vlgmr.msra.gmra.mxu1 %vm319_vm2, %v8995_v14  ;;  %v3184_v22 = vrot.slane %v11891_v39, 6  ;;  %v8983_v34 = vrot.slane %v8967_v12, 10  ;;  %10260 = vmatprep.mubr.msk.bf16.mxu0 %vm319_vm2, %v10598_v37  ;;  %v3188_v30 = vrot.slane %v11904_v23, 6  ;;  %v8984_v46 = vrot.slane %v8968_v7, 10  ;;  %v8971_v39 = vld [vmem:[%s15270_s0 + $0x90] sm:$0xc] }
  0xe9   :  { %10277 = vmatpush3.bf16.msra.mxu1 %v11819_v10  ;;  %v3181_v15 = vsel %vm11219_vm11, %v8981_v0, %v3180_v43  ;;  %v3192_v6 = vrot.slane %v11922_v9, 6  ;;  %v10600_v10 = vld [vmem:[%s15270_s0 + $0x20] ss:$8 sps:$4 sm:$0xff]   ;;  %10244 = vmatprep.mubr.msk.bf16.mxu1 %vm319_vm2, %v8996_v1  ;;  %v8985_v9 = vrot.slane %v8969_v41, 10  ;;  %v3196_v45 = vrot.slane %v11936_v27, 6  ;;  %15310 = vst [vmem:[#allocation7_spill] sm:$0xff] %v12153_v18 }
  0xea   :  { %v8997_v60 = vcombine.low %v3177_v2, %v3181_v15  ;;  %v3185_v23 = vsel %vm11219_vm11, %v8982_v17, %v3184_v22  ;;  %10278 = vmatprep.subr.bf16.mxu1 %v10605_v36  ;;  %v3189_v44 = vsel %vm11219_vm11, %v8983_v34, %v3188_v30  ;;  %v8986_v27 = vrot.slane %v8970_v29, 10  ;;  %v9053_v59 = vld [vmem:[%s15270_s0 + $0x1c] sm:$0x1]  ;;  %v12165_v50 = vld [vmem:[%s15270_s0 + $0x10] sm:$0xe]  ;;  %v12203_v2 = vpop.f32.mrf.mxu1 }
  0xeb   :  { %v12131_v5 = vsel %vm11219_vm11, %v8984_v46, %v3192_v6  ;;  %v3200_v47 = vrot.slane %v11956_v24, 6  ;;  %v8998_v57 = vcombine.low %v3185_v23, %v3189_v44  ;;  %v12144_v52 = vsel %vm11219_vm11, %v8985_v9, %v3196_v45  ;;  %v9052_v24 = vld [vmem:[%s15270_s0 + $0x18] sm:$0xf]  ;;  %v12201_v1 = vld [vmem:[%s15270_s0 + $0x24] sm:$0x1]  ;;  %15311 = vst [vmem:[#allocation8_spill] sm:$0xff] %v12203_v2 }
  0xec   :  { %v8987_v8 = vrot.slane %v8971_v39, 10  ;;  %v3204_v55 = vrot.slane %v11968_v21, 6  ;;  %v8999_v28 = vcombine.low %v12131_v5, %v12144_v52  ;;  %v8988_v37 = vrot.slane %v8972_v11, 10  ;;  %v12185_v7 = vld [vmem:[%s15270_s0 + $0x18] sm:$0xe]  ;;  %v12190_v58 = vpop.f32.mrf.mxu0  ;;  %v12215_v46 = vld [vmem:[%s15269_s1 + $0xe8] sm:$0xff]  }
  0xed   :  { %10279 = vmatpush3.bf16.msra.mxu1 %v10605_v36  ;;  %v12159_v35 = vsel %vm11219_vm11, %v8986_v27, %v3200_v47  ;;  %v3208_v21 = vrot.slane %v11988_v53, 6  ;;  %v8989_v12 = vrot.slane %v8973_v61, 10  ;;  %v3212_v3 = vrot.slane %v12000_v32, 6  ;;  %v9054_v32 = vld [vmem:[%s15270_s0 + $0x20] sm:$0xf] }
  0xee   :  { %v12172_v40 = vsel %vm11219_vm11, %v8987_v8, %v3204_v55  ;;  %v3636_v14 = vshrl.u32 %v9050_v25, 16  ;;  %10316 = vmatprep.subr.bf16.mxu1 %v12109_v49  ;;  %v3639_v33 = vshll.u32 %v9050_v25, 16  ;;  %v3645_v36 = vshll.u32 %v9051_v51, 16  ;;  %v9056_v30 = vld [vmem:[%s15270_s0 + $0x28] sm:$0xf]  ;;  %v12217_v6 = vpop.f32.mrf.mxu0 }
  0xef   :  { %v9000_v53 = vcombine.low %v12159_v35, %v12172_v40  ;;  %v12180_v19 = vsel %vm11219_vm11, %v8988_v37, %v3208_v21  ;;  %10261 = vmatmul.mubr.msk.bf16.vlgmr.msra.gmra.mxu0 %vm319_vm2, %v10600_v10  ;;  %v12196_v0 = vsel %vm11219_vm11, %v8989_v12, %v3212_v3  ;;  %v3650_v17 = vshrl.u32 %v9052_v24, 16  ;;  %v10604_v44 = vld [vmem:[%s15270_s0 + $0x70] ss:$8 sps:$4 sm:$0xff]   ;;  %v9057_v25 = vld [vmem:[%s15270_s0 + $0x2c] sm:$0x1] }
  0xf0   :  { %10245 = vmatmul.mubr.msk.bf16.gmra.mxu1 %vm319_vm2, %v8997_v60  ;;  %v3638_v43 = vrot.slane %v3636_v14, 4  ;;  %v3653_v41 = vshll.u32 %v9052_v24, 16  ;;  %10297 = vmatpush3.bf16.msra.mxu0 %v11872_v38  ;;  %v9001_v22 = vcombine.low %v12180_v19, %v12196_v0  ;;  %v3641_v34 = vrot.slane %v3639_v33, 5  ;;  %v10603_v38 = vld [vmem:[%s15270_s0 + $0x40] ss:$8 sps:$4 sm:$0xff]  }
  0xf1   :  { %10264 = vmatprep.mubr.msk.bf16.mxu0 %vm319_vm2, %v10602_v48  ;;  %v3647_v29 = vrot.slane %v3645_v36, 5  ;;  %v3659_v15 = vshll.u32 %v9053_v59, 16  ;;  %10248 = vmatprep.mubr.msk.bf16.mxu1 %vm319_vm2, %v8998_v57  ;;  %v3652_v39 = vrot.slane %v3650_v17, 4  ;;  %v9120_v60 = vrot.slane %v12165_v50, 9  ;;  %v12225_v48 = vpop.f32.mrf.mxu0  ;;  %v12237_v8 = vpop.f32.mrf.mxu1  ;;  %v12247_v21 = vld [vmem:[%s15270_s0 + $0x20] sm:$0xe] }
  0xf2   :  { %10298 = vmatprep.subr.bf16.mxu0 %v10607_v42  ;;  %v3655_v10 = vrot.slane %v3653_v41, 5  ;;  %v4087_v23 = vrot.slane %v9051_v51, 5  ;;  %v3642_v9 = vor.u32 %v3641_v34, %v3638_v43  ;;  %v9121_v11 = vrot.slane %v12185_v7, 9  ;;  %15312 = vst [vmem:[#allocation9_spill] sm:$0xff] %v12225_v48  ;;  %15313 = vst [vmem:[#allocation10_spill] sm:$0xff] %v12237_v8 }
  0xf3   :  { %v3661_v45 = vrot.slane %v3659_v15, 5  ;;  %v4091_v61 = vrot.slane %v9053_v59, 5  ;;  %v3664_v51 = vshrl.u32 %v9054_v32, 16  ;;  %v3667_v57 = vshll.u32 %v9054_v32, 16  ;;  %v12249_v12 = vpop.f32.mrf.mxu0  ;;  %v12256_v36 = vld [vmem:[%s15270_s0 + $0x28] sm:$0xe]  ;;  %v12259_v32 = vpop.f32.mrf.mxu1 }
  0xf4   :  { %v3656_v27 = vor.u32 %v3655_v10, %v3652_v39  ;;  %v12232_v47 = vsel %vm10980_vm6, %v9120_v60, %v4087_v23  ;;  %10299 = vmatpush3.bf16.msra.mxu0 %v10607_v42  ;;  %v3643_v55 = vrot.slane %v3642_v9, 4  ;;  %v3673_v59 = vshll.u32 %v12201_v1, 16  ;;  %15314 = vst [vmem:[#allocation11_spill] sm:$0xff] %v12249_v12  ;;  %15315 = vst [vmem:[#allocation12_spill] sm:$0xff] %v12259_v32  ;;  %v9058_v15 = vld [vmem:[%s15270_s0 + $0x30] sm:$0xf] }
  0xf5   :  { %v12241_v24 = vsel %vm10980_vm6, %v9121_v11, %v4091_v61  ;;  %v3678_v37 = vshrl.u32 %v9056_v30, 16  ;;  %v3666_v42 = vrot.slane %v3664_v51, 4  ;;  %v3669_v33 = vrot.slane %v3667_v57, 5  ;;  %10336 = vmatprep.subr.bf16.mxu0 %v12215_v46  ;;  %v12266_v39 = vpop.f32.mrf.mxu0  ;;  %v9059_v23 = vld [vmem:[%s15270_s0 + $0x34] sm:$0x1]  ;;  %v12279_v9 = vpop.f32.mrf.mxu1 }
  0xf6   :  { %v3657_v3 = vrot.slane %v3656_v27, 4  ;;  %v3648_v43 = vsel %vm10738_vm3, %v3643_v55, %v3647_v29  ;;  %v3675_v17 = vrot.slane %v3673_v59, 5  ;;  %v3681_v34 = vshll.u32 %v9056_v30, 16  ;;  %15316 = vst [vmem:[#allocation13_spill] sm:$0xff] %v12279_v9  ;;  %v10606_v61 = vld [vmem:[%s15270_s0 + $0x80] ss:$8 sps:$4 sm:$0xff]  }
  0xf7   :  { %v3680_v41 = vrot.slane %v3678_v37, 4  ;;  %10265 = vmatmul.mubr.msk.bf16.gmra.mxu0 %vm319_vm2, %v10603_v38  ;;  %v3670_v29 = vor.u32 %v3669_v33, %v3666_v42  ;;  %v3687_v60 = vshll.u32 %v9057_v25, 16  ;;  %v9122_v30 = vrot.slane %v12247_v21, 9  ;;  %v12291_v11 = vpop.f32.mrf.mxu0  ;;  %v12296_v27 = vpop.f32.mrf.mxu1  ;;  %v9061_v55 = vld [vmem:[%s15270_s0 + $0x3c] sm:$0x1] }
  0xf8   :  { %10249 = vmatmul.mubr.msk.bf16.gmra.mxu1 %vm319_vm2, %v8999_v28  ;;  %v3662_v10 = vsel %vm10738_vm3, %v3657_v3, %v3661_v45  ;;  %10268 = vmatprep.mubr.msk.bf16.mxu0 %vm319_vm2, %v10604_v44  ;;  %v3683_v52 = vrot.slane %v3681_v34, 5  ;;  %v4095_v28 = vrot.slane %v12201_v1, 5  ;;  %v9123_v38 = vrot.slane %v12256_v36, 9  ;;  %v9060_v45 = vld [vmem:[%s15270_s0 + $0x38] sm:$0xf]  ;;  %15317 = vst [vmem:[#allocation14_spill] sm:$0xff] %v12296_v27 }
  0xf9   :  { %10252 = vmatprep.mubr.msk.bf16.mxu1 %vm319_vm2, %v9000_v53  ;;  %v9086_v5 = vcombine.low %v3648_v43, %v3662_v10  ;;  %v3671_v44 = vrot.slane %v3670_v29, 4  ;;  %v3689_v35 = vrot.slane %v3687_v60, 5  ;;  %v4099_v40 = vrot.slane %v9057_v25, 5  ;;  %v10608_v1 = vld [vmem:[%s15270_s0 + $0x90] ss:$8 sps:$4 sm:$0xff]   ;;  %v12313_v3 = vpop.f32.mrf.mxu0 }
  0xfa   :  { %v3692_v53 = vshrl.u32 %v9058_v15, 16  ;;  %v3684_v51 = vor.u32 %v3683_v52, %v3680_v41  ;;  %v12303_v57 = vsel %vm10980_vm6, %v9122_v30, %v4095_v28  ;;  %v3695_v59 = vshll.u32 %v9058_v15, 16  ;;  %v12311_v25 = vld [vmem:[%s15270_s0 + $0x30] sm:$0xe]  ;;  %v12324_v34 = vld [vmem:[%s15270_s0 + $0x38] sm:$0xe] }
  0xfb   :  { %v3701_v37 = vshll.u32 %v9059_v23, 16  ;;  %v3676_v42 = vsel %vm10738_vm3, %v3671_v44, %v3675_v17  ;;  %v12319_v33 = vsel %vm10980_vm6, %v9123_v38, %v4099_v40  ;;  %v3706_v41 = vshrl.u32 %v9060_v45, 16  ;;  %v12332_v17 = vpop.f32.mrf.mxu0  ;;  %v9062_v40 = vld [vmem:[%s15270_s0 + $0x40] sm:$0xf]  ;;  %v12404_v18 = vld [vmem:[%s15270_s0 + $0x74] sm:$0x1] }
  0xfc   :  { %v3694_v43 = vrot.slane %v3692_v53, 4  ;;  %v12326_v15 = vpop.f32.mrf.mxu1  ;;  %v3685_v10 = vrot.slane %v3684_v51, 4  ;;  %v3697_v60 = vrot.slane %v3695_v59, 5  ;;  %v3709_v28 = vshll.u32 %v9060_v45, 16  ;;  %v9063_v45 = vld [vmem:[%s15270_s0 + $0x44] sm:$0x1] }
  0xfd   :  { %v12330_v30 = vrot.slane %v3701_v37, 5  ;;  %v3708_v52 = vrot.slane %v3706_v41, 4  ;;  %v3715_v38 = vshll.u32 %v9061_v55, 16  ;;  %v9124_v44 = vrot.slane %v12311_v25, 9  ;;  %v9064_v41 = vld [vmem:[%s15270_s0 + $0x48] sm:$0xf]  ;;  %v12349_v14 = vpop.f32.mrf.mxu0 }
  0xfe   :  { %v12338_v53 = vpop.f32.mrf.mxu1  ;;  %v3690_v51 = vsel %vm10738_vm3, %v3685_v10, %v3689_v35  ;;  %v3698_v29 = vor.u32 %v3697_v60, %v3694_v43  ;;  %v4103_v59 = vrot.slane %v9059_v23, 5  ;;  %v9125_v37 = vrot.slane %v12324_v34, 9  ;;  %v9065_v60 = vld [vmem:[%s15270_s0 + $0x4c] sm:$0x1] }
  0xff   :  { %10269 = vmatmul.mubr.msk.bf16.gmra.mxu0 %vm319_vm2, %v10606_v61  ;;  %v9087_v23 = vcombine.low %v3676_v42, %v3690_v51  ;;  %v3711_v35 = vrot.slane %v3709_v28, 5  ;;  %v3717_v43 = vrot.slane %v3715_v38, 5  ;;  %v4107_v10 = vrot.slane %v9061_v55, 5  ;;  %v12367_v42 = vpop.f32.mrf.mxu0 }
 0x100   :  { %10253 = vmatmul.mubr.msk.bf16.gmra.mxu1 %vm319_vm2, %v9001_v22  ;;  %v12359_v27 = vpop.f32.mrf.mxu1  ;;  %10272 = vmatprep.mubr.msk.bf16.mxu0 %vm319_vm2, %v10608_v1  ;;  %v3699_v61 = vrot.slane %v3698_v29, 4  ;;  %v12365_v19 = vsel %vm10980_vm6, %v9124_v44, %v4103_v59  ;;  %v3720_v0 = vshrl.u32 %v9062_v40, 16  ;;  %v3723_v22 = vshll.u32 %v9062_v40, 16  ;;  %15318 = vst [vmem:[#allocation15_spill] sm:$0xff] %v12367_v42  ;;  %v10609_v29 = vld [vmem:[%s15270_s0 + $0xa0] ss:$8 sps:$4 sm:$0xff]  }
 0x101   :  { %10280 = vmatprep.mubr.msk.bf16.mxu1 %vm319_vm2, %v9086_v5  ;;  %v3712_v55 = vor.u32 %v3711_v35, %v3708_v52  ;;  %v12371_v28 = vsel %vm10980_vm6, %v9125_v37, %v4107_v10  ;;  %v3729_v38 = vshll.u32 %v9063_v45, 16  ;;  %v3734_v51 = vshrl.u32 %v9064_v41, 16  ;;  %v12376_v5 = vld [vmem:[%s15270_s0 + $0x40] sm:$0xe]  ;;  %v12391_v37 = vld [vmem:[%s15270_s0 + $0x48] sm:$0xe]  ;;  %v12393_v35 = vpop.f32.mrf.mxu0 }
 0x102   :  { %v12378_v1 = vpop.f32.mrf.mxu1  ;;  %v3704_v52 = vsel %vm10738_vm3, %v3699_v61, %v12330_v30  ;;  %v3722_v40 = vrot.slane %v3720_v0, 4  ;;  %v3725_v59 = vrot.slane %v3723_v22, 5  ;;  %15319 = vst [vmem:[#allocation16_spill] sm:$0xff] %v12393_v35  ;;  %v3737_v8 = vshll.u32 %v9064_v41, 16  ;;  %v9066_v30 = vld [vmem:[%s15270_s0 + $0x70] sm:$0xf] }
 0x103   :  { %v3713_v10 = vrot.slane %v3712_v55, 4  ;;  %v3731_v9 = vrot.slane %v3729_v38, 5  ;;  %v3736_v32 = vrot.slane %v3734_v51, 4  ;;  %v3743_v0 = vshll.u32 %v9065_v60, 16  ;;  %v12406_v55 = vpop.f32.mrf.mxu0 }
 0x104   :  { %v12398_v61 = vpop.f32.mrf.mxu1  ;;  %v3726_v44 = vor.u32 %v3725_v59, %v3722_v40  ;;  %v9126_v22 = vrot.slane %v12376_v5, 9  ;;  %v4111_v2 = vrot.slane %v9063_v45, 5  ;;  %15320 = vst [vmem:[#allocation17_spill] sm:$0xff] %v12406_v55  ;;  %v3739_v38 = vrot.slane %v3737_v8, 5  ;;  %v9068_v40 = vld [vmem:[%s15270_s0 + $0x78] sm:$0xf] }
 0x105   :  { %v3718_v41 = vsel %vm10738_vm3, %v3713_v10, %v3717_v43  ;;  %v9127_v51 = vrot.slane %v12391_v37, 9  ;;  %v4115_v26 = vrot.slane %v9065_v60, 5  ;;  %v10612_v45 = vld [vmem:[%s15269_s1 + $0xd0] sm:$0xff]   ;;  %v3745_v55 = vrot.slane %v3743_v0, 5  ;;  %v9069_v8 = vld [vmem:[%s15270_s0 + $0x7c] sm:$0x1]  ;;  %v12431_v10 = vpop.f32.mrf.mxu0 }
 0x106   :  { %v12417_v59 = vpop.f32.mrf.mxu1  ;;  %v9088_v54 = vcombine.low %v3704_v52, %v3718_v41  ;;  %v3727_v35 = vrot.slane %v3726_v44, 4  ;;  %v12421_v43 = vsel %vm10980_vm6, %v9126_v22, %v4111_v2  ;;  %v12429_v60 = vld [vmem:[%s15270_s0 + $0x70] sm:$0xe]  ;;  %15322 = vst [vmem:[#allocation19_spill] sm:$0xff] %v12431_v10  ;;  %v3740_v52 = vor.u32 %v3739_v38, %v3736_v32 }
 0x107   :  { %15321 = vst [vmem:[#allocation18_spill] sm:$0xff] %v12429_v60  ;;  %10273 = vmatmul.mubr.msk.bf16.gmra.mxu0 %vm319_vm2, %v10609_v29  ;;  %v12437_v2 = vsel %vm10980_vm6, %v9127_v51, %v4115_v26  ;;  %v3748_v44 = vshrl.u32 %v9066_v30, 16  ;;  %v3751_v0 = vshll.u32 %v9066_v30, 16  ;;  %v15324_v41 = vcombine.low %v12232_v47, %v12241_v24  ;;  %v12454_v30 = vld [vmem:[%s15270_s0 + $0x78] sm:$0xe] }
 0x108   :  { %10281 = vmatmul.mubr.msk.bf16.vlgmr.msra.gmra.mxu1 %vm319_vm2, %v9087_v23  ;;  %v12439_v22 = vpop.f32.mrf.mxu1  ;;  %v3732_v29 = vsel %vm10738_vm3, %v3727_v35, %v3731_v9  ;;  %v3757_v26 = vshll.u32 %v12404_v18, 16  ;;  %v3762_v23 = vshrl.u32 %v9068_v40, 16  ;;  %v12459_v47 = vld [vmem:[%s15269_s1 + $0xf8] sm:$0xff]   ;;  %v3741_v24 = vrot.slane %v3740_v52, 4  ;;  %v9070_v51 = vld [vmem:[%s15270_s0 + $0x80] sm:$0xf] }
 0x109   :  { %15323 = vst [vmem:[#allocation20_spill] sm:$0xff] %v12439_v22  ;;  %10300 = vmatprep.mubr.msk.bf16.mxu0 %vm319_vm2, %v15324_v41  ;;  %10317 = vmatpush3.bf16.msra.mxu1 %v12109_v49  ;;  %v12461_v49 = vpop.f32.mrf.mxu0  ;;  %v3750_v9 = vrot.slane %v3748_v44, 4  ;;  %v3753_v35 = vrot.slane %v3751_v0, 5  ;;  %v3765_v38 = vshll.u32 %v9068_v40, 16  ;;  %v3771_v42 = vshll.u32 %v9069_v8, 16 }
 0x10a   :  { %15325 = vst [vmem:[#allocation21_spill] sm:$0xff] %v12461_v49  ;;  %10284 = vmatprep.mubr.msk.bf16.mxu1 %vm319_vm2, %v9088_v54  ;;  %10318 = vmatprep.subr.bf16.mxu1 %v10612_v45  ;;  %v12467_v41 = vpop.f32.mrf.mxu1  ;;  %v3759_v32 = vrot.slane %v3757_v26, 5  ;;  %v3764_v10 = vrot.slane %v3762_v23, 4  ;;  %v9128_v12 = vrot.slane %v12429_v60, 9  ;;  %v9071_v54 = vld [vmem:[%s15270_s0 + $0x84] sm:$0x1]  ;;  %v3746_v40 = vsel %vm10738_vm3, %v3741_v24, %v3745_v55 }
 0x10b   :  { %15326 = vst [vmem:[#allocation22_spill] sm:$0xff] %v12467_v41  ;;  %v12473_v52 = vpop.f32.mrf.mxu0  ;;  %v3754_v44 = vor.u32 %v3753_v35, %v3750_v9  ;;  %v3767_v0 = vrot.slane %v3765_v38, 5  ;;  %v4119_v49 = vrot.slane %v12404_v18, 5  ;;  %v9072_v26 = vld [vmem:[%s15270_s0 + $0x88] sm:$0xf]  ;;  %v9089_v60 = vcombine.low %v3732_v29, %v3746_v40  ;;  %v10613_v18 = vld [vmem:[%s15269_s1 + $0xe0] sm:$0xff]  }
 0x10c   :  { %15327 = vst [vmem:[#allocation23_spill] sm:$0xff] %v12473_v52  ;;  %v12481_v23 = vpop.f32.mrf.mxu1  ;;  %v3773_v41 = vrot.slane %v3771_v42, 5  ;;  %v9129_v22 = vrot.slane %v12454_v30, 9  ;;  %v4123_v48 = vrot.slane %v9069_v8, 5  ;;  %v9073_v52 = vld [vmem:[%s15270_s0 + $0x8c] sm:$0x1] }
 0x10d   :  { %10319 = vmatpush3.bf16.msra.mxu1 %v10612_v45  ;;  %v12490_v55 = vpop.f32.mrf.mxu0  ;;  %v3755_v24 = vrot.slane %v3754_v44, 4  ;;  %v3768_v9 = vor.u32 %v3767_v0, %v3764_v10  ;;  %v12494_v29 = vsel %vm10980_vm6, %v9128_v12, %v4119_v49  ;;  %v3776_v42 = vshrl.u32 %v9070_v51, 16  ;;  %v9114_v10 = vld [vmem:[%s15270_s0 + $0x80] sm:$0xe]  ;;  %v9115_v0 = vld [vmem:[%s15270_s0 + $0x88] sm:$0xe] }
 0x10e   :  { %15328 = vst [vmem:[#allocation24_spill] sm:$0xff] %v12490_v55  ;;  %10356 = vmatprep.subr.bf16.mxu1 %v12459_v47  ;;  %v12497_v8 = vpop.f32.mrf.mxu1  ;;  %v12501_v45 = vsel %vm10980_vm6, %v9129_v22, %v4123_v48  ;;  %v3779_v35 = vshll.u32 %v9070_v51, 16  ;;  %v3785_v38 = vshll.u32 %v9071_v54, 16  ;;  %v3790_v40 = vshrl.u32 %v9072_v26, 16  ;;  %v9075_v55 = vld [vmem:[%s15270_s0 + $0x94] sm:$0x1] }
 0x10f   :  { %15329 = vst [vmem:[#allocation25_spill] sm:$0xff] %v12497_v8  ;;  %v15331_v12 = vcombine.low %v12303_v57, %v12319_v33  ;;  %v3760_v48 = vsel %vm10738_vm3, %v3755_v24, %v3759_v32  ;;  %v3769_v22 = vrot.slane %v3768_v9, 4  ;;  %v9144_v49 = vcombine.low %v12494_v29, %v12501_v45 }
 0x110   :  { %v12506_v44 = vpop.f32.mrf.mxu0  ;;  %10285 = vmatmul.mubr.msk.bf16.gmra.mxu1 %vm319_vm2, %v9089_v60  ;;  %v3778_v51 = vrot.slane %v3776_v42, 4  ;;  %v15333_v57 = vcombine.low %v12365_v19, %v12371_v28  ;;  %v3781_v33 = vrot.slane %v3779_v35, 5  ;;  %v3787_v60 = vrot.slane %v3785_v38, 5  ;;  %v12537_v19 = vld [vmem:[%s15269_s1 + $0x108] sm:$0xff]  }
 0x111   :  { %15330 = vst [vmem:[#allocation26_spill] sm:$0xff] %v12506_v44  ;;  %10301 = vmatmul.mubr.msk.bf16.vlgmr.msra.gmra.mxu0 %vm319_vm2, %v15331_v12  ;;  %v12520_v44 = vpop.f32.mrf.mxu1  ;;  %v3792_v32 = vrot.slane %v3790_v40, 4  ;;  %v3793_v24 = vshll.u32 %v9072_v26, 16  ;;  %v3774_v29 = vsel %vm10738_vm3, %v3769_v22, %v3773_v41  ;;  %v3799_v42 = vshll.u32 %v9073_v52, 16 }
 0x112   :  { %15332 = vst [vmem:[#allocation27_spill] sm:$0xff] %v12520_v44  ;;  %10337 = vmatpush3.bf16.msra.mxu0 %v12215_v46  ;;  %10304 = vmatprep.mubr.msk.bf16.mxu0 %vm319_vm2, %v15333_v57  ;;  %v12527_v9 = vpop.f32.mrf.mxu0  ;;  %v9130_v45 = vrot.slane %v9114_v10, 9  ;;  %v4127_v12 = vrot.slane %v9071_v54, 5  ;;  %v9074_v46 = vld [vmem:[%s15270_s0 + $0x90] sm:$0xf]  ;;  %v9090_v26 = vcombine.low %v3760_v48, %v3774_v29  ;;  %v3782_v35 = vor.u32 %v3781_v33, %v3778_v51 }
 0x113   :  { %15334 = vst [vmem:[#allocation28_spill] sm:$0xff] %v12527_v9  ;;  %10338 = vmatprep.subr.bf16.mxu0 %v10613_v18  ;;  %v12539_v28 = vpop.f32.mrf.mxu1  ;;  %v3795_v38 = vrot.slane %v3793_v24, 5  ;;  %v9131_v40 = vrot.slane %v9115_v0, 9  ;;  %v3801_v22 = vrot.slane %v3799_v42, 5  ;;  %v4131_v57 = vrot.slane %v9073_v52, 5 }
 0x114   :  { %15335 = vst [vmem:[#allocation29_spill] sm:$0xff] %v12539_v28  ;;  %v12541_v41 = vpop.f32.mrf.mxu0  ;;  %v12545_v54 = vsel %vm10980_vm6, %v9130_v45, %v4127_v12  ;;  %v4524_v9 = vshrl.u32 %v9114_v10, 16  ;;  %v9076_v48 = vld [vmem:[%s15270_s0 + $0x98] sm:$0xf]  ;;  %10288 = vmatprep.mubr.msk.bf16.mxu1 %vm319_vm2, %v9090_v26  ;;  %v3783_v33 = vrot.slane %v3782_v35, 4  ;;  %v4527_v29 = vshll.u32 %v9114_v10, 16 }
 0x115   :  { %15336 = vst [vmem:[#allocation30_spill] sm:$0xff] %v12541_v41  ;;  %v12553_v51 = vpop.f32.mrf.mxu1  ;;  %v3796_v24 = vor.u32 %v3795_v38, %v3792_v32  ;;  %v4542_v42 = vshrl.u32 %v9115_v0, 16  ;;  %v12560_v52 = vsel %vm10980_vm6, %v9131_v40, %v4131_v57  ;;  %v4545_v41 = vshll.u32 %v9115_v0, 16  ;;  %v12579_v0 = vld [vmem:[%s15270_s0 + $0x90] sm:$0xe] }
 0x116   :  { %15337 = vst [vmem:[#allocation31_spill] sm:$0xff] %v12553_v51  ;;  %10339 = vmatpush3.bf16.msra.mxu0 %v10613_v18  ;;  %v12556_v45 = vpop.f32.mrf.mxu0  ;;  %v12562_v12 = vrot.slane %v4524_v9, 5  ;;  %v9077_v51 = vld [vmem:[%s15270_s0 + $0x9c] sm:$0x1]  ;;  %v3804_v28 = vshrl.u32 %v9074_v46, 16  ;;  %v3788_v18 = vsel %vm10738_vm3, %v3783_v33, %v3787_v60  ;;  %v9145_v26 = vcombine.low %v12545_v54, %v12560_v52 }
 0x117   :  { %15338 = vst [vmem:[#allocation32_spill] sm:$0xff] %v12556_v45  ;;  %10376 = vmatprep.subr.bf16.mxu0 %v12537_v19  ;;  %v12568_v32 = vpop.f32.mrf.mxu1  ;;  %v3797_v10 = vrot.slane %v3796_v24, 4  ;;  %v12574_v35 = vrot.slane %v4527_v29, 6  ;;  %v12584_v9 = vld [vmem:[%s15270_s0 + $0x98] sm:$0xe]  ;;  %v15342_v60 = vcombine.low %v12421_v43, %v12437_v2  ;;  %v12592_v40 = vrot.slane %v4542_v42, 5 }
 0x118   :  { %15339 = vst [vmem:[#allocation33_spill] sm:$0xff] %v12568_v32  ;;  %15340 = vst [vmem:[#allocation34_spill] sm:$0xff] %v12584_v9  ;;  %v12586_v38 = vpop.f32.mrf.mxu0  ;;  %v12594_v54 = vrot.slane %v4545_v41, 6  ;;  %v3806_v57 = vrot.slane %v3804_v28, 4  ;;  %v3807_v33 = vshll.u32 %v9074_v46, 16  ;;  %v3813_v43 = vshll.u32 %v9075_v55, 16 }
 0x119   :  { %15341 = vst [vmem:[#allocation35_spill] sm:$0xff] %v12586_v38  ;;  %10305 = vmatmul.mubr.msk.bf16.gmra.mxu0 %vm319_vm2, %v15342_v60  ;;  %15343 = vst [vmem:[#allocation36_spill] sm:$0xff] %v12592_v40  ;;  %v9078_v24 = vld [vmem:[%s15270_s0 + $0xa0] sm:$0xf]  ;;  %v12599_v29 = vpop.f32.mrf.mxu1  ;;  %v3802_v52 = vsel %vm10738_vm3, %v3797_v10, %v3801_v22  ;;  %v3818_v2 = vshrl.u32 %v9076_v48, 16  ;;  %v3821_v60 = vshll.u32 %v9076_v48, 16 }
 0x11a   :  { %15344 = vst [vmem:[#allocation37_spill] sm:$0xff] %v12594_v54  ;;  %15345 = vst [vmem:[#allocation38_spill] sm:$0xff] %v12599_v29  ;;  %10308 = vmatprep.mubr.msk.bf16.mxu0 %vm319_vm2, %v9144_v49  ;;  %v9079_v41 = vld [vmem:[%s15270_s0 + $0xa4] sm:$0x1]  ;;  %v9080_v46 = vld [vmem:[%s15270_s0 + $0xa8] sm:$0xf]  ;;  %v12610_v28 = vpop.f32.mrf.mxu0  ;;  %v9091_v42 = vcombine.low %v3788_v18, %v3802_v52 }
 0x11b   :  { %15346 = vst [vmem:[#allocation39_spill] sm:$0xff] %v12610_v28  ;;  %v3809_v38 = vrot.slane %v3807_v33, 5  ;;  %v3827_v45 = vshll.u32 %v9077_v51, 16  ;;  %v9132_v49 = vrot.slane %v12579_v0, 9  ;;  %v12613_v29 = vpop.f32.mrf.mxu1  ;;  %v3815_v22 = vrot.slane %v3813_v43, 5 }
 0x11c   :  { %15347 = vst [vmem:[#allocation40_spill] sm:$0xff] %v12613_v29  ;;  %v3820_v10 = vrot.slane %v3818_v2, 4  ;;  %v3823_v48 = vrot.slane %v3821_v60, 5  ;;  %v4135_v32 = vrot.slane %v9075_v55, 5  ;;  %v12615_v44 = vpop.f32.mrf.mxu0  ;;  %10289 = vmatmul.mubr.msk.bf16.gmra.mxu1 %vm319_vm2, %v9091_v42  ;;  %v9133_v40 = vrot.slane %v12584_v9, 9 }
 0x11d   :  { %15348 = vst [vmem:[#allocation41_spill] sm:$0xff] %v12615_v44  ;;  %v3810_v8 = vor.u32 %v3809_v38, %v3806_v57  ;;  %v3829_v54 = vrot.slane %v3827_v45, 5  ;;  %v4139_v28 = vrot.slane %v9077_v51, 5  ;;  %v12619_v18 = vpop.f32.mrf.mxu1  ;;  %v9081_v43 = vld [vmem:[%s15270_s0 + $0xac] sm:$0x1]  ;;  %v3832_v55 = vshrl.u32 %v9078_v24, 16 }
 0x11e   :  { %15349 = vst [vmem:[#allocation42_spill] sm:$0xff] %v12619_v18  ;;  %v3824_v33 = vor.u32 %v3823_v48, %v3820_v10  ;;  %v4136_v52 = vsel %vm10980_vm6, %v9132_v49, %v4135_v32  ;;  %v3835_v2 = vshll.u32 %v9078_v24, 16  ;;  %v12626_v60 = vpop.f32.mrf.mxu0  ;;  %v3841_v38 = vshll.u32 %v9079_v41, 16  ;;  %v9118_v57 = vld [vmem:[%s15270_s0 + $0xa0] sm:$0xe] }
 0x11f   :  { %15350 = vst [vmem:[#allocation43_spill] sm:$0xff] %v12626_v60  ;;  %v3811_v42 = vrot.slane %v3810_v8, 4  ;;  %v4140_v45 = vsel %vm10980_vm6, %v9133_v40, %v4139_v28  ;;  %v3846_v51 = vshrl.u32 %v9080_v46, 16  ;;  %v12633_v10 = vpop.f32.mrf.mxu1  ;;  %v3834_v48 = vrot.slane %v3832_v55, 4  ;;  %v9119_v24 = vld [vmem:[%s15270_s0 + $0xa8] sm:$0xe] }
 0x120   :  { %15351 = vst [vmem:[#allocation44_spill] sm:$0xff] %v12633_v10  ;;  %v3825_v32 = vrot.slane %v3824_v33, 4  ;;  %v9146_v49 = vcombine.low %v4136_v52, %v4140_v45  ;;  %v3837_v44 = vrot.slane %v3835_v2, 5  ;;  %v12638_v8 = vpop.f32.mrf.mxu0  ;;  %v3843_v28 = vrot.slane %v3841_v38, 5 }
 0x121   :  { %15352 = vst [vmem:[#allocation45_spill] sm:$0xff] %v12638_v8  ;;  %10309 = vmatmul.mubr.msk.bf16.gmra.mxu0 %vm319_vm2, %v9145_v26  ;;  %v3816_v40 = vsel %vm10738_vm3, %v3811_v42, %v3815_v22  ;;  %v3848_v60 = vrot.slane %v3846_v51, 4  ;;  %v3849_v18 = vshll.u32 %v9080_v46, 16  ;;  %v12643_v29 = vpop.f32.mrf.mxu1  ;;  %v3855_v55 = vshll.u32 %v9081_v43, 16 }
 0x122   :  { %v3830_v33 = vsel %vm10738_vm3, %v3825_v32, %v3829_v54  ;;  %10312 = vmatprep.mubr.msk.bf16.mxu0 %vm319_vm2, %v9146_v49  ;;  %v3838_v52 = vor.u32 %v3837_v44, %v3834_v48  ;;  %v9134_v2 = vrot.slane %v9118_v57, 9  ;;  %v4143_v10 = vrot.slane %v9079_v41, 5  ;;  %v12650_v22 = vpop.f32.mrf.mxu0  ;;  %v9158_v41 = vld [vmem:[%s15270_s0 + $0x14] sm:$0x3] }
 0x123   :  { %v9092_v45 = vcombine.low %v3816_v40, %v3830_v33  ;;  %v3851_v8 = vrot.slane %v3849_v18, 5  ;;  %v9135_v26 = vrot.slane %v9119_v24, 9  ;;  %v12648_v9 = vpop.f32.mrf.mxu1  ;;  %15353 = vst [vmem:[#allocation46_spill] sm:$0xff] %v12650_v22  ;;  %v3857_v46 = vrot.slane %v3855_v55, 5 }
 0x124   :  { %v3839_v42 = vrot.slane %v3838_v52, 4  ;;  %v4147_v38 = vrot.slane %v9081_v43, 5  ;;  %v4596_v51 = vshrl.u32 %v9118_v57, 16  ;;  %v4144_v44 = vsel %vm10980_vm6, %v9134_v2, %v4143_v10  ;;  %v12675_v2 = vpop.f32.mrf.mxu0 }
 0x125   :  { %10292 = vmatprep.mubr.msk.bf16.mxu1 %vm319_vm2, %v9092_v45  ;;  %v3852_v54 = vor.u32 %v3851_v8, %v3848_v60  ;;  %v4599_v32 = vshll.u32 %v9118_v57, 16  ;;  %v4614_v49 = vshrl.u32 %v9119_v24, 16  ;;  %v12658_v18 = vpop.f32.mrf.mxu1  ;;  %v4617_v60 = vshll.u32 %v9119_v24, 16  ;;  %v9159_v57 = vld [vmem:[%s15270_s0 + $0x1c] sm:$0x3]  ;;  %15356 = vst [vmem:[#allocation49_spill] sm:$0xff] %v12675_v2 }
 0x126   :  { %15354 = vst [vmem:[#allocation47_spill] sm:$0xff] %v12658_v18  ;;  %v3844_v48 = vsel %vm10738_vm3, %v3839_v42, %v3843_v28  ;;  %v4148_v43 = vsel %vm10980_vm6, %v9135_v26, %v4147_v38  ;;  %v12664_v40 = vrot.slane %v4596_v51, 5  ;;  %v4344_v45 = vshrl.u32 %v12165_v50, 16  ;;  %v12694_v22 = vpop.f32.mrf.mxu0 }
 0x127   :  { %v3853_v10 = vrot.slane %v3852_v54, 4  ;;  %v9147_v8 = vcombine.low %v4144_v44, %v4148_v43  ;;  %v12669_v33 = vrot.slane %v4599_v32, 6  ;;  %v12671_v52 = vrot.slane %v4614_v49, 5  ;;  %v12673_v55 = vpop.f32.mrf.mxu1  ;;  %v9196_v44 = vld [vmem:[%s15270_s0 + $0x10] sm:$0xc]  ;;  %15358 = vst [vmem:[#allocation51_spill] sm:$0xff] %v12694_v22 }
 0x128   :  { %15355 = vst [vmem:[#allocation48_spill] sm:$0xff] %v12673_v55  ;;  %v12677_v28 = vrot.slane %v4617_v60, 6  ;;  %v4347_v24 = vshll.u32 %v12165_v50, 16  ;;  %v4353_v26 = vshrl.u32 %v9158_v41, 16  ;;  %v4356_v38 = vshll.u32 %v9158_v41, 16 }
 0x129   :  { %v3858_v42 = vsel %vm10738_vm3, %v3853_v10, %v3857_v46  ;;  %10313 = vmatmul.mubr.msk.bf16.gmra.mxu0 %vm319_vm2, %v9147_v8  ;;  %v4362_v51 = vshrl.u32 %v12185_v7, 16  ;;  %v4365_v54 = vshll.u32 %v12185_v7, 16  ;;  %v12689_v32 = vpop.f32.mrf.mxu1  ;;  %v4346_v43 = vrot.slane %v4344_v45, 5  ;;  %v9197_v46 = vld [vmem:[%s15270_s0 + $0x18] sm:$0xc] }
 0x12a   :  { %15357 = vst [vmem:[#allocation50_spill] sm:$0xff] %v12689_v32  ;;  %v9093_v49 = vcombine.low %v3844_v48, %v3858_v42  ;;  %v4349_v50 = vrot.slane %v4347_v24, 6  ;;  %v4355_v60 = vrot.slane %v4353_v26, 5  ;;  %v4358_v10 = vrot.slane %v4356_v38, 6  ;;  %v9160_v42 = vld [vmem:[%s15270_s0 + $0x24] sm:$0x3] }
 0x12b   :  { %v4364_v8 = vrot.slane %v4362_v51, 5  ;;  %v4367_v62 = vrot.slane %v4365_v54, 6  ;;  %v4371_v2 = vshrl.u32 %v9159_v57, 16  ;;  %v4374_v55 = vshll.u32 %v9159_v57, 16  ;;  %v12700_v38 = vpop.f32.mrf.mxu1 }
 0x12c   :  { %10293 = vmatmul.mubr.msk.bf16.gmra.mxu1 %vm319_vm2, %v9093_v49  ;;  %v4350_v7 = vor.u32 %v4349_v50, %v4346_v43  ;;  %v9212_v18 = vrot.slane %v9196_v44, 10  ;;  %v4859_v32 = vrot.slane %v9158_v41, 6  ;;  %v4359_v48 = vor.u32 %v4358_v10, %v4355_v60 }
 0x12d   :  { %v4368_v45 = vor.u32 %v4367_v62, %v4364_v8  ;;  %v4373_v24 = vrot.slane %v4371_v2, 5  ;;  %v9213_v26 = vrot.slane %v9197_v46, 10  ;;  %v4376_v54 = vrot.slane %v4374_v55, 6  ;;  %v12708_v44 = vpop.f32.mrf.mxu0  ;;  %v9198_v46 = vld [vmem:[%s15270_s0 + $0x20] sm:$0xc] }
 0x12e   :  { %v4351_v51 = vrot.slane %v4350_v7, 4  ;;  %v4860_v22 = vsel %vm11219_vm11, %v9212_v18, %v4859_v32  ;;  %v4863_v49 = vrot.slane %v9159_v57, 6  ;;  %v560_v41 = vadd.f32 %v12326_v15, %v12023_v63  ;;  %v9161_v18 = vld [vmem:[%s15270_s0 + $0x2c] sm:$0x3] }
 0x12f   :  { %v4369_v43 = vrot.slane %v4368_v45, 4  ;;  %v4380_v62 = vshrl.u32 %v12247_v21, 16  ;;  %v4383_v2 = vshll.u32 %v12247_v21, 16  ;;  %v4377_v60 = vor.u32 %v4376_v54, %v4373_v24  ;;  %v12733_v54 = vpop.f32.mrf.mxu0 }
 0x130   :  { %v4360_v50 = vsel %vm11229_vm12, %v4351_v51, %v4359_v48  ;;  %v4864_v55 = vsel %vm11219_vm11, %v9213_v26, %v4863_v49  ;;  %v4389_v57 = vshrl.u32 %v9160_v42, 16  ;;  %v12718_v63 = vadd.f32 %v12266_v39, %v560_v41  ;;  %v12723_v10 = vpop.f32.mrf.mxu1  ;;  %v9199_v51 = vld [vmem:[%s15270_s0 + $0x28] sm:$0xc]  ;;  %15359 = vst [vmem:[#allocation52_spill] sm:$0xff] %v12733_v54 }
 0x131   :  { %v9232_v32 = vcombine.low %v4860_v22, %v4864_v55  ;;  %v4382_v15 = vrot.slane %v4380_v62, 5  ;;  %v4385_v21 = vrot.slane %v4383_v2, 6  ;;  %v4378_v8 = vsel %vm11229_vm12, %v4369_v43, %v4377_v60 }
 0x132   :  { %v4391_v7 = vrot.slane %v4389_v57, 5  ;;  %v4392_v48 = vshll.u32 %v9160_v42, 16  ;;  %v4398_v45 = vshrl.u32 %v12256_v36, 16  ;;  %v9178_v24 = vcombine.low %v4360_v50, %v4378_v8  ;;  %v12736_v57 = vpop.f32.mrf.mxu1 }
 0x133   :  { %10340 = vmatprep.mubr.msk.bf16.mxu0 %vm319_vm2, %v9232_v32  ;;  %v4386_v39 = vor.u32 %v4385_v21, %v4382_v15  ;;  %v4401_v22 = vshll.u32 %v12256_v36, 16  ;;  %v4407_v26 = vshrl.u32 %v9161_v18, 16  ;;  %v4410_v43 = vshll.u32 %v9161_v18, 16 }
 0x134   :  { %v4394_v49 = vrot.slane %v4392_v48, 6  ;;  %v4400_v41 = vrot.slane %v4398_v45, 5  ;;  %v9214_v62 = vrot.slane %v9198_v46, 10  ;;  %10320 = vmatprep.mubr.msk.bf16.mxu1 %vm319_vm2, %v9178_v24  ;;  %v4867_v55 = vrot.slane %v9160_v42, 6  ;;  %v9162_v42 = vld [vmem:[%s15270_s0 + $0x34] sm:$0x3]  ;;  %v12747_v45 = vpop.f32.mrf.mxu0 }
 0x135   :  { %v4387_v2 = vrot.slane %v4386_v39, 4  ;;  %v4403_v50 = vrot.slane %v4401_v22, 6  ;;  %v4409_v60 = vrot.slane %v4407_v26, 5  ;;  %v4412_v32 = vrot.slane %v4410_v43, 6  ;;  %v9163_v22 = vld [vmem:[%s15270_s0 + $0x3c] sm:$0x3] }
 0x136   :  { %v4395_v36 = vor.u32 %v4394_v49, %v4391_v7  ;;  %v9215_v15 = vrot.slane %v9199_v51, 10  ;;  %v4871_v21 = vrot.slane %v9161_v18, 6  ;;  %v4868_v54 = vsel %vm11219_vm11, %v9214_v62, %v4867_v55  ;;  %v10617_v26 = vld [vmem:[%s15269_s1 + $0x100] sm:$0xff]   ;;  %v12767_v51 = vpop.f32.mrf.mxu1  ;;  %v12782_v62 = vpop.f32.mrf.mxu0  ;;  %v9201_v55 = vld [vmem:[%s15270_s0 + $0x38] sm:$0xc] }
 0x137   :  { %v4404_v8 = vor.u32 %v4403_v50, %v4400_v41  ;;  %v552_v48 = vadd.f32 %v12338_v53, %v12050_v4  ;;  %v563_v46 = vadd.f32 %v12359_v27, %v12085_v56  ;;  %v4413_v18 = vor.u32 %v4412_v32, %v4409_v60 }
 0x138   :  { %v4396_v7 = vsel %vm11229_vm12, %v4387_v2, %v4395_v36  ;;  %v4872_v24 = vsel %vm11219_vm11, %v9215_v15, %v4871_v21  ;;  %v555_v39 = vadd.f32 %v12378_v1, %v12140_v20  ;;  %v4416_v1 = vshrl.u32 %v12311_v25, 16 }
 0x139   :  { %v4405_v4 = vrot.slane %v4404_v8, 4  ;;  %v9233_v53 = vcombine.low %v4868_v54, %v4872_v24  ;;  %v12756_v56 = vadd.f32 %v12291_v11, %v552_v48  ;;  %v12759_v27 = vadd.f32 %v12313_v3, %v563_v46  ;;  %v12796_v8 = vpop.f32.mrf.mxu1  ;;  %v12802_v24 = vld [vmem:[%s15270_s0 + $0x44] sm:$0x3] }
 0x13a   :  { %v12770_v20 = vadd.f32 %v12332_v17, %v555_v39  ;;  %v4419_v11 = vshll.u32 %v12311_v25, 16  ;;  %v4425_v54 = vshrl.u32 %v9162_v42, 16  ;;  %v4428_v49 = vshll.u32 %v9162_v42, 16  ;;  %v9200_v17 = vld [vmem:[%s15270_s0 + $0x30] sm:$0xc] }
 0x13b   :  { %v4414_v3 = vsel %vm11229_vm12, %v4405_v4, %v4413_v18  ;;  %10341 = vmatmul.mubr.msk.bf16.vlgmr.msra.gmra.mxu0 %vm319_vm2, %v9233_v53  ;;  %v4434_v41 = vshrl.u32 %v12324_v34, 16  ;;  %v4437_v43 = vshll.u32 %v12324_v34, 16  ;;  %v4418_v25 = vrot.slane %v4416_v1, 5  ;;  %v10616_v34 = vld [vmem:[%s15269_s1 + $0xf0] sm:$0xff]  }
 0x13c   :  { %v9179_v2 = vcombine.low %v4396_v7, %v4414_v3  ;;  %10377 = vmatpush3.bf16.msra.mxu0 %v12537_v19  ;;  %v4421_v50 = vrot.slane %v4419_v11, 6  ;;  %v4427_v60 = vrot.slane %v4425_v54, 5  ;;  %v4430_v36 = vrot.slane %v4428_v49, 6  ;;  %v12794_v19 = vld [vmem:[%s15269_s1 + $0x128] sm:$0xff]  }
 0x13d   :  { %v4436_v32 = vrot.slane %v4434_v41, 5  ;;  %v4439_v15 = vrot.slane %v4437_v43, 6  ;;  %v4443_v21 = vshrl.u32 %v9163_v22, 16  ;;  %10378 = vmatprep.subr.bf16.mxu0 %v10617_v26  ;;  %v4446_v46 = vshll.u32 %v9163_v22, 16  ;;  %v12805_v11 = vpop.f32.mrf.mxu0 }
 0x13e   :  { %10321 = vmatmul.mubr.msk.bf16.vlgmr.msra.gmra.mxu1 %vm319_vm2, %v9179_v2  ;;  %v4422_v48 = vor.u32 %v4421_v50, %v4418_v25  ;;  %v9216_v7 = vrot.slane %v9200_v17, 10  ;;  %v4875_v18 = vrot.slane %v9162_v42, 6  ;;  %v4431_v39 = vor.u32 %v4430_v36, %v4427_v60  ;;  %v12812_v42 = vld [vmem:[%s15269_s1 + $0x118] sm:$0xff]  }
 0x13f   :  { %10357 = vmatpush3.bf16.msra.mxu1 %v12459_v47  ;;  %v4440_v4 = vor.u32 %v4439_v15, %v4436_v32  ;;  %v4445_v53 = vrot.slane %v4443_v21, 5  ;;  %v9217_v1 = vrot.slane %v9201_v55, 10  ;;  %v4448_v3 = vrot.slane %v4446_v46, 6  ;;  %v9202_v15 = vld [vmem:[%s15270_s0 + $0x40] sm:$0xc] }
 0x140   :  { %v4423_v54 = vrot.slane %v4422_v48, 4  ;;  %v4876_v49 = vsel %vm11219_vm11, %v9216_v7, %v4875_v18  ;;  %v4879_v41 = vrot.slane %v9163_v22, 6  ;;  %10358 = vmatprep.subr.bf16.mxu1 %v10616_v34  ;;  %10379 = vmatpush3.bf16.msra.mxu0 %v10617_v26  ;;  %v576_v43 = vadd.f32 %v12398_v61, %v12190_v58  ;;  %v12819_v25 = vpop.f32.mrf.mxu1  ;;  %v12821_v22 = vpop.f32.mrf.mxu0  ;;  %v9165_v58 = vld [vmem:[%s15270_s0 + $0x4c] sm:$0x3] }
 0x141   :  { %v4441_v47 = vrot.slane %v4440_v4, 4  ;;  %v4452_v17 = vshrl.u32 %v12376_v5, 16  ;;  %v4455_v2 = vshll.u32 %v12376_v5, 16  ;;  %10416 = vmatprep.subr.bf16.mxu0 %v12794_v19  ;;  %v4449_v50 = vor.u32 %v4448_v3, %v4445_v53 }
 0x142   :  { %v4432_v26 = vsel %vm11229_vm12, %v4423_v54, %v4431_v39  ;;  %v4880_v60 = vsel %vm11219_vm11, %v9217_v1, %v4879_v41  ;;  %v4461_v61 = vshrl.u32 %v12802_v24, 16  ;;  %v12832_v55 = vadd.f32 %v12349_v14, %v576_v43  ;;  %v12837_v21 = vpop.f32.mrf.mxu1  ;;  %v12844_v14 = vpop.f32.mrf.mxu0  ;;  %v9203_v1 = vld [vmem:[%s15270_s0 + $0x48] sm:$0xc] }
 0x143   :  { %v9234_v5 = vcombine.low %v4876_v49, %v4880_v60  ;;  %v4454_v36 = vrot.slane %v4452_v17, 5  ;;  %v4457_v32 = vrot.slane %v4455_v2, 6  ;;  %10359 = vmatpush3.bf16.msra.mxu1 %v10616_v34  ;;  %v4450_v48 = vsel %vm11229_vm12, %v4441_v47, %v4449_v50  ;;  %15360 = vst [vmem:[#allocation53_spill] sm:$0xff] %v12844_v14 }
 0x144   :  { %v4463_v46 = vrot.slane %v4461_v61, 5  ;;  %v4464_v7 = vshll.u32 %v12802_v24, 16  ;;  %v4470_v18 = vshrl.u32 %v12391_v37, 16  ;;  %10396 = vmatprep.subr.bf16.mxu1 %v12812_v42  ;;  %v9180_v39 = vcombine.low %v4432_v26, %v4450_v48  ;;  %v12851_v54 = vpop.f32.mrf.mxu1 }
 0x145   :  { %10344 = vmatprep.mubr.msk.bf16.mxu0 %vm319_vm2, %v9234_v5  ;;  %v4458_v4 = vor.u32 %v4457_v32, %v4454_v36  ;;  %v4473_v34 = vshll.u32 %v12391_v37, 16  ;;  %v4479_v53 = vshrl.u32 %v9165_v58, 16  ;;  %v4482_v41 = vshll.u32 %v9165_v58, 16  ;;  %v12857_v36 = vpop.f32.mrf.mxu0 }
 0x146   :  { %v4466_v3 = vrot.slane %v4464_v7, 6  ;;  %v4472_v49 = vrot.slane %v4470_v18, 5  ;;  %v9218_v47 = vrot.slane %v9202_v15, 10  ;;  %10324 = vmatprep.mubr.msk.bf16.mxu1 %vm319_vm2, %v9180_v39  ;;  %v4883_v26 = vrot.slane %v12802_v24, 6  ;;  %v12855_v50 = vpop.f32.mrf.mxu1  ;;  %15361 = vst [vmem:[#allocation54_spill] sm:$0xff] %v12857_v36  ;;  %v15362_v7 = vld [vmem:[#allocation9_spill] sm:$0xff] }
 0x147   :  { %v4459_v43 = vrot.slane %v4458_v4, 4  ;;  %v4475_v17 = vrot.slane %v4473_v34, 6  ;;  %v4481_v2 = vrot.slane %v4479_v53, 5  ;;  %v4484_v60 = vrot.slane %v4482_v41, 6  ;;  %v15363_v18 = vld [vmem:[#allocation20_spill] sm:$0xff]  ;;  %v15365_v53 = vld [vmem:[#allocation11_spill] sm:$0xff] }
 0x148   :  { %v4467_v37 = vor.u32 %v4466_v3, %v4463_v46  ;;  %v9219_v61 = vrot.slane %v9203_v1, 10  ;;  %v4887_v5 = vrot.slane %v9165_v58, 6  ;;  %v4884_v48 = vsel %vm11219_vm11, %v9218_v47, %v4883_v26  ;;  %v9166_v24 = vld [vmem:[%s15270_s0 + $0x74] sm:$0x3]  ;;  %v12868_v46 = vpop.f32.mrf.mxu1  ;;  %v15366_v1 = vld [vmem:[#allocation22_spill] sm:$0xff]  ;;  %v15367_v41 = vld [vmem:[#allocation15_spill] sm:$0xff] }
 0x149   :  { %v4476_v32 = vor.u32 %v4475_v17, %v4472_v49  ;;  %v568_v15 = vadd.f32 %v12417_v59, %v12217_v6  ;;  %v579_v39 = vadd.f32 %v15363_v18, %v15362_v7  ;;  %15364 = vst [vmem:[#allocation9_spill] sm:$0xff] %v12868_v46  ;;  %v4485_v4 = vor.u32 %v4484_v60, %v4481_v2  ;;  %v9167_v6 = vld [vmem:[%s15270_s0 + $0x7c] sm:$0x3]  ;;  %v15368_v17 = vld [vmem:[#allocation16_spill] sm:$0xff] }
 0x14a   :  { %v4468_v58 = vsel %vm11229_vm12, %v4459_v43, %v4467_v37  ;;  %v4888_v34 = vsel %vm11219_vm11, %v9219_v61, %v4887_v5  ;;  %v571_v3 = vadd.f32 %v15366_v1, %v15365_v53  ;;  %v9204_v43 = vld [vmem:[%s15270_s0 + $0x70] sm:$0xc]  ;;  %v12888_v2 = vpop.f32.mrf.mxu1  ;;  %v15370_v37 = vld [vmem:[#allocation17_spill] sm:$0xff]  ;;  %v15371_v61 = vld [vmem:[#allocation18_spill] sm:$0xff]  ;;  %v4509_v53 = vshll.u32 %v12454_v30, 16 }
 0x14b   :  { %v4477_v59 = vrot.slane %v4476_v32, 4  ;;  %v9235_v49 = vcombine.low %v4884_v48, %v4888_v34  ;;  %v12880_v47 = vadd.f32 %v15367_v41, %v568_v15  ;;  %v12883_v26 = vadd.f32 %v15368_v17, %v579_v39  ;;  %15369 = vst [vmem:[#allocation20_spill] sm:$0xff] %v12888_v2  ;;  %v9205_v15 = vld [vmem:[%s15270_s0 + $0x78] sm:$0xc]  ;;  %v12898_v7 = vpop.f32.mrf.mxu0 }
 0x14c   :  { %v12891_v60 = vadd.f32 %v15370_v37, %v571_v3  ;;  %v4488_v5 = vshrl.u32 %v15371_v61, 16  ;;  %v4491_v32 = vshll.u32 %v15371_v61, 16  ;;  %v4497_v48 = vshrl.u32 %v9166_v24, 16  ;;  %15372 = vst [vmem:[#allocation11_spill] sm:$0xff] %v12898_v7  ;;  %v12905_v1 = vpop.f32.mrf.mxu1 }
 0x14d   :  { %v4486_v18 = vsel %vm11229_vm12, %v4477_v59, %v4485_v4  ;;  %10345 = vmatmul.mubr.msk.bf16.gmra.mxu0 %vm319_vm2, %v9235_v49  ;;  %v4500_v39 = vshll.u32 %v9166_v24, 16  ;;  %v4506_v34 = vshrl.u32 %v12454_v30, 16  ;;  %15373 = vst [vmem:[#allocation22_spill] sm:$0xff] %v12905_v1  ;;  %v12907_v61 = vpop.f32.mrf.mxu0  ;;  %v4511_v46 = vrot.slane %v4509_v53, 6  ;;  %v15405_v1 = vld [vmem:[#allocation10_spill] sm:$0xff] }
 0x14e   :  { %v9181_v3 = vcombine.low %v4468_v58, %v4486_v18  ;;  %v4490_v41 = vrot.slane %v4488_v5, 5  ;;  %v4493_v17 = vrot.slane %v4491_v32, 6  ;;  %v4499_v37 = vrot.slane %v4497_v48, 5  ;;  %15374 = vst [vmem:[#allocation15_spill] sm:$0xff] %v12907_v61  ;;  %v12909_v4 = vpop.f32.mrf.mxu1  ;;  %v9168_v58 = vld [vmem:[%s15270_s0 + $0x84] sm:$0x3] }
 0x14f   :  { %v4502_v2 = vrot.slane %v4500_v39, 6  ;;  %v4508_v7 = vrot.slane %v4506_v34, 5  ;;  %v4515_v36 = vshrl.u32 %v9167_v6, 16  ;;  %15375 = vst [vmem:[#allocation16_spill] sm:$0xff] %v12909_v4  ;;  %v4518_v49 = vshll.u32 %v9167_v6, 16  ;;  %v12915_v5 = vpop.f32.mrf.mxu0 }
 0x150   :  { %10325 = vmatmul.mubr.msk.bf16.gmra.mxu1 %vm319_vm2, %v9181_v3  ;;  %v4494_v59 = vor.u32 %v4493_v17, %v4490_v41  ;;  %v9220_v14 = vrot.slane %v9204_v43, 10  ;;  %v4891_v30 = vrot.slane %v9166_v24, 6  ;;  %15376 = vst [vmem:[#allocation17_spill] sm:$0xff] %v12915_v5  ;;  %v9221_v39 = vrot.slane %v9205_v15, 10  ;;  %v12917_v34 = vpop.f32.mrf.mxu1  ;;  %v9169_v24 = vld [vmem:[%s15270_s0 + $0x8c] sm:$0x3] }
 0x151   :  { %v4503_v32 = vor.u32 %v4502_v2, %v4499_v37  ;;  %v4512_v48 = vor.u32 %v4511_v46, %v4508_v7  ;;  %v4517_v18 = vrot.slane %v4515_v36, 5  ;;  %15377 = vst [vmem:[#allocation18_spill] sm:$0xff] %v12917_v34  ;;  %v4520_v4 = vrot.slane %v4518_v49, 6  ;;  %v12924_v43 = vpop.f32.mrf.mxu0  ;;  %v15379_v5 = vld [vmem:[#allocation5_spill] sm:$0xff]  ;;  %v9206_v15 = vld [vmem:[%s15270_s0 + $0x80] sm:$0xc] }
 0x152   :  { %v4495_v53 = vrot.slane %v4494_v59, 4  ;;  %v4892_v3 = vsel %vm11219_vm11, %v9220_v14, %v4891_v30  ;;  %v4895_v41 = vrot.slane %v9167_v6, 6  ;;  %15378 = vst [vmem:[#allocation55_spill] sm:$0xff] %v12924_v43  ;;  %v592_v46 = vadd.f32 %v12481_v23, %v15379_v5  ;;  %v12933_v14 = vpop.f32.mrf.mxu1  ;;  %v15381_v23 = vld [vmem:[#allocation19_spill] sm:$0xff] }
 0x153   :  { %v4513_v17 = vrot.slane %v4512_v48, 4  ;;  %v4530_v36 = vor.u32 %v12574_v35, %v12562_v12  ;;  %v4533_v2 = vshrl.u32 %v9168_v58, 16  ;;  %15380 = vst [vmem:[#allocation5_spill] sm:$0xff] %v12933_v14  ;;  %v4521_v7 = vor.u32 %v4520_v4, %v4517_v18  ;;  %v9207_v5 = vld [vmem:[%s15270_s0 + $0x88] sm:$0xc]  ;;  %v15383_v18 = vld [vmem:[#allocation36_spill] sm:$0xff] }
 0x154   :  { %v4504_v6 = vsel %vm11229_vm12, %v4495_v53, %v4503_v32  ;;  %v4896_v37 = vsel %vm11219_vm11, %v9221_v39, %v4895_v41  ;;  %v4536_v59 = vshll.u32 %v9168_v58, 16  ;;  %v12940_v30 = vadd.f32 %v15381_v23, %v592_v46  ;;  %v12945_v48 = vpop.f32.mrf.mxu1  ;;  %v15384_v53 = vld [vmem:[#allocation37_spill] sm:$0xff] }
 0x155   :  { %v9236_v49 = vcombine.low %v4892_v3, %v4896_v37  ;;  %v4531_v12 = vrot.slane %v4530_v36, 4  ;;  %v4535_v35 = vrot.slane %v4533_v2, 5  ;;  %15382 = vst [vmem:[#allocation19_spill] sm:$0xff] %v12945_v48  ;;  %v4522_v32 = vsel %vm11229_vm12, %v4513_v17, %v4521_v7  ;;  %v12951_v3 = vpop.f32.mrf.mxu0  ;;  %v12959_v17 = vld [vmem:[%s15270_s0 + $0x94] sm:$0x3] }
 0x156   :  { %v4538_v4 = vrot.slane %v4536_v59, 6  ;;  %v4548_v39 = vor.u32 %v15384_v53, %v15383_v18  ;;  %v4551_v41 = vshrl.u32 %v9169_v24, 16  ;;  %15385 = vst [vmem:[#allocation36_spill] sm:$0xff] %v12951_v3  ;;  %v9182_v46 = vcombine.low %v4504_v6, %v4522_v32  ;;  %v12954_v23 = vpop.f32.mrf.mxu1  ;;  %v15388_v59 = vld [vmem:[#allocation6_spill] sm:$0xff]  ;;  %v15391_v18 = vld [vmem:[#allocation7_spill] sm:$0xff] }
 0x157   :  { %10348 = vmatprep.mubr.msk.bf16.mxu0 %vm319_vm2, %v9236_v49  ;;  %v4554_v36 = vshll.u32 %v9169_v24, 16  ;;  %v9222_v2 = vrot.slane %v9206_v15, 10  ;;  %v4899_v37 = vrot.slane %v9168_v58, 6  ;;  %15386 = vst [vmem:[#allocation37_spill] sm:$0xff] %v12954_v23  ;;  %v9223_v43 = vrot.slane %v9207_v5, 10  ;;  %v12961_v7 = vpop.f32.mrf.mxu0  ;;  %v15389_v49 = vld [vmem:[#allocation25_spill] sm:$0xff] }
 0x158   :  { %v4539_v14 = vor.u32 %v4538_v4, %v4535_v35  ;;  %v4549_v48 = vrot.slane %v4548_v39, 4  ;;  %v4553_v34 = vrot.slane %v4551_v41, 5  ;;  %15387 = vst [vmem:[#allocation56_spill] sm:$0xff] %v12961_v7  ;;  %10328 = vmatprep.mubr.msk.bf16.mxu1 %vm319_vm2, %v9182_v46  ;;  %v4903_v58 = vrot.slane %v9169_v24, 6  ;;  %v9171_v5 = vld [vmem:[%s15270_s0 + $0x9c] sm:$0x3]  ;;  %v12971_v32 = vpop.f32.mrf.mxu1 }
 0x159   :  { %v4556_v6 = vrot.slane %v4554_v36, 6  ;;  %v4900_v15 = vsel %vm11219_vm11, %v9222_v2, %v4899_v37  ;;  %v584_v35 = vadd.f32 %v15389_v49, %v15388_v59  ;;  %15390 = vst [vmem:[#allocation6_spill] sm:$0xff] %v12971_v32  ;;  %v15392_v53 = vld [vmem:[#allocation27_spill] sm:$0xff]  ;;  %v15393_v41 = vld [vmem:[#allocation8_spill] sm:$0xff]  ;;  %v15394_v46 = vld [vmem:[#allocation29_spill] sm:$0xff]  ;;  %v4560_v24 = vshrl.u32 %v12579_v0, 16  ;;  %v12980_v2 = vpop.f32.mrf.mxu0 }
 0x15a   :  { %v4540_v4 = vsel %vm11229_vm12, %v4531_v12, %v4539_v14  ;;  %v595_v39 = vadd.f32 %v15392_v53, %v15391_v18  ;;  %v587_v36 = vadd.f32 %v15394_v46, %v15393_v41  ;;  %15395 = vst [vmem:[#allocation25_spill] sm:$0xff] %v12980_v2  ;;  %v4904_v59 = vsel %vm11219_vm11, %v9223_v43, %v4903_v58  ;;  %v15396_v49 = vld [vmem:[#allocation21_spill] sm:$0xff]  ;;  %v9208_v14 = vld [vmem:[%s15270_s0 + $0x90] sm:$0xc]  ;;  %v12991_v12 = vpop.f32.mrf.mxu1  ;;  %v15398_v53 = vld [vmem:[#allocation23_spill] sm:$0xff] }
 0x15b   :  { %v4557_v37 = vor.u32 %v4556_v6, %v4553_v34  ;;  %v12985_v7 = vadd.f32 %v15396_v49, %v584_v35  ;;  %v4563_v32 = vshll.u32 %v12579_v0, 16  ;;  %15397 = vst [vmem:[#allocation7_spill] sm:$0xff] %v12991_v12  ;;  %v9237_v18 = vcombine.low %v4900_v15, %v4904_v59  ;;  %v15399_v46 = vld [vmem:[#allocation24_spill] sm:$0xff]  ;;  %v12999_v43 = vpop.f32.mrf.mxu0  ;;  %v9209_v15 = vld [vmem:[%s15270_s0 + $0x98] sm:$0xc] }
 0x15c   :  { %v12994_v41 = vadd.f32 %v15398_v53, %v595_v39  ;;  %v12997_v34 = vadd.f32 %v15399_v46, %v587_v36  ;;  %v4562_v6 = vrot.slane %v4560_v24, 5  ;;  %15400 = vst [vmem:[#allocation27_spill] sm:$0xff] %v12999_v43  ;;  %v4569_v35 = vshrl.u32 %v12959_v17, 16  ;;  %v13008_v39 = vpop.f32.mrf.mxu1  ;;  %v15402_v36 = vld [vmem:[#allocation34_spill] sm:$0xff] }
 0x15d   :  { %v4558_v58 = vsel %vm11229_vm12, %v4549_v48, %v4557_v37  ;;  %v4565_v0 = vrot.slane %v4563_v32, 6  ;;  %v4572_v49 = vshll.u32 %v12959_v17, 16  ;;  %15401 = vst [vmem:[#allocation8_spill] sm:$0xff] %v13008_v39  ;;  %10349 = vmatmul.mubr.msk.bf16.gmra.mxu0 %vm319_vm2, %v9237_v18  ;;  %v4578_v24 = vshrl.u32 %v15402_v36, 16  ;;  %v9172_v43 = vld [vmem:[%s15270_s0 + $0xa4] sm:$0x3] }
 0x15e   :  { %v9183_v59 = vcombine.low %v4540_v4, %v4558_v58  ;;  %v4581_v53 = vshll.u32 %v15402_v36, 16  ;;  %v4587_v46 = vshrl.u32 %v9171_v5, 16  ;;  %v4571_v32 = vrot.slane %v4569_v35, 5  ;;  %v13016_v2 = vpop.f32.mrf.mxu1  ;;  %v13019_v23 = vpop.f32.mrf.mxu0  ;;  %v9173_v35 = vld [vmem:[%s15270_s0 + $0xac] sm:$0x3] }
 0x15f   :  { %v4566_v48 = vor.u32 %v4565_v0, %v4562_v6  ;;  %v4574_v37 = vrot.slane %v4572_v49, 6  ;;  %v4590_v12 = vshll.u32 %v9171_v5, 16  ;;  %15403 = vst [vmem:[#allocation29_spill] sm:$0xff] %v13016_v2  ;;  %v4580_v4 = vrot.slane %v4578_v24, 5  ;;  %15404 = vst [vmem:[#allocation21_spill] sm:$0xff] %v13019_v23  ;;  %v15432_v23 = vld [vmem:[#allocation39_spill] sm:$0xff] }
 0x160   :  { %10329 = vmatmul.mubr.msk.bf16.gmra.mxu1 %vm319_vm2, %v9183_v59  ;;  %v4583_v58 = vrot.slane %v4581_v53, 6  ;;  %v4589_v18 = vrot.slane %v4587_v46, 5  ;;  %v9224_v39 = vrot.slane %v9208_v14, 10  ;;  %v4907_v0 = vrot.slane %v12959_v17, 6  ;;  %v15406_v59 = vld [vmem:[#allocation31_spill] sm:$0xff]  ;;  %v13030_v53 = vpop.f32.mrf.mxu0 }
 0x161   :  { %v4567_v36 = vrot.slane %v4566_v48, 4  ;;  %v4575_v3 = vor.u32 %v4574_v37, %v4571_v32  ;;  %v4592_v6 = vrot.slane %v4590_v12, 6  ;;  %v9225_v61 = vrot.slane %v9209_v15, 10  ;;  %v9210_v14 = vld [vmem:[%s15270_s0 + $0xa0] sm:$0xc]  ;;  %15407 = vst [vmem:[#allocation23_spill] sm:$0xff] %v13030_v53 }
 0x162   :  { %v4584_v49 = vor.u32 %v4583_v58, %v4580_v4  ;;  %v4911_v2 = vrot.slane %v9171_v5, 6  ;;  %v608_v24 = vadd.f32 %v15406_v59, %v15405_v1  ;;  %v4908_v46 = vsel %vm11219_vm11, %v9224_v39, %v4907_v0  ;;  %v9211_v1 = vld [vmem:[%s15270_s0 + $0xa8] sm:$0xc]  ;;  %v13041_v5 = vpop.f32.mrf.mxu1  ;;  %v15409_v37 = vld [vmem:[#allocation26_spill] sm:$0xff]  ;;  %v13048_v58 = vpop.f32.mrf.mxu0 }
 0x163   :  { %v4576_v12 = vsel %vm11229_vm12, %v4567_v36, %v4575_v3  ;;  %v4593_v17 = vor.u32 %v4592_v6, %v4589_v18  ;;  %v4602_v15 = vor.u32 %v12669_v33, %v12664_v40  ;;  %15408 = vst [vmem:[#allocation24_spill] sm:$0xff] %v13041_v5  ;;  %v4605_v3 = vshrl.u32 %v9172_v43, 16  ;;  %15410 = vst [vmem:[#allocation34_spill] sm:$0xff] %v13048_v58 }
 0x164   :  { %v4585_v48 = vrot.slane %v4584_v49, 4  ;;  %v4912_v32 = vsel %vm11219_vm11, %v9225_v61, %v4911_v2  ;;  %v13046_v4 = vadd.f32 %v15409_v37, %v608_v24  ;;  %v4608_v36 = vshll.u32 %v9172_v43, 16  ;;  %v13054_v59 = vpop.f32.mrf.mxu0 }
 0x165   :  { %v9238_v39 = vcombine.low %v4908_v46, %v4912_v32  ;;  %v4603_v18 = vrot.slane %v4602_v15, 4  ;;  %v4620_v40 = vor.u32 %v12677_v28, %v12671_v52  ;;  %v4607_v6 = vrot.slane %v4605_v3, 5  ;;  %15411 = vst [vmem:[#allocation10_spill] sm:$0xff] %v13054_v59  ;;  %v9288_v46 = vld [vmem:[%s15270_s0 + $0x18] sm:$0xf]  ;;  %v13060_v15 = vpop.f32.mrf.mxu1 }
 0x166   :  { %v4594_v33 = vsel %vm11229_vm12, %v4585_v48, %v4593_v17  ;;  %v4623_v0 = vshrl.u32 %v9173_v35, 16  ;;  %v4626_v49 = vshll.u32 %v9173_v35, 16  ;;  %v4610_v2 = vrot.slane %v4608_v36, 6  ;;  %15412 = vst [vmem:[#allocation31_spill] sm:$0xff] %v13060_v15  ;;  %v15415_v36 = vld [vmem:[#allocation13_spill] sm:$0xff] }
 0x167   :  { %v9184_v61 = vcombine.low %v4576_v12, %v4594_v33  ;;  %10352 = vmatprep.mubr.msk.bf16.mxu0 %vm319_vm2, %v9238_v39  ;;  %v4621_v24 = vrot.slane %v4620_v40, 4  ;;  %v9226_v37 = vrot.slane %v9210_v14, 10  ;;  %v4915_v17 = vrot.slane %v9172_v43, 6  ;;  %v15413_v12 = vld [vmem:[#allocation12_spill] sm:$0xff]  ;;  %v15414_v33 = vld [vmem:[#allocation33_spill] sm:$0xff]  ;;  %v15416_v40 = vld [vmem:[#allocation38_spill] sm:$0xff]  ;;  %v13067_v5 = vpop.f32.mrf.mxu1 }
 0x168   :  { %v4625_v52 = vrot.slane %v4623_v0, 5  ;;  %v4628_v28 = vrot.slane %v4626_v49, 6  ;;  %v9227_v48 = vrot.slane %v9211_v1, 10  ;;  %v4611_v32 = vor.u32 %v4610_v2, %v4607_v6  ;;  %15417 = vst [vmem:[#allocation26_spill] sm:$0xff] %v13067_v5  ;;  %v15418_v0 = vld [vmem:[#allocation14_spill] sm:$0xff]  ;;  %v15419_v49 = vld [vmem:[#allocation40_spill] sm:$0xff] }
 0x169   :  { %10332 = vmatprep.mubr.msk.bf16.mxu1 %vm319_vm2, %v9184_v61  ;;  %v4919_v3 = vrot.slane %v9173_v35, 6  ;;  %v600_v39 = vadd.f32 %v15414_v33, %v15413_v12  ;;  %v611_v14 = vadd.f32 %v15416_v40, %v15415_v36  ;;  %v4916_v15 = vsel %vm11219_vm11, %v9226_v37, %v4915_v17  ;;  %v13076_v1 = vld [vmem:[%s15270_s0 + $0x1c] sm:$0x1]  ;;  %v9290_v35 = vld [vmem:[%s15270_s0 + $0x20] sm:$0xf]  ;;  %v13081_v61 = vpop.f32.mrf.mxu0  ;;  %v13101_v40 = vpop.f32.mrf.mxu1 }
 0x16a   :  { %v4629_v59 = vor.u32 %v4628_v28, %v4625_v52  ;;  %v603_v43 = vadd.f32 %v15419_v49, %v15418_v0  ;;  %v5343_v6 = vshrl.u32 %v9288_v46, 16  ;;  %15420 = vst [vmem:[#allocation12_spill] sm:$0xff] %v13081_v61  ;;  %v4612_v2 = vsel %vm11229_vm12, %v4603_v18, %v4611_v32  ;;  %v15421_v52 = vld [vmem:[#allocation28_spill] sm:$0xff]  ;;  %v15422_v17 = vld [vmem:[#allocation30_spill] sm:$0xff]  ;;  %v9292_v36 = vld [vmem:[%s15270_s0 + $0x28] sm:$0xf] }
 0x16b   :  { %v4920_v37 = vsel %vm11219_vm11, %v9227_v48, %v4919_v3  ;;  %v13088_v28 = vadd.f32 %v15421_v52, %v600_v39  ;;  %v13091_v12 = vadd.f32 %v15422_v17, %v611_v14  ;;  %v13096_v33 = vld [vmem:[%s15270_s0 + $0x24] sm:$0x1]  ;;  %15423 = vst [vmem:[#allocation33_spill] sm:$0xff] %v13101_v40  ;;  %v15424_v32 = vld [vmem:[#allocation32_spill] sm:$0xff]  ;;  %v10618_v39 = vld [vmem:[%s15270_s0 + $0x18] ss:$8 sps:$4 sm:$0xff]  }
 0x16c   :  { %v4630_v18 = vsel %vm11229_vm12, %v4621_v24, %v4629_v59  ;;  %v9239_v48 = vcombine.low %v4916_v15, %v4920_v37  ;;  %v13106_v3 = vadd.f32 %v15424_v32, %v603_v43  ;;  %v5345_v14 = vrot.slane %v5343_v6, 4  ;;  %v13117_v59 = vpop.f32.mrf.mxu0  ;;  %v15426_v43 = vld [vmem:[#allocation42_spill] sm:$0xff]  ;;  %v15428_v40 = vld [vmem:[#allocation35_spill] sm:$0xff] }
 0x16d   :  { %v9185_v0 = vcombine.low %v4612_v2, %v4630_v18  ;;  %v5346_v49 = vshll.u32 %v9288_v46, 16  ;;  %v5352_v52 = vshll.u32 %v13076_v1, 16  ;;  %v5357_v17 = vshrl.u32 %v9290_v35, 16  ;;  %15425 = vst [vmem:[#allocation13_spill] sm:$0xff] %v13117_v59  ;;  %v9294_v46 = vld [vmem:[%s15270_s0 + $0x30] sm:$0xf]  ;;  %v13132_v59 = vpop.f32.mrf.mxu1 }
 0x16e   :  { %10353 = vmatmul.mubr.msk.bf16.gmra.mxu0 %vm319_vm2, %v9239_v48  ;;  %v5360_v24 = vshll.u32 %v9290_v35, 16  ;;  %v5366_v15 = vshll.u32 %v13096_v33, 16  ;;  %v1378_v6 = vadd.f32 %v15426_v43, %v12718_v63  ;;  %v5371_v2 = vshrl.u32 %v9292_v36, 16  ;;  %v13130_v48 = vld [vmem:[%s15270_s0 + $0x34] sm:$0x1]  ;;  %15427 = vst [vmem:[#allocation38_spill] sm:$0xff] %v13132_v59  ;;  %v13139_v58 = vpop.f32.mrf.mxu0 }
 0x16f   :  { %10333 = vmatmul.mubr.msk.bf16.gmra.mxu1 %vm319_vm2, %v9185_v0  ;;  %v5348_v37 = vrot.slane %v5346_v49, 5  ;;  %v5354_v18 = vrot.slane %v5352_v52, 5  ;;  %v5359_v32 = vrot.slane %v5357_v17, 4  ;;  %v5374_v35 = vshll.u32 %v9292_v36, 16  ;;  %15429 = vst [vmem:[#allocation14_spill] sm:$0xff] %v13139_v58 }
 0x170   :  { %10360 = vmatprep.mubr.msk.bf16.mxu1 %vm319_vm2, %v10618_v39  ;;  %v5362_v63 = vrot.slane %v5360_v24, 5  ;;  %v5368_v43 = vrot.slane %v5366_v15, 5  ;;  %v13136_v5 = vadd.f32 %v15428_v40, %v1378_v6  ;;  %v5373_v61 = vrot.slane %v5371_v2, 4  ;;  %v10620_v36 = vld [vmem:[%s15270_s0 + $0x28] ss:$8 sps:$4 sm:$0xff]  }
 0x171   :  { %v5349_v0 = vor.u32 %v5348_v37, %v5345_v14  ;;  %v5376_v49 = vrot.slane %v5374_v35, 5  ;;  %v5380_v52 = vshll.u32 %v13115_v16, 16  ;;  %v5385_v17 = vshrl.u32 %v9294_v46, 16  ;;  %v15430_v24 = vld [vmem:[#allocation44_spill] sm:$0xff]  ;;  %v9296_v37 = vld [vmem:[%s15270_s0 + $0x38] sm:$0xf]  ;;  %v13150_v35 = vpop.f32.mrf.mxu1 }
 0x172   :  { %v5363_v53 = vor.u32 %v5362_v63, %v5359_v32  ;;  %v5388_v59 = vshll.u32 %v9294_v46, 16  ;;  %v5394_v39 = vshll.u32 %v13130_v48, 16  ;;  %v1376_v40 = vadd.f32 %v15430_v24, %v12756_v56  ;;  %15431 = vst [vmem:[#allocation40_spill] sm:$0xff] %v13150_v35  ;;  %v10622_v56 = vld [vmem:[%s15270_s0 + $0x38] ss:$8 sps:$4 sm:$0xff]  }
 0x173   :  { %v5350_v15 = vrot.slane %v5349_v0, 4  ;;  %v5377_v6 = vor.u32 %v5376_v49, %v5373_v61  ;;  %v5382_v14 = vrot.slane %v5380_v52, 5  ;;  %v5387_v2 = vrot.slane %v5385_v17, 4 }
 0x174   :  { %v5364_v32 = vrot.slane %v5363_v53, 4  ;;  %v5390_v63 = vrot.slane %v5388_v59, 5  ;;  %v5396_v58 = vrot.slane %v5394_v39, 5  ;;  %v13153_v46 = vadd.f32 %v15432_v23, %v1376_v40  ;;  %v13167_v53 = vld [vmem:[%s15270_s0 + $0x3c] sm:$0x1]  ;;  %v10625_v23 = vld [vmem:[%s15269_s1 + $0x110] sm:$0xff]   ;;  %v13172_v59 = vpop.f32.mrf.mxu0 }
 0x175   :  { %v5355_v61 = vsel %vm10738_vm3, %v5350_v15, %v5354_v18  ;;  %v5378_v0 = vrot.slane %v5377_v6, 4  ;;  %v1379_v49 = vadd.f32 %v12643_v29, %v12759_v27  ;;  %v1377_v52 = vadd.f32 %v12648_v9, %v12770_v20  ;;  %15433 = vst [vmem:[#allocation28_spill] sm:$0xff] %v13172_v59  ;;  %v9298_v29 = vld [vmem:[%s15270_s0 + $0x40] sm:$0xf]  ;;  %v13182_v9 = vld [vmem:[%s15270_s0 + $0x44] sm:$0x1] }
 0x176   :  { %v5369_v18 = vsel %vm10738_vm3, %v5364_v32, %v5368_v43  ;;  %v5391_v17 = vor.u32 %v5390_v63, %v5387_v2  ;;  %15434 = vst [vmem:[#allocation30_spill] sm:$0xff] %v13182_v9  ;;  %v5399_v27 = vshrl.u32 %v9296_v37, 16  ;;  %v5402_v20 = vshll.u32 %v9296_v37, 16  ;;  %v15435_v40 = vld [vmem:[#allocation41_spill] sm:$0xff]  ;;  %v15436_v15 = vld [vmem:[#allocation43_spill] sm:$0xff]  ;;  %v13196_v32 = vpop.f32.mrf.mxu1 }
 0x177   :  { %v9324_v39 = vcombine.low %v5355_v61, %v5369_v18  ;;  %10361 = vmatmul.mubr.msk.bf16.vlgmr.msra.gmra.mxu1 %vm319_vm2, %v10620_v36  ;;  %v5383_v24 = vsel %vm10738_vm3, %v5378_v0, %v5382_v14  ;;  %v13188_v43 = vadd.f32 %v15435_v40, %v1379_v49  ;;  %v13191_v6 = vadd.f32 %v15436_v15, %v1377_v52  ;;  %v9300_v2 = vld [vmem:[%s15270_s0 + $0x48] sm:$0xf] }
 0x178   :  { %15437 = vst [vmem:[#allocation32_spill] sm:$0xff] %v13196_v32  ;;  %v5392_v63 = vrot.slane %v5391_v17, 4  ;;  %10397 = vmatpush3.bf16.msra.mxu1 %v12812_v42  ;;  %10364 = vmatprep.mubr.msk.bf16.mxu1 %vm319_vm2, %v10622_v56  ;;  %v5401_v36 = vrot.slane %v5399_v27, 4  ;;  %v5404_v37 = vrot.slane %v5402_v20, 5  ;;  %v5408_v14 = vshll.u32 %v13167_v53, 16  ;;  %v15438_v52 = vld [vmem:[#allocation47_spill] sm:$0xff]  ;;  %v13213_v56 = vpop.f32.mrf.mxu0 }
 0x179   :  { %10380 = vmatprep.mubr.msk.bf16.mxu0 %vm319_vm2, %v9324_v39  ;;  %v5413_v61 = vshrl.u32 %v9298_v29, 16  ;;  %v5416_v0 = vshll.u32 %v9298_v29, 16  ;;  %v5422_v49 = vshll.u32 %v13182_v9, 16  ;;  %v1382_v18 = vadd.f32 %v15438_v52, %v12832_v55  ;;  %v10623_v17 = vld [vmem:[%s15270_s0 + $0x48] ss:$8 sps:$4 sm:$0xff]   ;;  %10398 = vmatprep.subr.bf16.mxu1 %v10625_v23  ;;  %v13211_v42 = vld [vmem:[%s15269_s1 + $0x138] sm:$0xff]  }
 0x17a   :  { %15439 = vst [vmem:[#allocation42_spill] sm:$0xff] %v13213_v56  ;;  %v5397_v29 = vsel %vm10738_vm3, %v5392_v63, %v5396_v58  ;;  %v5405_v27 = vor.u32 %v5404_v37, %v5401_v36  ;;  %v5410_v20 = vrot.slane %v5408_v14, 5  ;;  %v13220_v55 = vld [vmem:[%s15270_s0 + $0x4c] sm:$0x1]  ;;  %v9302_v39 = vld [vmem:[%s15270_s0 + $0x50] sm:$0xf]  ;;  %v13233_v36 = vpop.f32.mrf.mxu1 }
 0x17b   :  { %v5427_v40 = vshrl.u32 %v9300_v2, 16  ;;  %v9325_v15 = vcombine.low %v5383_v24, %v5397_v29  ;;  %v5415_v52 = vrot.slane %v5413_v61, 4  ;;  %v5418_v32 = vrot.slane %v5416_v0, 5  ;;  %v13228_v58 = vld [vmem:[%s15270_s0 + $0x54] sm:$0x1]  ;;  %v10627_v63 = vld [vmem:[%s15269_s1 + $0x120] sm:$0xff]  }
 0x17c   :  { %v5424_v35 = vrot.slane %v5422_v49, 5  ;;  %15440 = vst [vmem:[#allocation35_spill] sm:$0xff] %v13233_v36  ;;  %v5406_v37 = vrot.slane %v5405_v27, 4  ;;  %v15441_v14 = vld [vmem:[#allocation45_spill] sm:$0xff]  ;;  %v5430_v24 = vshll.u32 %v9300_v2, 16  ;;  %10399 = vmatpush3.bf16.msra.mxu1 %v10625_v23  ;;  %v5436_v49 = vshll.u32 %v13220_v55, 16  ;;  %v13244_v27 = vpop.f32.mrf.mxu0 }
 0x17d   :  { %v13236_v56 = vadd.f32 %v15441_v14, %v1382_v18  ;;  %v5429_v59 = vrot.slane %v5427_v40, 4  ;;  %v10624_v61 = vld [vmem:[%s15270_s0 + $0x78] ss:$8 sps:$4 sm:$0xff]   ;;  %10381 = vmatmul.mubr.msk.bf16.vlgmr.msra.gmra.mxu0 %vm319_vm2, %v9325_v15  ;;  %v5419_v0 = vor.u32 %v5418_v32, %v5415_v52  ;;  %v5441_v29 = vshrl.u32 %v9302_v39, 16  ;;  %10436 = vmatprep.subr.bf16.mxu1 %v13211_v42  ;;  %15442 = vst [vmem:[#allocation44_spill] sm:$0xff] %v13244_v27  ;;  %v15443_v23 = vld [vmem:[#allocation48_spill] sm:$0xff] }
 0x17e   :  { %v5444_v9 = vshll.u32 %v9302_v39, 16  ;;  %10417 = vmatpush3.bf16.msra.mxu0 %v12794_v19  ;;  %v5411_v2 = vsel %vm10738_vm3, %v5406_v37, %v5410_v20  ;;  %v5432_v18 = vrot.slane %v5430_v24, 5  ;;  %v5450_v40 = vshll.u32 %v13228_v58, 16  ;;  %v9304_v32 = vld [vmem:[%s15270_s0 + $0x78] sm:$0xf]  ;;  %v13259_v19 = vld [vmem:[%s15269_s1 + $0x148] sm:$0xff]   ;;  %v13261_v20 = vpop.f32.mrf.mxu1 }
 0x17f   :  { %v1380_v15 = vadd.f32 %v15443_v23, %v12880_v47  ;;  %v5420_v39 = vrot.slane %v5419_v0, 4  ;;  %10365 = vmatmul.mubr.msk.bf16.gmra.mxu1 %vm319_vm2, %v10623_v17  ;;  %v5438_v52 = vrot.slane %v5436_v49, 5  ;;  %v5443_v14 = vrot.slane %v5441_v29, 4  ;;  %10418 = vmatprep.subr.bf16.mxu0 %v10627_v63  ;;  %15444 = vst [vmem:[#allocation39_spill] sm:$0xff] %v13261_v20  ;;  %v15445_v24 = vld [vmem:[#allocation46_spill] sm:$0xff] }
 0x180   :  { %v5446_v36 = vrot.slane %v5444_v9, 5  ;;  %v5433_v37 = vor.u32 %v5432_v18, %v5429_v59  ;;  %v5452_v47 = vrot.slane %v5450_v40, 5  ;;  %v15446_v0 = vld [vmem:[#allocation50_spill] sm:$0xff]  ;;  %10368 = vmatprep.mubr.msk.bf16.mxu1 %vm319_vm2, %v10624_v61  ;;  %v13272_v9 = vld [vmem:[%s15270_s0 + $0x7c] sm:$0x1]  ;;  %v1381_v59 = vadd.f32 %v12700_v38, %v12891_v60 }
 0x181   :  { %v13264_v23 = vadd.f32 %v15445_v24, %v1380_v15  ;;  %v1383_v27 = vadd.f32 %v15446_v0, %v12883_v26  ;;  %v5425_v17 = vsel %vm10738_vm3, %v5420_v39, %v5424_v35  ;;  %v9306_v29 = vld [vmem:[%s15270_s0 + $0x80] sm:$0xf]  ;;  %v5455_v18 = vshrl.u32 %v9304_v32, 16  ;;  %v13281_v26 = vpop.f32.mrf.mxu0  ;;  %v15448_v15 = vld [vmem:[#allocation49_spill] sm:$0xff]  ;;  %v13289_v35 = vld [vmem:[%s15270_s0 + $0x84] sm:$0x1]  ;;  %v13302_v0 = vpop.f32.mrf.mxu1 }
 0x182   :  { %v5447_v49 = vor.u32 %v5446_v36, %v5443_v14  ;;  %15447 = vst [vmem:[#allocation41_spill] sm:$0xff] %v13281_v26  ;;  %v9326_v61 = vcombine.low %v5411_v2, %v5425_v17  ;;  %v5434_v40 = vrot.slane %v5433_v37, 4  ;;  %15449 = vst [vmem:[#allocation43_spill] sm:$0xff] %v13289_v35  ;;  %v5458_v36 = vshll.u32 %v9304_v32, 16  ;;  %v10626_v38 = vld [vmem:[%s15270_s0 + $0x88] ss:$8 sps:$4 sm:$0xff]   ;;  %10419 = vmatpush3.bf16.msra.mxu0 %v10627_v63 }
 0x183   :  { %v13284_v24 = vadd.f32 %v15448_v15, %v1383_v27  ;;  %v15450_v39 = vld [vmem:[#allocation51_spill] sm:$0xff]  ;;  %v5457_v2 = vrot.slane %v5455_v18, 4  ;;  %v5464_v37 = vshll.u32 %v13272_v9, 16  ;;  %10456 = vmatprep.subr.bf16.mxu0 %v13259_v19  ;;  %15451 = vst [vmem:[#allocation47_spill] sm:$0xff] %v13302_v0  ;;  %v5469_v17 = vshrl.u32 %v9306_v29, 16 }
 0x184   :  { %v5448_v60 = vrot.slane %v5447_v49, 4  ;;  %v13295_v14 = vadd.f32 %v15450_v39, %v1381_v59  ;;  %v9308_v27 = vld [vmem:[%s15270_s0 + $0x88] sm:$0xf]  ;;  %10384 = vmatprep.mubr.msk.bf16.mxu0 %vm319_vm2, %v9326_v61  ;;  %v5439_v63 = vsel %vm10738_vm3, %v5434_v40, %v5438_v52  ;;  %v5460_v32 = vrot.slane %v5458_v36, 5  ;;  %v10628_v59 = vld [vmem:[%s15270_s0 + $0x98] ss:$8 sps:$4 sm:$0xff]   ;;  %v13323_v61 = vpop.f32.mrf.mxu0 }
 0x185   :  { %v5472_v49 = vshll.u32 %v9306_v29, 16  ;;  %v5466_v15 = vrot.slane %v5464_v37, 5  ;;  %v5478_v39 = vshll.u32 %v13289_v35, 16  ;;  %v1386_v0 = vadd.f32 %v12723_v10, %v12940_v30  ;;  %v13318_v52 = vld [vmem:[%s15270_s0 + $0x8c] sm:$0x1]  ;;  %v13334_v35 = vpop.f32.mrf.mxu1 }
 0x186   :  { %v5453_v18 = vsel %vm10738_vm3, %v5448_v60, %v5452_v47  ;;  %v9310_v29 = vld [vmem:[%s15270_s0 + $0x90] sm:$0xf]  ;;  %v5461_v36 = vor.u32 %v5460_v32, %v5457_v2  ;;  %v5471_v47 = vrot.slane %v5469_v17, 4  ;;  %v13328_v37 = vld [vmem:[%s15270_s0 + $0x94] sm:$0x1]  ;;  %v5483_v20 = vshrl.u32 %v9308_v27, 16 }
 0x187   :  { %v9327_v40 = vcombine.low %v5439_v63, %v5453_v18  ;;  %v5474_v60 = vrot.slane %v5472_v49, 5  ;;  %v5480_v10 = vrot.slane %v5478_v39, 5  ;;  %v13331_v30 = vadd.f32 %v12708_v44, %v1386_v0  ;;  %10369 = vmatmul.mubr.msk.bf16.gmra.mxu1 %vm319_vm2, %v10626_v38  ;;  %15452 = vst [vmem:[#allocation45_spill] sm:$0xff] %v13334_v35  ;;  %v9312_v38 = vld [vmem:[%s15270_s0 + $0x98] sm:$0xf] }
 0x188   :  { %v5486_v26 = vshll.u32 %v9308_v27, 16  ;;  %v5462_v2 = vrot.slane %v5461_v36, 4  ;;  %v5492_v32 = vshll.u32 %v13318_v52, 16  ;;  %v5497_v17 = vshrl.u32 %v9310_v29, 16  ;;  %10372 = vmatprep.mubr.msk.bf16.mxu1 %vm319_vm2, %v10628_v59  ;;  %v13343_v27 = vpop.f32.mrf.mxu0 }
 0x189   :  { %10385 = vmatmul.mubr.msk.bf16.gmra.mxu0 %vm319_vm2, %v9327_v40  ;;  %v5475_v63 = vor.u32 %v5474_v60, %v5471_v47  ;;  %v5485_v49 = vrot.slane %v5483_v20, 4  ;;  %v5500_v39 = vshll.u32 %v9310_v29, 16  ;;  %v5506_v44 = vshll.u32 %v13328_v37, 16  ;;  %15453 = vst [vmem:[#allocation48_spill] sm:$0xff] %v13343_v27  ;;  %v13352_v29 = vpop.f32.mrf.mxu1 }
 0x18a   :  { %v5488_v18 = vrot.slane %v5486_v26, 5  ;;  %v5467_v0 = vsel %vm10738_vm3, %v5462_v2, %v5466_v15  ;;  %v5494_v36 = vrot.slane %v5492_v32, 5  ;;  %v5499_v47 = vrot.slane %v5497_v17, 4  ;;  %v10629_v26 = vld [vmem:[%s15270_s0 + $0xa8] ss:$8 sps:$4 sm:$0xff]  }
 0x18b   :  { %v5476_v40 = vrot.slane %v5475_v63, 4  ;;  %v5502_v35 = vrot.slane %v5500_v39, 5  ;;  %v5508_v59 = vrot.slane %v5506_v44, 5  ;;  %v1384_v20 = vadd.f32 %v12736_v57, %v12985_v7  ;;  %v13363_v63 = vld [vmem:[%s15270_s0 + $0x9c] sm:$0x1] }
 0x18c   :  { %v5489_v60 = vor.u32 %v5488_v18, %v5485_v49  ;;  %v1387_v15 = vadd.f32 %v12767_v51, %v12994_v41  ;;  %v1385_v2 = vadd.f32 %v12796_v8, %v12997_v34  ;;  %v9314_v57 = vld [vmem:[%s15270_s0 + $0xa0] sm:$0xf]  ;;  %v5511_v7 = vshrl.u32 %v9312_v38, 16  ;;  %v13374_v51 = vld [vmem:[%s15270_s0 + $0xa4] sm:$0x1]  ;;  %v13376_v8 = vpop.f32.mrf.mxu0 }
 0x18d   :  { %v5481_v27 = vsel %vm10738_vm3, %v5476_v40, %v5480_v10  ;;  %v5503_v49 = vor.u32 %v5502_v35, %v5499_v47  ;;  %v15454_v10 = vld [vmem:[#allocation52_spill] sm:$0xff]  ;;  %v5514_v44 = vshll.u32 %v9312_v38, 16  ;;  %v9316_v35 = vld [vmem:[%s15270_s0 + $0xa8] sm:$0xf]  ;;  %v5520_v40 = vshll.u32 %v13363_v63, 16 }
 0x18e   :  { %v9328_v32 = vcombine.low %v5467_v0, %v5481_v27  ;;  %v5490_v17 = vrot.slane %v5489_v60, 4  ;;  %v13369_v18 = vadd.f32 %v15454_v10, %v1384_v20  ;;  %v13379_v41 = vadd.f32 %v12747_v45, %v1387_v15  ;;  %v13392_v45 = vpop.f32.mrf.mxu1  ;;  %v13400_v15 = vld [vmem:[%s15270_s0 + $0xac] sm:$0x1]  ;;  %v13412_v10 = vld [vmem:[%s15270_s0 + $0xb4] sm:$0x1] }
 0x18f   :  { %v13382_v34 = vadd.f32 %v12782_v62, %v1385_v2  ;;  %v5513_v39 = vrot.slane %v5511_v7, 4  ;;  %v5504_v0 = vrot.slane %v5503_v49, 4  ;;  %v5525_v47 = vshrl.u32 %v9314_v57, 16  ;;  %10373 = vmatmul.mubr.msk.bf16.gmra.mxu1 %vm319_vm2, %v10629_v26  ;;  %15455 = vst [vmem:[#allocation46_spill] sm:$0xff] %v13392_v45  ;;  %v9318_v26 = vld [vmem:[%s15270_s0 + $0xb0] sm:$0xf] }
 0x190   :  { %10388 = vmatprep.mubr.msk.bf16.mxu0 %vm319_vm2, %v9328_v32  ;;  %v5495_v27 = vsel %vm10738_vm3, %v5490_v17, %v5494_v36  ;;  %v5516_v62 = vrot.slane %v5514_v44, 5  ;;  %v5528_v60 = vshll.u32 %v9314_v57, 16  ;;  %v5534_v38 = vshll.u32 %v13374_v51, 16  ;;  %v13407_v32 = vpop.f32.mrf.mxu0 }
 0x191   :  { %v1390_v20 = vadd.f32 %v12819_v25, %v13046_v4  ;;  %v5509_v36 = vsel %vm10738_vm3, %v5504_v0, %v5508_v59  ;;  %v5522_v2 = vrot.slane %v5520_v40, 5  ;;  %v5527_v7 = vrot.slane %v5525_v47, 4  ;;  %15456 = vst [vmem:[#allocation50_spill] sm:$0xff] %v13407_v32  ;;  %v13418_v47 = vpop.f32.mrf.mxu1 }
 0x192   :  { %v5539_v57 = vshrl.u32 %v9316_v35, 16  ;;  %v9329_v17 = vcombine.low %v5495_v27, %v5509_v36  ;;  %v5517_v49 = vor.u32 %v5516_v62, %v5513_v39  ;;  %v5530_v25 = vrot.slane %v5528_v60, 5  ;;  %15457 = vst [vmem:[#allocation49_spill] sm:$0xff] %v13418_v47 }
 0x193   :  { %v5536_v4 = vrot.slane %v5534_v38, 5  ;;  %v13415_v59 = vadd.f32 %v12805_v11, %v1390_v20  ;;  %v5542_v0 = vshll.u32 %v9316_v35, 16  ;;  %v5548_v40 = vshll.u32 %v13400_v15, 16  ;;  %v13424_v20 = vpop.f32.mrf.mxu0 }
 0x194   :  { %v5541_v44 = vrot.slane %v5539_v57, 4  ;;  %10389 = vmatmul.mubr.msk.bf16.gmra.mxu0 %vm319_vm2, %v9329_v17  ;;  %v5518_v27 = vrot.slane %v5517_v49, 4  ;;  %v5531_v39 = vor.u32 %v5530_v25, %v5527_v7  ;;  %v5553_v62 = vshrl.u32 %v9318_v26, 16 }
 0x195   :  { %v5556_v60 = vshll.u32 %v9318_v26, 16  ;;  %v5544_v38 = vrot.slane %v5542_v0, 5  ;;  %v5550_v36 = vrot.slane %v5548_v40, 5  ;;  %v5562_v45 = vshll.u32 %v13412_v10, 16  ;;  %v15459_v40 = vld [vmem:[#allocation53_spill] sm:$0xff] }
 0x196   :  { %v1388_v11 = vadd.f32 %v12837_v21, %v13088_v28  ;;  %v5523_v35 = vsel %vm10738_vm3, %v5518_v27, %v5522_v2  ;;  %v5532_v57 = vrot.slane %v5531_v39, 4  ;;  %v5555_v47 = vrot.slane %v5553_v62, 4  ;;  %v9342_v21 = vld [vmem:[%s15270_s0 + $0x18] sm:$0xe]  ;;  %v13436_v28 = vpop.f32.mrf.mxu1 }
 0x197   :  { %v5558_v32 = vrot.slane %v5556_v60, 5  ;;  %v5545_v17 = vor.u32 %v5544_v38, %v5541_v44  ;;  %v5564_v49 = vrot.slane %v5562_v45, 5  ;;  %v1391_v26 = vadd.f32 %v12851_v54, %v13091_v12  ;;  %15458 = vst [vmem:[#allocation51_spill] sm:$0xff] %v13436_v28  ;;  %v9343_v54 = vld [vmem:[%s15270_s0 + $0x20] sm:$0xe] }
 0x198   :  { %v13429_v7 = vadd.f32 %v12821_v22, %v1388_v11  ;;  %v5537_v2 = vsel %vm10738_vm3, %v5532_v57, %v5536_v4  ;;  %v1389_v44 = vadd.f32 %v12855_v50, %v13106_v3  ;;  %v9358_v45 = vrot.slane %v9342_v21, 9  ;;  %v13452_v4 = vld [vmem:[%s15270_s0 + $0x1c] sm:$0x3]  ;;  %v15461_v3 = vld [vmem:[#allocation54_spill] sm:$0xff]  ;;  %v13465_v57 = vpop.f32.mrf.mxu1 }
 0x199   :  { %v5559_v25 = vor.u32 %v5558_v32, %v5555_v47  ;;  %v9330_v0 = vcombine.low %v5523_v35, %v5537_v2  ;;  %v5546_v22 = vrot.slane %v5545_v17, 4  ;;  %v13443_v27 = vadd.f32 %v15459_v40, %v1391_v26  ;;  %v13454_v32 = vpop.f32.mrf.mxu0  ;;  %15463 = vst [vmem:[#allocation53_spill] sm:$0xff] %v13465_v57 }
 0x19a   :  { %v5794_v12 = vrot.slane %v13076_v1, 5  ;;  %15460 = vst [vmem:[#allocation52_spill] sm:$0xff] %v13454_v32  ;;  %v13457_v47 = vadd.f32 %v15461_v3, %v1389_v44  ;;  %v9359_v39 = vrot.slane %v9343_v54, 9  ;;  %v5798_v62 = vrot.slane %v13096_v33, 5  ;;  %v13474_v33 = vld [vmem:[%s15270_s0 + $0x24] sm:$0x3] }
 0x19b   :  { %v5560_v50 = vrot.slane %v5559_v25, 4  ;;  %10392 = vmatprep.mubr.msk.bf16.mxu0 %vm319_vm2, %v9330_v0  ;;  %v5551_v60 = vsel %vm10738_vm3, %v5546_v22, %v5550_v36  ;;  %v6051_v11 = vshrl.u32 %v9342_v21, 16  ;;  %v6054_v35 = vshll.u32 %v9342_v21, 16  ;;  %v13478_v0 = vpop.f32.mrf.mxu0  ;;  %v9635_v1 = vld [vmem:[%s15270_s0 + $0x2c] sm:$0x3] }
 0x19c   :  { %v5795_v38 = vsel %vm10980_vm6, %v9358_v45, %v5794_v12  ;;  %v5799_v26 = vsel %vm10980_vm6, %v9359_v39, %v5798_v62  ;;  %v6060_v36 = vshrl.u32 %v13452_v4, 16  ;;  %v6063_v2 = vshll.u32 %v13452_v4, 16  ;;  %15464 = vst [vmem:[#allocation54_spill] sm:$0xff] %v13478_v0  ;;  %v15465_v62 = vld [vmem:[#allocation9_spill] sm:$0xff] }
 0x19d   :  { %v5565_v17 = vsel %vm10738_vm3, %v5560_v50, %v5564_v49  ;;  %v9378_v44 = vcombine.low %v5795_v38, %v5799_v26  ;;  %v6053_v21 = vrot.slane %v6051_v11, 5  ;;  %v6056_v45 = vrot.slane %v6054_v35, 6  ;;  %v9344_v38 = vld [vmem:[%s15270_s0 + $0x28] sm:$0xe]  ;;  %v13489_v11 = vpop.f32.mrf.mxu1  ;;  %v9345_v26 = vld [vmem:[%s15270_s0 + $0x30] sm:$0xe] }
 0x19e   :  { %v9331_v25 = vcombine.low %v5551_v60, %v5565_v17  ;;  %v6062_v22 = vrot.slane %v6060_v36, 5  ;;  %v6065_v49 = vrot.slane %v6063_v2, 6  ;;  %v6069_v40 = vshrl.u32 %v9343_v54, 16  ;;  %15466 = vst [vmem:[#allocation3_spill] sm:$0xff] %v13489_v11 }
 0x19f   :  { %v6072_v12 = vshll.u32 %v9343_v54, 16  ;;  %10400 = vmatprep.mubr.msk.bf16.mxu1 %vm319_vm2, %v9378_v44  ;;  %v6057_v50 = vor.u32 %v6056_v45, %v6053_v21  ;;  %v6078_v3 = vshrl.u32 %v13474_v33, 16  ;;  %v6081_v39 = vshll.u32 %v13474_v33, 16  ;;  %v15467_v21 = vld [vmem:[#allocation11_spill] sm:$0xff] }
 0x1a0   :  { %10393 = vmatmul.mubr.msk.bf16.gmra.mxu0 %vm319_vm2, %v9331_v25  ;;  %v1882_v60 = vadd.f32 %v15465_v62, %v13136_v5  ;;  %v6066_v35 = vor.u32 %v6065_v49, %v6062_v22  ;;  %v6071_v54 = vrot.slane %v6069_v40, 5  ;;  %v9360_v36 = vrot.slane %v9344_v38, 9  ;;  %v13500_v5 = vld [vmem:[%s15270_s0 + $0x2c] sm:$0x3]  ;;  %v13502_v62 = vpop.f32.mrf.mxu0  ;;  %v13504_v22 = vpop.f32.mrf.mxu1 }
 0x1a1   :  { %v6074_v17 = vrot.slane %v6072_v12, 6  ;;  %v6058_v2 = vrot.slane %v6057_v50, 4  ;;  %v6080_v25 = vrot.slane %v6078_v3, 5  ;;  %v6083_v44 = vrot.slane %v6081_v39, 6  ;;  %15468 = vst [vmem:[#allocation9_spill] sm:$0xff] %v13502_v62  ;;  %15469 = vst [vmem:[#allocation11_spill] sm:$0xff] %v13504_v22 }
 0x1a2   :  { %v13495_v45 = vadd.f32 %v15467_v21, %v1882_v60  ;;  %v5802_v40 = vrot.slane %v13115_v16, 5  ;;  %v9361_v12 = vrot.slane %v9345_v26, 9  ;;  %v5806_v50 = vrot.slane %v13130_v48, 5  ;;  %v13510_v31 = vpop.f32.mrf.mxu1  ;;  %v13519_v16 = vld [vmem:[%s15270_s0 + $0x34] sm:$0x3] }
 0x1a3   :  { %v6075_v49 = vor.u32 %v6074_v17, %v6071_v54  ;;  %v6067_v3 = vsel %vm11229_vm12, %v6058_v2, %v6066_v35  ;;  %v6084_v39 = vor.u32 %v6083_v44, %v6080_v25  ;;  %v6087_v60 = vshrl.u32 %v9344_v38, 16  ;;  %15470 = vst [vmem:[#allocation57_spill] sm:$0xff] %v13510_v31  ;;  %v10632_v25 = vld [vmem:[%s15269_s1 + $0x130] sm:$0xff]  }
 0x1a4   :  { %v6090_v21 = vshll.u32 %v9344_v38, 16  ;;  %v5803_v62 = vsel %vm10980_vm6, %v9360_v36, %v5802_v40  ;;  %v5807_v54 = vsel %vm10980_vm6, %v9361_v12, %v5806_v50  ;;  %v6096_v48 = vshrl.u32 %v13500_v5, 16  ;;  %v13526_v36 = vpop.f32.mrf.mxu0  ;;  %v13528_v44 = vpop.f32.mrf.mxu1 }
 0x1a5   :  { %v6076_v11 = vrot.slane %v6075_v49, 4  ;;  %v9379_v35 = vcombine.low %v5803_v62, %v5807_v54  ;;  %v6089_v17 = vrot.slane %v6087_v60, 5  ;;  %v6099_v38 = vshll.u32 %v13500_v5, 16  ;;  %15471 = vst [vmem:[#allocation58_spill] sm:$0xff] %v13526_v36  ;;  %15472 = vst [vmem:[#allocation59_spill] sm:$0xff] %v13528_v44  ;;  %v15473_v44 = vld [vmem:[#allocation20_spill] sm:$0xff] }
 0x1a6   :  { %v6092_v2 = vrot.slane %v6090_v21, 6  ;;  %v6098_v40 = vrot.slane %v6096_v48, 5  ;;  %v6105_v12 = vshrl.u32 %v9345_v26, 16  ;;  %v6108_v50 = vshll.u32 %v9345_v26, 16 }
 0x1a7   :  { %v6085_v49 = vsel %vm11229_vm12, %v6076_v11, %v6084_v39  ;;  %10401 = vmatmul.mubr.msk.bf16.vlgmr.msra.gmra.mxu1 %vm319_vm2, %v9379_v35  ;;  %v6101_v60 = vrot.slane %v6099_v38, 6  ;;  %v6114_v21 = vshrl.u32 %v13519_v16, 16  ;;  %v6117_v57 = vshll.u32 %v13519_v16, 16  ;;  %v15474_v39 = vld [vmem:[#allocation22_spill] sm:$0xff]  ;;  %v13544_v35 = vld [vmem:[%s15269_s1 + $0x158] sm:$0xff]   ;;  %v15477_v38 = vld [vmem:[#allocation15_spill] sm:$0xff] }
 0x1a8   :  { %v9416_v31 = vcombine.low %v6067_v3, %v6085_v49  ;;  %v6093_v62 = vor.u32 %v6092_v2, %v6089_v17  ;;  %v6107_v54 = vrot.slane %v6105_v12, 5  ;;  %v6110_v22 = vrot.slane %v6108_v50, 6  ;;  %10437 = vmatpush3.bf16.msra.mxu1 %v13211_v42  ;;  %v13546_v17 = vpop.f32.mrf.mxu0  ;;  %v13548_v42 = vpop.f32.mrf.mxu1  ;;  %v15479_v12 = vld [vmem:[#allocation17_spill] sm:$0xff] }
 0x1a9   :  { %v1880_v36 = vadd.f32 %v15473_v44, %v13153_v46  ;;  %v6102_v26 = vor.u32 %v6101_v60, %v6098_v40  ;;  %v6116_v3 = vrot.slane %v6114_v21, 5  ;;  %v1883_v48 = vadd.f32 %v15474_v39, %v13188_v43  ;;  %10438 = vmatprep.subr.bf16.mxu1 %v10632_v25  ;;  %15475 = vst [vmem:[#allocation20_spill] sm:$0xff] %v13546_v17  ;;  %v15478_v44 = vld [vmem:[#allocation16_spill] sm:$0xff]  ;;  %v9346_v43 = vld [vmem:[%s15270_s0 + $0x38] sm:$0xe] }
 0x1aa   :  { %10420 = vmatprep.mubr.msk.bf16.mxu0 %vm319_vm2, %v9416_v31  ;;  %v6094_v11 = vrot.slane %v6093_v62, 4  ;;  %15476 = vst [vmem:[#allocation22_spill] sm:$0xff] %v13548_v42  ;;  %v6111_v2 = vor.u32 %v6110_v22, %v6107_v54  ;;  %v6119_v46 = vrot.slane %v6117_v57, 6  ;;  %v1881_v49 = vadd.f32 %v15478_v44, %v13191_v6  ;;  %v9347_v57 = vld [vmem:[%s15270_s0 + $0x40] sm:$0xe]  ;;  %v13572_v62 = vpop.f32.mrf.mxu0  ;;  %v13574_v60 = vpop.f32.mrf.mxu1 }
 0x1ab   :  { %v13551_v31 = vadd.f32 %v15477_v38, %v1880_v36  ;;  %v13561_v50 = vadd.f32 %v15479_v12, %v1883_v48  ;;  %v9362_v22 = vrot.slane %v9346_v43, 9  ;;  %v5810_v36 = vrot.slane %v13167_v53, 5  ;;  %v13570_v6 = vld [vmem:[%s15270_s0 + $0x3c] sm:$0x3]  ;;  %15480 = vst [vmem:[#allocation15_spill] sm:$0xff] %v13572_v62  ;;  %15481 = vst [vmem:[#allocation16_spill] sm:$0xff] %v13574_v60 }
 0x1ac   :  { %v6103_v40 = vsel %vm11229_vm12, %v6094_v11, %v6102_v26  ;;  %v6112_v21 = vrot.slane %v6111_v2, 4  ;;  %v6120_v54 = vor.u32 %v6119_v46, %v6116_v3  ;;  %v15482_v11 = vld [vmem:[#allocation55_spill] sm:$0xff]  ;;  %v9363_v39 = vrot.slane %v9347_v57, 9  ;;  %10439 = vmatpush3.bf16.msra.mxu1 %v10632_v25  ;;  %v15483_v53 = vld [vmem:[#allocation30_spill] sm:$0xff]  ;;  %v13583_v42 = vpop.f32.mrf.mxu0  ;;  %v13585_v62 = vpop.f32.mrf.mxu1 }
 0x1ad   :  { %v13577_v26 = vadd.f32 %v15482_v11, %v1881_v49  ;;  %v5811_v48 = vsel %vm10980_vm6, %v9362_v22, %v5810_v36  ;;  %v5814_v38 = vrot.slane %v15483_v53, 5  ;;  %v6123_v44 = vshrl.u32 %v9346_v43, 16  ;;  %10476 = vmatprep.subr.bf16.mxu1 %v13544_v35  ;;  %15484 = vst [vmem:[#allocation17_spill] sm:$0xff] %v13583_v42  ;;  %15485 = vst [vmem:[#allocation55_spill] sm:$0xff] %v13585_v62  ;;  %v13592_v25 = vld [vmem:[%s15270_s0 + $0x44] sm:$0x3] }
 0x1ae   :  { %v6126_v12 = vshll.u32 %v9346_v43, 16  ;;  %v6121_v3 = vsel %vm11229_vm12, %v6112_v21, %v6120_v54  ;;  %v6132_v2 = vshrl.u32 %v13570_v6, 16  ;;  %v6135_v46 = vshll.u32 %v13570_v6, 16  ;;  %v10633_v21 = vld [vmem:[%s15269_s1 + $0x140] sm:$0xff]   ;;  %v13601_v54 = vpop.f32.mrf.mxu0  ;;  %v13603_v53 = vpop.f32.mrf.mxu1 }
 0x1af   :  { %v6141_v49 = vshrl.u32 %v9347_v57, 16  ;;  %v9417_v43 = vcombine.low %v6103_v40, %v6121_v3  ;;  %v5815_v22 = vsel %vm10980_vm6, %v9363_v39, %v5814_v38  ;;  %v6125_v36 = vrot.slane %v6123_v44, 5  ;;  %15486 = vst [vmem:[#allocation30_spill] sm:$0xff] %v13601_v54  ;;  %15487 = vst [vmem:[#allocation60_spill] sm:$0xff] %v13603_v53  ;;  %v9348_v44 = vld [vmem:[%s15270_s0 + $0x48] sm:$0xe] }
 0x1b0   :  { %v6128_v11 = vrot.slane %v6126_v12, 6  ;;  %v9380_v62 = vcombine.low %v5811_v48, %v5815_v22  ;;  %v6134_v60 = vrot.slane %v6132_v2, 5  ;;  %v6137_v42 = vrot.slane %v6135_v46, 6  ;;  %v13611_v12 = vpop.f32.mrf.mxu0  ;;  %v13613_v54 = vpop.f32.mrf.mxu1  ;;  %v15490_v2 = vld [vmem:[#allocation18_spill] sm:$0xff]  ;;  %v9349_v46 = vld [vmem:[%s15270_s0 + $0x50] sm:$0xe] }
 0x1b1   :  { %v6143_v17 = vrot.slane %v6141_v49, 5  ;;  %10421 = vmatmul.mubr.msk.bf16.vlgmr.msra.gmra.mxu0 %vm319_vm2, %v9417_v43  ;;  %v6144_v3 = vshll.u32 %v9347_v57, 16  ;;  %v6150_v39 = vshrl.u32 %v13592_v25, 16  ;;  %v6153_v38 = vshll.u32 %v13592_v25, 16  ;;  %15488 = vst [vmem:[#allocation61_spill] sm:$0xff] %v13611_v12  ;;  %15489 = vst [vmem:[#allocation62_spill] sm:$0xff] %v13613_v54 }
 0x1b2   :  { %v6129_v40 = vor.u32 %v6128_v11, %v6125_v36  ;;  %10457 = vmatpush3.bf16.msra.mxu0 %v13259_v19  ;;  %10404 = vmatprep.mubr.msk.bf16.mxu1 %vm319_vm2, %v9380_v62  ;;  %v6138_v48 = vor.u32 %v6137_v42, %v6134_v60  ;;  %v1886_v57 = vadd.f32 %v15490_v2, %v13236_v56  ;;  %v9364_v49 = vrot.slane %v9348_v44, 9  ;;  %v13626_v22 = vld [vmem:[%s15270_s0 + $0x4c] sm:$0x3]  ;;  %v13633_v42 = vpop.f32.mrf.mxu0  ;;  %v13635_v60 = vpop.f32.mrf.mxu1 }
 0x1b3   :  { %v5818_v43 = vrot.slane %v13220_v55, 5  ;;  %v6146_v19 = vrot.slane %v6144_v3, 6  ;;  %v6152_v11 = vrot.slane %v6150_v39, 5  ;;  %v6155_v62 = vrot.slane %v6153_v38, 6  ;;  %10458 = vmatprep.subr.bf16.mxu0 %v10633_v21  ;;  %v13631_v56 = vld [vmem:[%s15269_s1 + $0x168] sm:$0xff]   ;;  %15491 = vst [vmem:[#allocation18_spill] sm:$0xff] %v13633_v42 }
 0x1b4   :  { %v6130_v36 = vrot.slane %v6129_v40, 4  ;;  %15492 = vst [vmem:[#allocation63_spill] sm:$0xff] %v13635_v60  ;;  %v15493_v55 = vld [vmem:[#allocation36_spill] sm:$0xff]  ;;  %v9365_v40 = vrot.slane %v9349_v46, 9  ;;  %v5822_v3 = vrot.slane %v13228_v58, 5  ;;  %v6159_v12 = vshrl.u32 %v9348_v44, 16  ;;  %v13645_v0 = vpop.f32.mrf.mxu0  ;;  %v13647_v42 = vpop.f32.mrf.mxu1 }
 0x1b5   :  { %v13638_v2 = vadd.f32 %v15493_v55, %v1886_v57  ;;  %v5819_v54 = vsel %vm10980_vm6, %v9364_v49, %v5818_v43  ;;  %v6147_v38 = vor.u32 %v6146_v19, %v6143_v17  ;;  %v6156_v53 = vor.u32 %v6155_v62, %v6152_v11  ;;  %15494 = vst [vmem:[#allocation36_spill] sm:$0xff] %v13645_v0  ;;  %v13654_v49 = vld [vmem:[%s15270_s0 + $0x54] sm:$0x3]  ;;  %v15500_v0 = vld [vmem:[#allocation5_spill] sm:$0xff] }
 0x1b6   :  { %v6139_v39 = vsel %vm11229_vm12, %v6130_v36, %v6138_v48  ;;  %15495 = vst [vmem:[#allocation64_spill] sm:$0xff] %v13647_v42  ;;  %v5823_v57 = vsel %vm10980_vm6, %v9365_v40, %v5822_v3  ;;  %v6162_v43 = vshll.u32 %v9348_v44, 16  ;;  %v6168_v58 = vshrl.u32 %v13626_v22, 16  ;;  %10459 = vmatpush3.bf16.msra.mxu0 %v10633_v21  ;;  %v13659_v62 = vpop.f32.mrf.mxu0  ;;  %v13661_v55 = vpop.f32.mrf.mxu1 }
 0x1b7   :  { %v6171_v48 = vshll.u32 %v13626_v22, 16  ;;  %v6148_v17 = vrot.slane %v6147_v38, 4  ;;  %v9381_v36 = vcombine.low %v5819_v54, %v5823_v57  ;;  %v6161_v19 = vrot.slane %v6159_v12, 5  ;;  %10496 = vmatprep.subr.bf16.mxu0 %v13631_v56  ;;  %15496 = vst [vmem:[#allocation65_spill] sm:$0xff] %v13659_v62  ;;  %15497 = vst [vmem:[#allocation66_spill] sm:$0xff] %v13661_v55 }
 0x1b8   :  { %v6177_v11 = vshrl.u32 %v9349_v46, 16  ;;  %v6164_v40 = vrot.slane %v6162_v43, 6  ;;  %v6170_v3 = vrot.slane %v6168_v58, 5  ;;  %v6180_v60 = vshll.u32 %v9349_v46, 16  ;;  %v13668_v38 = vpop.f32.mrf.mxu0  ;;  %v13670_v57 = vpop.f32.mrf.mxu1 }
 0x1b9   :  { %v6173_v42 = vrot.slane %v6171_v48, 6  ;;  %v6157_v44 = vsel %vm11229_vm12, %v6148_v17, %v6156_v53  ;;  %10405 = vmatmul.mubr.msk.bf16.gmra.mxu1 %vm319_vm2, %v9381_v36  ;;  %v6186_v54 = vshrl.u32 %v13654_v49, 16  ;;  %v6189_v12 = vshll.u32 %v13654_v49, 16  ;;  %15498 = vst [vmem:[#allocation67_spill] sm:$0xff] %v13668_v38  ;;  %15499 = vst [vmem:[#allocation68_spill] sm:$0xff] %v13670_v57  ;;  %v15501_v17 = vld [vmem:[#allocation19_spill] sm:$0xff] }
 0x1ba   :  { %v6179_v21 = vrot.slane %v6177_v11, 5  ;;  %v9418_v62 = vcombine.low %v6139_v39, %v6157_v44  ;;  %v6165_v55 = vor.u32 %v6164_v40, %v6161_v19  ;;  %v6182_v58 = vrot.slane %v6180_v60, 6  ;;  %v9350_v11 = vld [vmem:[%s15270_s0 + $0x78] sm:$0xe]  ;;  %v13679_v28 = vpop.f32.mrf.mxu0  ;;  %v13681_v38 = vpop.f32.mrf.mxu1 }
 0x1bb   :  { %v6174_v43 = vor.u32 %v6173_v42, %v6170_v3  ;;  %v6188_v48 = vrot.slane %v6186_v54, 5  ;;  %v6191_v46 = vrot.slane %v6189_v12, 6  ;;  %v1884_v53 = vadd.f32 %v15500_v0, %v13264_v23  ;;  %15502 = vst [vmem:[#allocation5_spill] sm:$0xff] %v13679_v28  ;;  %15503 = vst [vmem:[#allocation19_spill] sm:$0xff] %v13681_v38  ;;  %v15504_v39 = vld [vmem:[#allocation37_spill] sm:$0xff]  ;;  %v15505_v0 = vld [vmem:[#allocation56_spill] sm:$0xff] }
 0x1bc   :  { %v1887_v36 = vadd.f32 %v15501_v17, %v13284_v24  ;;  %10424 = vmatprep.mubr.msk.bf16.mxu0 %vm319_vm2, %v9418_v62  ;;  %v6166_v42 = vrot.slane %v6165_v55, 4  ;;  %v6183_v60 = vor.u32 %v6182_v58, %v6179_v21  ;;  %v1885_v19 = vadd.f32 %v15504_v39, %v13295_v14  ;;  %v15506_v24 = vld [vmem:[#allocation25_spill] sm:$0xff]  ;;  %v9351_v54 = vld [vmem:[%s15270_s0 + $0x80] sm:$0xe]  ;;  %v13701_v14 = vpop.f32.mrf.mxu0  ;;  %v13703_v55 = vpop.f32.mrf.mxu1  ;;  %v15510_v17 = vld [vmem:[#allocation43_spill] sm:$0xff] }
 0x1bd   :  { %v9366_v40 = vrot.slane %v9350_v11, 9  ;;  %v6192_v23 = vor.u32 %v6191_v46, %v6188_v48  ;;  %v13687_v3 = vadd.f32 %v15505_v0, %v1884_v53  ;;  %v5826_v12 = vrot.slane %v13272_v9, 5  ;;  %v13699_v62 = vld [vmem:[%s15270_s0 + $0x7c] sm:$0x3]  ;;  %15507 = vst [vmem:[#allocation37_spill] sm:$0xff] %v13701_v14  ;;  %15508 = vst [vmem:[#allocation56_spill] sm:$0xff] %v13703_v55 }
 0x1be   :  { %v13690_v44 = vadd.f32 %v15506_v24, %v1887_v36  ;;  %v6175_v21 = vsel %vm11229_vm12, %v6166_v42, %v6174_v43  ;;  %v6184_v58 = vrot.slane %v6183_v60, 4  ;;  %v15509_v48 = vld [vmem:[#allocation27_spill] sm:$0xff]  ;;  %v9367_v53 = vrot.slane %v9351_v54, 9  ;;  %v13713_v24 = vpop.f32.mrf.mxu0  ;;  %v13715_v38 = vpop.f32.mrf.mxu1  ;;  %v13722_v43 = vld [vmem:[%s15270_s0 + $0x84] sm:$0x3] }
 0x1bf   :  { %v13708_v46 = vadd.f32 %v15509_v48, %v1885_v19  ;;  %v5827_v9 = vsel %vm10980_vm6, %v9366_v40, %v5826_v12  ;;  %v5830_v36 = vrot.slane %v15510_v17, 5  ;;  %v6195_v39 = vshrl.u32 %v9350_v11, 16  ;;  %15511 = vst [vmem:[#allocation25_spill] sm:$0xff] %v13713_v24  ;;  %15512 = vst [vmem:[#allocation27_spill] sm:$0xff] %v13715_v38 }
 0x1c0   :  { %v6198_v0 = vshll.u32 %v9350_v11, 16  ;;  %v6193_v55 = vsel %vm11229_vm12, %v6184_v58, %v6192_v23  ;;  %v6204_v42 = vshrl.u32 %v13699_v62, 16  ;;  %v6207_v60 = vshll.u32 %v13699_v62, 16  ;;  %v13728_v17 = vpop.f32.mrf.mxu0  ;;  %v13730_v38 = vpop.f32.mrf.mxu1 }
 0x1c1   :  { %v6213_v19 = vshrl.u32 %v9351_v54, 16  ;;  %v9419_v40 = vcombine.low %v6175_v21, %v6193_v55  ;;  %v5831_v11 = vsel %vm10980_vm6, %v9367_v53, %v5830_v36  ;;  %v6197_v12 = vrot.slane %v6195_v39, 5  ;;  %15513 = vst [vmem:[#allocation43_spill] sm:$0xff] %v13728_v17  ;;  %15514 = vst [vmem:[#allocation69_spill] sm:$0xff] %v13730_v38  ;;  %v9352_v21 = vld [vmem:[%s15270_s0 + $0x88] sm:$0xe] }
 0x1c2   :  { %v6200_v48 = vrot.slane %v6198_v0, 6  ;;  %v9382_v23 = vcombine.low %v5827_v9, %v5831_v11  ;;  %v6206_v58 = vrot.slane %v6204_v42, 5  ;;  %v6209_v57 = vrot.slane %v6207_v60, 6  ;;  %v13738_v53 = vpop.f32.mrf.mxu0  ;;  %v13740_v36 = vpop.f32.mrf.mxu1  ;;  %v15517_v39 = vld [vmem:[#allocation6_spill] sm:$0xff] }
 0x1c3   :  { %v6215_v24 = vrot.slane %v6213_v19, 5  ;;  %10425 = vmatmul.mubr.msk.bf16.gmra.mxu0 %vm319_vm2, %v9419_v40  ;;  %v6216_v28 = vshll.u32 %v9351_v54, 16  ;;  %v6222_v32 = vshrl.u32 %v13722_v43, 16  ;;  %v6225_v55 = vshll.u32 %v13722_v43, 16  ;;  %15515 = vst [vmem:[#allocation70_spill] sm:$0xff] %v13738_v53  ;;  %15516 = vst [vmem:[#allocation71_spill] sm:$0xff] %v13740_v36 }
 0x1c4   :  { %v6201_v14 = vor.u32 %v6200_v48, %v6197_v12  ;;  %10408 = vmatprep.mubr.msk.bf16.mxu1 %vm319_vm2, %v9382_v23  ;;  %v6210_v9 = vor.u32 %v6209_v57, %v6206_v58  ;;  %v1890_v0 = vadd.f32 %v15517_v39, %v13331_v30  ;;  %v9353_v54 = vld [vmem:[%s15270_s0 + $0x90] sm:$0xe]  ;;  %v9368_v42 = vrot.slane %v9352_v21, 9  ;;  %v13752_v48 = vld [vmem:[%s15270_s0 + $0x8c] sm:$0x3]  ;;  %v13754_v57 = vpop.f32.mrf.mxu0  ;;  %v13756_v23 = vpop.f32.mrf.mxu1  ;;  %v15520_v30 = vld [vmem:[#allocation21_spill] sm:$0xff] }
 0x1c5   :  { %v5834_v60 = vrot.slane %v13318_v52, 5  ;;  %v6218_v40 = vrot.slane %v6216_v28, 6  ;;  %v6224_v11 = vrot.slane %v6222_v32, 5  ;;  %v6227_v12 = vrot.slane %v6225_v55, 6  ;;  %15518 = vst [vmem:[#allocation6_spill] sm:$0xff] %v13754_v57  ;;  %15519 = vst [vmem:[#allocation72_spill] sm:$0xff] %v13756_v23 }
 0x1c6   :  { %v6202_v19 = vrot.slane %v6201_v14, 4  ;;  %v13759_v58 = vadd.f32 %v15520_v30, %v1890_v0  ;;  %v9369_v52 = vrot.slane %v9353_v54, 9  ;;  %v5838_v28 = vrot.slane %v13328_v37, 5  ;;  %v13766_v38 = vpop.f32.mrf.mxu0  ;;  %v13773_v0 = vld [vmem:[%s15270_s0 + $0x94] sm:$0x3]  ;;  %v13777_v30 = vpop.f32.mrf.mxu1 }
 0x1c7   :  { %v5835_v39 = vsel %vm10980_vm6, %v9368_v42, %v5834_v60  ;;  %v6219_v14 = vor.u32 %v6218_v40, %v6215_v24  ;;  %v6228_v55 = vor.u32 %v6227_v12, %v6224_v11  ;;  %v6231_v36 = vshrl.u32 %v9352_v21, 16  ;;  %15521 = vst [vmem:[#allocation21_spill] sm:$0xff] %v13766_v38  ;;  %15522 = vst [vmem:[#allocation73_spill] sm:$0xff] %v13777_v30 }
 0x1c8   :  { %v6211_v32 = vsel %vm11229_vm12, %v6202_v19, %v6210_v9  ;;  %v5839_v23 = vsel %vm10980_vm6, %v9369_v52, %v5838_v28  ;;  %v6234_v42 = vshll.u32 %v9352_v21, 16  ;;  %v6240_v60 = vshrl.u32 %v13752_v48, 16  ;;  %v13779_v11 = vpop.f32.mrf.mxu0 }
 0x1c9   :  { %v6243_v37 = vshll.u32 %v13752_v48, 16  ;;  %v6220_v24 = vrot.slane %v6219_v14, 4  ;;  %v9383_v9 = vcombine.low %v5835_v39, %v5839_v23  ;;  %v6233_v19 = vrot.slane %v6231_v36, 5  ;;  %15523 = vst [vmem:[#allocation74_spill] sm:$0xff] %v13779_v11 }
 0x1ca   :  { %v6249_v40 = vshrl.u32 %v9353_v54, 16  ;;  %v6236_v12 = vrot.slane %v6234_v42, 6  ;;  %v6242_v52 = vrot.slane %v6240_v60, 5  ;;  %v6252_v38 = vshll.u32 %v9353_v54, 16  ;;  %v13786_v14 = vpop.f32.mrf.mxu0  ;;  %v13788_v42 = vpop.f32.mrf.mxu1 }
 0x1cb   :  { %v6245_v28 = vrot.slane %v6243_v37, 6  ;;  %v6229_v57 = vsel %vm11229_vm12, %v6220_v24, %v6228_v55  ;;  %10409 = vmatmul.mubr.msk.bf16.gmra.mxu1 %vm319_vm2, %v9383_v9  ;;  %v6258_v53 = vshrl.u32 %v13773_v0, 16  ;;  %v6261_v30 = vshll.u32 %v13773_v0, 16  ;;  %15524 = vst [vmem:[#allocation75_spill] sm:$0xff] %v13786_v14  ;;  %15525 = vst [vmem:[#allocation76_spill] sm:$0xff] %v13788_v42  ;;  %v15526_v37 = vld [vmem:[#allocation7_spill] sm:$0xff] }
 0x1cc   :  { %v6251_v21 = vrot.slane %v6249_v40, 5  ;;  %v9420_v36 = vcombine.low %v6211_v32, %v6229_v57  ;;  %v6237_v23 = vor.u32 %v6236_v12, %v6233_v19  ;;  %v6254_v11 = vrot.slane %v6252_v38, 6  ;;  %v15527_v24 = vld [vmem:[#allocation8_spill] sm:$0xff]  ;;  %v9354_v40 = vld [vmem:[%s15270_s0 + $0x98] sm:$0xe]  ;;  %v13797_v17 = vpop.f32.mrf.mxu0  ;;  %v15530_v12 = vld [vmem:[#allocation23_spill] sm:$0xff] }
 0x1cd   :  { %v6246_v39 = vor.u32 %v6245_v28, %v6242_v52  ;;  %v6260_v60 = vrot.slane %v6258_v53, 5  ;;  %v6263_v54 = vrot.slane %v6261_v30, 6  ;;  %v1888_v55 = vadd.f32 %v15526_v37, %v13369_v18  ;;  %15528 = vst [vmem:[#allocation7_spill] sm:$0xff] %v13797_v17  ;;  %v15529_v32 = vld [vmem:[#allocation29_spill] sm:$0xff]  ;;  %v15531_v52 = vld [vmem:[#allocation34_spill] sm:$0xff] }
 0x1ce   :  { %v1891_v9 = vadd.f32 %v15527_v24, %v13379_v41  ;;  %10428 = vmatprep.mubr.msk.bf16.mxu0 %vm319_vm2, %v9420_v36  ;;  %v6238_v57 = vrot.slane %v6237_v23, 4  ;;  %v6255_v38 = vor.u32 %v6254_v11, %v6251_v21  ;;  %v1889_v53 = vadd.f32 %v15529_v32, %v13382_v34  ;;  %v9355_v28 = vld [vmem:[%s15270_s0 + $0xa0] sm:$0xe]  ;;  %v13815_v11 = vld [vmem:[%s15270_s0 + $0x9c] sm:$0x3]  ;;  %v13817_v34 = vpop.f32.mrf.mxu0 }
 0x1cf   :  { %v9370_v30 = vrot.slane %v9354_v40, 9  ;;  %v6264_v19 = vor.u32 %v6263_v54, %v6260_v60  ;;  %v13803_v18 = vadd.f32 %v15530_v12, %v1888_v55  ;;  %v5842_v37 = vrot.slane %v13363_v63, 5  ;;  %15532 = vst [vmem:[#allocation8_spill] sm:$0xff] %v13817_v34  ;;  %v15533_v23 = vld [vmem:[#allocation10_spill] sm:$0xff]  ;;  %v13824_v55 = vpop.f32.mrf.mxu1 }
 0x1d0   :  { %v13806_v41 = vadd.f32 %v15531_v52, %v1891_v9  ;;  %v6247_v21 = vsel %vm11229_vm12, %v6238_v57, %v6246_v39  ;;  %v6256_v36 = vrot.slane %v6255_v38, 4  ;;  %v13822_v60 = vadd.f32 %v15533_v23, %v1889_v53  ;;  %15534 = vst [vmem:[#allocation29_spill] sm:$0xff] %v13824_v55  ;;  %v13836_v39 = vld [vmem:[%s15270_s0 + $0xa4] sm:$0x3] }
 0x1d1   :  { %v9371_v54 = vrot.slane %v9355_v28, 9  ;;  %v5843_v63 = vsel %vm10980_vm6, %v9370_v30, %v5842_v37  ;;  %v5846_v24 = vrot.slane %v13374_v51, 5  ;;  %v6267_v9 = vshrl.u32 %v9354_v40, 16  ;;  %v13829_v12 = vpop.f32.mrf.mxu0  ;;  %v13844_v42 = vpop.f32.mrf.mxu1 }
 0x1d2   :  { %v6270_v32 = vshll.u32 %v9354_v40, 16  ;;  %15535 = vst [vmem:[#allocation23_spill] sm:$0xff] %v13829_v12  ;;  %v6265_v52 = vsel %vm11229_vm12, %v6256_v36, %v6264_v19  ;;  %v6276_v57 = vshrl.u32 %v13815_v11, 16  ;;  %v6279_v38 = vshll.u32 %v13815_v11, 16  ;;  %15537 = vst [vmem:[#allocation10_spill] sm:$0xff] %v13844_v42 }
 0x1d3   :  { %v6285_v53 = vshrl.u32 %v9355_v28, 16  ;;  %v9421_v30 = vcombine.low %v6247_v21, %v6265_v52  ;;  %v5847_v51 = vsel %vm10980_vm6, %v9371_v54, %v5846_v24  ;;  %v6269_v40 = vrot.slane %v6267_v9, 5  ;;  %v13842_v23 = vpop.f32.mrf.mxu0  ;;  %v9356_v54 = vld [vmem:[%s15270_s0 + $0xa8] sm:$0xe]  ;;  %v15539_v9 = vld [vmem:[#allocation24_spill] sm:$0xff] }
 0x1d4   :  { %v6272_v37 = vrot.slane %v6270_v32, 6  ;;  %15536 = vst [vmem:[#allocation34_spill] sm:$0xff] %v13842_v23  ;;  %v9384_v55 = vcombine.low %v5843_v63, %v5847_v51  ;;  %v6278_v19 = vrot.slane %v6276_v57, 5  ;;  %v6281_v36 = vrot.slane %v6279_v38, 6 }
 0x1d5   :  { %v6287_v12 = vrot.slane %v6285_v53, 5  ;;  %10429 = vmatmul.mubr.msk.bf16.gmra.mxu0 %vm319_vm2, %v9421_v30  ;;  %v6288_v17 = vshll.u32 %v9355_v28, 16  ;;  %v6294_v14 = vshrl.u32 %v13836_v39, 16  ;;  %v6297_v21 = vshll.u32 %v13836_v39, 16  ;;  %v13852_v24 = vpop.f32.mrf.mxu0  ;;  %v9357_v28 = vld [vmem:[%s15270_s0 + $0xb0] sm:$0xe] }
 0x1d6   :  { %v6273_v34 = vor.u32 %v6272_v37, %v6269_v40  ;;  %15538 = vst [vmem:[#allocation77_spill] sm:$0xff] %v13852_v24  ;;  %10412 = vmatprep.mubr.msk.bf16.mxu1 %vm319_vm2, %v9384_v55  ;;  %v6282_v63 = vor.u32 %v6281_v36, %v6278_v19  ;;  %v1894_v32 = vadd.f32 %v15539_v9, %v13415_v59  ;;  %v9372_v52 = vrot.slane %v9356_v54, 9  ;;  %v13864_v40 = vld [vmem:[%s15270_s0 + $0xac] sm:$0x3]  ;;  %v15540_v55 = vld [vmem:[#allocation12_spill] sm:$0xff]  ;;  %v13872_v9 = vpop.f32.mrf.mxu1 }
 0x1d7   :  { %v5850_v57 = vrot.slane %v13400_v15, 5  ;;  %v6290_v53 = vrot.slane %v6288_v17, 6  ;;  %v6296_v30 = vrot.slane %v6294_v14, 5  ;;  %v6299_v51 = vrot.slane %v6297_v21, 6  ;;  %15541 = vst [vmem:[#allocation24_spill] sm:$0xff] %v13872_v9  ;;  %v13874_v15 = vpop.f32.mrf.mxu0 }
 0x1d8   :  { %v6274_v38 = vrot.slane %v6273_v34, 4  ;;  %v13867_v37 = vadd.f32 %v15540_v55, %v1894_v32  ;;  %v9373_v19 = vrot.slane %v9357_v28, 9  ;;  %v5854_v36 = vrot.slane %v13412_v10, 5  ;;  %15542 = vst [vmem:[#allocation12_spill] sm:$0xff] %v13874_v15 }
 0x1d9   :  { %v5851_v59 = vsel %vm10980_vm6, %v9372_v52, %v5850_v57  ;;  %v6291_v14 = vor.u32 %v6290_v53, %v6287_v12  ;;  %v6300_v34 = vor.u32 %v6299_v51, %v6296_v30  ;;  %v6303_v21 = vshrl.u32 %v9356_v54, 16  ;;  %v13883_v52 = vld [vmem:[%s15270_s0 + $0xb4] sm:$0x3]  ;;  %v13887_v51 = vpop.f32.mrf.mxu1 }
 0x1da   :  { %v6283_v17 = vsel %vm11229_vm12, %v6274_v38, %v6282_v63  ;;  %v5855_v32 = vsel %vm10980_vm6, %v9373_v19, %v5854_v36  ;;  %v6306_v57 = vshll.u32 %v9356_v54, 16  ;;  %v6312_v10 = vshrl.u32 %v13864_v40, 16  ;;  %15543 = vst [vmem:[#allocation78_spill] sm:$0xff] %v13887_v51  ;;  %v13889_v19 = vpop.f32.mrf.mxu0 }
 0x1db   :  { %v6315_v55 = vshll.u32 %v13864_v40, 16  ;;  %v6292_v15 = vrot.slane %v6291_v14, 4  ;;  %v9385_v24 = vcombine.low %v5851_v59, %v5855_v32  ;;  %v6305_v23 = vrot.slane %v6303_v21, 5  ;;  %15544 = vst [vmem:[#allocation79_spill] sm:$0xff] %v13889_v19  ;;  %v9434_v14 = vld [vmem:[%s15270_s0 + $0x18] sm:$0xc] }
 0x1dc   :  { %v6321_v63 = vshrl.u32 %v9357_v28, 16  ;;  %v6308_v12 = vrot.slane %v6306_v57, 6  ;;  %v6314_v38 = vrot.slane %v6312_v10, 5  ;;  %v6324_v30 = vshll.u32 %v9357_v28, 16  ;;  %v15545_v19 = vld [vmem:[#allocation31_spill] sm:$0xff] }
 0x1dd   :  { %v6317_v53 = vrot.slane %v6315_v55, 6  ;;  %v6301_v36 = vsel %vm11229_vm12, %v6292_v15, %v6300_v34  ;;  %10413 = vmatmul.mubr.msk.bf16.gmra.mxu1 %vm319_vm2, %v9385_v24  ;;  %v6330_v9 = vshrl.u32 %v13883_v52, 16  ;;  %v6333_v59 = vshll.u32 %v13883_v52, 16  ;;  %v15546_v24 = vld [vmem:[#allocation26_spill] sm:$0xff] }
 0x1de   :  { %v6323_v54 = vrot.slane %v6321_v63, 5  ;;  %v9422_v21 = vcombine.low %v6283_v17, %v6301_v36  ;;  %v6309_v28 = vor.u32 %v6308_v12, %v6305_v23  ;;  %v6326_v57 = vrot.slane %v6324_v30, 6  ;;  %v9435_v63 = vld [vmem:[%s15270_s0 + $0x20] sm:$0xc]  ;;  %v15547_v23 = vld [vmem:[#allocation33_spill] sm:$0xff] }
 0x1df   :  { %v6318_v32 = vor.u32 %v6317_v53, %v6314_v38  ;;  %v6332_v10 = vrot.slane %v6330_v9, 5  ;;  %v6335_v55 = vrot.slane %v6333_v59, 6  ;;  %v1892_v15 = vadd.f32 %v15545_v19, %v13429_v7  ;;  %v9436_v9 = vld [vmem:[%s15270_s0 + $0x28] sm:$0xc]  ;;  %v13912_v7 = vpop.f32.mrf.mxu1  ;;  %v13914_v38 = vpop.f32.mrf.mxu0  ;;  %v15548_v53 = vld [vmem:[#allocation13_spill] sm:$0xff]  ;;  %v15549_v19 = vld [vmem:[#allocation14_spill] sm:$0xff] }
 0x1e0   :  { %v1895_v34 = vadd.f32 %v15546_v24, %v13443_v27  ;;  %10432 = vmatprep.mubr.msk.bf16.mxu0 %vm319_vm2, %v9422_v21  ;;  %v6310_v51 = vrot.slane %v6309_v28, 4  ;;  %v6327_v42 = vor.u32 %v6326_v57, %v6323_v54  ;;  %v1893_v17 = vadd.f32 %v15547_v23, %v13457_v47  ;;  %v9437_v47 = vld [vmem:[%s15270_s0 + $0x30] sm:$0xc]  ;;  %v15552_v24 = vld [vmem:[#allocation38_spill] sm:$0xff] }
 0x1e1   :  { %v9450_v12 = vrot.slane %v9434_v14, 10  ;;  %v6336_v27 = vor.u32 %v6335_v55, %v6332_v10  ;;  %v13917_v30 = vadd.f32 %v15548_v53, %v1892_v15  ;;  %v6566_v54 = vrot.slane %v13452_v4, 6  ;;  %v15550_v21 = vld [vmem:[#allocation28_spill] sm:$0xff]  ;;  %v10634_v4 = vld [vmem:[%s15270_s0 + $0x20] ss:$8 sps:$4 sm:$0xff]  }
 0x1e2   :  { %v13920_v36 = vadd.f32 %v15549_v19, %v1895_v34  ;;  %v6319_v59 = vsel %vm11229_vm12, %v6310_v51, %v6318_v32  ;;  %v6328_v14 = vrot.slane %v6327_v42, 4  ;;  %v13929_v28 = vadd.f32 %v15550_v21, %v1893_v17  ;;  %v13946_v17 = vpop.f32.mrf.mxu1 }
 0x1e3   :  { %v9451_v57 = vrot.slane %v9435_v63, 10  ;;  %v6567_v55 = vsel %vm11219_vm11, %v9450_v12, %v6566_v54  ;;  %v6570_v15 = vrot.slane %v13474_v33, 6  ;;  %v2606_v34 = vadd.f32 %v15552_v24, %v13495_v45  ;;  %v9438_v33 = vld [vmem:[%s15270_s0 + $0x38] sm:$0xc]  ;;  %v13948_v12 = vpop.f32.mrf.mxu0 }
 0x1e4   :  { %v9452_v23 = vrot.slane %v9436_v9, 10  ;;  %v6337_v42 = vsel %vm11229_vm12, %v6328_v14, %v6336_v27  ;;  %v6574_v51 = vrot.slane %v13500_v5, 6  ;;  %v9453_v32 = vrot.slane %v9437_v47, 10  ;;  %v15553_v9 = vld [vmem:[#allocation42_spill] sm:$0xff]  ;;  %v15554_v5 = vld [vmem:[#allocation40_spill] sm:$0xff] }
 0x1e5   :  { %v6578_v63 = vrot.slane %v13519_v16, 6  ;;  %v9423_v53 = vcombine.low %v6319_v59, %v6337_v42  ;;  %v6571_v45 = vsel %vm11219_vm11, %v9451_v57, %v6570_v15  ;;  %v13953_v19 = vadd.f32 %v15553_v9, %v2606_v34  ;;  %v9439_v16 = vld [vmem:[%s15270_s0 + $0x40] sm:$0xc]  ;;  %v15555_v14 = vld [vmem:[#allocation32_spill] sm:$0xff]  ;;  %v9440_v57 = vld [vmem:[%s15270_s0 + $0x48] sm:$0xc] }
 0x1e6   :  { %v2604_v27 = vadd.f32 %v15554_v5, %v13551_v31  ;;  %v9470_v54 = vcombine.low %v6567_v55, %v6571_v45  ;;  %v6575_v47 = vsel %vm11219_vm11, %v9452_v23, %v6574_v51  ;;  %v2607_v21 = vadd.f32 %v15555_v14, %v13561_v50  ;;  %v15556_v15 = vld [vmem:[#allocation44_spill] sm:$0xff]  ;;  %v15557_v55 = vld [vmem:[#allocation35_spill] sm:$0xff]  ;;  %v15558_v51 = vld [vmem:[#allocation41_spill] sm:$0xff]  ;;  %v13990_v45 = vpop.f32.mrf.mxu0 }
 0x1e7   :  { %v6579_v59 = vsel %vm11219_vm11, %v9453_v32, %v6578_v63  ;;  %10433 = vmatmul.mubr.msk.bf16.gmra.mxu0 %vm319_vm2, %v9423_v53  ;;  %v2605_v34 = vadd.f32 %v15557_v55, %v13577_v26  ;;  %v9454_v23 = vrot.slane %v9438_v33, 10  ;;  %v9441_v42 = vld [vmem:[%s15270_s0 + $0x50] sm:$0xc]  ;;  %v6582_v63 = vrot.slane %v13570_v6, 6  ;;  %v13988_v33 = vpop.f32.mrf.mxu1  ;;  %v15559_v5 = vld [vmem:[#allocation39_spill] sm:$0xff] }
 0x1e8   :  { %v9471_v31 = vcombine.low %v6575_v47, %v6579_v59  ;;  %v13971_v24 = vadd.f32 %v15556_v15, %v2604_v27  ;;  %v10641_v50 = vld [vmem:[%s15269_s1 + $0x150] sm:$0xff]   ;;  %10440 = vmatprep.mubr.msk.bf16.mxu1 %vm319_vm2, %v9470_v54  ;;  %10460 = vmatprep.mubr.msk.bf16.mxu0 %vm319_vm2, %v10634_v4  ;;  %v13984_v32 = vadd.f32 %v15558_v51, %v2607_v21  ;;  %v9455_v53 = vrot.slane %v9439_v16, 10  ;;  %v9442_v6 = vld [vmem:[%s15270_s0 + $0x78] sm:$0xc] }
 0x1e9   :  { %v6586_v26 = vrot.slane %v13592_v25, 6  ;;  %v13994_v9 = vadd.f32 %v13323_v61, %v2605_v34  ;;  %v2610_v4 = vadd.f32 %v15559_v5, %v13638_v2  ;;  %v9456_v27 = vrot.slane %v9440_v57, 10  ;;  %v9443_v2 = vld [vmem:[%s15270_s0 + $0x80] sm:$0xc]  ;;  %v15560_v14 = vld [vmem:[#allocation48_spill] sm:$0xff]  ;;  %v14027_v15 = vld [vmem:[%s15269_s1 + $0x178] sm:$0xff]  }
 0x1ea   :  { %10441 = vmatmul.mubr.msk.bf16.vlgmr.msra.gmra.mxu1 %vm319_vm2, %v9471_v31  ;;  %v6590_v54 = vrot.slane %v13626_v22, 6  ;;  %v6583_v25 = vsel %vm11219_vm11, %v9454_v23, %v6582_v63  ;;  %v9457_v61 = vrot.slane %v9441_v42, 10  ;;  %v6594_v47 = vrot.slane %v13654_v49, 6  ;;  %v10636_v22 = vld [vmem:[%s15270_s0 + $0x30] ss:$8 sps:$4 sm:$0xff]   ;;  %v15561_v49 = vld [vmem:[#allocation47_spill] sm:$0xff] }
 0x1eb   :  { %10477 = vmatpush3.bf16.msra.mxu1 %v13544_v35  ;;  %v6587_v16 = vsel %vm11219_vm11, %v9455_v53, %v6586_v26  ;;  %v10638_v35 = vld [vmem:[%s15270_s0 + $0x40] ss:$8 sps:$4 sm:$0xff]   ;;  %v14018_v21 = vadd.f32 %v15560_v14, %v2610_v4  ;;  %v2608_v31 = vadd.f32 %v15561_v49, %v13687_v3  ;;  %v15562_v34 = vld [vmem:[#allocation45_spill] sm:$0xff]  ;;  %v2609_v42 = vadd.f32 %v13352_v29, %v13708_v46  ;;  %v9445_v63 = vld [vmem:[%s15270_s0 + $0x90] sm:$0xc]  ;;  %v14041_v53 = vpop.f32.mrf.mxu1  ;;  %v14043_v26 = vpop.f32.mrf.mxu0 }
 0x1ec   :  { %v9472_v59 = vcombine.low %v6583_v25, %v6587_v16  ;;  %v6591_v57 = vsel %vm11219_vm11, %v9456_v27, %v6590_v54  ;;  %10478 = vmatprep.subr.bf16.mxu1 %v10641_v50  ;;  %v6595_v55 = vsel %vm11219_vm11, %v9457_v61, %v6594_v47  ;;  %v2611_v23 = vadd.f32 %v15562_v34, %v13690_v44  ;;  %v9444_v3 = vld [vmem:[%s15270_s0 + $0x88] sm:$0xc]  ;;  %v10643_v4 = vld [vmem:[%s15269_s1 + $0x160] sm:$0xff]  }
 0x1ed   :  { %v9458_v51 = vrot.slane %v9442_v6, 10  ;;  %v9473_v5 = vcombine.low %v6591_v57, %v6595_v55  ;;  %v14047_v44 = vadd.f32 %v13376_v8, %v2608_v31  ;;  %v6598_v29 = vrot.slane %v13699_v62, 6  ;;  %v15563_v27 = vld [vmem:[#allocation50_spill] sm:$0xff]  ;;  %v9446_v8 = vld [vmem:[%s15270_s0 + $0x98] sm:$0xc]  ;;  %v14083_v57 = vpop.f32.mrf.mxu1  ;;  %v14098_v34 = vld [vmem:[%s15269_s1 + $0x188] sm:$0xff]  }
 0x1ee   :  { %10444 = vmatprep.mubr.msk.bf16.mxu1 %vm319_vm2, %v9472_v59  ;;  %v9459_v46 = vrot.slane %v9443_v2, 10  ;;  %v14054_v54 = vadd.f32 %v15563_v27, %v2611_v23  ;;  %v14057_v6 = vadd.f32 %v13424_v20, %v2609_v42  ;;  %v6602_v25 = vrot.slane %v13722_v43, 6  ;;  %v15564_v16 = vld [vmem:[#allocation46_spill] sm:$0xff]  ;;  %v15566_v59 = vld [vmem:[#allocation49_spill] sm:$0xff]  ;;  %15567 = vst [vmem:[#allocation31_spill] sm:$0xff] %v14083_v57 }
 0x1ef   :  { %v2614_v61 = vadd.f32 %v15564_v16, %v13759_v58  ;;  %10479 = vmatpush3.bf16.msra.mxu1 %v10641_v50  ;;  %10461 = vmatmul.mubr.msk.bf16.vlgmr.msra.gmra.mxu0 %vm319_vm2, %v10636_v22  ;;  %v6599_v62 = vsel %vm11219_vm11, %v9458_v51, %v6598_v29  ;;  %v9460_v47 = vrot.slane %v9444_v3, 10  ;;  %v6606_v2 = vrot.slane %v13752_v48, 6  ;;  %v15565_v58 = vld [vmem:[#allocation52_spill] sm:$0xff]  ;;  %v9447_v48 = vld [vmem:[%s15270_s0 + $0xa0] sm:$0xc]  ;;  %v15571_v3 = vld [vmem:[#allocation53_spill] sm:$0xff] }
 0x1f0   :  { %v9461_v20 = vrot.slane %v9445_v63, 10  ;;  %10516 = vmatprep.subr.bf16.mxu1 %v14027_v15  ;;  %10497 = vmatpush3.bf16.msra.mxu0 %v13631_v56  ;;  %v6603_v43 = vsel %vm11219_vm11, %v9459_v46, %v6602_v25  ;;  %v6610_v22 = vrot.slane %v13773_v0, 6  ;;  %v2612_v14 = vadd.f32 %v15566_v59, %v13803_v18  ;;  %v14085_v56 = vpop.f32.mrf.mxu0  ;;  %v15569_v0 = vld [vmem:[#allocation51_spill] sm:$0xff]  ;;  %v15570_v42 = vld [vmem:[#allocation54_spill] sm:$0xff]  ;;  %v10639_v29 = vld [vmem:[%s15270_s0 + $0x50] ss:$8 sps:$4 sm:$0xff]  }
 0x1f1   :  { %10464 = vmatprep.mubr.msk.bf16.mxu0 %vm319_vm2, %v10638_v35  ;;  %v14075_v50 = vadd.f32 %v15565_v58, %v2614_v61  ;;  %15568 = vst [vmem:[#allocation26_spill] sm:$0xff] %v14085_v56  ;;  %v9474_v35 = vcombine.low %v6599_v62, %v6603_v43  ;;  %v6607_v49 = vsel %vm11219_vm11, %v9460_v47, %v6606_v2  ;;  %v9462_v55 = vrot.slane %v9446_v8, 10  ;;  %v9448_v18 = vld [vmem:[%s15270_s0 + $0xa8] sm:$0xc]  ;;  %v15572_v27 = vld [vmem:[#allocation9_spill] sm:$0xff] }
 0x1f2   :  { %10445 = vmatmul.mubr.msk.bf16.gmra.mxu1 %vm319_vm2, %v9473_v5  ;;  %10498 = vmatprep.subr.bf16.mxu0 %v10643_v4  ;;  %v2615_v31 = vadd.f32 %v15569_v0, %v13806_v41  ;;  %v6611_v23 = vsel %vm11219_vm11, %v9461_v20, %v6610_v22  ;;  %v14103_v51 = vadd.f32 %v15570_v42, %v2612_v14  ;;  %v6614_v41 = vrot.slane %v13815_v11, 6  ;;  %v9449_v5 = vld [vmem:[%s15270_s0 + $0xb0] sm:$0xc]  ;;  %v10640_v11 = vld [vmem:[%s15270_s0 + $0x80] ss:$8 sps:$4 sm:$0xff]   ;;  %v14134_v58 = vpop.f32.mrf.mxu0 }
 0x1f3   :  { %v2613_v63 = vadd.f32 %v15571_v3, %v13822_v60  ;;  %10448 = vmatprep.mubr.msk.bf16.mxu1 %vm319_vm2, %v9474_v35  ;;  %v9475_v46 = vcombine.low %v6607_v49, %v6611_v23  ;;  %v9463_v16 = vrot.slane %v9447_v48, 10  ;;  %v6618_v61 = vrot.slane %v13836_v39, 6  ;;  %v15573_v60 = vld [vmem:[#allocation58_spill] sm:$0xff]  ;;  %v15574_v47 = vld [vmem:[#allocation3_spill] sm:$0xff]  ;;  %v14132_v39 = vpop.f32.mrf.mxu1  ;;  %15576 = vst [vmem:[#allocation13_spill] sm:$0xff] %v14134_v58  ;;  %v15577_v48 = vld [vmem:[#allocation20_spill] sm:$0xff] }
 0x1f4   :  { %v14116_v25 = vadd.f32 %v15572_v27, %v2615_v31  ;;  %10499 = vmatpush3.bf16.msra.mxu0 %v10643_v4  ;;  %v6615_v62 = vsel %vm11219_vm11, %v9462_v55, %v6614_v41  ;;  %v2618_v2 = vadd.f32 %v15574_v47, %v13867_v37  ;;  %v9464_v20 = vrot.slane %v9448_v18, 10  ;;  %v9526_v43 = vld [vmem:[%s15270_s0 + $0x20] sm:$0xf]  ;;  %15575 = vst [vmem:[#allocation33_spill] sm:$0xff] %v14132_v39  ;;  %v15578_v49 = vld [vmem:[#allocation11_spill] sm:$0xff]  ;;  %v15579_v31 = vld [vmem:[#allocation57_spill] sm:$0xff] }
 0x1f5   :  { %v14123_v8 = vadd.f32 %v15573_v60, %v2613_v63  ;;  %v6619_v4 = vsel %vm11219_vm11, %v9463_v16, %v6618_v61  ;;  %v6622_v22 = vrot.slane %v13864_v40, 6  ;;  %v9465_v59 = vrot.slane %v9449_v5, 10  ;;  %10536 = vmatprep.subr.bf16.mxu0 %v14098_v34  ;;  %v9527_v18 = vld [vmem:[%s15270_s0 + $0x24] sm:$0x1]  ;;  %v9528_v40 = vld [vmem:[%s15270_s0 + $0x28] sm:$0xf]  ;;  %v14184_v60 = vpop.f32.mrf.mxu1 }
 0x1f6   :  { %v6626_v14 = vrot.slane %v13883_v52, 6  ;;  %v9476_v37 = vcombine.low %v6615_v62, %v6619_v4  ;;  %v14142_v35 = vadd.f32 %v15577_v48, %v2618_v2  ;;  %v2616_v0 = vadd.f32 %v15578_v49, %v13917_v30  ;;  %v15580_v23 = vld [vmem:[#allocation59_spill] sm:$0xff]  ;;  %v14169_v63 = vld [vmem:[%s15270_s0 + $0x20] sm:$0xe]  ;;  %v15582_v27 = vld [vmem:[#allocation17_spill] sm:$0xff]  ;;  %15583 = vst [vmem:[#allocation14_spill] sm:$0xff] %v14184_v60  ;;  %v14186_v62 = vpop.f32.mrf.mxu0 }
 0x1f7   :  { %v2619_v55 = vadd.f32 %v15579_v31, %v13920_v36  ;;  %10465 = vmatmul.mubr.msk.bf16.gmra.mxu0 %vm319_vm2, %v10639_v29  ;;  %v14157_v52 = vsel %vm11219_vm11, %v9464_v20, %v6622_v22  ;;  %v2617_v36 = vadd.f32 %v15580_v23, %v13929_v28  ;;  %v9529_v42 = vld [vmem:[%s15270_s0 + $0x2c] sm:$0x1]  ;;  %v7050_v3 = vshrl.u32 %v9526_v43, 16  ;;  %v14182_v61 = vld [vmem:[%s15270_s0 + $0x28] sm:$0xe]  ;;  %15584 = vst [vmem:[#allocation28_spill] sm:$0xff] %v14186_v62 }
 0x1f8   :  { %v6627_v30 = vsel %vm11219_vm11, %v9465_v59, %v6626_v14  ;;  %10468 = vmatprep.mubr.msk.bf16.mxu0 %vm319_vm2, %v10640_v11  ;;  %v15581_v5 = vld [vmem:[#allocation15_spill] sm:$0xff]  ;;  %v7053_v28 = vshll.u32 %v9526_v43, 16  ;;  %v10642_v11 = vld [vmem:[%s15270_s0 + $0x90] ss:$8 sps:$4 sm:$0xff]   ;;  %v15585_v47 = vld [vmem:[#allocation30_spill] sm:$0xff]  ;;  %v7059_v43 = vshll.u32 %v9527_v18, 16 }
 0x1f9   :  { %v9477_v41 = vcombine.low %v14157_v52, %v6627_v30  ;;  %v14174_v29 = vadd.f32 %v15581_v5, %v2616_v0  ;;  %v14177_v16 = vadd.f32 %v15582_v27, %v2619_v55  ;;  %v14193_v2 = vadd.f32 %v15585_v47, %v2617_v36  ;;  %v9531_v52 = vld [vmem:[%s15270_s0 + $0x34] sm:$0x1]  ;;  %v14209_v5 = vpop.f32.mrf.mxu0  ;;  %v15588_v27 = vld [vmem:[#allocation22_spill] sm:$0xff]  ;;  %v9532_v47 = vld [vmem:[%s15270_s0 + $0x38] sm:$0xf] }
 0x1fa   :  { %10449 = vmatmul.mubr.msk.bf16.gmra.mxu1 %vm319_vm2, %v9475_v46  ;;  %v7052_v20 = vrot.slane %v7050_v3, 4  ;;  %v7064_v4 = vshrl.u32 %v9528_v40, 16  ;;  %v7055_v22 = vrot.slane %v7053_v28, 5  ;;  %v7067_v59 = vshll.u32 %v9528_v40, 16  ;;  %v9530_v46 = vld [vmem:[%s15270_s0 + $0x30] sm:$0xf]  ;;  %v14207_v3 = vpop.f32.mrf.mxu1 }
 0x1fb   :  { %10452 = vmatprep.mubr.msk.bf16.mxu1 %vm319_vm2, %v9476_v37  ;;  %v7073_v14 = vshll.u32 %v9529_v42, 16  ;;  %v9596_v48 = vrot.slane %v14169_v63, 9  ;;  %v7061_v49 = vrot.slane %v7059_v43, 5  ;;  %v7501_v31 = vrot.slane %v9527_v18, 5  ;;  %v10644_v37 = vld [vmem:[%s15270_s0 + $0xa0] ss:$8 sps:$4 sm:$0xff]  }
 0x1fc   :  { %v7066_v0 = vrot.slane %v7064_v4, 4  ;;  %v9597_v55 = vrot.slane %v14182_v61, 9  ;;  %v7056_v40 = vor.u32 %v7055_v22, %v7052_v20  ;;  %v7069_v30 = vrot.slane %v7067_v59, 5  ;;  %15586 = vst [vmem:[#allocation4_spill] sm:$0xff] %v14207_v3  ;;  %15587 = vst [vmem:[#allocation38_spill] sm:$0xff] %v14209_v5  ;;  %v14243_v3 = vpop.f32.mrf.mxu1 }
 0x1fd   :  { %v7075_v23 = vrot.slane %v7073_v14, 5  ;;  %v7505_v36 = vrot.slane %v9529_v42, 5  ;;  %v14213_v18 = vsel %vm10980_vm6, %v9596_v48, %v7501_v31  ;;  %v3378_v28 = vadd.f32 %v15588_v27, %v13953_v19  ;;  %v9533_v59 = vld [vmem:[%s15270_s0 + $0x3c] sm:$0x1]  ;;  %v14228_v19 = vld [vmem:[%s15270_s0 + $0x30] sm:$0xe] }
 0x1fe   :  { %v7078_v43 = vshrl.u32 %v9530_v46, 16  ;;  %v7081_v20 = vshll.u32 %v9530_v46, 16  ;;  %v7057_v4 = vrot.slane %v7056_v40, 4  ;;  %v7070_v22 = vor.u32 %v7069_v30, %v7066_v0  ;;  %v15589_v46 = vld [vmem:[#allocation61_spill] sm:$0xff]  ;;  %15591 = vst [vmem:[#allocation42_spill] sm:$0xff] %v14243_v3 }
 0x1ff   :  { %v7506_v42 = vsel %vm10980_vm6, %v9597_v55, %v7505_v36  ;;  %v7087_v14 = vshll.u32 %v9531_v52, 16  ;;  %10469 = vmatmul.mubr.msk.bf16.gmra.mxu0 %vm319_vm2, %v10642_v11  ;;  %v14233_v31 = vadd.f32 %v15589_v46, %v3378_v28  ;;  %v14238_v55 = vld [vmem:[%s15270_s0 + $0x38] sm:$0xe]  ;;  %v7092_v11 = vshrl.u32 %v9532_v47, 16 }
 0x200   :  { %v9616_v48 = vcombine.low %v14213_v18, %v7506_v42  ;;  %v7080_v0 = vrot.slane %v7078_v43, 4  ;;  %v7083_v40 = vrot.slane %v7081_v20, 5  ;;  %10472 = vmatprep.mubr.msk.bf16.mxu0 %vm319_vm2, %v10644_v37  ;;  %v7062_v36 = vsel %vm10738_vm3, %v7057_v4, %v7061_v49  ;;  %v14245_v18 = vpop.f32.mrf.mxu0  ;;  %v9534_v4 = vld [vmem:[%s15270_s0 + $0x40] sm:$0xf] }
 0x201   :  { %v7071_v27 = vrot.slane %v7070_v22, 4  ;;  %v7089_v5 = vrot.slane %v7087_v14, 5  ;;  %15592 = vst [vmem:[#allocation40_spill] sm:$0xff] %v14245_v18  ;;  %v7095_v43 = vshll.u32 %v9532_v47, 16  ;;  %v7101_v20 = vshll.u32 %v9533_v59, 16  ;;  %v14255_v22 = vpop.f32.mrf.mxu1 }
 0x202   :  { %10453 = vmatmul.mubr.msk.bf16.gmra.mxu1 %vm319_vm2, %v9477_v41  ;;  %v7084_v28 = vor.u32 %v7083_v40, %v7080_v0  ;;  %v9598_v42 = vrot.slane %v14228_v19, 9  ;;  %v7094_v46 = vrot.slane %v7092_v11, 4  ;;  %v7509_v62 = vrot.slane %v9531_v52, 5  ;;  %15593 = vst [vmem:[#allocation32_spill] sm:$0xff] %v14255_v22  ;;  %v14257_v14 = vpop.f32.mrf.mxu0  ;;  %v10645_v41 = vld [vmem:[%s15270_s0 + $0xb0] ss:$8 sps:$4 sm:$0xff]  }
 0x203   :  { %v7076_v37 = vsel %vm10738_vm3, %v7071_v27, %v7075_v23  ;;  %v9599_v49 = vrot.slane %v14238_v55, 9  ;;  %15594 = vst [vmem:[#allocation44_spill] sm:$0xff] %v14257_v14  ;;  %v7097_v40 = vrot.slane %v7095_v43, 5  ;;  %v7103_v23 = vrot.slane %v7101_v20, 5  ;;  %v15595_v11 = vld [vmem:[#allocation16_spill] sm:$0xff]  ;;  %v15596_v22 = vld [vmem:[#allocation55_spill] sm:$0xff]  ;;  %v14270_v14 = vpop.f32.mrf.mxu1 }
 0x204   :  { %v9562_v47 = vcombine.low %v7062_v36, %v7076_v37  ;;  %v7085_v0 = vrot.slane %v7084_v28, 4  ;;  %v14264_v52 = vsel %vm10980_vm6, %v9598_v42, %v7509_v62  ;;  %v7513_v27 = vrot.slane %v9533_v59, 5  ;;  %15597 = vst [vmem:[#allocation35_spill] sm:$0xff] %v14270_v14  ;;  %v14272_v58 = vpop.f32.mrf.mxu0  ;;  %v15599_v62 = vld [vmem:[#allocation60_spill] sm:$0xff]  ;;  %v15600_v42 = vld [vmem:[#allocation18_spill] sm:$0xff] }
 0x205   :  { %v3376_v18 = vadd.f32 %v15595_v11, %v13971_v24  ;;  %v3379_v3 = vadd.f32 %v15596_v22, %v13984_v32  ;;  %15598 = vst [vmem:[#allocation41_spill] sm:$0xff] %v14272_v58  ;;  %v7098_v28 = vor.u32 %v7097_v40, %v7094_v46  ;;  %v3377_v43 = vadd.f32 %v15599_v62, %v13994_v9  ;;  %v9535_v24 = vld [vmem:[%s15270_s0 + $0x44] sm:$0x1]  ;;  %v9536_v32 = vld [vmem:[%s15270_s0 + $0x48] sm:$0xf] }
 0x206   :  { %10480 = vmatprep.mubr.msk.bf16.mxu1 %vm319_vm2, %v9562_v47  ;;  %v7090_v36 = vsel %vm10738_vm3, %v7085_v0, %v7089_v5  ;;  %v7106_v59 = vshrl.u32 %v9534_v4, 16  ;;  %v7514_v20 = vsel %vm10980_vm6, %v9599_v49, %v7513_v27  ;;  %v15601_v5 = vld [vmem:[#allocation36_spill] sm:$0xff]  ;;  %v9537_v9 = vld [vmem:[%s15270_s0 + $0x4c] sm:$0x1]  ;;  %v7109_v22 = vshll.u32 %v9534_v4, 16  ;;  %v14301_v0 = vpop.f32.mrf.mxu1  ;;  %v14303_v40 = vpop.f32.mrf.mxu0  ;;  %v15604_v49 = vld [vmem:[#allocation65_spill] sm:$0xff] }
 0x207   :  { %v14288_v37 = vadd.f32 %v15600_v42, %v3376_v18  ;;  %v14291_v46 = vadd.f32 %v15601_v5, %v3379_v3  ;;  %v14299_v47 = vld [vmem:[%s15270_s0 + $0x40] sm:$0xe]  ;;  %15602 = vst [vmem:[#allocation39_spill] sm:$0xff] %v14301_v0  ;;  %15603 = vst [vmem:[#allocation48_spill] sm:$0xff] %v14303_v40  ;;  %10473 = vmatmul.mubr.msk.bf16.gmra.mxu0 %vm319_vm2, %v10645_v41  ;;  %v7099_v18 = vrot.slane %v7098_v28, 4  ;;  %v7115_v42 = vshll.u32 %v9535_v24, 16 }
 0x208   :  { %v9617_v3 = vcombine.low %v14264_v52, %v7514_v20  ;;  %v14308_v27 = vadd.f32 %v15604_v49, %v3377_v43  ;;  %v7108_v11 = vrot.slane %v7106_v59, 4  ;;  %v9538_v4 = vld [vmem:[%s15270_s0 + $0x50] sm:$0xf]  ;;  %10500 = vmatprep.mubr.msk.bf16.mxu0 %vm319_vm2, %v9616_v48  ;;  %v7111_v62 = vrot.slane %v7109_v22, 5  ;;  %v14317_v41 = vld [vmem:[%s15270_s0 + $0x48] sm:$0xe]  ;;  %v14319_v52 = vpop.f32.mrf.mxu1  ;;  %v14321_v28 = vpop.f32.mrf.mxu0 }
 0x209   :  { %v7120_v5 = vshrl.u32 %v9536_v32, 16  ;;  %v7123_v0 = vshll.u32 %v9536_v32, 16  ;;  %15605 = vst [vmem:[#allocation47_spill] sm:$0xff] %v14319_v52  ;;  %15606 = vst [vmem:[#allocation45_spill] sm:$0xff] %v14321_v28  ;;  %v7104_v43 = vsel %vm10738_vm3, %v7099_v18, %v7103_v23  ;;  %v7129_v59 = vshll.u32 %v9537_v9, 16  ;;  %v10648_v23 = vld [vmem:[%s15269_s1 + $0x170] sm:$0xff]  }
 0x20a   :  { %v9600_v20 = vrot.slane %v14299_v47, 9  ;;  %v7517_v48 = vrot.slane %v9535_v24, 5  ;;  %v9540_v32 = vld [vmem:[%s15270_s0 + $0x58] sm:$0xf]  ;;  %v9563_v22 = vcombine.low %v7090_v36, %v7104_v43  ;;  %v7112_v49 = vor.u32 %v7111_v62, %v7108_v11  ;;  %v9539_v52 = vld [vmem:[%s15270_s0 + $0x54] sm:$0x1]  ;;  %v14335_v18 = vpop.f32.mrf.mxu1  ;;  %v14337_v28 = vpop.f32.mrf.mxu0 }
 0x20b   :  { %v7117_v40 = vrot.slane %v7115_v42, 5  ;;  %v7122_v58 = vrot.slane %v7120_v5, 4  ;;  %15607 = vst [vmem:[#allocation50_spill] sm:$0xff] %v14335_v18  ;;  %15608 = vst [vmem:[#allocation46_spill] sm:$0xff] %v14337_v28  ;;  %v7125_v24 = vrot.slane %v7123_v0, 5  ;;  %v7131_v14 = vrot.slane %v7129_v59, 5 }
 0x20c   :  { %v7518_v36 = vsel %vm10980_vm6, %v9600_v20, %v7517_v48  ;;  %v9601_v11 = vrot.slane %v14317_v41, 9  ;;  %10481 = vmatmul.mubr.msk.bf16.vlgmr.msra.gmra.mxu1 %vm319_vm2, %v9563_v22  ;;  %v7113_v62 = vrot.slane %v7112_v49, 4  ;;  %v7521_v42 = vrot.slane %v9537_v9, 5  ;;  %v15609_v5 = vld [vmem:[#allocation62_spill] sm:$0xff]  ;;  %v9541_v18 = vld [vmem:[%s15270_s0 + $0x5c] sm:$0x1]  ;;  %v14348_v28 = vpop.f32.mrf.mxu1  ;;  %v14350_v0 = vpop.f32.mrf.mxu0 }
 0x20d   :  { %v3382_v43 = vadd.f32 %v15609_v5, %v14018_v21  ;;  %v7134_v56 = vshrl.u32 %v9538_v4, 16  ;;  %15610 = vst [vmem:[#allocation52_spill] sm:$0xff] %v14348_v28  ;;  %15611 = vst [vmem:[#allocation49_spill] sm:$0xff] %v14350_v0  ;;  %10517 = vmatpush3.bf16.msra.mxu1 %v14027_v15  ;;  %v7126_v59 = vor.u32 %v7125_v24, %v7122_v58  ;;  %v7137_v20 = vshll.u32 %v9538_v4, 16  ;;  %v14356_v9 = vld [vmem:[%s15270_s0 + $0x50] sm:$0xe] }
 0x20e   :  { %v7143_v48 = vshll.u32 %v9539_v52, 16  ;;  %v7148_v22 = vshrl.u32 %v9540_v32, 16  ;;  %v7118_v21 = vsel %vm10738_vm3, %v7113_v62, %v7117_v40  ;;  %v7522_v49 = vsel %vm10980_vm6, %v9601_v11, %v7521_v42  ;;  %v15612_v5 = vld [vmem:[#allocation67_spill] sm:$0xff]  ;;  %v14368_v15 = vld [vmem:[%s15270_s0 + $0x58] sm:$0xe]  ;;  %10518 = vmatprep.subr.bf16.mxu1 %v10648_v23  ;;  %v10649_v58 = vld [vmem:[%s15269_s1 + $0x180] sm:$0xff]   ;;  %v14373_v4 = vpop.f32.mrf.mxu0 }
 0x20f   :  { %v14363_v28 = vadd.f32 %v15612_v5, %v3382_v43  ;;  %v7136_v0 = vrot.slane %v7134_v56, 4  ;;  %15613 = vst [vmem:[#allocation51_spill] sm:$0xff] %v14373_v4  ;;  %10501 = vmatmul.mubr.msk.bf16.vlgmr.msra.gmra.mxu0 %vm319_vm2, %v9617_v3  ;;  %v7127_v40 = vrot.slane %v7126_v59, 4  ;;  %v9618_v24 = vcombine.low %v7518_v36, %v7522_v49 }
 0x210   :  { %v7139_v11 = vrot.slane %v7137_v20, 5  ;;  %v7145_v62 = vrot.slane %v7143_v48, 5  ;;  %10537 = vmatpush3.bf16.msra.mxu0 %v14098_v34  ;;  %v7150_v56 = vrot.slane %v7148_v22, 4  ;;  %v7151_v42 = vshll.u32 %v9540_v32, 16  ;;  %v14378_v60 = vpop.f32.mrf.mxu1  ;;  %v9542_v34 = vld [vmem:[%s15270_s0 + $0x80] sm:$0xf]  ;;  %v14387_v22 = vpop.f32.mrf.mxu0 }
 0x211   :  { %v7157_v43 = vshll.u32 %v9541_v18, 16  ;;  %v9602_v5 = vrot.slane %v14356_v9, 9  ;;  %15614 = vst [vmem:[#allocation54_spill] sm:$0xff] %v14378_v60  ;;  %v7132_v39 = vsel %vm10738_vm3, %v7127_v40, %v7131_v14  ;;  %10504 = vmatprep.mubr.msk.bf16.mxu0 %vm319_vm2, %v9618_v24  ;;  %v7525_v3 = vrot.slane %v9539_v52, 5  ;;  %10519 = vmatpush3.bf16.msra.mxu1 %v10648_v23  ;;  %15615 = vst [vmem:[#allocation53_spill] sm:$0xff] %v14387_v22  ;;  %v15616_v52 = vld [vmem:[#allocation63_spill] sm:$0xff] }
 0x212   :  { %v7140_v4 = vor.u32 %v7139_v11, %v7136_v0  ;;  %v9603_v36 = vrot.slane %v14368_v15, 9  ;;  %v9564_v32 = vcombine.low %v7118_v21, %v7132_v39  ;;  %v7153_v59 = vrot.slane %v7151_v42, 5  ;;  %10538 = vmatprep.subr.bf16.mxu0 %v10649_v58  ;;  %v15617_v40 = vld [vmem:[#allocation64_spill] sm:$0xff]  ;;  %v9544_v39 = vld [vmem:[%s15270_s0 + $0x88] sm:$0xf]  ;;  %v15618_v21 = vld [vmem:[#allocation66_spill] sm:$0xff]  ;;  %v14409_v42 = vpop.f32.mrf.mxu1 }
 0x213   :  { %v7159_v20 = vrot.slane %v7157_v43, 5  ;;  %v7529_v48 = vrot.slane %v9541_v18, 5  ;;  %v7526_v14 = vsel %vm10980_vm6, %v9602_v5, %v7525_v3  ;;  %v3380_v0 = vadd.f32 %v15616_v52, %v14047_v44  ;;  %v9543_v44 = vld [vmem:[%s15270_s0 + $0x84] sm:$0x1]  ;;  %15619 = vst [vmem:[#allocation9_spill] sm:$0xff] %v14409_v42  ;;  %v15620_v5 = vld [vmem:[#allocation5_spill] sm:$0xff] }
 0x214   :  { %v7141_v49 = vrot.slane %v7140_v4, 4  ;;  %v3383_v24 = vadd.f32 %v15617_v40, %v14054_v54  ;;  %10484 = vmatprep.mubr.msk.bf16.mxu1 %vm319_vm2, %v9564_v32  ;;  %v7154_v23 = vor.u32 %v7153_v59, %v7150_v56  ;;  %v3381_v4 = vadd.f32 %v15618_v21, %v14057_v6  ;;  %v9545_v54 = vld [vmem:[%s15270_s0 + $0x8c] sm:$0x1]  ;;  %10539 = vmatpush3.bf16.msra.mxu0 %v10649_v58  ;;  %v15621_v6 = vld [vmem:[#allocation37_spill] sm:$0xff]  ;;  %v14422_v32 = vld [vmem:[%s15270_s0 + $0x80] sm:$0xe] }
 0x215   :  { %v7530_v18 = vsel %vm10980_vm6, %v9603_v36, %v7529_v48  ;;  %v7162_v11 = vshrl.u32 %v9542_v34, 16  ;;  %v14414_v3 = vadd.f32 %v15620_v5, %v3380_v0  ;;  %v15622_v48 = vld [vmem:[#allocation25_spill] sm:$0xff]  ;;  %v7165_v40 = vshll.u32 %v9542_v34, 16  ;;  %v14444_v5 = vpop.f32.mrf.mxu1  ;;  %v9547_v22 = vld [vmem:[%s15270_s0 + $0x94] sm:$0x1]  ;;  %v15717_v13 = vld [vmem:[#allocation46_spill] sm:$0xff] }
 0x216   :  { %v7146_v56 = vsel %vm10738_vm3, %v7141_v49, %v7145_v62  ;;  %v9619_v43 = vcombine.low %v7526_v14, %v7530_v18  ;;  %v14417_v36 = vadd.f32 %v15621_v6, %v3383_v24  ;;  %v7155_v59 = vrot.slane %v7154_v23, 4  ;;  %v9546_v62 = vld [vmem:[%s15270_s0 + $0x90] sm:$0xf]  ;;  %v14430_v49 = vpop.f32.mrf.mxu0  ;;  %v14436_v23 = vld [vmem:[%s15270_s0 + $0x88] sm:$0xe]  ;;  %15624 = vst [vmem:[#allocation3_spill] sm:$0xff] %v14444_v5 }
 0x217   :  { %v14425_v58 = vadd.f32 %v15622_v48, %v3381_v4  ;;  %v7164_v52 = vrot.slane %v7162_v11, 4  ;;  %15623 = vst [vmem:[#allocation58_spill] sm:$0xff] %v14430_v49  ;;  %v7171_v14 = vshll.u32 %v9543_v44, 16  ;;  %v7176_v0 = vshrl.u32 %v9544_v39, 16 }
 0x218   :  { %10505 = vmatmul.mubr.msk.bf16.gmra.mxu0 %vm319_vm2, %v9619_v43  ;;  %v7179_v24 = vshll.u32 %v9544_v39, 16  ;;  %v7185_v18 = vshll.u32 %v9545_v54, 16  ;;  %v7160_v34 = vsel %vm10738_vm3, %v7155_v59, %v7159_v20  ;;  %v7167_v21 = vrot.slane %v7165_v40, 5  ;;  %v9548_v43 = vld [vmem:[%s15270_s0 + $0x98] sm:$0xf]  ;;  %v14452_v40 = vpop.f32.mrf.mxu0 }
 0x219   :  { %v9604_v4 = vrot.slane %v14422_v32, 9  ;;  %v7533_v11 = vrot.slane %v9543_v44, 5  ;;  %v9565_v39 = vcombine.low %v7146_v56, %v7160_v34  ;;  %v7173_v6 = vrot.slane %v7171_v14, 5  ;;  %15625 = vst [vmem:[#allocation20_spill] sm:$0xff] %v14452_v40  ;;  %v15626_v14 = vld [vmem:[#allocation68_spill] sm:$0xff] }
 0x21a   :  { %v7178_v48 = vrot.slane %v7176_v0, 4  ;;  %v7181_v49 = vrot.slane %v7179_v24, 5  ;;  %v7168_v42 = vor.u32 %v7167_v21, %v7164_v52  ;;  %v7187_v20 = vrot.slane %v7185_v18, 5  ;;  %v9549_v52 = vld [vmem:[%s15270_s0 + $0x9c] sm:$0x1] }
 0x21b   :  { %v7534_v59 = vsel %vm10980_vm6, %v9604_v4, %v7533_v11  ;;  %v9605_v44 = vrot.slane %v14436_v23, 9  ;;  %10485 = vmatmul.mubr.msk.bf16.gmra.mxu1 %vm319_vm2, %v9565_v39  ;;  %v7537_v56 = vrot.slane %v9545_v54, 5  ;;  %v3386_v0 = vadd.f32 %v15626_v14, %v14075_v50  ;;  %v14460_v11 = vpop.f32.mrf.mxu1  ;;  %v14470_v50 = vld [vmem:[%s15270_s0 + $0x90] sm:$0xe] }
 0x21c   :  { %v7182_v5 = vor.u32 %v7181_v49, %v7178_v48  ;;  %v7190_v24 = vshrl.u32 %v9546_v62, 16  ;;  %v7169_v34 = vrot.slane %v7168_v42, 4  ;;  %v7193_v18 = vshll.u32 %v9546_v62, 16  ;;  %15627 = vst [vmem:[#allocation11_spill] sm:$0xff] %v14460_v11  ;;  %v15628_v49 = vld [vmem:[#allocation43_spill] sm:$0xff] }
 0x21d   :  { %v7199_v21 = vshll.u32 %v9547_v22, 16  ;;  %v7204_v4 = vshrl.u32 %v9548_v43, 16  ;;  %v7538_v39 = vsel %vm10980_vm6, %v9605_v44, %v7537_v56  ;;  %v14465_v54 = vadd.f32 %v15628_v49, %v3386_v0  ;;  %v14479_v44 = vpop.f32.mrf.mxu0 }
 0x21e   :  { %v7183_v60 = vrot.slane %v7182_v5, 4  ;;  %v7192_v48 = vrot.slane %v7190_v24, 4  ;;  %v7174_v42 = vsel %vm10738_vm3, %v7169_v34, %v7173_v6  ;;  %v9620_v62 = vcombine.low %v7534_v59, %v7538_v39  ;;  %v14477_v5 = vld [vmem:[%s15270_s0 + $0x98] sm:$0xe]  ;;  %15629 = vst [vmem:[#allocation57_spill] sm:$0xff] %v14479_v44 }
 0x21f   :  { %v7195_v14 = vrot.slane %v7193_v18, 5  ;;  %v7201_v40 = vrot.slane %v7199_v21, 5  ;;  %v7206_v0 = vrot.slane %v7204_v4, 4  ;;  %v7207_v24 = vshll.u32 %v9548_v43, 16  ;;  %v9550_v18 = vld [vmem:[%s15270_s0 + $0xa0] sm:$0xf] }
 0x220   :  { %v7188_v56 = vsel %vm10738_vm3, %v7183_v60, %v7187_v20  ;;  %v7213_v49 = vshll.u32 %v9549_v52, 16  ;;  %10508 = vmatprep.mubr.msk.bf16.mxu0 %vm319_vm2, %v9620_v62  ;;  %v9606_v59 = vrot.slane %v14470_v50, 9  ;;  %v7541_v34 = vrot.slane %v9547_v22, 5  ;;  %v14488_v21 = vpop.f32.mrf.mxu1 }
 0x221   :  { %v9566_v11 = vcombine.low %v7174_v42, %v7188_v56  ;;  %v7196_v6 = vor.u32 %v7195_v14, %v7192_v48  ;;  %15630 = vst [vmem:[#allocation59_spill] sm:$0xff] %v14488_v21  ;;  %v7209_v39 = vrot.slane %v7207_v24, 5  ;;  %v9607_v60 = vrot.slane %v14477_v5, 9  ;;  %v15631_v48 = vld [vmem:[#allocation19_spill] sm:$0xff]  ;;  %v15632_v42 = vld [vmem:[#allocation56_spill] sm:$0xff]  ;;  %v14501_v56 = vpop.f32.mrf.mxu0 }
 0x222   :  { %v7215_v44 = vrot.slane %v7213_v49, 5  ;;  %v7545_v20 = vrot.slane %v9549_v52, 5  ;;  %v7542_v4 = vsel %vm10980_vm6, %v9606_v59, %v7541_v34  ;;  %v3384_v22 = vadd.f32 %v15631_v48, %v14103_v51  ;;  %v9552_v14 = vld [vmem:[%s15270_s0 + $0xa8] sm:$0xf]  ;;  %15633 = vst [vmem:[#allocation15_spill] sm:$0xff] %v14501_v56  ;;  %v14513_v59 = vpop.f32.mrf.mxu1 }
 0x223   :  { %10488 = vmatprep.mubr.msk.bf16.mxu1 %vm319_vm2, %v9566_v11  ;;  %v7197_v43 = vrot.slane %v7196_v6, 4  ;;  %v3387_v62 = vadd.f32 %v15632_v42, %v14116_v25  ;;  %v7210_v24 = vor.u32 %v7209_v39, %v7206_v0  ;;  %v15634_v11 = vld [vmem:[#allocation27_spill] sm:$0xff]  ;;  %v9551_v51 = vld [vmem:[%s15270_s0 + $0xa4] sm:$0x1]  ;;  %v7218_v6 = vshrl.u32 %v9550_v18, 16  ;;  %15635 = vst [vmem:[#allocation17_spill] sm:$0xff] %v14513_v59 }
 0x224   :  { %v7546_v52 = vsel %vm10980_vm6, %v9607_v60, %v7545_v20  ;;  %v3385_v49 = vadd.f32 %v15634_v11, %v14123_v8  ;;  %v9553_v25 = vld [vmem:[%s15270_s0 + $0xac] sm:$0x1]  ;;  %v15636_v39 = vld [vmem:[#allocation70_spill] sm:$0xff]  ;;  %v15640_v11 = vld [vmem:[#allocation21_spill] sm:$0xff]  ;;  %v7221_v21 = vshll.u32 %v9550_v18, 16 }
 0x225   :  { %v7202_v0 = vsel %vm10738_vm3, %v7197_v43, %v7201_v40  ;;  %v9621_v34 = vcombine.low %v7542_v4, %v7546_v52  ;;  %v14518_v60 = vadd.f32 %v15636_v39, %v3384_v22  ;;  %v15637_v20 = vld [vmem:[#allocation6_spill] sm:$0xff]  ;;  %v7211_v42 = vrot.slane %v7210_v24, 4  ;;  %v9554_v40 = vld [vmem:[%s15270_s0 + $0xb0] sm:$0xf]  ;;  %v14538_v52 = vld [vmem:[%s15270_s0 + $0xa8] sm:$0xe]  ;;  %v14540_v24 = vpop.f32.mrf.mxu0 }
 0x226   :  { %v14521_v8 = vadd.f32 %v15637_v20, %v3387_v62  ;;  %v14526_v48 = vld [vmem:[%s15270_s0 + $0xa0] sm:$0xe]  ;;  %v14529_v56 = vadd.f32 %v15640_v11, %v3385_v49  ;;  %v7220_v59 = vrot.slane %v7218_v6, 4  ;;  %v7227_v43 = vshll.u32 %v9551_v51, 16  ;;  %15642 = vst [vmem:[#allocation2_spill] sm:$0xff] %v14538_v52  ;;  %15643 = vst [vmem:[#allocation16_spill] sm:$0xff] %v14540_v24 }
 0x227   :  { %15639 = vst [vmem:[#allocation22_spill] sm:$0xff] %v14526_v48  ;;  %10509 = vmatmul.mubr.msk.bf16.gmra.mxu0 %vm319_vm2, %v9621_v34  ;;  %v7232_v4 = vshrl.u32 %v9552_v14, 16  ;;  %v7235_v22 = vshll.u32 %v9552_v14, 16  ;;  %v7241_v62 = vshll.u32 %v9553_v25, 16  ;;  %v7216_v18 = vsel %vm10738_vm3, %v7211_v42, %v7215_v44  ;;  %v9556_v34 = vld [vmem:[%s15270_s0 + $0xb8] sm:$0xf]  ;;  %v14548_v14 = vpop.f32.mrf.mxu1 }
 0x228   :  { %15638 = vst [vmem:[#allocation30_spill] sm:$0xff] %v14521_v8  ;;  %15641 = vst [vmem:[#allocation61_spill] sm:$0xff] %v14529_v56  ;;  %v7223_v49 = vrot.slane %v7221_v21, 5  ;;  %v9608_v6 = vrot.slane %v14526_v48, 9  ;;  %v7549_v39 = vrot.slane %v9551_v51, 5  ;;  %v9567_v20 = vcombine.low %v7202_v0, %v7216_v18  ;;  %v15645_v0 = vld [vmem:[#allocation69_spill] sm:$0xff] }
 0x229   :  { %15644 = vst [vmem:[#allocation55_spill] sm:$0xff] %v14548_v14  ;;  %v7229_v11 = vrot.slane %v7227_v43, 5  ;;  %v7234_v56 = vrot.slane %v7232_v4, 4  ;;  %v7237_v8 = vrot.slane %v7235_v22, 5  ;;  %v9555_v24 = vld [vmem:[%s15270_s0 + $0xb4] sm:$0x1]  ;;  %v3390_v43 = vadd.f32 %v15645_v0, %v14142_v35  ;;  %v14559_v22 = vpop.f32.mrf.mxu0 }
 0x22a   :  { %v7224_v57 = vor.u32 %v7223_v49, %v7220_v59  ;;  %v7243_v44 = vrot.slane %v7241_v62, 5  ;;  %v7550_v21 = vsel %vm10980_vm6, %v9608_v6, %v7549_v39  ;;  %v9609_v51 = vrot.slane %v14538_v52, 9  ;;  %10489 = vmatmul.mubr.msk.bf16.gmra.mxu1 %vm319_vm2, %v9567_v20  ;;  %15646 = vst [vmem:[#allocation60_spill] sm:$0xff] %v14559_v22  ;;  %v9557_v59 = vld [vmem:[%s15270_s0 + $0xbc] sm:$0x1]  ;;  %v14564_v39 = vpop.f32.mrf.mxu1 }
 0x22b   :  { %v7238_v42 = vor.u32 %v7237_v8, %v7234_v56  ;;  %v7553_v48 = vrot.slane %v9553_v25, 5  ;;  %v7246_v4 = vshrl.u32 %v9554_v40, 16  ;;  %v7249_v62 = vshll.u32 %v9554_v40, 16  ;;  %15647 = vst [vmem:[#allocation18_spill] sm:$0xff] %v14564_v39  ;;  %v15648_v25 = vld [vmem:[#allocation74_spill] sm:$0xff] }
 0x22c   :  { %v7225_v18 = vrot.slane %v7224_v57, 4  ;;  %v7255_v49 = vshll.u32 %v9555_v24, 16  ;;  %v7260_v6 = vshrl.u32 %v9556_v34, 16  ;;  %v14569_v8 = vadd.f32 %v15648_v25, %v3390_v43  ;;  %v14574_v57 = vld [vmem:[%s15270_s0 + $0xb0] sm:$0xe] }
 0x22d   :  { %v7239_v14 = vrot.slane %v7238_v42, 4  ;;  %v7554_v56 = vsel %vm10980_vm6, %v9609_v51, %v7553_v48  ;;  %v7248_v35 = vrot.slane %v7246_v4, 4  ;;  %v7251_v0 = vrot.slane %v7249_v62, 5  ;;  %v14581_v42 = vld [vmem:[%s15270_s0 + $0xb8] sm:$0xe] }
 0x22e   :  { %15649 = vst [vmem:[#allocation36_spill] sm:$0xff] %v14569_v8  ;;  %v7230_v40 = vsel %vm10738_vm3, %v7225_v18, %v7229_v11  ;;  %v9622_v20 = vcombine.low %v7550_v21, %v7554_v56  ;;  %v7257_v22 = vrot.slane %v7255_v49, 5  ;;  %v7262_v51 = vrot.slane %v7260_v6, 4  ;;  %v14585_v25 = vpop.f32.mrf.mxu0 }
 0x22f   :  { %v7244_v48 = vsel %vm10738_vm3, %v7239_v14, %v7243_v44  ;;  %v7263_v43 = vshll.u32 %v9556_v34, 16  ;;  %v7269_v4 = vshll.u32 %v9557_v59, 16  ;;  %15650 = vst [vmem:[#allocation65_spill] sm:$0xff] %v14585_v25  ;;  %v7252_v11 = vor.u32 %v7251_v0, %v7248_v35  ;;  %v14589_v62 = vpop.f32.mrf.mxu1  ;;  %v15651_v44 = vld [vmem:[#allocation71_spill] sm:$0xff]  ;;  %v15652_v35 = vld [vmem:[#allocation72_spill] sm:$0xff] }
 0x230   :  { %v9568_v39 = vcombine.low %v7230_v40, %v7244_v48  ;;  %10512 = vmatprep.mubr.msk.bf16.mxu0 %vm319_vm2, %v9622_v20  ;;  %v9610_v21 = vrot.slane %v14574_v57, 9  ;;  %v7557_v18 = vrot.slane %v9555_v24, 5  ;;  %v9611_v8 = vrot.slane %v14581_v42, 9  ;;  %v14601_v20 = vpop.f32.mrf.mxu0 }
 0x231   :  { %v7265_v49 = vrot.slane %v7263_v43, 5  ;;  %v7271_v56 = vrot.slane %v7269_v4, 5  ;;  %v7561_v52 = vrot.slane %v9557_v59, 5  ;;  %v7253_v34 = vrot.slane %v7252_v11, 4  ;;  %v14599_v24 = vpop.f32.mrf.mxu1  ;;  %15654 = vst [vmem:[#allocation67_spill] sm:$0xff] %v14601_v20  ;;  %v15656_v11 = vld [vmem:[#allocation75_spill] sm:$0xff] }
 0x232   :  { %10492 = vmatprep.mubr.msk.bf16.mxu1 %vm319_vm2, %v9568_v39  ;;  %v7558_v14 = vsel %vm10980_vm6, %v9610_v21, %v7557_v18  ;;  %v3388_v6 = vadd.f32 %v15651_v44, %v14174_v29  ;;  %v3391_v40 = vadd.f32 %v15652_v35, %v14177_v16  ;;  %15653 = vst [vmem:[#allocation62_spill] sm:$0xff] %v14599_v24  ;;  %v15655_v39 = vld [vmem:[#allocation73_spill] sm:$0xff]  ;;  %v9634_v43 = vld [vmem:[%s15270_s0 + $0x24] sm:$0x3]  ;;  %v7758_v29 = vshrl.u32 %v14169_v63, 16 }
 0x233   :  { %v7266_v0 = vor.u32 %v7265_v49, %v7262_v51  ;;  %v7562_v59 = vsel %vm10980_vm6, %v9611_v8, %v7561_v52  ;;  %v3389_v48 = vadd.f32 %v15655_v39, %v14193_v2  ;;  %v7258_v16 = vsel %vm10738_vm3, %v7253_v34, %v7257_v22  ;;  %v15657_v51 = vld [vmem:[#allocation7_spill] sm:$0xff]  ;;  %v14622_v2 = vpop.f32.mrf.mxu1  ;;  %v15659_v8 = vld [vmem:[#allocation8_spill] sm:$0xff] }
 0x234   :  { %v9623_v4 = vcombine.low %v7558_v14, %v7562_v59  ;;  %v14614_v21 = vadd.f32 %v15656_v11, %v3388_v6  ;;  %v14617_v18 = vadd.f32 %v15657_v51, %v3391_v40  ;;  %15658 = vst [vmem:[#allocation63_spill] sm:$0xff] %v14622_v2  ;;  %v7760_v44 = vrot.slane %v7758_v29, 5  ;;  %v9672_v40 = vld [vmem:[%s15270_s0 + $0x20] sm:$0xc]  ;;  %v14634_v59 = vpop.f32.mrf.mxu0  ;;  %v9636_v24 = vld [vmem:[%s15270_s0 + $0x34] sm:$0x3] }
 0x235   :  { %v7267_v52 = vrot.slane %v7266_v0, 4  ;;  %v14625_v49 = vadd.f32 %v15659_v8, %v3389_v48  ;;  %v7761_v22 = vshll.u32 %v14169_v63, 16  ;;  %v7767_v34 = vshrl.u32 %v9634_v43, 16  ;;  %15660 = vst [vmem:[#allocation64_spill] sm:$0xff] %v14634_v59  ;;  %v14636_v0 = vpop.f32.mrf.mxu1 }
 0x236   :  { %10513 = vmatmul.mubr.msk.bf16.gmra.mxu0 %vm319_vm2, %v9623_v4  ;;  %v7770_v14 = vshll.u32 %v9634_v43, 16  ;;  %v7776_v6 = vshrl.u32 %v14182_v61, 16  ;;  %v7779_v35 = vshll.u32 %v14182_v61, 16  ;;  %15661 = vst [vmem:[#allocation66_spill] sm:$0xff] %v14636_v0  ;;  %v7785_v48 = vshrl.u32 %v9635_v1, 16 }
 0x237   :  { %v7272_v39 = vsel %vm10738_vm3, %v7267_v52, %v7271_v56  ;;  %v7763_v63 = vrot.slane %v7761_v22, 6  ;;  %v7788_v29 = vshll.u32 %v9635_v1, 16  ;;  %v9673_v4 = vld [vmem:[%s15270_s0 + $0x28] sm:$0xc]  ;;  %v7769_v61 = vrot.slane %v7767_v34, 5  ;;  %v14643_v2 = vpop.f32.mrf.mxu1 }
 0x238   :  { %v9569_v11 = vcombine.low %v7258_v16, %v7272_v39  ;;  %v7772_v51 = vrot.slane %v7770_v14, 6  ;;  %v7778_v8 = vrot.slane %v7776_v6, 5  ;;  %v7781_v59 = vrot.slane %v7779_v35, 6  ;;  %v14649_v16 = vpop.f32.mrf.mxu0 }
 0x239   :  { %v7764_v20 = vor.u32 %v7763_v63, %v7760_v44  ;;  %v7787_v25 = vrot.slane %v7785_v48, 5  ;;  %v7790_v0 = vrot.slane %v7788_v29, 6  ;;  %v9688_v56 = vrot.slane %v9672_v40, 10  ;;  %15662 = vst [vmem:[#allocation5_spill] sm:$0xff] %v14649_v16  ;;  %v14651_v34 = vpop.f32.mrf.mxu1  ;;  %v15663_v63 = vld [vmem:[#allocation76_spill] sm:$0xff] }
 0x23a   :  { %10493 = vmatmul.mubr.msk.bf16.gmra.mxu1 %vm319_vm2, %v9569_v11  ;;  %v7773_v30 = vor.u32 %v7772_v51, %v7769_v61  ;;  %v8273_v52 = vrot.slane %v9634_v43, 6  ;;  %v9689_v22 = vrot.slane %v9673_v4, 10  ;;  %v7782_v6 = vor.u32 %v7781_v59, %v7778_v8  ;;  %v9674_v51 = vld [vmem:[%s15270_s0 + $0x30] sm:$0xc] }
 0x23b   :  { %v7765_v14 = vrot.slane %v7764_v20, 4  ;;  %v7791_v44 = vor.u32 %v7790_v0, %v7787_v25  ;;  %v8277_v35 = vrot.slane %v9635_v1, 6  ;;  %v4023_v40 = vadd.f32 %v15663_v63, %v14233_v31  ;;  %v14659_v29 = vpop.f32.mrf.mxu1  ;;  %v9637_v20 = vld [vmem:[%s15270_s0 + $0x3c] sm:$0x3]  ;;  %v15664_v31 = vld [vmem:[#allocation23_spill] sm:$0xff] }
 0x23c   :  { %v8274_v39 = vsel %vm11219_vm11, %v9688_v56, %v8273_v52  ;;  %v7794_v43 = vshrl.u32 %v14228_v19, 16  ;;  %v7797_v48 = vshll.u32 %v14228_v19, 16  ;;  %v7783_v11 = vrot.slane %v7782_v6, 4 }
 0x23d   :  { %v7774_v4 = vsel %vm11229_vm12, %v7765_v14, %v7773_v30  ;;  %v8278_v25 = vsel %vm11219_vm11, %v9689_v22, %v8277_v35  ;;  %v7803_v1 = vshrl.u32 %v9636_v24, 16  ;;  %v14669_v0 = vadd.f32 %v15664_v31, %v4023_v40  ;;  %v14674_v8 = vpop.f32.mrf.mxu0  ;;  %v14676_v30 = vpop.f32.mrf.mxu1  ;;  %v9675_v40 = vld [vmem:[%s15270_s0 + $0x38] sm:$0xc] }
 0x23e   :  { %v9708_v59 = vcombine.low %v8274_v39, %v8278_v25  ;;  %v7796_v61 = vrot.slane %v7794_v43, 5  ;;  %v7799_v19 = vrot.slane %v7797_v48, 6  ;;  %15665 = vst [vmem:[#allocation37_spill] sm:$0xff] %v14674_v8  ;;  %15666 = vst [vmem:[#allocation25_spill] sm:$0xff] %v14676_v30  ;;  %v7792_v56 = vsel %vm11229_vm12, %v7783_v11, %v7791_v44 }
 0x23f   :  { %v7805_v52 = vrot.slane %v7803_v1, 5  ;;  %v7806_v22 = vshll.u32 %v9636_v24, 16  ;;  %v7812_v14 = vshrl.u32 %v14238_v55, 16  ;;  %v9654_v6 = vcombine.low %v7774_v4, %v7792_v56  ;;  %v14686_v43 = vpop.f32.mrf.mxu0  ;;  %v14688_v48 = vpop.f32.mrf.mxu1 }
 0x240   :  { %10540 = vmatprep.mubr.msk.bf16.mxu0 %vm319_vm2, %v9708_v59  ;;  %v7800_v35 = vor.u32 %v7799_v19, %v7796_v61  ;;  %v7815_v39 = vshll.u32 %v14238_v55, 16  ;;  %v7821_v63 = vshrl.u32 %v9637_v20, 16  ;;  %15667 = vst [vmem:[#allocation68_spill] sm:$0xff] %v14686_v43  ;;  %v7824_v25 = vshll.u32 %v9637_v20, 16 }
 0x241   :  { %v7808_v44 = vrot.slane %v7806_v22, 6  ;;  %v7814_v11 = vrot.slane %v7812_v14, 5  ;;  %v9690_v1 = vrot.slane %v9674_v51, 10  ;;  %10520 = vmatprep.mubr.msk.bf16.mxu1 %vm319_vm2, %v9654_v6  ;;  %v8281_v61 = vrot.slane %v9636_v24, 6  ;;  %v14691_v55 = vpop.f32.mrf.mxu0  ;;  %v14693_v19 = vpop.f32.mrf.mxu1  ;;  %v15668_v51 = vld [vmem:[#allocation29_spill] sm:$0xff]  ;;  %v15669_v6 = vld [vmem:[#allocation10_spill] sm:$0xff] }
 0x242   :  { %v7801_v4 = vrot.slane %v7800_v35, 4  ;;  %v7817_v59 = vrot.slane %v7815_v39, 6  ;;  %v7823_v31 = vrot.slane %v7821_v63, 5  ;;  %v7826_v8 = vrot.slane %v7824_v25, 6  ;;  %v9638_v24 = vld [vmem:[%s15270_s0 + $0x44] sm:$0x3] }
 0x243   :  { %v7809_v56 = vor.u32 %v7808_v44, %v7805_v52  ;;  %v9691_v16 = vrot.slane %v9675_v40, 10  ;;  %v8285_v43 = vrot.slane %v9637_v20, 6  ;;  %v8282_v22 = vsel %vm11219_vm11, %v9690_v1, %v8281_v61  ;;  %v14704_v39 = vpop.f32.mrf.mxu1  ;;  %v15671_v40 = vld [vmem:[#allocation24_spill] sm:$0xff]  ;;  %v15672_v25 = vld [vmem:[#allocation34_spill] sm:$0xff] }
 0x244   :  { %v7818_v30 = vor.u32 %v7817_v59, %v7814_v11  ;;  %v4021_v14 = vadd.f32 %v15668_v51, %v14288_v37  ;;  %v4024_v35 = vadd.f32 %v15669_v6, %v14291_v46  ;;  %15670 = vst [vmem:[#allocation43_spill] sm:$0xff] %v14704_v39  ;;  %v7827_v20 = vor.u32 %v7826_v8, %v7823_v31  ;;  %v14712_v37 = vpop.f32.mrf.mxu0  ;;  %v15673_v59 = vld [vmem:[#allocation77_spill] sm:$0xff]  ;;  %v15674_v51 = vld [vmem:[#allocation12_spill] sm:$0xff] }
 0x245   :  { %v7810_v52 = vsel %vm11229_vm12, %v7801_v4, %v7809_v56  ;;  %v8286_v63 = vsel %vm11219_vm11, %v9691_v16, %v8285_v43  ;;  %v4022_v44 = vadd.f32 %v15671_v40, %v14308_v27  ;;  %v9639_v16 = vld [vmem:[%s15270_s0 + $0x4c] sm:$0x3]  ;;  %v7830_v8 = vshrl.u32 %v14299_v47, 16 }
 0x246   :  { %v7819_v11 = vrot.slane %v7818_v30, 4  ;;  %v9709_v46 = vcombine.low %v8282_v22, %v8286_v63  ;;  %v14715_v1 = vadd.f32 %v15672_v25, %v4021_v14  ;;  %v14718_v61 = vadd.f32 %v15673_v59, %v4024_v35  ;;  %v9676_v22 = vld [vmem:[%s15270_s0 + $0x40] sm:$0xc]  ;;  %v14736_v14 = vpop.f32.mrf.mxu1 }
 0x247   :  { %v14721_v6 = vadd.f32 %v15674_v51, %v4022_v44  ;;  %v7833_v27 = vshll.u32 %v14299_v47, 16  ;;  %v7839_v43 = vshrl.u32 %v9638_v24, 16  ;;  %v7842_v4 = vshll.u32 %v9638_v24, 16  ;;  %15675 = vst [vmem:[#allocation19_spill] sm:$0xff] %v14736_v14 }
 0x248   :  { %v7828_v30 = vsel %vm11229_vm12, %v7819_v11, %v7827_v20  ;;  %10541 = vmatmul.mubr.msk.bf16.vlgmr.msra.gmra.mxu0 %vm319_vm2, %v9709_v46  ;;  %v7848_v31 = vshrl.u32 %v14317_v41, 16  ;;  %v7851_v56 = vshll.u32 %v14317_v41, 16  ;;  %v7832_v63 = vrot.slane %v7830_v8, 5  ;;  %v9677_v20 = vld [vmem:[%s15270_s0 + $0x48] sm:$0xc] }
 0x249   :  { %v9655_v35 = vcombine.low %v7810_v52, %v7828_v30  ;;  %v7835_v47 = vrot.slane %v7833_v27, 6  ;;  %v7841_v40 = vrot.slane %v7839_v43, 5  ;;  %v14741_v44 = vpop.f32.mrf.mxu0  ;;  %v7844_v11 = vrot.slane %v7842_v4, 6  ;;  %v14749_v4 = vpop.f32.mrf.mxu1 }
 0x24a   :  { %15676 = vst [vmem:[#allocation56_spill] sm:$0xff] %v14741_v44  ;;  %v7850_v46 = vrot.slane %v7848_v31, 5  ;;  %v7853_v25 = vrot.slane %v7851_v56, 6  ;;  %v7857_v41 = vshrl.u32 %v9639_v16, 16  ;;  %v7860_v51 = vshll.u32 %v9639_v16, 16  ;;  %15677 = vst [vmem:[#allocation27_spill] sm:$0xff] %v14749_v4 }
 0x24b   :  { %10521 = vmatmul.mubr.msk.bf16.vlgmr.msra.gmra.mxu1 %vm319_vm2, %v9655_v35  ;;  %v7836_v59 = vor.u32 %v7835_v47, %v7832_v63  ;;  %v9692_v39 = vrot.slane %v9676_v22, 10  ;;  %v8289_v14 = vrot.slane %v9638_v24, 6  ;;  %v14744_v52 = vpop.f32.mrf.mxu0  ;;  %v7845_v8 = vor.u32 %v7844_v11, %v7841_v40  ;;  %v9640_v44 = vld [vmem:[%s15270_s0 + $0x54] sm:$0x3]  ;;  %v15678_v24 = vld [vmem:[#allocation78_spill] sm:$0xff] }
 0x24c   :  { %v7854_v27 = vor.u32 %v7853_v25, %v7850_v46  ;;  %v7859_v43 = vrot.slane %v7857_v41, 5  ;;  %v9693_v30 = vrot.slane %v9677_v20, 10  ;;  %v7862_v56 = vrot.slane %v7860_v51, 6 }
 0x24d   :  { %v7837_v31 = vrot.slane %v7836_v59, 4  ;;  %v8290_v35 = vsel %vm11219_vm11, %v9692_v39, %v8289_v14  ;;  %v8293_v63 = vrot.slane %v9639_v16, 6  ;;  %v4027_v47 = vadd.f32 %v15678_v24, %v14363_v28  ;;  %v14757_v11 = vpop.f32.mrf.mxu0  ;;  %v9641_v39 = vld [vmem:[%s15270_s0 + $0x5c] sm:$0x3]  ;;  %v15680_v28 = vld [vmem:[#allocation79_spill] sm:$0xff] }
 0x24e   :  { %v7855_v22 = vrot.slane %v7854_v27, 4  ;;  %v7866_v40 = vshrl.u32 %v14356_v9, 16  ;;  %v7869_v20 = vshll.u32 %v14356_v9, 16  ;;  %15679 = vst [vmem:[#allocation70_spill] sm:$0xff] %v14757_v11  ;;  %v7863_v25 = vor.u32 %v7862_v56, %v7859_v43  ;;  %v9678_v27 = vld [vmem:[%s15270_s0 + $0x50] sm:$0xc] }
 0x24f   :  { %v7846_v46 = vsel %vm11229_vm12, %v7837_v31, %v7845_v8  ;;  %v8294_v41 = vsel %vm11219_vm11, %v9693_v30, %v8293_v63  ;;  %v7875_v16 = vshrl.u32 %v9640_v44, 16  ;;  %v14767_v59 = vadd.f32 %v15680_v28, %v4027_v47  ;;  %v14772_v8 = vpop.f32.mrf.mxu1 }
 0x250   :  { %v9710_v14 = vcombine.low %v8290_v35, %v8294_v41  ;;  %v7868_v51 = vrot.slane %v7866_v40, 5  ;;  %v7871_v9 = vrot.slane %v7869_v20, 6  ;;  %15681 = vst [vmem:[#allocation6_spill] sm:$0xff] %v14772_v8  ;;  %v7864_v43 = vsel %vm11229_vm12, %v7855_v22, %v7863_v25  ;;  %v9679_v40 = vld [vmem:[%s15270_s0 + $0x58] sm:$0xc]  ;;  %v14782_v20 = vpop.f32.mrf.mxu0 }
 0x251   :  { %v7877_v30 = vrot.slane %v7875_v16, 5  ;;  %v7878_v31 = vshll.u32 %v9640_v44, 16  ;;  %v7884_v56 = vshrl.u32 %v14368_v15, 16  ;;  %v9656_v63 = vcombine.low %v7846_v46, %v7864_v43  ;;  %15682 = vst [vmem:[#allocation21_spill] sm:$0xff] %v14782_v20 }
 0x252   :  { %10544 = vmatprep.mubr.msk.bf16.mxu0 %vm319_vm2, %v9710_v14  ;;  %v7872_v35 = vor.u32 %v7871_v9, %v7868_v51  ;;  %v7887_v24 = vshll.u32 %v14368_v15, 16  ;;  %v7893_v47 = vshrl.u32 %v9641_v39, 16  ;;  %v7896_v22 = vshll.u32 %v9641_v39, 16  ;;  %v14785_v51 = vpop.f32.mrf.mxu1 }
 0x253   :  { %v7880_v41 = vrot.slane %v7878_v31, 6  ;;  %v7886_v28 = vrot.slane %v7884_v56, 5  ;;  %v9694_v25 = vrot.slane %v9678_v27, 10  ;;  %10524 = vmatprep.mubr.msk.bf16.mxu1 %vm319_vm2, %v9656_v63  ;;  %v8297_v14 = vrot.slane %v9640_v44, 6  ;;  %v9642_v44 = vld [vmem:[%s15270_s0 + $0x84] sm:$0x3] }
 0x254   :  { %v7873_v16 = vrot.slane %v7872_v35, 4  ;;  %v7889_v46 = vrot.slane %v7887_v24, 6  ;;  %v7895_v43 = vrot.slane %v7893_v47, 5  ;;  %v7898_v9 = vrot.slane %v7896_v22, 6  ;;  %v14796_v56 = vpop.f32.mrf.mxu0  ;;  %v14810_v24 = vpop.f32.mrf.mxu1 }
 0x255   :  { %v7881_v15 = vor.u32 %v7880_v41, %v7877_v30  ;;  %v9695_v11 = vrot.slane %v9679_v40, 10  ;;  %v8301_v8 = vrot.slane %v9641_v39, 6  ;;  %v8298_v20 = vsel %vm11219_vm11, %v9694_v25, %v8297_v14  ;;  %v9680_v40 = vld [vmem:[%s15270_s0 + $0x80] sm:$0xc]  ;;  %v9681_v25 = vld [vmem:[%s15270_s0 + $0x88] sm:$0xc] }
 0x256   :  { %v7890_v4 = vor.u32 %v7889_v46, %v7886_v28  ;;  %v4025_v31 = vadd.f32 %v13912_v7, %v14414_v3  ;;  %v4028_v27 = vadd.f32 %v13946_v17, %v14417_v36  ;;  %v7899_v39 = vor.u32 %v7898_v9, %v7895_v43 }
 0x257   :  { %v7882_v30 = vsel %vm11229_vm12, %v7873_v16, %v7881_v15  ;;  %v8302_v63 = vsel %vm11219_vm11, %v9695_v11, %v8301_v8  ;;  %v4026_v35 = vadd.f32 %v13988_v33, %v14425_v58  ;;  %v9643_v11 = vld [vmem:[%s15270_s0 + $0x8c] sm:$0x3]  ;;  %v7902_v8 = vshrl.u32 %v14422_v32, 16  ;;  %v14833_v15 = vpop.f32.mrf.mxu1 }
 0x258   :  { %v7891_v7 = vrot.slane %v7890_v4, 4  ;;  %v9711_v3 = vcombine.low %v8298_v20, %v8302_v63  ;;  %v14805_v17 = vadd.f32 %v13914_v38, %v4025_v31  ;;  %v14808_v36 = vadd.f32 %v13948_v12, %v4028_v27  ;;  %v14828_v20 = vpop.f32.mrf.mxu0 }
 0x259   :  { %v14813_v47 = vadd.f32 %v13990_v45, %v4026_v35  ;;  %v7905_v33 = vshll.u32 %v14422_v32, 16  ;;  %v7911_v58 = vshrl.u32 %v9642_v44, 16  ;;  %v7914_v12 = vshll.u32 %v9642_v44, 16 }
 0x25a   :  { %v7900_v38 = vsel %vm11229_vm12, %v7891_v7, %v7899_v39  ;;  %10545 = vmatmul.mubr.msk.bf16.gmra.mxu0 %vm319_vm2, %v9711_v3  ;;  %v7920_v4 = vshrl.u32 %v14436_v23, 16  ;;  %v7923_v45 = vshll.u32 %v14436_v23, 16  ;;  %v7904_v28 = vrot.slane %v7902_v8, 5  ;;  %v9644_v7 = vld [vmem:[%s15270_s0 + $0x94] sm:$0x3]  ;;  %v14839_v3 = vpop.f32.mrf.mxu0 }
 0x25b   :  { %v9657_v41 = vcombine.low %v7882_v30, %v7900_v38  ;;  %v7907_v32 = vrot.slane %v7905_v33, 6  ;;  %v7913_v22 = vrot.slane %v7911_v58, 5  ;;  %v7916_v16 = vrot.slane %v7914_v12, 6 }
 0x25c   :  { %v7922_v46 = vrot.slane %v7920_v4, 5  ;;  %v7925_v43 = vrot.slane %v7923_v45, 6  ;;  %v7929_v14 = vshrl.u32 %v9643_v11, 16  ;;  %v7932_v9 = vshll.u32 %v9643_v11, 16 }
 0x25d   :  { %10525 = vmatmul.mubr.msk.bf16.gmra.mxu1 %vm319_vm2, %v9657_v41  ;;  %v7908_v23 = vor.u32 %v7907_v32, %v7904_v28  ;;  %v9696_v31 = vrot.slane %v9680_v40, 10  ;;  %v8305_v27 = vrot.slane %v9642_v44, 6  ;;  %v7917_v30 = vor.u32 %v7916_v16, %v7913_v22  ;;  %v14847_v40 = vpop.f32.mrf.mxu1  ;;  %v9682_v16 = vld [vmem:[%s15270_s0 + $0x90] sm:$0xc] }
 0x25e   :  { %v7926_v39 = vor.u32 %v7925_v43, %v7922_v46  ;;  %v7931_v63 = vrot.slane %v7929_v14, 5  ;;  %v9697_v35 = vrot.slane %v9681_v25, 10  ;;  %v7934_v33 = vrot.slane %v7932_v9, 6  ;;  %v14862_v46 = vpop.f32.mrf.mxu0 }
 0x25f   :  { %v7909_v8 = vrot.slane %v7908_v23, 4  ;;  %v8306_v58 = vsel %vm11219_vm11, %v9696_v31, %v8305_v27  ;;  %v8309_v38 = vrot.slane %v9643_v11, 6  ;;  %v4031_v44 = vadd.f32 %v14041_v53, %v14465_v54  ;;  %v9645_v11 = vld [vmem:[%s15270_s0 + $0x9c] sm:$0x3] }
 0x260   :  { %v7927_v12 = vrot.slane %v7926_v39, 4  ;;  %v7938_v4 = vshrl.u32 %v14470_v50, 16  ;;  %v7941_v45 = vshll.u32 %v14470_v50, 16  ;;  %v7935_v28 = vor.u32 %v7934_v33, %v7931_v63  ;;  %v9683_v39 = vld [vmem:[%s15270_s0 + $0x98] sm:$0xc]  ;;  %v14872_v63 = vpop.f32.mrf.mxu1 }
 0x261   :  { %v7918_v41 = vsel %vm11229_vm12, %v7909_v8, %v7917_v30  ;;  %v8310_v32 = vsel %vm11219_vm11, %v9697_v35, %v8309_v38  ;;  %v7947_v22 = vshrl.u32 %v9644_v7, 16  ;;  %v14857_v53 = vadd.f32 %v14043_v26, %v4031_v44 }
 0x262   :  { %v9712_v25 = vcombine.low %v8306_v58, %v8310_v32  ;;  %v7940_v54 = vrot.slane %v7938_v4, 5  ;;  %v7943_v50 = vrot.slane %v7941_v45, 6  ;;  %v7936_v43 = vsel %vm11229_vm12, %v7927_v12, %v7935_v28  ;;  %v14875_v45 = vpop.f32.mrf.mxu0 }
 0x263   :  { %v7949_v14 = vrot.slane %v7947_v22, 5  ;;  %v7950_v23 = vshll.u32 %v9644_v7, 16  ;;  %v7956_v9 = vshrl.u32 %v14477_v5, 16  ;;  %v9658_v31 = vcombine.low %v7918_v41, %v7936_v43  ;;  %v15685_v43 = vld [vmem:[#allocation33_spill] sm:$0xff] }
 0x264   :  { %10548 = vmatprep.mubr.msk.bf16.mxu0 %vm319_vm2, %v9712_v25  ;;  %v7944_v26 = vor.u32 %v7943_v50, %v7940_v54  ;;  %v7959_v27 = vshll.u32 %v14477_v5, 16  ;;  %v7965_v30 = vshrl.u32 %v9645_v11, 16  ;;  %v7968_v33 = vshll.u32 %v9645_v11, 16  ;;  %v15683_v54 = vld [vmem:[#allocation31_spill] sm:$0xff] }
 0x265   :  { %v7952_v35 = vrot.slane %v7950_v23, 6  ;;  %v7958_v8 = vrot.slane %v7956_v9, 5  ;;  %v9698_v58 = vrot.slane %v9682_v16, 10  ;;  %10528 = vmatprep.mubr.msk.bf16.mxu1 %vm319_vm2, %v9658_v31  ;;  %v8313_v4 = vrot.slane %v9644_v7, 6  ;;  %v15684_v16 = vld [vmem:[#allocation30_spill] sm:$0xff]  ;;  %v14886_v9 = vpop.f32.mrf.mxu1 }
 0x266   :  { %v7945_v38 = vrot.slane %v7944_v26, 4  ;;  %v7961_v12 = vrot.slane %v7959_v27, 6  ;;  %v7967_v44 = vrot.slane %v7965_v30, 5  ;;  %v7970_v41 = vrot.slane %v7968_v33, 6  ;;  %v9646_v7 = vld [vmem:[%s15270_s0 + $0xa4] sm:$0x3] }
 0x267   :  { %v7953_v5 = vor.u32 %v7952_v35, %v7949_v14  ;;  %v9699_v28 = vrot.slane %v9683_v39, 10  ;;  %v8317_v32 = vrot.slane %v9645_v11, 6  ;;  %v8314_v25 = vsel %vm11219_vm11, %v9698_v58, %v8313_v4  ;;  %15686 = vst [vmem:[#allocation69_spill] sm:$0xff] %v14886_v9  ;;  %v15687_v26 = vld [vmem:[#allocation61_spill] sm:$0xff]  ;;  %v15688_v27 = vld [vmem:[#allocation14_spill] sm:$0xff]  ;;  %v15691_v4 = vld [vmem:[#allocation28_spill] sm:$0xff] }
 0x268   :  { %v7962_v22 = vor.u32 %v7961_v12, %v7958_v8  ;;  %v4029_v50 = vadd.f32 %v15683_v54, %v14518_v60  ;;  %v4032_v23 = vadd.f32 %v15685_v43, %v15684_v16  ;;  %v7971_v11 = vor.u32 %v7970_v41, %v7967_v44  ;;  %v15689_v35 = vld [vmem:[#allocation26_spill] sm:$0xff]  ;;  %v15690_v33 = vld [vmem:[#allocation13_spill] sm:$0xff]  ;;  %v14900_v12 = vpop.f32.mrf.mxu0 }
 0x269   :  { %v7954_v14 = vsel %vm11229_vm12, %v7945_v38, %v7953_v5  ;;  %v8318_v31 = vsel %vm11219_vm11, %v9699_v28, %v8317_v32  ;;  %v4030_v30 = vadd.f32 %v15688_v27, %v15687_v26  ;;  %v9647_v38 = vld [vmem:[%s15270_s0 + $0xac] sm:$0x3]  ;;  %v15692_v44 = vld [vmem:[#allocation22_spill] sm:$0xff]  ;;  %v7983_v28 = vshrl.u32 %v9646_v7, 16 }
 0x26a   :  { %v7963_v60 = vrot.slane %v7962_v22, 4  ;;  %v9713_v39 = vcombine.low %v8314_v25, %v8318_v31  ;;  %v14895_v8 = vadd.f32 %v15689_v35, %v4029_v50  ;;  %v14898_v58 = vadd.f32 %v15690_v33, %v4032_v23  ;;  %v15693_v25 = vld [vmem:[#allocation2_spill] sm:$0xff]  ;;  %v14918_v23 = vpop.f32.mrf.mxu1 }
 0x26b   :  { %v14903_v54 = vadd.f32 %v15691_v4, %v4030_v30  ;;  %v7974_v5 = vshrl.u32 %v15692_v44, 16  ;;  %v7977_v41 = vshll.u32 %v15692_v44, 16  ;;  %v7986_v22 = vshll.u32 %v9646_v7, 16  ;;  %v9684_v43 = vld [vmem:[%s15270_s0 + $0xa0] sm:$0xc]  ;;  %15694 = vst [vmem:[#allocation74_spill] sm:$0xff] %v14918_v23  ;;  %v14923_v4 = vpop.f32.mrf.mxu0 }
 0x26c   :  { %v7972_v32 = vsel %vm11229_vm12, %v7963_v60, %v7971_v11  ;;  %10549 = vmatmul.mubr.msk.bf16.gmra.mxu0 %vm319_vm2, %v9713_v39  ;;  %v7992_v50 = vshrl.u32 %v15693_v25, 16  ;;  %v7995_v16 = vshll.u32 %v15693_v25, 16  ;;  %v7985_v30 = vrot.slane %v7983_v28, 5  ;;  %v9685_v11 = vld [vmem:[%s15270_s0 + $0xa8] sm:$0xc]  ;;  %15695 = vst [vmem:[#allocation71_spill] sm:$0xff] %v14923_v4 }
 0x26d   :  { %v9659_v31 = vcombine.low %v7954_v14, %v7972_v32  ;;  %v7976_v26 = vrot.slane %v7974_v5, 5  ;;  %v7979_v27 = vrot.slane %v7977_v41, 6  ;;  %v7988_v60 = vrot.slane %v7986_v22, 6  ;;  %v9648_v32 = vld [vmem:[%s15270_s0 + $0xb4] sm:$0x3]  ;;  %v14929_v22 = vpop.f32.mrf.mxu1 }
 0x26e   :  { %v7994_v39 = vrot.slane %v7992_v50, 5  ;;  %v7997_v35 = vrot.slane %v7995_v16, 6  ;;  %v8001_v33 = vshrl.u32 %v9647_v38, 16  ;;  %v8004_v25 = vshll.u32 %v9647_v38, 16  ;;  %15696 = vst [vmem:[#allocation72_spill] sm:$0xff] %v14929_v22 }
 0x26f   :  { %10529 = vmatmul.mubr.msk.bf16.gmra.mxu1 %vm319_vm2, %v9659_v31  ;;  %v7980_v44 = vor.u32 %v7979_v27, %v7976_v26  ;;  %v9700_v9 = vrot.slane %v9684_v43, 10  ;;  %v8321_v23 = vrot.slane %v9646_v7, 6  ;;  %v7989_v14 = vor.u32 %v7988_v60, %v7985_v30  ;;  %v15697_v27 = vld [vmem:[#allocation36_spill] sm:$0xff]  ;;  %v14937_v60 = vpop.f32.mrf.mxu0 }
 0x270   :  { %v7998_v5 = vor.u32 %v7997_v35, %v7994_v39  ;;  %v8003_v41 = vrot.slane %v8001_v33, 5  ;;  %v9701_v28 = vrot.slane %v9685_v11, 10  ;;  %v8006_v16 = vrot.slane %v8004_v25, 6  ;;  %v15698_v43 = vld [vmem:[#allocation4_spill] sm:$0xff]  ;;  %15699 = vst [vmem:[#allocation73_spill] sm:$0xff] %v14937_v60 }
 0x271   :  { %v7981_v50 = vrot.slane %v7980_v44, 4  ;;  %v8322_v4 = vsel %vm11219_vm11, %v9700_v9, %v8321_v23  ;;  %v8325_v31 = vrot.slane %v9647_v38, 6  ;;  %v4035_v7 = vadd.f32 %v15698_v43, %v15697_v27  ;;  %v9649_v9 = vld [vmem:[%s15270_s0 + $0xbc] sm:$0x3]  ;;  %v15700_v44 = vld [vmem:[#allocation38_spill] sm:$0xff] }
 0x272   :  { %v7999_v26 = vrot.slane %v7998_v5, 4  ;;  %v8010_v30 = vshrl.u32 %v14574_v57, 16  ;;  %v8013_v11 = vshll.u32 %v14574_v57, 16  ;;  %v8007_v35 = vor.u32 %v8006_v16, %v8003_v41  ;;  %v9686_v27 = vld [vmem:[%s15270_s0 + $0xb0] sm:$0xc] }
 0x273   :  { %v7990_v39 = vsel %vm11229_vm12, %v7981_v50, %v7989_v14  ;;  %v8326_v33 = vsel %vm11219_vm11, %v9701_v28, %v8325_v31  ;;  %v8019_v38 = vshrl.u32 %v9648_v32, 16  ;;  %v14947_v25 = vadd.f32 %v15700_v44, %v4035_v7  ;;  %v14952_v14 = vpop.f32.mrf.mxu1 }
 0x274   :  { %v9714_v23 = vcombine.low %v8322_v4, %v8326_v33  ;;  %v8012_v5 = vrot.slane %v8010_v30, 5  ;;  %v8015_v57 = vrot.slane %v8013_v11, 6  ;;  %15701 = vst [vmem:[#allocation75_spill] sm:$0xff] %v14952_v14  ;;  %v8008_v41 = vsel %vm11229_vm12, %v7999_v26, %v8007_v35  ;;  %v9687_v30 = vld [vmem:[%s15270_s0 + $0xb8] sm:$0xc]  ;;  %v14962_v11 = vpop.f32.mrf.mxu0 }
 0x275   :  { %v8021_v28 = vrot.slane %v8019_v38, 5  ;;  %v8022_v50 = vshll.u32 %v9648_v32, 16  ;;  %v8028_v16 = vshrl.u32 %v14581_v42, 16  ;;  %v9660_v31 = vcombine.low %v7990_v39, %v8008_v41  ;;  %15702 = vst [vmem:[#allocation7_spill] sm:$0xff] %v14962_v11 }
 0x276   :  { %10552 = vmatprep.mubr.msk.bf16.mxu0 %vm319_vm2, %v9714_v23  ;;  %v8016_v4 = vor.u32 %v8015_v57, %v8012_v5  ;;  %v8031_v43 = vshll.u32 %v14581_v42, 16  ;;  %v8037_v7 = vshrl.u32 %v9649_v9, 16  ;;  %v8040_v26 = vshll.u32 %v9649_v9, 16  ;;  %v14965_v5 = vpop.f32.mrf.mxu1 }
 0x277   :  { %v8024_v33 = vrot.slane %v8022_v50, 6  ;;  %v8030_v44 = vrot.slane %v8028_v16, 5  ;;  %v9702_v35 = vrot.slane %v9686_v27, 10  ;;  %10532 = vmatprep.mubr.msk.bf16.mxu1 %vm319_vm2, %v9660_v31  ;;  %v8329_v23 = vrot.slane %v9648_v32, 6  ;;  %v15703_v50 = vld [vmem:[#allocation42_spill] sm:$0xff]  ;;  %v15704_v27 = vld [vmem:[#allocation32_spill] sm:$0xff] }
 0x278   :  { %v8017_v38 = vrot.slane %v8016_v4, 4  ;;  %v8033_v39 = vrot.slane %v8031_v43, 6  ;;  %v8039_v41 = vrot.slane %v8037_v7, 5  ;;  %v8042_v57 = vrot.slane %v8040_v26, 6  ;;  %v14973_v4 = vpop.f32.mrf.mxu0 }
 0x279   :  { %v8025_v42 = vor.u32 %v8024_v33, %v8021_v28  ;;  %v9703_v60 = vrot.slane %v9687_v30, 10  ;;  %v8333_v14 = vrot.slane %v9649_v9, 6  ;;  %v8330_v11 = vsel %vm11219_vm11, %v9702_v35, %v8329_v23  ;;  %v15705_v9 = vld [vmem:[#allocation35_spill] sm:$0xff] }
 0x27a   :  { %v8034_v22 = vor.u32 %v8033_v39, %v8030_v44  ;;  %v4033_v16 = vadd.f32 %v15703_v50, %v14614_v21  ;;  %v4036_v31 = vadd.f32 %v15704_v27, %v14617_v18  ;;  %v8043_v43 = vor.u32 %v8042_v57, %v8039_v41  ;;  %v15706_v44 = vld [vmem:[#allocation40_spill] sm:$0xff]  ;;  %v14983_v39 = vpop.f32.mrf.mxu1  ;;  %v15708_v18 = vld [vmem:[#allocation41_spill] sm:$0xff]  ;;  %v15709_v50 = vld [vmem:[#allocation39_spill] sm:$0xff]  ;;  %v15001_v27 = vpop.f32.mrf.mxu0 }
 0x27b   :  { %v8026_v32 = vsel %vm11229_vm12, %v8017_v38, %v8025_v42  ;;  %v8334_v28 = vsel %vm11219_vm11, %v9703_v60, %v8333_v14  ;;  %v4034_v7 = vadd.f32 %v15705_v9, %v14625_v49  ;;  %v15707_v21 = vld [vmem:[#allocation44_spill] sm:$0xff]  ;;  %v4795_v38 = vadd.f32 %v15709_v50, %v14669_v0  ;;  %v15710_v41 = vld [vmem:[#allocation47_spill] sm:$0xff]  ;;  %v15711_v60 = vld [vmem:[#allocation50_spill] sm:$0xff] }
 0x27c   :  { %v8035_v30 = vrot.slane %v8034_v22, 4  ;;  %v9715_v33 = vcombine.low %v8330_v11, %v8334_v28  ;;  %v4323_v26 = vadd.f32 %v15706_v44, %v4033_v16  ;;  %v4326_v35 = vadd.f32 %v15707_v21, %v4036_v31  ;;  %v15712_v22 = vld [vmem:[#allocation52_spill] sm:$0xff]  ;;  %v15713_v42 = vld [vmem:[#allocation54_spill] sm:$0xff]  ;;  %v15714_v16 = vld [vmem:[#allocation9_spill] sm:$0xff]  ;;  %v15011_v50 = vpop.f32.mrf.mxu1 }
 0x27d   :  { %v4324_v23 = vadd.f32 %v15708_v18, %v4034_v7  ;;  %v4793_v10 = vadd.f32 %v15710_v41, %v14715_v1  ;;  %v4796_v14 = vadd.f32 %v15711_v60, %v14718_v61  ;;  %v4794_v11 = vadd.f32 %v15712_v22, %v14721_v6  ;;  %v15715_v31 = vld [vmem:[#allocation48_spill] sm:$0xff]  ;;  %v15716_v61 = vld [vmem:[#allocation45_spill] sm:$0xff]  ;;  %v15726_v22 = vld [vmem:[#allocation58_spill] sm:$0xff] }
 0x27e   :  { %v8044_v49 = vsel %vm11229_vm12, %v8035_v30, %v8043_v43  ;;  %10553 = vmatmul.mubr.msk.bf16.gmra.mxu0 %vm319_vm2, %v9715_v33  ;;  %v4799_v57 = vadd.f32 %v15713_v42, %v14767_v59  ;;  %v4797_v0 = vadd.f32 %v15714_v16, %v14805_v17  ;;  %v5085_v28 = vadd.f32 %v15715_v31, %v4795_v38  ;;  %v15718_v7 = vld [vmem:[#allocation49_spill] sm:$0xff]  ;;  %v15719_v33 = vld [vmem:[#allocation51_spill] sm:$0xff]  ;;  %v15728_v16 = vld [vmem:[#allocation62_spill] sm:$0xff] }
 0x27f   :  { %v9661_v1 = vcombine.low %v8026_v32, %v8044_v49  ;;  %v5083_v9 = vadd.f32 %v15716_v61, %v4793_v10  ;;  %v5086_v43 = vadd.f32 %v15717_v13, %v4796_v14  ;;  %v5084_v30 = vadd.f32 %v15718_v7, %v4794_v11  ;;  %v15720_v6 = vld [vmem:[#allocation53_spill] sm:$0xff]  ;;  %v15721_v59 = vld [vmem:[#allocation3_spill] sm:$0xff]  ;;  %v15732_v7 = vld [vmem:[#allocation16_spill] sm:$0xff] }
 0x280   :  { %v5089_v44 = vadd.f32 %v15719_v33, %v4799_v57  ;;  %v5087_v21 = vadd.f32 %v15720_v6, %v4797_v0  ;;  %v4800_v18 = vadd.f32 %v15721_v59, %v14808_v36  ;;  %v15722_v17 = vld [vmem:[#allocation11_spill] sm:$0xff]  ;;  %v15724_v10 = vld [vmem:[#allocation17_spill] sm:$0xff]  ;;  %v15727_v36 = vld [vmem:[#allocation18_spill] sm:$0xff]  ;;  %v4807_v57 = vadd.f32 %v14589_v62, %v14947_v25  ;;  %v10407_v62 = vpop.f32.mrf.mxu1 }
 0x281   :  { %10533 = vmatmul.mubr.msk.bf16.gmra.mxu1 %vm319_vm2, %v9661_v1  ;;  %v4798_v32 = vadd.f32 %v15722_v17, %v14813_v47  ;;  %v15723_v38 = vld [vmem:[#allocation59_spill] sm:$0xff]  ;;  %v4801_v60 = vadd.f32 %v15724_v10, %v14895_v8  ;;  %v4802_v42 = vadd.f32 %v15727_v36, %v14903_v54  ;;  %v4805_v0 = vadd.f32 %v15728_v16, %v4323_v26  ;;  %v6440_v47 = vpop.f32.mrf.mxu0  ;;  %v15729_v1 = vld [vmem:[#allocation20_spill] sm:$0xff]  ;;  %v15734_v59 = vld [vmem:[#allocation65_spill] sm:$0xff] }
 0x282   :  { %v4803_v41 = vadd.f32 %v15723_v38, %v14857_v53  ;;  %v15725_v14 = vld [vmem:[#allocation55_spill] sm:$0xff]  ;;  %v5090_v11 = vadd.f32 %v15726_v22, %v4800_v18  ;;  %v15730_v53 = vld [vmem:[#allocation57_spill] sm:$0xff]  ;;  %v5097_v18 = vadd.f32 %v15734_v59, %v4807_v57  ;;  %v15737_v25 = vld [vmem:[#allocation66_spill] sm:$0xff]  ;;  %v5298_v57 = vadd.f32 %v14693_v19, %v5087_v21 }
 0x283   :  { %v4804_v49 = vadd.f32 %v15725_v14, %v14898_v58  ;;  %v5088_v31 = vadd.f32 %v15729_v1, %v4798_v32  ;;  %v15731_v13 = vld [vmem:[#allocation15_spill] sm:$0xff]  ;;  %v15733_v58 = vld [vmem:[#allocation60_spill] sm:$0xff]  ;;  %v4806_v26 = vadd.f32 %v15737_v25, %v4324_v23  ;;  %v5296_v14 = vadd.f32 %v14643_v2, %v5085_v28  ;;  %v10426_v16 = vpop.f32.mrf.mxu0  ;;  %v15741_v1 = vld [vmem:[#allocation37_spill] sm:$0xff] }
 0x284   :  { %v5093_v61 = vadd.f32 %v15730_v53, %v4803_v41  ;;  %v5091_v8 = vadd.f32 %v15731_v13, %v4801_v60  ;;  %v5092_v6 = vadd.f32 %v15733_v58, %v4802_v42  ;;  %v15735_v17 = vld [vmem:[#allocation67_spill] sm:$0xff]  ;;  %v5294_v32 = vadd.f32 %v14651_v34, %v5083_v9  ;;  %v15738_v60 = vld [vmem:[#allocation64_spill] sm:$0xff]  ;;  %v15747_v58 = vld [vmem:[#allocation6_spill] sm:$0xff] }
 0x285   :  { %v5094_v33 = vadd.f32 %v15732_v7, %v4804_v49  ;;  %v5095_v54 = vadd.f32 %v15735_v17, %v4805_v0  ;;  %v15736_v38 = vld [vmem:[#allocation63_spill] sm:$0xff]  ;;  %v5297_v41 = vadd.f32 %v14659_v29, %v5086_v43  ;;  %v15739_v49 = vld [vmem:[#allocation25_spill] sm:$0xff]  ;;  %v5300_v42 = vadd.f32 %v14688_v48, %v5089_v44  ;;  %v15742_v23 = vld [vmem:[#allocation68_spill] sm:$0xff]  ;;  %v5974_v48 = vpop.f32.mrf.mxu1 }
 0x286   :  { %v4808_v10 = vadd.f32 %v15736_v38, %v4326_v35  ;;  %v5295_v36 = vadd.f32 %v15739_v49, %v5084_v30  ;;  %v15740_v0 = vld [vmem:[#allocation5_spill] sm:$0xff]  ;;  %v5730_v53 = vadd.f32 %v15741_v1, %v5296_v14  ;;  %v5728_v13 = vadd.f32 %v15742_v23, %v5294_v32  ;;  %v15743_v29 = vld [vmem:[#allocation56_spill] sm:$0xff]  ;;  %v15744_v43 = vld [vmem:[#allocation43_spill] sm:$0xff] }
 0x287   :  { %v5096_v35 = vadd.f32 %v15740_v0, %v4806_v26  ;;  %v5731_v2 = vadd.f32 %v14691_v55, %v5297_v41  ;;  %v5734_v28 = vadd.f32 %v15743_v29, %v5300_v42  ;;  %v5732_v9 = vadd.f32 %v14744_v52, %v5298_v57  ;;  %v15745_v44 = vld [vmem:[#allocation19_spill] sm:$0xff]  ;;  %v15748_v38 = vld [vmem:[#allocation70_spill] sm:$0xff]  ;;  %v6453_v52 = vpop.f32.mrf.mxu0  ;;  %v15749_v26 = vld [vmem:[#allocation21_spill] sm:$0xff] }
 0x288   :  { %v5098_v22 = vadd.f32 %v15738_v60, %v4808_v10  ;;  %v5729_v34 = vadd.f32 %v14712_v37, %v5295_v36  ;;  %v5301_v30 = vadd.f32 %v15744_v43, %v5090_v11  ;;  %v5299_v19 = vadd.f32 %v15745_v44, %v5088_v31  ;;  %v15746_v21 = vld [vmem:[#allocation27_spill] sm:$0xff]  ;;  %v15752_v32 = vld [vmem:[#allocation72_spill] sm:$0xff] }
 0x289   :  { %v5304_v7 = vadd.f32 %v15746_v21, %v5093_v61  ;;  %v5302_v59 = vadd.f32 %v15747_v58, %v5091_v8  ;;  %v5305_v17 = vadd.f32 %v14785_v51, %v5094_v33  ;;  %v5303_v55 = vadd.f32 %v14810_v24, %v5092_v6  ;;  %v15750_v6 = vld [vmem:[#allocation69_spill] sm:$0xff]  ;;  %v15756_v42 = vld [vmem:[#allocation7_spill] sm:$0xff] }
 0x28a   :  { %v5735_v10 = vadd.f32 %v15748_v38, %v5301_v30  ;;  %v5308_v37 = vadd.f32 %v14833_v15, %v5097_v18  ;;  %v5306_v25 = vadd.f32 %v14847_v40, %v5095_v54  ;;  %v5733_v11 = vadd.f32 %v15749_v26, %v5299_v19  ;;  %v15751_v18 = vld [vmem:[#allocation74_spill] sm:$0xff] }
 0x28b   :  { %v5738_v14 = vadd.f32 %v14796_v56, %v5304_v7  ;;  %v5736_v31 = vadd.f32 %v14828_v20, %v5302_v59  ;;  %v5739_v61 = vadd.f32 %v14839_v3, %v5305_v17  ;;  %v5737_v8 = vadd.f32 %v14862_v46, %v5303_v55  ;;  %v10410_v15 = vpop.f32.mrf.mxu1  ;;  %v15753_v56 = vld [vmem:[#allocation75_spill] sm:$0xff] }
 0x28c   :  { %v5742_v51 = vadd.f32 %v14875_v45, %v5308_v37  ;;  %v5740_v33 = vadd.f32 %v14900_v12, %v5306_v25  ;;  %v5309_v24 = vadd.f32 %v14872_v63, %v5098_v22  ;;  %v5307_v40 = vadd.f32 %v15750_v6, %v5096_v35  ;;  %v15754_v20 = vld [vmem:[#allocation71_spill] sm:$0xff]  ;;  %v10427_v12 = vpop.f32.mrf.mxu0  ;;  %v15755_v63 = vld [vmem:[#allocation73_spill] sm:$0xff] }
 0x28d   :  { %v6020_v54 = vadd.f32 %v15751_v18, %v5730_v53  ;;  %v6018_v41 = vadd.f32 %v15752_v32, %v5728_v13  ;;  %v6021_v60 = vadd.f32 %v15753_v56, %v5731_v2  ;;  %v6019_v3 = vadd.f32 %v14965_v5, %v5729_v34  ;;  %v5987_v36 = vpop.f32.mrf.mxu1 }
 0x28e   :  { %v5743_v49 = vadd.f32 %v15754_v20, %v5309_v24  ;;  %v6024_v46 = vadd.f32 %v14983_v39, %v5734_v28  ;;  %v6022_v45 = vadd.f32 %v15011_v50, %v5732_v9  ;;  %v5741_v22 = vadd.f32 %v15755_v63, %v5307_v40  ;;  %v6456_v28 = vpop.f32.mrf.mxu0 }
 0x28f   :  { %v15078_v57 = vadd.f32 %v15756_v42, %v6020_v54  ;;  %v15081_v0 = vadd.f32 %v14973_v4, %v6018_v41  ;;  %v15084_v35 = vadd.f32 %v15001_v27, %v6021_v60  ;;  %v15086_v1 = vadd.f32 %v6440_v47, %v6019_v3  ;;  %v10411_v23 = vpop.f32.mrf.mxu1 }
 0x290   :  { %v6506_v5 = vadd.f32 %v10426_v16, %v6024_v46  ;;  %v6504_v53 = vadd.f32 %v6453_v52, %v6022_v45  ;;  %v6025_v39 = vadd.f32 %v10407_v62, %v5735_v10  ;;  %v6023_v50 = vadd.f32 %v5974_v48, %v5733_v11 }
 0x291   :  { %v6028_v13 = vadd.f32 %v10410_v15, %v5738_v14  ;;  %v6026_v2 = vadd.f32 %v5987_v36, %v5736_v31  ;;  %v6029_v34 = vadd.f32 %v10411_v23, %v5739_v61  ;;  %v5990_v9 = vpop.f32.mrf.mxu1 }
 0x292   :  { %v6507_v29 = vadd.f32 %v10427_v12, %v6025_v39  ;;  %v6505_v43 = vadd.f32 %v6456_v28, %v6023_v50  ;;  %v6027_v30 = vadd.f32 %v5990_v9, %v5737_v8 }
 0x295   :  { %v10430_v4 = vpop.f32.mrf.mxu0 }
 0x296   :  { %v6510_v44 = vadd.f32 %v10430_v4, %v6028_v13 }
 0x297   :  { %v6469_v19 = vpop.f32.mrf.mxu0 }
 0x298   :  { %v6508_v27 = vadd.f32 %v6469_v19, %v6026_v2 }
 0x299   :  { %v10431_v21 = vpop.f32.mrf.mxu0 }
 0x29a   :  { %v6511_v47 = vadd.f32 %v10431_v21, %v6029_v34 }
 0x29b   :  { %v6472_v7 = vpop.f32.mrf.mxu0 }
 0x29c   :  { %v6509_v16 = vadd.f32 %v6472_v7, %v6027_v30 }
 0x29d   :  { %v10414_v58 = vpop.f32.mrf.mxu1 }
 0x29e   :  { %v6032_v62 = vadd.f32 %v10414_v58, %v5742_v51 }
 0x29f   :  { %v6003_v59 = vpop.f32.mrf.mxu1 }
 0x2a0   :  { %v6030_v48 = vadd.f32 %v6003_v59, %v5740_v33 }
 0x2a1   :  { %v10415_v17 = vpop.f32.mrf.mxu1 }
 0x2a2   :  { %v6033_v38 = vadd.f32 %v10415_v17, %v5743_v49 }
 0x2a3   :  { %v6006_v10 = vpop.f32.mrf.mxu1 }
 0x2a4   :  { %v6031_v55 = vadd.f32 %v6006_v10, %v5741_v22 }
 0x2a7   :  { %v10434_v37 = vpop.f32.mrf.mxu0 }
 0x2a8   :  { %v6514_v25 = vadd.f32 %v10434_v37, %v6032_v62 }
 0x2a9   :  { %v6485_v52 = vpop.f32.mrf.mxu0 }
 0x2aa   :  { %v15088_v26 = vpop.f32.mrf.mxu1  ;;  %v6512_v11 = vadd.f32 %v6485_v52, %v6030_v48 }
 0x2ab   :  { %v10435_v14 = vpop.f32.mrf.mxu0 }
 0x2ac   :  { %v15090_v31 = vpop.f32.mrf.mxu1  ;;  %v6515_v61 = vadd.f32 %v10435_v14, %v6033_v38 }
 0x2ad   :  { %v6488_v8 = vpop.f32.mrf.mxu0 }
 0x2ae   :  { %v15092_v24 = vpop.f32.mrf.mxu1  ;;  %v6513_v51 = vadd.f32 %v6488_v8, %v6031_v55 }
 0x2af   :  { %v15094_v15 = vpop.f32.mrf.mxu0 }
 0x2b0   :  { %v15096_v33 = vpop.f32.mrf.mxu1 }
 0x2b1   :  { %v15098_v6 = vpop.f32.mrf.mxu0 }
 0x2b2   :  { %v10446_v40 = vpop.f32.mrf.mxu1 }
 0x2b3   :  { %v6796_v18 = vadd.f32 %v10446_v40, %v6506_v5  ;;  %v15100_v54 = vpop.f32.mrf.mxu0 }
 0x2b4   :  { %v6743_v32 = vpop.f32.mrf.mxu1 }
 0x2b5   :  { %v6794_v41 = vadd.f32 %v6743_v32, %v6504_v53  ;;  %v15102_v56 = vpop.f32.mrf.mxu0 }
 0x2b6   :  { %v10447_v60 = vpop.f32.mrf.mxu1 }
 0x2b7   :  { %v6797_v20 = vadd.f32 %v10447_v60, %v6507_v29  ;;  %v10466_v49 = vpop.f32.mrf.mxu0 }
 0x2b8   :  { %v6746_v3 = vpop.f32.mrf.mxu1  ;;  %v15104_v46 = vadd.f32 %v10466_v49, %v6796_v18 }
 0x2b9   :  { %v6795_v45 = vadd.f32 %v6746_v3, %v6505_v43  ;;  %v6954_v12 = vpop.f32.mrf.mxu0 }
 0x2ba   :  { %v10450_v36 = vpop.f32.mrf.mxu1  ;;  %v15106_v63 = vadd.f32 %v6954_v12, %v6794_v41 }
 0x2bb   :  { %v6800_v22 = vadd.f32 %v10450_v36, %v6510_v44  ;;  %v10467_v42 = vpop.f32.mrf.mxu0 }
 0x2bc   :  { %v6759_v5 = vpop.f32.mrf.mxu1  ;;  %v15108_v39 = vadd.f32 %v10467_v42, %v6797_v20 }
 0x2bd   :  { %v6798_v23 = vadd.f32 %v6759_v5, %v6508_v27  ;;  %v6957_v53 = vpop.f32.mrf.mxu0 }
 0x2be   :  { %v10451_v50 = vpop.f32.mrf.mxu1  ;;  %v15110_v13 = vadd.f32 %v6957_v53, %v6795_v45 }
 0x2bf   :  { %v6801_v2 = vadd.f32 %v10451_v50, %v6511_v47  ;;  %v10470_v34 = vpop.f32.mrf.mxu0 }
 0x2c0   :  { %v6762_v29 = vpop.f32.mrf.mxu1  ;;  %v15112_v28 = vadd.f32 %v10470_v34, %v6800_v22 }
 0x2c1   :  { %v6799_v9 = vadd.f32 %v6762_v29, %v6509_v16  ;;  %v6970_v43 = vpop.f32.mrf.mxu0 }
 0x2c2   :  { %v10454_v30 = vpop.f32.mrf.mxu1  ;;  %v15114_v4 = vadd.f32 %v6970_v43, %v6798_v23 }
 0x2c3   :  { %v6804_v44 = vadd.f32 %v10454_v30, %v6514_v25  ;;  %v10471_v19 = vpop.f32.mrf.mxu0 }
 0x2c4   :  { %v6775_v21 = vpop.f32.mrf.mxu1  ;;  %v15116_v7 = vadd.f32 %v10471_v19, %v6801_v2  ;;  %v6792_v19 = vadd.f32 %v15088_v26, %v15078_v57 }
 0x2c5   :  { %v6802_v27 = vadd.f32 %v6775_v21, %v6512_v11  ;;  %v6973_v58 = vpop.f32.mrf.mxu0 }
 0x2c6   :  { %v10455_v62 = vpop.f32.mrf.mxu1  ;;  %v15118_v59 = vadd.f32 %v6973_v58, %v6799_v9 }
 0x2c7   :  { %v6805_v47 = vadd.f32 %v10455_v62, %v6515_v61  ;;  %v10474_v48 = vpop.f32.mrf.mxu0  ;;  %v7003_v62 = vadd.f32 %v15094_v15, %v6792_v19 }
 0x2c8   :  { %v6778_v17 = vpop.f32.mrf.mxu1  ;;  %v15120_v38 = vadd.f32 %v10474_v48, %v6804_v44 }
 0x2c9   :  { %v6803_v16 = vadd.f32 %v6778_v17, %v6513_v51  ;;  %v6986_v10 = vpop.f32.mrf.mxu0 }
 0x2ca   :  { %v15122_v55 = vadd.f32 %v6986_v10, %v6802_v27  ;;  %v6790_v27 = vadd.f32 %v15090_v31, %v15081_v0 }
 0x2cb   :  { %v10475_v37 = vpop.f32.mrf.mxu0 }
 0x2cc   :  { %v15124_v25 = vadd.f32 %v10475_v37, %v6805_v47  ;;  %v10482_v52 = vpop.f32.mrf.mxu1  ;;  %v6793_v47 = vadd.f32 %v15092_v24, %v15084_v35  ;;  %v7001_v17 = vadd.f32 %v15098_v6, %v6790_v27 }
 0x2cd   :  { %v6989_v14 = vpop.f32.mrf.mxu0  ;;  %v7437_v57 = vadd.f32 %v10482_v52, %v7003_v62 }
 0x2ce   :  { %v15126_v8 = vadd.f32 %v6989_v14, %v6803_v16  ;;  %v7372_v40 = vpop.f32.mrf.mxu1  ;;  %v6791_v16 = vadd.f32 %v15096_v33, %v15086_v1  ;;  %v7004_v10 = vadd.f32 %v15100_v54, %v6793_v47  ;;  %v15191_v33 = vld [vmem:[%s15271_s2] ss:$0 sm:$0xff] }
 0x2cf   :  { %v10502_v11 = vpop.f32.mrf.mxu0  ;;  %v7435_v0 = vadd.f32 %v7372_v40, %v7001_v17 }
 0x2d0   :  { %15757 = vst [vmem:[#allocation8_spill] sm:$0xff] %v15126_v8  ;;  %v10483_v32 = vpop.f32.mrf.mxu1  ;;  %v7002_v37 = vadd.f32 %v15102_v56, %v6791_v16  ;;  %v7727_v15 = vadd.f32 %v10502_v11, %v7437_v57 }
 0x2d1   :  { %v7662_v18 = vpop.f32.mrf.mxu0  ;;  %v7438_v14 = vadd.f32 %v10483_v32, %v7004_v10 }
 0x2d2   :  { %v7375_v60 = vpop.f32.mrf.mxu1  ;;  %v7725_v24 = vadd.f32 %v7662_v18, %v7435_v0 }
 0x2d3   :  { %v10503_v61 = vpop.f32.mrf.mxu0 }
 0x2d4   :  { %v7728_v27 = vadd.f32 %v10503_v61, %v7438_v14 }
 0x2d5   :  { %v7665_v41 = vpop.f32.mrf.mxu0 }
 0x2d8   :  { %v15128_v20 = vpop.f32.mrf.mxu0 }
 0x2da   :  { %v15132_v49 = vpop.f32.mrf.mxu0 }
 0x2db   :  { %v15130_v51 = vpop.f32.mrf.mxu1 }
 0x2dc   :  { %v15136_v45 = vpop.f32.mrf.mxu0 }
 0x2dd   :  { %v15134_v3 = vpop.f32.mrf.mxu1 }
 0x2de   :  { %v15140_v36 = vpop.f32.mrf.mxu0 }
 0x2df   :  { %v15138_v12 = vpop.f32.mrf.mxu1 }
 0x2e1   :  { %v15142_v22 = vpop.f32.mrf.mxu1 }
 0x2e7   :  { %v15144_v42 = vpop.f32.mrf.mxu0 }
 0x2e9   :  { %v15148_v23 = vpop.f32.mrf.mxu0 }
 0x2ea   :  { %v15146_v5 = vpop.f32.mrf.mxu1 }
 0x2eb   :  { %v15152_v50 = vpop.f32.mrf.mxu0 }
 0x2ec   :  { %v15150_v53 = vpop.f32.mrf.mxu1 }
 0x2ed   :  { %v15156_v34 = vpop.f32.mrf.mxu0 }
 0x2ee   :  { %v15154_v2 = vpop.f32.mrf.mxu1 }
 0x2f0   :  { %v15158_v29 = vpop.f32.mrf.mxu1 }
 0x2f6   :  { %v15160_v9 = vpop.f32.mrf.mxu0 }
 0x2f8   :  { %v15164_v30 = vpop.f32.mrf.mxu0 }
 0x2fa   :  { %v15162_v43 = vpop.f32.mrf.mxu1  ;;  %v15170_v21 = vpop.f32.mrf.mxu0 }
 0x2fb   :  { %15758 = vst [vmem:[#allocation76_spill] sm:$0xff] %v15170_v21 }
 0x2fc   :  { %v15166_v44 = vpop.f32.mrf.mxu1  ;;  %v15179_v48 = vpop.f32.mrf.mxu0 }
 0x2fd   :  { %15759 = vst [vmem:[#allocation23_spill] sm:$0xff] %v15179_v48  ;;  %v7436_v48 = vadd.f32 %v7375_v60, %v7002_v37 }
 0x2fe   :  { %v15174_v58 = vpop.f32.mrf.mxu1 }
 0x2ff   :  { %v7726_v40 = vadd.f32 %v7665_v41, %v7436_v48  ;;  %v7441_v41 = vadd.f32 %v15130_v51, %v15104_v46 }
 0x300   :  { %v15184_v26 = vpop.f32.mrf.mxu1 }
 0x301   :  { %v7731_v14 = vadd.f32 %v15128_v20, %v7441_v41  ;;  %v7446_v41 = vadd.f32 %v15154_v2, %v15116_v7 }
 0x308   :  { %v10542_v31 = vpop.f32.mrf.mxu0 }
 0x30a   :  { %v8434_v35 = vpop.f32.mrf.mxu0 }
 0x30b   :  { %v10522_v19 = vpop.f32.mrf.mxu1 }
 0x30c   :  { %v8209_v21 = vadd.f32 %v10522_v19, %v7727_v15  ;;  %v10543_v52 = vpop.f32.mrf.mxu0  ;;  %v7442_v19 = vadd.f32 %v15138_v12, %v15108_v39 }
 0x30d   :  { %v8144_v6 = vpop.f32.mrf.mxu1 }
 0x30e   :  { %v8499_v8 = vadd.f32 %v10542_v31, %v8209_v21  ;;  %v8207_v1 = vadd.f32 %v8144_v6, %v7725_v24  ;;  %v8437_v47 = vpop.f32.mrf.mxu0  ;;  %v7732_v6 = vadd.f32 %v15136_v45, %v7442_v19 }
 0x30f   :  { %v10523_v54 = vpop.f32.mrf.mxu1 }
 0x310   :  { %v8497_v56 = vadd.f32 %v8434_v35, %v8207_v1  ;;  %v8210_v11 = vadd.f32 %v10523_v54, %v7728_v27  ;;  %v8522_v62 = vadd.f32 %v15191_v33, %v8499_v8  ;;  %v7439_v8 = vadd.f32 %v15134_v3, %v15106_v63 }
 0x311   :  { %v8147_v32 = vpop.f32.mrf.mxu1  ;;  %v7440_v63 = vadd.f32 %v15142_v22, %v15110_v13 }
 0x312   :  { %v8500_v18 = vadd.f32 %v10543_v52, %v8210_v11  ;;  %v8208_v60 = vadd.f32 %v8147_v32, %v7726_v40  ;;  %v8520_v61 = vadd.f32 %v15191_v33, %v8497_v56  ;;  %v8538_v16 = vmax.f32 %v8522_v62, 0.0 }
 0x313   :  { %v7729_v35 = vadd.f32 %v15132_v49, %v7439_v8  ;;  %v7730_v39 = vadd.f32 %v15140_v36, %v7440_v63  ;;  %v7445_v36 = vadd.f32 %v15146_v5, %v15112_v28 }
 0x314   :  { %v8523_v21 = vadd.f32 %v15191_v33, %v8500_v18  ;;  %v8498_v17 = vadd.f32 %v8437_v47, %v8208_v60  ;;  %v8536_v48 = vmax.f32 %v8520_v61, 0.0 }
 0x316   :  { %v8539_v57 = vmax.f32 %v8523_v21, 0.0  ;;  %v8521_v10 = vadd.f32 %v15191_v33, %v8498_v17  ;;  %v7443_v17 = vadd.f32 %v15150_v53, %v15114_v4  ;;  %v7444_v4 = vadd.f32 %v15158_v29, %v15118_v59 }
 0x318   :  { %v9767_v0 = vpack.c.bf16 %v8539_v57, %v8538_v16  ;;  %v8537_v31 = vmax.f32 %v8521_v10, 0.0  ;;  %v7735_v10 = vadd.f32 %v15144_v42, %v7445_v36  ;;  %v7734_v7 = vadd.f32 %v15156_v34, %v7444_v4 }
 0x319   :  { %v7449_v34 = vadd.f32 %v15162_v43, %v15120_v38 }
 0x31a   :  { %9799 = vst [vmem:[%s15272_s3 + $0x8] sm:$0xff] %v9767_v0   ;;  %v9762_v37 = vpack.c.bf16 %v8537_v31, %v8536_v48  ;;  %v10546_v15 = vpop.f32.mrf.mxu0  ;;  %v7733_v48 = vadd.f32 %v15148_v23, %v7443_v17  ;;  %v7736_v31 = vadd.f32 %v15152_v50, %v7446_v41 }
 0x31c   :  { %9763 = vst [vmem:[%s15272_s3] sm:$0xff] %v9762_v37   ;;  %v8450_v51 = vpop.f32.mrf.mxu0 }
 0x31d   :  { %v10526_v46 = vpop.f32.mrf.mxu1 }
 0x31e   :  { %v8213_v3 = vadd.f32 %v10526_v46, %v7731_v14  ;;  %v10547_v54 = vpop.f32.mrf.mxu0 }
 0x31f   :  { %v8160_v24 = vpop.f32.mrf.mxu1 }
 0x320   :  { %v8503_v27 = vadd.f32 %v10546_v15, %v8213_v3  ;;  %v8211_v20 = vadd.f32 %v8160_v24, %v7729_v35  ;;  %v8453_v32 = vpop.f32.mrf.mxu0 }
 0x321   :  { %v10527_v1 = vpop.f32.mrf.mxu1 }
 0x322   :  { %v8501_v12 = vadd.f32 %v8450_v51, %v8211_v20  ;;  %v8214_v52 = vadd.f32 %v10527_v1, %v7732_v6  ;;  %v8526_v56 = vadd.f32 %v15191_v33, %v8503_v27  ;;  %v7447_v1 = vadd.f32 %v15166_v44, %v15122_v55  ;;  %v15760_v55 = vld [vmem:[#allocation8_spill] sm:$0xff] }
 0x323   :  { %v8163_v40 = vpop.f32.mrf.mxu1  ;;  %v7448_v44 = vadd.f32 %v15184_v26, %v15760_v55 }
 0x324   :  { %v8504_v11 = vadd.f32 %v10547_v54, %v8214_v52  ;;  %v8212_v49 = vadd.f32 %v8163_v40, %v7730_v39  ;;  %v8524_v13 = vadd.f32 %v15191_v33, %v8501_v12  ;;  %v8542_v45 = vmax.f32 %v8526_v56, 0.0 }
 0x325   :  { %v7739_v12 = vadd.f32 %v15160_v9, %v7449_v34  ;;  %v7450_v52 = vadd.f32 %v15174_v58, %v15124_v25  ;;  %v7737_v40 = vadd.f32 %v15164_v30, %v7447_v1  ;;  %v15762_v25 = vld [vmem:[#allocation23_spill] sm:$0xff] }
 0x326   :  { %v8527_v22 = vadd.f32 %v15191_v33, %v8504_v11  ;;  %v8502_v62 = vadd.f32 %v8453_v32, %v8212_v49  ;;  %v8540_v47 = vmax.f32 %v8524_v13, 0.0  ;;  %v15761_v49 = vld [vmem:[#allocation76_spill] sm:$0xff]  ;;  %v7738_v58 = vadd.f32 %v15762_v25, %v7448_v44 }
 0x327   :  { %v7740_v32 = vadd.f32 %v15761_v49, %v7450_v52 }
 0x328   :  { %v8543_v18 = vmax.f32 %v8527_v22, 0.0  ;;  %v8525_v60 = vadd.f32 %v15191_v33, %v8502_v62 }
 0x32a   :  { %v9777_v61 = vpack.c.bf16 %v8543_v18, %v8542_v45  ;;  %v8541_v21 = vmax.f32 %v8525_v60, 0.0 }
 0x32c   :  { %9801 = vst [vmem:[%s15272_s3 + $0x18] sm:$0xff] %v9777_v61   ;;  %v9772_v16 = vpack.c.bf16 %v8541_v21, %v8540_v47  ;;  %v10550_v57 = vpop.f32.mrf.mxu0 }
 0x32e   :  { %9800 = vst [vmem:[%s15272_s3 + $0x10] sm:$0xff] %v9772_v16   ;;  %v8466_v5 = vpop.f32.mrf.mxu0 }
 0x32f   :  { %v10530_v28 = vpop.f32.mrf.mxu1 }
 0x330   :  { %v8217_v53 = vadd.f32 %v10530_v28, %v7735_v10  ;;  %v10551_v15 = vpop.f32.mrf.mxu0 }
 0x331   :  { %v8176_v0 = vpop.f32.mrf.mxu1 }
 0x332   :  { %v8507_v8 = vadd.f32 %v10550_v57, %v8217_v53  ;;  %v8215_v42 = vadd.f32 %v8176_v0, %v7733_v48  ;;  %v8469_v35 = vpop.f32.mrf.mxu0 }
 0x333   :  { %v10531_v37 = vpop.f32.mrf.mxu1 }
 0x334   :  { %v8505_v2 = vadd.f32 %v8466_v5, %v8215_v42  ;;  %v8218_v14 = vadd.f32 %v10531_v37, %v7736_v31  ;;  %v8530_v46 = vadd.f32 %v15191_v33, %v8507_v8 }
 0x335   :  { %v8179_v19 = vpop.f32.mrf.mxu1 }
 0x336   :  { %v8508_v51 = vadd.f32 %v10551_v15, %v8218_v14  ;;  %v8216_v23 = vadd.f32 %v8179_v19, %v7734_v7  ;;  %v8528_v59 = vadd.f32 %v15191_v33, %v8505_v2  ;;  %v8546_v50 = vmax.f32 %v8530_v46, 0.0 }
 0x338   :  { %v8531_v29 = vadd.f32 %v15191_v33, %v8508_v51  ;;  %v8506_v63 = vadd.f32 %v8469_v35, %v8216_v23  ;;  %v8544_v6 = vmax.f32 %v8528_v59, 0.0 }
 0x33a   :  { %v8547_v3 = vmax.f32 %v8531_v29, 0.0  ;;  %v8529_v24 = vadd.f32 %v15191_v33, %v8506_v63 }
 0x33c   :  { %v9787_v27 = vpack.c.bf16 %v8547_v3, %v8546_v50  ;;  %v8545_v20 = vmax.f32 %v8529_v24, 0.0 }
 0x33e   :  { %9803 = vst [vmem:[%s15272_s3 + $0x28] sm:$0xff] %v9787_v27   ;;  %v9782_v54 = vpack.c.bf16 %v8545_v20, %v8544_v6  ;;  %v10554_v39 = vpop.f32.mrf.mxu0 }
 0x340   :  { %9802 = vst [vmem:[%s15272_s3 + $0x20] sm:$0xff] %v9782_v54   ;;  %v8482_v43 = vpop.f32.mrf.mxu0 }
 0x341   :  { %v10534_v38 = vpop.f32.mrf.mxu1 }
 0x342   :  { %v8221_v56 = vadd.f32 %v10534_v38, %v7739_v12  ;;  %v10555_v62 = vpop.f32.mrf.mxu0 }
 0x343   :  { %v8192_v11 = vpop.f32.mrf.mxu1 }
 0x344   :  { %v8511_v13 = vadd.f32 %v10554_v39, %v8221_v56  ;;  %v8219_v9 = vadd.f32 %v8192_v11, %v7737_v40  ;;  %v8485_v61 = vpop.f32.mrf.mxu0 }
 0x345   :  { %v10535_v22 = vpop.f32.mrf.mxu1 }
 0x346   :  { %v8509_v45 = vadd.f32 %v8482_v43, %v8219_v9  ;;  %v8222_v18 = vadd.f32 %v10535_v22, %v7740_v32  ;;  %v8534_v36 = vadd.f32 %v15191_v33, %v8511_v13 }
 0x347   :  { %v8195_v60 = vpop.f32.mrf.mxu1 }
 0x348   :  { %v8512_v47 = vadd.f32 %v10555_v62, %v8222_v18  ;;  %v8220_v30 = vadd.f32 %v8195_v60, %v7738_v58  ;;  %v8532_v26 = vadd.f32 %v15191_v33, %v8509_v45  ;;  %v8550_v16 = vmax.f32 %v8534_v36, 0.0 }
 0x34a   :  { %v8535_v21 = vadd.f32 %v15191_v33, %v8512_v47  ;;  %v8510_v17 = vadd.f32 %v8485_v61, %v8220_v30  ;;  %v8548_v41 = vmax.f32 %v8532_v26, 0.0 }
 0x34c   :  { %v8551_v57 = vmax.f32 %v8535_v21, 0.0  ;;  %v8533_v10 = vadd.f32 %v15191_v33, %v8510_v17 }
 0x34e   :  { %v9797_v28 = vpack.c.bf16 %v8551_v57, %v8550_v16  ;;  %v8549_v5 = vmax.f32 %v8533_v10, 0.0 }
 0x350   :  { %9805 = vst [vmem:[%s15272_s3 + $0x38] sm:$0xff] %v9797_v28   ;;  %v9792_v48 = vpack.c.bf16 %v8549_v5, %v8548_v41 }
 0x352   :  { %9804 = vst [vmem:[%s15272_s3 + $0x30] sm:$0xff] %v9792_v48  }

</bundles_post_ra>
